<compile_context>
chip_gen: v5e
topology: v5e:2x2
jax: 0.10.0
libtpu: 0.0.40
codegen_flags: <defaults>
</compile_context>

<pallas_src>
import jax
import jax.numpy as jnp
import numpy as np
from jax import lax
from jax.experimental import pallas as pl
from jax.experimental.pallas import tpu as pltpu

# Static problem sizes (16x16 input view, matching the module's conv stack).
IN_C, H_IN, W_IN = 4, 16, 16
C1 = 8              # conv1 out channels
H1, W1 = 16, 16     # conv1 output (padding=1, stride=1)
HP1, WP1 = 7, 7     # MaxPool2d(4,2): floor((16-4)/2)+1 = 7
C2 = 8
H2, W2 = 8, 8       # conv2 computed on an 8x8 grid (valid region is 7x7)
HP2, WP2 = 2, 2     # MaxPool2d(4,2): floor((7-4)/2)+1 = 2
FLAT = C2 * HP2 * WP2   # 32

# Images per grid step (see header note on per-generation tuning).
MAX_BATCH_BLOCK = 64


def _pad_hw(x, top, bottom, left, right):
    """Zero-pad dims 1 (H, untiled) and 2 (W, sublane) of an NHWC value."""
    b, h, w, c = x.shape
    dt = x.dtype
    parts = []
    if top:
        parts.append(jnp.zeros((b, top, w, c), dt))
    parts.append(x)
    if bottom:
        parts.append(jnp.zeros((b, bottom, w, c), dt))
    x = jnp.concatenate(parts, axis=1)
    hh = h + top + bottom
    parts = []
    if left:
        parts.append(jnp.zeros((b, hh, left, c), dt))
    parts.append(x)
    if right:
        parts.append(jnp.zeros((b, hh, right, c), dt))
    return jnp.concatenate(parts, axis=2)


def _conv3x3_relu(xp, w_mat, bias, h_out, w_out):
    """3x3 stride-1 conv + bias + ReLU via batched im2col matmul on the MXU.

    xp:    (B, h_out+2, w_out+2, cin) zero-padded NHWC block
    w_mat: (9*cin, cout)  weights ordered ((dy, dx, cin) -> cout)
    bias:  (1, cout)
    """
    b = xp.shape[0]
    cin = xp.shape[3]
    cout = w_mat.shape[1]
    patches = [xp[:, dy:dy + h_out, dx:dx + w_out, :]
               for dy in range(3) for dx in range(3)]
    pm = jnp.concatenate(patches, axis=-1)             # (B, h, w, 9*cin)
    # Layout-preserving collapse (second-minor dim is a multiple of 8).
    pm = pm.reshape(b * h_out * w_out, 9 * cin)
    y = jnp.dot(pm, w_mat, preferred_element_type=jnp.float32) + bias
    y = jnp.maximum(y, 0.0)
    return y.reshape(b, h_out, w_out, cout)


def _maxpool_4_2(x, hp, wp):
    """Separable MaxPool2d(kernel=4, stride=2) on NHWC x -> (B, hp, wp, C).

    out[:, i, j] = max(x[:, 2i:2i+4, 2j:2j+4]); rows/cols >= 2*hp+2 / 2*wp+2
    are never read, so conv2's junk row/col 7 stays untouched.
    """
    # H direction (untiled axis): 4-wide window max per output row.
    rows = []
    for i in range(hp):
        r0 = jnp.maximum(x[:, 2 * i + 0:2 * i + 1], x[:, 2 * i + 1:2 * i + 2])
        r1 = jnp.maximum(x[:, 2 * i + 2:2 * i + 3], x[:, 2 * i + 3:2 * i + 4])
        rows.append(jnp.maximum(r0, r1))               # (B, 1, W, C)
    t = jnp.concatenate(rows, axis=1)                  # (B, hp, W, C)
    # W direction (sublane axis): 4-wide window max per output column.
    cols = []
    for j in range(wp):
        c0 = jnp.maximum(t[:, :, 2 * j + 0:2 * j + 1, :],
                         t[:, :, 2 * j + 1:2 * j + 2, :])
        c1 = jnp.maximum(t[:, :, 2 * j + 2:2 * j + 3, :],
                         t[:, :, 2 * j + 3:2 * j + 4, :])
        cols.append(jnp.maximum(c0, c1))               # (B, hp, 1, C)
    return jnp.concatenate(cols, axis=2)               # (B, hp, wp, C)


def _cnn_encoder_kernel(x_ref, w1_ref, b1_ref, w2_ref, b2_ref, out_ref):
    x = x_ref[...]                                                # (B, 16, 16, 4)

    # conv1 + ReLU (zero padding built in registers, no wrapper pad / scratch)
    xp1 = _pad_hw(x, 1, 1, 1, 1)                                  # (B, 18, 18, 4)
    h1 = _conv3x3_relu(xp1, w1_ref[...], b1_ref[...], H1, W1)     # (B, 16, 16, 8)

    # maxpool(4,2) -> (B, 7, 7, 8)
    p1 = _maxpool_4_2(h1, HP1, WP1)

    # conv2 + ReLU on an 8x8 grid: pad the 7x7 map to 10x10 so every 3x3
    # window is in range; output row/col 7 come from the zero rows and are
    # never read by the second pool (valid region is 7x7).
    xp2 = _pad_hw(p1, 1, 2, 1, 2)                                 # (B, 10, 10, 8)
    h2 = _conv3x3_relu(xp2, w2_ref[...], b2_ref[...], H2, W2)     # (B, 8, 8, 8)

    # maxpool(4,2) on the valid 7x7 region -> (B, 2, 2, 8)
    out_ref[...] = _maxpool_4_2(h2, HP2, WP2)


@jax.jit
def cnn_encoder_forward(x_nchw, params):
    n = x_nchw.shape[0]
    b_blk = min(MAX_BATCH_BLOCK, n)
    n_blocks = -(-n // b_blk)
    n_pad = n_blocks * b_blk

    # Single layout pass: NCHW -> NHWC (im2col wants channels on the lane
    # axis).  Spatial zero padding now happens inside the kernel.
    x = jnp.transpose(x_nchw, (0, 2, 3, 1)).astype(jnp.float32)
    if n_pad != n:  # zero-pad the last partial batch block; sliced off below
        x = jnp.pad(x, ((0, n_pad - n), (0, 0), (0, 0), (0, 0)))

    # PyTorch conv weights are (Cout, Cin, kh, kw); the im2col matrix wants
    # rows ordered (dy, dx, cin) to match the patch concatenation above.
    w1m = jnp.transpose(params["w1"], (2, 3, 1, 0)).reshape(9 * IN_C, C1)
    w2m = jnp.transpose(params["w2"], (2, 3, 1, 0)).reshape(9 * C1, C2)
    w1m = w1m.astype(jnp.float32)
    w2m = w2m.astype(jnp.float32)
    b1 = params["b1"].reshape(1, C1).astype(jnp.float32)
    b2 = params["b2"].reshape(1, C2).astype(jnp.float32)

    out_nhwc = pl.pallas_call(
        _cnn_encoder_kernel,
        out_shape=jax.ShapeDtypeStruct((n_pad, HP2, WP2, C2), jnp.float32),
        grid_spec=pltpu.PrefetchScalarGridSpec(
            num_scalar_prefetch=0,
            grid=(n_blocks,),
            in_specs=[
                pl.BlockSpec((b_blk, H_IN, W_IN, IN_C),
                             lambda i: (i, 0, 0, 0)),
                pl.BlockSpec((9 * IN_C, C1), lambda i: (0, 0)),
                pl.BlockSpec((1, C1), lambda i: (0, 0)),
                pl.BlockSpec((9 * C1, C2), lambda i: (0, 0)),
                pl.BlockSpec((1, C2), lambda i: (0, 0)),
            ],
            out_specs=pl.BlockSpec((b_blk, HP2, WP2, C2),
                                   lambda i: (i, 0, 0, 0)),
        ),
        compiler_params=pltpu.CompilerParams(
            dimension_semantics=("parallel",)),
    )(x, w1m, b1, w2m, b2)

    # nn.Flatten() on NCHW flattens channel-major: tiny (N, 32) fixup.
    out = jnp.transpose(out_nhwc, (0, 3, 1, 2)).reshape(n_pad, FLAT)
    return out[:n]


def reference_forward(x, params):
    """Pure-JAX (XLA) reference matching the PyTorch module semantics."""
    def conv(z, w, b):
        y = lax.conv_general_dilated(
            z, w, window_strides=(1, 1), padding=((1, 1), (1, 1)),
            dimension_numbers=("NCHW", "OIHW", "NCHW"))
        return jnp.maximum(y + b[None, :, None, None], 0.0)

    def pool(z):
        return lax.reduce_window(z, -jnp.inf, lax.max,
                                 (1, 1, 4, 4), (1, 1, 2, 2), "VALID")

    y = pool(conv(x, params["w1"], params["b1"]))
    y = pool(conv(y, params["w2"], params["b2"]))
    return y.reshape(x.shape[0], -1)


if __name__ == "__main__":
    key = jax.random.PRNGKey(0)
    k1, k2, k3, k4, kx = jax.random.split(key, 5)
    # Deterministic synthetic parameters (shapes from the module's __init__).
    params = {
        "w1": 0.1 * jax.random.normal(k1, (C1, IN_C, 3, 3), jnp.float32),
        "b1": 0.1 * jax.random.normal(k2, (C1,), jnp.float32),
        "w2": 0.1 * jax.random.normal(k3, (C2, IN_C * 2, 3, 3), jnp.float32)[:, :C1],
        "b2": 0.1 * jax.random.normal(k4, (C2,), jnp.float32),
    }
    # (keep exact conv2 weight shape (C2, C1, 3, 3))
    params["w2"] = 0.1 * jax.random.normal(k3, (C2, C1, 3, 3), jnp.float32)

    x = jax.random.normal(kx, (2, IN_C, H_IN, W_IN), jnp.float32)

    out = jax.block_until_ready(cnn_encoder_forward(x, params))
    ref = jax.block_until_ready(reference_forward(x, params))

    assert out.shape == (2, FLAT), out.shape
    np.testing.assert_allclose(np.asarray(out), np.asarray(ref),
                               rtol=1e-4, atol=1e-4)
    print("KERNEL_OK")
</pallas_src>

<mosaic_0001>
module attributes {stable_mosaic.version = 11 : i64} {
  func.func @_cnn_encoder_kernel(%arg0: i32, %arg1: memref<2x16x16x4xf32, #tpu.memory_space<vmem>>, %arg2: memref<36x8xf32, #tpu.memory_space<vmem>>, %arg3: memref<1x8xf32, #tpu.memory_space<vmem>>, %arg4: memref<72x8xf32, #tpu.memory_space<vmem>>, %arg5: memref<1x8xf32, #tpu.memory_space<vmem>>, %arg6: memref<2x2x2x8xf32, #tpu.memory_space<vmem>>) attributes {dimension_semantics = [#tpu.dimension_semantics<parallel>], iteration_bounds = array<i64: 1>, scalar_prefetch = 0 : i64, scratch_operands = 0 : i64, tpu.core_type = #tpu.core_type<tc>, window_params = [{transform_indices = @transform_0, window_bounds = array<i64: 2, 16, 16, 4>}, {pipeline_mode = #tpu.pipeline_mode<synchronous>, transform_indices = @transform_1, window_bounds = array<i64: 36, 8>}, {pipeline_mode = #tpu.pipeline_mode<synchronous>, transform_indices = @transform_2, window_bounds = array<i64: 1, 8>}, {pipeline_mode = #tpu.pipeline_mode<synchronous>, transform_indices = @transform_3, window_bounds = array<i64: 72, 8>}, {pipeline_mode = #tpu.pipeline_mode<synchronous>, transform_indices = @transform_4, window_bounds = array<i64: 1, 8>}, {transform_indices = @transform_5, window_bounds = array<i64: 2, 2, 2, 8>}]} {
    %c0 = arith.constant 0 : index
    %c0_0 = arith.constant 0 : index
    %c0_1 = arith.constant 0 : index
    %c0_2 = arith.constant 0 : index
    %0 = vector.load %arg1[%c0, %c0_0, %c0_1, %c0_2] : memref<2x16x16x4xf32, #tpu.memory_space<vmem>>, vector<2x16x16x4xf32>
    %cst = arith.constant 0.000000e+00 : f32
    %1 = vector.broadcast %cst : f32 to vector<2x1x16x4xf32>
    %cst_3 = arith.constant 0.000000e+00 : f32
    %2 = vector.broadcast %cst_3 : f32 to vector<2x1x16x4xf32>
    %3 = tpu.concatenate %1, %0, %2 in 1 : vector<2x1x16x4xf32>, vector<2x16x16x4xf32>, vector<2x1x16x4xf32> -> vector<2x18x16x4xf32>
    %cst_4 = arith.constant 0.000000e+00 : f32
    %4 = vector.broadcast %cst_4 : f32 to vector<2x18x1x4xf32>
    %cst_5 = arith.constant 0.000000e+00 : f32
    %5 = vector.broadcast %cst_5 : f32 to vector<2x18x1x4xf32>
    %6 = tpu.concatenate %4, %3, %5 in 2 : vector<2x18x1x4xf32>, vector<2x18x16x4xf32>, vector<2x18x1x4xf32> -> vector<2x18x18x4xf32>
    %c0_6 = arith.constant 0 : index
    %c0_7 = arith.constant 0 : index
    %7 = vector.load %arg2[%c0_6, %c0_7] : memref<36x8xf32, #tpu.memory_space<vmem>>, vector<36x8xf32>
    %c0_8 = arith.constant 0 : index
    %c0_9 = arith.constant 0 : index
    %8 = vector.load %arg3[%c0_8, %c0_9] : memref<1x8xf32, #tpu.memory_space<vmem>>, vector<1x8xf32>
    %9 = vector.extract_strided_slice %6 {offsets = [0, 0, 0, 0], sizes = [2, 16, 16, 4], strides = [1, 1, 1, 1]} : vector<2x18x18x4xf32> to vector<2x16x16x4xf32>
    %10 = vector.extract_strided_slice %6 {offsets = [0, 0, 1, 0], sizes = [2, 16, 16, 4], strides = [1, 1, 1, 1]} : vector<2x18x18x4xf32> to vector<2x16x16x4xf32>
    %11 = vector.extract_strided_slice %6 {offsets = [0, 0, 2, 0], sizes = [2, 16, 16, 4], strides = [1, 1, 1, 1]} : vector<2x18x18x4xf32> to vector<2x16x16x4xf32>
    %12 = vector.extract_strided_slice %6 {offsets = [0, 1, 0, 0], sizes = [2, 16, 16, 4], strides = [1, 1, 1, 1]} : vector<2x18x18x4xf32> to vector<2x16x16x4xf32>
    %13 = vector.extract_strided_slice %6 {offsets = [0, 1, 1, 0], sizes = [2, 16, 16, 4], strides = [1, 1, 1, 1]} : vector<2x18x18x4xf32> to vector<2x16x16x4xf32>
    %14 = vector.extract_strided_slice %6 {offsets = [0, 1, 2, 0], sizes = [2, 16, 16, 4], strides = [1, 1, 1, 1]} : vector<2x18x18x4xf32> to vector<2x16x16x4xf32>
    %15 = vector.extract_strided_slice %6 {offsets = [0, 2, 0, 0], sizes = [2, 16, 16, 4], strides = [1, 1, 1, 1]} : vector<2x18x18x4xf32> to vector<2x16x16x4xf32>
    %16 = vector.extract_strided_slice %6 {offsets = [0, 2, 1, 0], sizes = [2, 16, 16, 4], strides = [1, 1, 1, 1]} : vector<2x18x18x4xf32> to vector<2x16x16x4xf32>
    %17 = vector.extract_strided_slice %6 {offsets = [0, 2, 2, 0], sizes = [2, 16, 16, 4], strides = [1, 1, 1, 1]} : vector<2x18x18x4xf32> to vector<2x16x16x4xf32>
    %18 = tpu.concatenate %9, %10, %11, %12, %13, %14, %15, %16, %17 in 3 : vector<2x16x16x4xf32>, vector<2x16x16x4xf32>, vector<2x16x16x4xf32>, vector<2x16x16x4xf32>, vector<2x16x16x4xf32>, vector<2x16x16x4xf32>, vector<2x16x16x4xf32>, vector<2x16x16x4xf32>, vector<2x16x16x4xf32> -> vector<2x16x16x36xf32>
    %19 = vector.shape_cast %18 : vector<2x16x16x36xf32> to vector<512x36xf32>
    %cst_10 = arith.constant dense<0.000000e+00> : vector<512x8xf32>
    %20 = tpu.matmul %19, %7, %cst_10 {dimension_numbers = #tpu.dot_dimension_numbers<[1], [0], [0], [1], [0, 0, 1, 1], [], []>} : vector<512x36xf32>, vector<36x8xf32>, vector<512x8xf32> -> vector<512x8xf32>
    %21 = vector.broadcast %8 : vector<1x8xf32> to vector<512x8xf32>
    %22 = arith.addf %20, %21 : vector<512x8xf32>
    %cst_11 = arith.constant 0.000000e+00 : f32
    %23 = vector.broadcast %cst_11 : f32 to vector<512x8xf32>
    %24 = arith.maximumf %22, %23 : vector<512x8xf32>
    %25 = vector.shape_cast %24 : vector<512x8xf32> to vector<2x16x16x8xf32>
    %26 = vector.extract_strided_slice %25 {offsets = [0, 0, 0, 0], sizes = [2, 1, 16, 8], strides = [1, 1, 1, 1]} : vector<2x16x16x8xf32> to vector<2x1x16x8xf32>
    %27 = vector.extract_strided_slice %25 {offsets = [0, 1, 0, 0], sizes = [2, 1, 16, 8], strides = [1, 1, 1, 1]} : vector<2x16x16x8xf32> to vector<2x1x16x8xf32>
    %28 = arith.maximumf %26, %27 : vector<2x1x16x8xf32>
    %29 = vector.extract_strided_slice %25 {offsets = [0, 2, 0, 0], sizes = [2, 1, 16, 8], strides = [1, 1, 1, 1]} : vector<2x16x16x8xf32> to vector<2x1x16x8xf32>
    %30 = vector.extract_strided_slice %25 {offsets = [0, 3, 0, 0], sizes = [2, 1, 16, 8], strides = [1, 1, 1, 1]} : vector<2x16x16x8xf32> to vector<2x1x16x8xf32>
    %31 = arith.maximumf %29, %30 : vector<2x1x16x8xf32>
    %32 = arith.maximumf %28, %31 : vector<2x1x16x8xf32>
    %33 = vector.extract_strided_slice %25 {offsets = [0, 2, 0, 0], sizes = [2, 1, 16, 8], strides = [1, 1, 1, 1]} : vector<2x16x16x8xf32> to vector<2x1x16x8xf32>
    %34 = vector.extract_strided_slice %25 {offsets = [0, 3, 0, 0], sizes = [2, 1, 16, 8], strides = [1, 1, 1, 1]} : vector<2x16x16x8xf32> to vector<2x1x16x8xf32>
    %35 = arith.maximumf %33, %34 : vector<2x1x16x8xf32>
    %36 = vector.extract_strided_slice %25 {offsets = [0, 4, 0, 0], sizes = [2, 1, 16, 8], strides = [1, 1, 1, 1]} : vector<2x16x16x8xf32> to vector<2x1x16x8xf32>
    %37 = vector.extract_strided_slice %25 {offsets = [0, 5, 0, 0], sizes = [2, 1, 16, 8], strides = [1, 1, 1, 1]} : vector<2x16x16x8xf32> to vector<2x1x16x8xf32>
    %38 = arith.maximumf %36, %37 : vector<2x1x16x8xf32>
    %39 = arith.maximumf %35, %38 : vector<2x1x16x8xf32>
    %40 = vector.extract_strided_slice %25 {offsets = [0, 4, 0, 0], sizes = [2, 1, 16, 8], strides = [1, 1, 1, 1]} : vector<2x16x16x8xf32> to vector<2x1x16x8xf32>
    %41 = vector.extract_strided_slice %25 {offsets = [0, 5, 0, 0], sizes = [2, 1, 16, 8], strides = [1, 1, 1, 1]} : vector<2x16x16x8xf32> to vector<2x1x16x8xf32>
    %42 = arith.maximumf %40, %41 : vector<2x1x16x8xf32>
    %43 = vector.extract_strided_slice %25 {offsets = [0, 6, 0, 0], sizes = [2, 1, 16, 8], strides = [1, 1, 1, 1]} : vector<2x16x16x8xf32> to vector<2x1x16x8xf32>
    %44 = vector.extract_strided_slice %25 {offsets = [0, 7, 0, 0], sizes = [2, 1, 16, 8], strides = [1, 1, 1, 1]} : vector<2x16x16x8xf32> to vector<2x1x16x8xf32>
    %45 = arith.maximumf %43, %44 : vector<2x1x16x8xf32>
    %46 = arith.maximumf %42, %45 : vector<2x1x16x8xf32>
    %47 = vector.extract_strided_slice %25 {offsets = [0, 6, 0, 0], sizes = [2, 1, 16, 8], strides = [1, 1, 1, 1]} : vector<2x16x16x8xf32> to vector<2x1x16x8xf32>
    %48 = vector.extract_strided_slice %25 {offsets = [0, 7, 0, 0], sizes = [2, 1, 16, 8], strides = [1, 1, 1, 1]} : vector<2x16x16x8xf32> to vector<2x1x16x8xf32>
    %49 = arith.maximumf %47, %48 : vector<2x1x16x8xf32>
    %50 = vector.extract_strided_slice %25 {offsets = [0, 8, 0, 0], sizes = [2, 1, 16, 8], strides = [1, 1, 1, 1]} : vector<2x16x16x8xf32> to vector<2x1x16x8xf32>
    %51 = vector.extract_strided_slice %25 {offsets = [0, 9, 0, 0], sizes = [2, 1, 16, 8], strides = [1, 1, 1, 1]} : vector<2x16x16x8xf32> to vector<2x1x16x8xf32>
    %52 = arith.maximumf %50, %51 : vector<2x1x16x8xf32>
    %53 = arith.maximumf %49, %52 : vector<2x1x16x8xf32>
    %54 = vector.extract_strided_slice %25 {offsets = [0, 8, 0, 0], sizes = [2, 1, 16, 8], strides = [1, 1, 1, 1]} : vector<2x16x16x8xf32> to vector<2x1x16x8xf32>
    %55 = vector.extract_strided_slice %25 {offsets = [0, 9, 0, 0], sizes = [2, 1, 16, 8], strides = [1, 1, 1, 1]} : vector<2x16x16x8xf32> to vector<2x1x16x8xf32>
    %56 = arith.maximumf %54, %55 : vector<2x1x16x8xf32>
    %57 = vector.extract_strided_slice %25 {offsets = [0, 10, 0, 0], sizes = [2, 1, 16, 8], strides = [1, 1, 1, 1]} : vector<2x16x16x8xf32> to vector<2x1x16x8xf32>
    %58 = vector.extract_strided_slice %25 {offsets = [0, 11, 0, 0], sizes = [2, 1, 16, 8], strides = [1, 1, 1, 1]} : vector<2x16x16x8xf32> to vector<2x1x16x8xf32>
    %59 = arith.maximumf %57, %58 : vector<2x1x16x8xf32>
    %60 = arith.maximumf %56, %59 : vector<2x1x16x8xf32>
    %61 = vector.extract_strided_slice %25 {offsets = [0, 10, 0, 0], sizes = [2, 1, 16, 8], strides = [1, 1, 1, 1]} : vector<2x16x16x8xf32> to vector<2x1x16x8xf32>
    %62 = vector.extract_strided_slice %25 {offsets = [0, 11, 0, 0], sizes = [2, 1, 16, 8], strides = [1, 1, 1, 1]} : vector<2x16x16x8xf32> to vector<2x1x16x8xf32>
    %63 = arith.maximumf %61, %62 : vector<2x1x16x8xf32>
    %64 = vector.extract_strided_slice %25 {offsets = [0, 12, 0, 0], sizes = [2, 1, 16, 8], strides = [1, 1, 1, 1]} : vector<2x16x16x8xf32> to vector<2x1x16x8xf32>
    %65 = vector.extract_strided_slice %25 {offsets = [0, 13, 0, 0], sizes = [2, 1, 16, 8], strides = [1, 1, 1, 1]} : vector<2x16x16x8xf32> to vector<2x1x16x8xf32>
    %66 = arith.maximumf %64, %65 : vector<2x1x16x8xf32>
    %67 = arith.maximumf %63, %66 : vector<2x1x16x8xf32>
    %68 = vector.extract_strided_slice %25 {offsets = [0, 12, 0, 0], sizes = [2, 1, 16, 8], strides = [1, 1, 1, 1]} : vector<2x16x16x8xf32> to vector<2x1x16x8xf32>
    %69 = vector.extract_strided_slice %25 {offsets = [0, 13, 0, 0], sizes = [2, 1, 16, 8], strides = [1, 1, 1, 1]} : vector<2x16x16x8xf32> to vector<2x1x16x8xf32>
    %70 = arith.maximumf %68, %69 : vector<2x1x16x8xf32>
    %71 = vector.extract_strided_slice %25 {offsets = [0, 14, 0, 0], sizes = [2, 1, 16, 8], strides = [1, 1, 1, 1]} : vector<2x16x16x8xf32> to vector<2x1x16x8xf32>
    %72 = vector.extract_strided_slice %25 {offsets = [0, 15, 0, 0], sizes = [2, 1, 16, 8], strides = [1, 1, 1, 1]} : vector<2x16x16x8xf32> to vector<2x1x16x8xf32>
    %73 = arith.maximumf %71, %72 : vector<2x1x16x8xf32>
    %74 = arith.maximumf %70, %73 : vector<2x1x16x8xf32>
    %75 = tpu.concatenate %32, %39, %46, %53, %60, %67, %74 in 1 : vector<2x1x16x8xf32>, vector<2x1x16x8xf32>, vector<2x1x16x8xf32>, vector<2x1x16x8xf32>, vector<2x1x16x8xf32>, vector<2x1x16x8xf32>, vector<2x1x16x8xf32> -> vector<2x7x16x8xf32>
    %76 = vector.extract_strided_slice %75 {offsets = [0, 0, 0, 0], sizes = [2, 7, 1, 8], strides = [1, 1, 1, 1]} : vector<2x7x16x8xf32> to vector<2x7x1x8xf32>
    %77 = vector.extract_strided_slice %75 {offsets = [0, 0, 1, 0], sizes = [2, 7, 1, 8], strides = [1, 1, 1, 1]} : vector<2x7x16x8xf32> to vector<2x7x1x8xf32>
    %78 = arith.maximumf %76, %77 : vector<2x7x1x8xf32>
    %79 = vector.extract_strided_slice %75 {offsets = [0, 0, 2, 0], sizes = [2, 7, 1, 8], strides = [1, 1, 1, 1]} : vector<2x7x16x8xf32> to vector<2x7x1x8xf32>
    %80 = vector.extract_strided_slice %75 {offsets = [0, 0, 3, 0], sizes = [2, 7, 1, 8], strides = [1, 1, 1, 1]} : vector<2x7x16x8xf32> to vector<2x7x1x8xf32>
    %81 = arith.maximumf %79, %80 : vector<2x7x1x8xf32>
    %82 = arith.maximumf %78, %81 : vector<2x7x1x8xf32>
    %83 = vector.extract_strided_slice %75 {offsets = [0, 0, 2, 0], sizes = [2, 7, 1, 8], strides = [1, 1, 1, 1]} : vector<2x7x16x8xf32> to vector<2x7x1x8xf32>
    %84 = vector.extract_strided_slice %75 {offsets = [0, 0, 3, 0], sizes = [2, 7, 1, 8], strides = [1, 1, 1, 1]} : vector<2x7x16x8xf32> to vector<2x7x1x8xf32>
    %85 = arith.maximumf %83, %84 : vector<2x7x1x8xf32>
    %86 = vector.extract_strided_slice %75 {offsets = [0, 0, 4, 0], sizes = [2, 7, 1, 8], strides = [1, 1, 1, 1]} : vector<2x7x16x8xf32> to vector<2x7x1x8xf32>
    %87 = vector.extract_strided_slice %75 {offsets = [0, 0, 5, 0], sizes = [2, 7, 1, 8], strides = [1, 1, 1, 1]} : vector<2x7x16x8xf32> to vector<2x7x1x8xf32>
    %88 = arith.maximumf %86, %87 : vector<2x7x1x8xf32>
    %89 = arith.maximumf %85, %88 : vector<2x7x1x8xf32>
    %90 = vector.extract_strided_slice %75 {offsets = [0, 0, 4, 0], sizes = [2, 7, 1, 8], strides = [1, 1, 1, 1]} : vector<2x7x16x8xf32> to vector<2x7x1x8xf32>
    %91 = vector.extract_strided_slice %75 {offsets = [0, 0, 5, 0], sizes = [2, 7, 1, 8], strides = [1, 1, 1, 1]} : vector<2x7x16x8xf32> to vector<2x7x1x8xf32>
    %92 = arith.maximumf %90, %91 : vector<2x7x1x8xf32>
    %93 = vector.extract_strided_slice %75 {offsets = [0, 0, 6, 0], sizes = [2, 7, 1, 8], strides = [1, 1, 1, 1]} : vector<2x7x16x8xf32> to vector<2x7x1x8xf32>
    %94 = vector.extract_strided_slice %75 {offsets = [0, 0, 7, 0], sizes = [2, 7, 1, 8], strides = [1, 1, 1, 1]} : vector<2x7x16x8xf32> to vector<2x7x1x8xf32>
    %95 = arith.maximumf %93, %94 : vector<2x7x1x8xf32>
    %96 = arith.maximumf %92, %95 : vector<2x7x1x8xf32>
    %97 = vector.extract_strided_slice %75 {offsets = [0, 0, 6, 0], sizes = [2, 7, 1, 8], strides = [1, 1, 1, 1]} : vector<2x7x16x8xf32> to vector<2x7x1x8xf32>
    %98 = vector.extract_strided_slice %75 {offsets = [0, 0, 7, 0], sizes = [2, 7, 1, 8], strides = [1, 1, 1, 1]} : vector<2x7x16x8xf32> to vector<2x7x1x8xf32>
    %99 = arith.maximumf %97, %98 : vector<2x7x1x8xf32>
    %100 = vector.extract_strided_slice %75 {offsets = [0, 0, 8, 0], sizes = [2, 7, 1, 8], strides = [1, 1, 1, 1]} : vector<2x7x16x8xf32> to vector<2x7x1x8xf32>
    %101 = vector.extract_strided_slice %75 {offsets = [0, 0, 9, 0], sizes = [2, 7, 1, 8], strides = [1, 1, 1, 1]} : vector<2x7x16x8xf32> to vector<2x7x1x8xf32>
    %102 = arith.maximumf %100, %101 : vector<2x7x1x8xf32>
    %103 = arith.maximumf %99, %102 : vector<2x7x1x8xf32>
    %104 = vector.extract_strided_slice %75 {offsets = [0, 0, 8, 0], sizes = [2, 7, 1, 8], strides = [1, 1, 1, 1]} : vector<2x7x16x8xf32> to vector<2x7x1x8xf32>
    %105 = vector.extract_strided_slice %75 {offsets = [0, 0, 9, 0], sizes = [2, 7, 1, 8], strides = [1, 1, 1, 1]} : vector<2x7x16x8xf32> to vector<2x7x1x8xf32>
    %106 = arith.maximumf %104, %105 : vector<2x7x1x8xf32>
    %107 = vector.extract_strided_slice %75 {offsets = [0, 0, 10, 0], sizes = [2, 7, 1, 8], strides = [1, 1, 1, 1]} : vector<2x7x16x8xf32> to vector<2x7x1x8xf32>
    %108 = vector.extract_strided_slice %75 {offsets = [0, 0, 11, 0], sizes = [2, 7, 1, 8], strides = [1, 1, 1, 1]} : vector<2x7x16x8xf32> to vector<2x7x1x8xf32>
    %109 = arith.maximumf %107, %108 : vector<2x7x1x8xf32>
    %110 = arith.maximumf %106, %109 : vector<2x7x1x8xf32>
    %111 = vector.extract_strided_slice %75 {offsets = [0, 0, 10, 0], sizes = [2, 7, 1, 8], strides = [1, 1, 1, 1]} : vector<2x7x16x8xf32> to vector<2x7x1x8xf32>
    %112 = vector.extract_strided_slice %75 {offsets = [0, 0, 11, 0], sizes = [2, 7, 1, 8], strides = [1, 1, 1, 1]} : vector<2x7x16x8xf32> to vector<2x7x1x8xf32>
    %113 = arith.maximumf %111, %112 : vector<2x7x1x8xf32>
    %114 = vector.extract_strided_slice %75 {offsets = [0, 0, 12, 0], sizes = [2, 7, 1, 8], strides = [1, 1, 1, 1]} : vector<2x7x16x8xf32> to vector<2x7x1x8xf32>
    %115 = vector.extract_strided_slice %75 {offsets = [0, 0, 13, 0], sizes = [2, 7, 1, 8], strides = [1, 1, 1, 1]} : vector<2x7x16x8xf32> to vector<2x7x1x8xf32>
    %116 = arith.maximumf %114, %115 : vector<2x7x1x8xf32>
    %117 = arith.maximumf %113, %116 : vector<2x7x1x8xf32>
    %118 = vector.extract_strided_slice %75 {offsets = [0, 0, 12, 0], sizes = [2, 7, 1, 8], strides = [1, 1, 1, 1]} : vector<2x7x16x8xf32> to vector<2x7x1x8xf32>
    %119 = vector.extract_strided_slice %75 {offsets = [0, 0, 13, 0], sizes = [2, 7, 1, 8], strides = [1, 1, 1, 1]} : vector<2x7x16x8xf32> to vector<2x7x1x8xf32>
    %120 = arith.maximumf %118, %119 : vector<2x7x1x8xf32>
    %121 = vector.extract_strided_slice %75 {offsets = [0, 0, 14, 0], sizes = [2, 7, 1, 8], strides = [1, 1, 1, 1]} : vector<2x7x16x8xf32> to vector<2x7x1x8xf32>
    %122 = vector.extract_strided_slice %75 {offsets = [0, 0, 15, 0], sizes = [2, 7, 1, 8], strides = [1, 1, 1, 1]} : vector<2x7x16x8xf32> to vector<2x7x1x8xf32>
    %123 = arith.maximumf %121, %122 : vector<2x7x1x8xf32>
    %124 = arith.maximumf %120, %123 : vector<2x7x1x8xf32>
    %125 = tpu.concatenate %82, %89, %96, %103, %110, %117, %124 in 2 : vector<2x7x1x8xf32>, vector<2x7x1x8xf32>, vector<2x7x1x8xf32>, vector<2x7x1x8xf32>, vector<2x7x1x8xf32>, vector<2x7x1x8xf32>, vector<2x7x1x8xf32> -> vector<2x7x7x8xf32>
    %cst_12 = arith.constant 0.000000e+00 : f32
    %126 = vector.broadcast %cst_12 : f32 to vector<2x1x7x8xf32>
    %cst_13 = arith.constant 0.000000e+00 : f32
    %127 = vector.broadcast %cst_13 : f32 to vector<2x2x7x8xf32>
    %128 = tpu.concatenate %126, %125, %127 in 1 : vector<2x1x7x8xf32>, vector<2x7x7x8xf32>, vector<2x2x7x8xf32> -> vector<2x10x7x8xf32>
    %cst_14 = arith.constant 0.000000e+00 : f32
    %129 = vector.broadcast %cst_14 : f32 to vector<2x10x1x8xf32>
    %cst_15 = arith.constant 0.000000e+00 : f32
    %130 = vector.broadcast %cst_15 : f32 to vector<2x10x2x8xf32>
    %131 = tpu.concatenate %129, %128, %130 in 2 : vector<2x10x1x8xf32>, vector<2x10x7x8xf32>, vector<2x10x2x8xf32> -> vector<2x10x10x8xf32>
    %c0_16 = arith.constant 0 : index
    %c0_17 = arith.constant 0 : index
    %132 = vector.load %arg4[%c0_16, %c0_17] : memref<72x8xf32, #tpu.memory_space<vmem>>, vector<72x8xf32>
    %c0_18 = arith.constant 0 : index
    %c0_19 = arith.constant 0 : index
    %133 = vector.load %arg5[%c0_18, %c0_19] : memref<1x8xf32, #tpu.memory_space<vmem>>, vector<1x8xf32>
    %134 = vector.extract_strided_slice %131 {offsets = [0, 0, 0, 0], sizes = [2, 8, 8, 8], strides = [1, 1, 1, 1]} : vector<2x10x10x8xf32> to vector<2x8x8x8xf32>
    %135 = vector.extract_strided_slice %131 {offsets = [0, 0, 1, 0], sizes = [2, 8, 8, 8], strides = [1, 1, 1, 1]} : vector<2x10x10x8xf32> to vector<2x8x8x8xf32>
    %136 = vector.extract_strided_slice %131 {offsets = [0, 0, 2, 0], sizes = [2, 8, 8, 8], strides = [1, 1, 1, 1]} : vector<2x10x10x8xf32> to vector<2x8x8x8xf32>
    %137 = vector.extract_strided_slice %131 {offsets = [0, 1, 0, 0], sizes = [2, 8, 8, 8], strides = [1, 1, 1, 1]} : vector<2x10x10x8xf32> to vector<2x8x8x8xf32>
    %138 = vector.extract_strided_slice %131 {offsets = [0, 1, 1, 0], sizes = [2, 8, 8, 8], strides = [1, 1, 1, 1]} : vector<2x10x10x8xf32> to vector<2x8x8x8xf32>
    %139 = vector.extract_strided_slice %131 {offsets = [0, 1, 2, 0], sizes = [2, 8, 8, 8], strides = [1, 1, 1, 1]} : vector<2x10x10x8xf32> to vector<2x8x8x8xf32>
    %140 = vector.extract_strided_slice %131 {offsets = [0, 2, 0, 0], sizes = [2, 8, 8, 8], strides = [1, 1, 1, 1]} : vector<2x10x10x8xf32> to vector<2x8x8x8xf32>
    %141 = vector.extract_strided_slice %131 {offsets = [0, 2, 1, 0], sizes = [2, 8, 8, 8], strides = [1, 1, 1, 1]} : vector<2x10x10x8xf32> to vector<2x8x8x8xf32>
    %142 = vector.extract_strided_slice %131 {offsets = [0, 2, 2, 0], sizes = [2, 8, 8, 8], strides = [1, 1, 1, 1]} : vector<2x10x10x8xf32> to vector<2x8x8x8xf32>
    %143 = tpu.concatenate %134, %135, %136, %137, %138, %139, %140, %141, %142 in 3 : vector<2x8x8x8xf32>, vector<2x8x8x8xf32>, vector<2x8x8x8xf32>, vector<2x8x8x8xf32>, vector<2x8x8x8xf32>, vector<2x8x8x8xf32>, vector<2x8x8x8xf32>, vector<2x8x8x8xf32>, vector<2x8x8x8xf32> -> vector<2x8x8x72xf32>
    %144 = vector.shape_cast %143 : vector<2x8x8x72xf32> to vector<128x72xf32>
    %cst_20 = arith.constant dense<0.000000e+00> : vector<128x8xf32>
    %145 = tpu.matmul %144, %132, %cst_20 {dimension_numbers = #tpu.dot_dimension_numbers<[1], [0], [0], [1], [0, 0, 1, 1], [], []>} : vector<128x72xf32>, vector<72x8xf32>, vector<128x8xf32> -> vector<128x8xf32>
    %146 = vector.broadcast %133 : vector<1x8xf32> to vector<128x8xf32>
    %147 = arith.addf %145, %146 : vector<128x8xf32>
    %cst_21 = arith.constant 0.000000e+00 : f32
    %148 = vector.broadcast %cst_21 : f32 to vector<128x8xf32>
    %149 = arith.maximumf %147, %148 : vector<128x8xf32>
    %150 = vector.shape_cast %149 : vector<128x8xf32> to vector<2x8x8x8xf32>
    %151 = vector.extract_strided_slice %150 {offsets = [0, 0, 0, 0], sizes = [2, 1, 8, 8], strides = [1, 1, 1, 1]} : vector<2x8x8x8xf32> to vector<2x1x8x8xf32>
    %152 = vector.extract_strided_slice %150 {offsets = [0, 1, 0, 0], sizes = [2, 1, 8, 8], strides = [1, 1, 1, 1]} : vector<2x8x8x8xf32> to vector<2x1x8x8xf32>
    %153 = arith.maximumf %151, %152 : vector<2x1x8x8xf32>
    %154 = vector.extract_strided_slice %150 {offsets = [0, 2, 0, 0], sizes = [2, 1, 8, 8], strides = [1, 1, 1, 1]} : vector<2x8x8x8xf32> to vector<2x1x8x8xf32>
    %155 = vector.extract_strided_slice %150 {offsets = [0, 3, 0, 0], sizes = [2, 1, 8, 8], strides = [1, 1, 1, 1]} : vector<2x8x8x8xf32> to vector<2x1x8x8xf32>
    %156 = arith.maximumf %154, %155 : vector<2x1x8x8xf32>
    %157 = arith.maximumf %153, %156 : vector<2x1x8x8xf32>
    %158 = vector.extract_strided_slice %150 {offsets = [0, 2, 0, 0], sizes = [2, 1, 8, 8], strides = [1, 1, 1, 1]} : vector<2x8x8x8xf32> to vector<2x1x8x8xf32>
    %159 = vector.extract_strided_slice %150 {offsets = [0, 3, 0, 0], sizes = [2, 1, 8, 8], strides = [1, 1, 1, 1]} : vector<2x8x8x8xf32> to vector<2x1x8x8xf32>
    %160 = arith.maximumf %158, %159 : vector<2x1x8x8xf32>
    %161 = vector.extract_strided_slice %150 {offsets = [0, 4, 0, 0], sizes = [2, 1, 8, 8], strides = [1, 1, 1, 1]} : vector<2x8x8x8xf32> to vector<2x1x8x8xf32>
    %162 = vector.extract_strided_slice %150 {offsets = [0, 5, 0, 0], sizes = [2, 1, 8, 8], strides = [1, 1, 1, 1]} : vector<2x8x8x8xf32> to vector<2x1x8x8xf32>
    %163 = arith.maximumf %161, %162 : vector<2x1x8x8xf32>
    %164 = arith.maximumf %160, %163 : vector<2x1x8x8xf32>
    %165 = tpu.concatenate %157, %164 in 1 : vector<2x1x8x8xf32>, vector<2x1x8x8xf32> -> vector<2x2x8x8xf32>
    %166 = vector.extract_strided_slice %165 {offsets = [0, 0, 0, 0], sizes = [2, 2, 1, 8], strides = [1, 1, 1, 1]} : vector<2x2x8x8xf32> to vector<2x2x1x8xf32>
    %167 = vector.extract_strided_slice %165 {offsets = [0, 0, 1, 0], sizes = [2, 2, 1, 8], strides = [1, 1, 1, 1]} : vector<2x2x8x8xf32> to vector<2x2x1x8xf32>
    %168 = arith.maximumf %166, %167 : vector<2x2x1x8xf32>
    %169 = vector.extract_strided_slice %165 {offsets = [0, 0, 2, 0], sizes = [2, 2, 1, 8], strides = [1, 1, 1, 1]} : vector<2x2x8x8xf32> to vector<2x2x1x8xf32>
    %170 = vector.extract_strided_slice %165 {offsets = [0, 0, 3, 0], sizes = [2, 2, 1, 8], strides = [1, 1, 1, 1]} : vector<2x2x8x8xf32> to vector<2x2x1x8xf32>
    %171 = arith.maximumf %169, %170 : vector<2x2x1x8xf32>
    %172 = arith.maximumf %168, %171 : vector<2x2x1x8xf32>
    %173 = vector.extract_strided_slice %165 {offsets = [0, 0, 2, 0], sizes = [2, 2, 1, 8], strides = [1, 1, 1, 1]} : vector<2x2x8x8xf32> to vector<2x2x1x8xf32>
    %174 = vector.extract_strided_slice %165 {offsets = [0, 0, 3, 0], sizes = [2, 2, 1, 8], strides = [1, 1, 1, 1]} : vector<2x2x8x8xf32> to vector<2x2x1x8xf32>
    %175 = arith.maximumf %173, %174 : vector<2x2x1x8xf32>
    %176 = vector.extract_strided_slice %165 {offsets = [0, 0, 4, 0], sizes = [2, 2, 1, 8], strides = [1, 1, 1, 1]} : vector<2x2x8x8xf32> to vector<2x2x1x8xf32>
    %177 = vector.extract_strided_slice %165 {offsets = [0, 0, 5, 0], sizes = [2, 2, 1, 8], strides = [1, 1, 1, 1]} : vector<2x2x8x8xf32> to vector<2x2x1x8xf32>
    %178 = arith.maximumf %176, %177 : vector<2x2x1x8xf32>
    %179 = arith.maximumf %175, %178 : vector<2x2x1x8xf32>
    %180 = tpu.concatenate %172, %179 in 2 : vector<2x2x1x8xf32>, vector<2x2x1x8xf32> -> vector<2x2x2x8xf32>
    %c0_22 = arith.constant 0 : index
    %c0_23 = arith.constant 0 : index
    %c0_24 = arith.constant 0 : index
    %c0_25 = arith.constant 0 : index
    %181 = vector.load %arg6[%c0_22, %c0_23, %c0_24, %c0_25] : memref<2x2x2x8xf32, #tpu.memory_space<vmem>>, vector<2x2x2x8xf32>
    tpu.vector_store %arg6[%c0_22, %c0_23, %c0_24, %c0_25], %180 {strides = array<i32>} : memref<2x2x2x8xf32, #tpu.memory_space<vmem>>, vector<2x2x2x8xf32>,
    return
  }
  func.func @transform_0(%arg0: i32) -> (i32, i32, i32, i32) {
    %c0_i32 = arith.constant 0 : i32
    %c0_i32_0 = arith.constant 0 : i32
    %c0_i32_1 = arith.constant 0 : i32
    %c0_i32_2 = arith.constant 0 : i32
    return %arg0, %c0_i32, %c0_i32_0, %c0_i32_1 : i32, i32, i32, i32
  }
  func.func @transform_1(%arg0: i32) -> (i32, i32) {
    %c0_i32 = arith.constant 0 : i32
    %c0_i32_0 = arith.constant 0 : i32
    %c0_i32_1 = arith.constant 0 : i32
    return %c0_i32, %c0_i32_0 : i32, i32
  }
  func.func @transform_2(%arg0: i32) -> (i32, i32) {
    %c0_i32 = arith.constant 0 : i32
    %c0_i32_0 = arith.constant 0 : i32
    %c0_i32_1 = arith.constant 0 : i32
    return %c0_i32, %c0_i32_0 : i32, i32
  }
  func.func @transform_3(%arg0: i32) -> (i32, i32) {
    %c0_i32 = arith.constant 0 : i32
    %c0_i32_0 = arith.constant 0 : i32
    %c0_i32_1 = arith.constant 0 : i32
    return %c0_i32, %c0_i32_0 : i32, i32
  }
  func.func @transform_4(%arg0: i32) -> (i32, i32) {
    %c0_i32 = arith.constant 0 : i32
    %c0_i32_0 = arith.constant 0 : i32
    %c0_i32_1 = arith.constant 0 : i32
    return %c0_i32, %c0_i32_0 : i32, i32
  }
  func.func @transform_5(%arg0: i32) -> (i32, i32, i32, i32) {
    %c0_i32 = arith.constant 0 : i32
    %c0_i32_0 = arith.constant 0 : i32
    %c0_i32_1 = arith.constant 0 : i32
    %c0_i32_2 = arith.constant 0 : i32
    return %arg0, %c0_i32, %c0_i32_0, %c0_i32_1 : i32, i32, i32, i32
  }
}

</mosaic_0001>

<bundles_post_ra>
// kernel: cnn_encoder_forward.1
= control target key start
LH: loop header
LB: loop body
LE: loop exit
PB: predicated region body
PF: predicated region fallthrough
CT: control target
= control target key end

     0   :  { %vm149_vm0 = vcmask 1040384   ;;  %v9983_v3 = vmov 0.0   ;;  %vm478_vm1 = vcmask 1046528   ;;  %s4843_s9 = smov 4   ;;  %vm820_vm2 = vcmask 1045504   ;;  %s4844_s18 = smov 8   ;;  %s9976_s0 = inlined_call_operand.vmem [shape: f32[2,16,16,4], index: 0, kind: input, shape index: {}]   ;;  %s9977_s1 = inlined_call_operand.vmem [shape: f32[36,8], index: 1, kind: input, shape index: {}]   ;;  %s9978_s2 = inlined_call_operand.vmem [shape: f32[1,8], index: 2, kind: input, shape index: {}]   ;;  %s9979_s3 = inlined_call_operand.vmem [shape: f32[72,8], index: 3, kind: input, shape index: {}]   ;;  %s9980_s4 = inlined_call_operand.vmem [shape: f32[1,8], index: 4, kind: input, shape index: {}]   ;;  %s9981_s5 = inlined_call_operand.vmem [shape: f32[2,2,2,8], index: 5, kind: output, shape index: {}]  }
   0x1   :  { %v22_v0 = vld [vmem:[%s9976_s0 + $0x10] sm:$0xff]  ;;  %v23_v1 = vld [vmem:[%s9976_s0 + $0x18] sm:$0xff]  ;;  %v20_v2 = vld [vmem:[%s9976_s0] sm:$0xff]  ;;  %v4895_v4 = vrot.slane %v9983_v3, 7  ;;  %s4847_s27 = smov 20   ;;  %s4848_s28 = smov 24  }
   0x2   :  { %v155_v5 = vrot.slane %v22_v0, 7  ;;  %v156_v6 = vrot.slane %v23_v1, 7  ;;  %v21_v7 = vld [vmem:[%s9976_s0 + $0x8] sm:$0xff]  ;;  %v152_v8 = vrot.slane %v20_v2, 7  ;;  %v24_v21 = vld [vmem:[%s9976_s0 + $0x20] sm:$0xff]  ;;  %v26_v27 = vld [vmem:[%s9976_s0 + $0x30] sm:$0xff] }
   0x3   :  { %10355 = vst [vmem:[#allocation2_spill] sm:$0xff] %v4895_v4  ;;  %v153_v9 = vrot.slane %v21_v7, 7  ;;  %v4902_v10 = vsel %vm149_vm0, 0.0, %v4895_v4  ;;  %v4906_v11 = vsel %vm149_vm0, %v4895_v4, 0.0  ;;  %v480_v12 = vrot.slane %v4895_v4, 1  ;;  %v25_v22 = vld [vmem:[%s9976_s0 + $0x28] sm:$0xff] }
   0x4   :  { %10356 = vst [vmem:[#allocation3_spill] sm:$0xff] %v4902_v10  ;;  %v4910_v13 = vsel %vm149_vm0, %v155_v5, %v156_v6  ;;  %v4913_v14 = vsel %vm149_vm0, %v156_v6, 0.0  ;;  %v9982_v15 = vrot.slane %v4902_v10, 1  ;;  %v482_v16 = vrot.slane %v4906_v11, 1  ;;  %v27_v30 = vld [vmem:[%s9976_s0 + $0x38] sm:$0xff]  ;;  %v30_v51 = vld [vmem:[%s9976_s0 + $0x50] sm:$0xff] }
   0x5   :  { %v490_v17 = vrot.slane %v4910_v13, 1  ;;  %v492_v18 = vrot.slane %v4913_v14, 1  ;;  %v4920_v19 = vsel %vm149_vm0, %v152_v8, %v153_v9  ;;  %v4923_v20 = vsel %vm149_vm0, %v153_v9, 0.0  ;;  %v31_v52 = vld [vmem:[%s9976_s0 + $0x58] sm:$0xff]  ;;  %v28_v53 = vld [vmem:[%s9976_s0 + $0x40] sm:$0xff]  ;;  %v29_v54 = vld [vmem:[%s9976_s0 + $0x48] sm:$0xff] }
   0x6   :  { %10357 = vst [vmem:[#allocation4_spill] sm:$0xff] %v4920_v19  ;;  %v485_v23 = vrot.slane %v4920_v19, 1  ;;  %v487_v24 = vrot.slane %v4923_v20, 1  ;;  %v481_v25 = vsel %vm478_vm1, %v9982_v15, %v480_v12  ;;  %v483_v26 = vsel %vm478_vm1, %v480_v12, %v482_v16  ;;  %v32_v6 = vld [vmem:[%s9976_s0 + $0x60] sm:$0xff]  ;;  %v33_v12 = vld [vmem:[%s9976_s0 + $0x68] sm:$0xff]  ;;  %s4849_s29 = smov 28  }
   0x7   :  { %v4941_v28 = vsel %vm478_vm1, %v490_v17, %v492_v18  ;;  %v4943_v29 = vpack.i.bf16 %v483_v26, %v481_v25  ;;  %v158_v32 = vrot.slane %v24_v21, 7  ;;  %v159_v33 = vrot.slane %v25_v22, 7  ;;  %s4850_s30 = smov 32   ;;  %s4852_s20 = smov 48  }
   0x8   :  { %10358 = vst [vmem:[#allocation5_spill] sm:$0xff] %v4941_v28  ;;  %644 = vrot.lane.b32.xlu2 %v4941_v28, %s4843_s9  ;;  %v4951_v31 = vsel %vm478_vm1, %v485_v23, %v487_v24  ;;  %v4954_v34 = vsel %vm149_vm0, 0.0, %v155_v5  ;;  %v4962_v36 = vsel %vm149_vm0, 0.0, %v152_v8  ;;  %v161_v37 = vrot.slane %v26_v27, 7  ;;  %s4853_s21 = smov 64   ;;  %s4854_s22 = smov 56  }
   0x9   :  { %10359 = vst [vmem:[#allocation6_spill] sm:$0xff] %v4943_v29  ;;  %640 = vrot.lane.b32.xlu1 %v4951_v31, %s4843_s9  ;;  %4815 = vrot.lane.b32.xlu0 %v4943_v29, %s4843_s9  ;;  %v489_v35 = vrot.slane %v4954_v34, 1  ;;  %v4965_v38 = vsel %vm149_vm0, %v158_v32, %v159_v33  ;;  %v4968_v39 = vsel %vm149_vm0, 0.0, %v158_v32  ;;  %v484_v40 = vrot.slane %v4962_v36, 1 }
   0xa   :  { %10360 = vst [vmem:[#allocation7_spill] sm:$0xff] %v4951_v31  ;;  %v162_v41 = vrot.slane %v27_v30, 7  ;;  %v494_v42 = vrot.slane %v4968_v39, 1  ;;  %v495_v43 = vrot.slane %v4965_v38, 1  ;;  %v4989_v49 = vsel %vm149_vm0, 0.0, %v161_v37 }
   0xb   :  { %10361 = vst [vmem:[#allocation8_spill] sm:$0xff] %v4962_v36  ;;  %v4977_v45 = vsel %vm478_vm1, %v489_v35, %v490_v17  ;;  %v4980_v46 = vsel %vm478_vm1, %v484_v40, %v485_v23  ;;  %v4992_v50 = vsel %vm149_vm0, %v159_v33, 0.0  ;;  %v499_v57 = vrot.slane %v4989_v49, 1  ;;  %v37_v40 = vld [vmem:[%s9976_s0 + $0x88] sm:$0xff] }
   0xc   :  { %v4974_v44 = vsel %vm478_vm1, %v494_v42, %v495_v43  ;;  %10363 = vst [vmem:[#allocation10_spill] sm:$0xff] %v4977_v45  ;;  %v4983_v47 = vsel %vm149_vm0, %v161_v37, %v162_v41  ;;  %v4986_v48 = vsel %vm149_vm0, %v162_v41, 0.0  ;;  %v497_v58 = vrot.slane %v4992_v50, 1  ;;  %v36_v37 = vld [vmem:[%s9976_s0 + $0x80] sm:$0xff]  ;;  %v34_v41 = vld [vmem:[%s9976_s0 + $0x70] sm:$0xff]  ;;  %v35_v42 = vld [vmem:[%s9976_s0 + $0x78] sm:$0xff] }
   0xd   :  { %10362 = vst [vmem:[#allocation9_spill] sm:$0xff] %v4974_v44  ;;  %v500_v55 = vrot.slane %v4983_v47, 1  ;;  %v502_v56 = vrot.slane %v4986_v48, 1  ;;  %v167_v59 = vrot.slane %v30_v51, 7  ;;  %v168_v60 = vrot.slane %v31_v52, 7 }
   0xe   :  { %10364 = vst [vmem:[#allocation11_spill] sm:$0xff] %v4980_v46  ;;  %v164_v61 = vrot.slane %v28_v53, 7  ;;  %v165_v62 = vrot.slane %v29_v54, 7  ;;  %v5023_v1 = vsel %vm478_vm1, %v495_v43, %v497_v58  ;;  %v170_v18 = vrot.slane %v32_v6, 7 }
   0xf   :  { %10365 = vst [vmem:[#allocation12_spill] sm:$0xff] %v4983_v47  ;;  %v5017_v63 = vsel %vm478_vm1, %v500_v55, %v502_v56  ;;  %v5020_v0 = vsel %vm478_vm1, %v499_v57, %v500_v55  ;;  %v5026_v2 = vsel %vm149_vm0, %v167_v59, %v168_v60  ;;  %v5029_v5 = vsel %vm149_vm0, 0.0, %v167_v59 }
  0x10   :  { %10366 = vst [vmem:[#allocation13_spill] sm:$0xff] %v4989_v49  ;;  %646 = vrot.lane.b32.xlu2 %v4974_v44, %s4843_s9  ;;  %v5035_v7 = vsel %vm149_vm0, %v164_v61, %v165_v62  ;;  %v5038_v8 = vsel %vm149_vm0, %v165_v62, 0.0  ;;  %v5041_v9 = vsel %vm149_vm0, 0.0, %v164_v61  ;;  %v509_v16 = vrot.slane %v5029_v5, 1 }
  0x11   :  { %642 = vrot.lane.b32.xlu1 %v4977_v45, %s4843_s9  ;;  %638 = vrot.lane.b32.xlu0 %v4980_v46, %s4843_s9  ;;  %10367 = vst [vmem:[#allocation14_spill] sm:$0xff] %v5017_v63  ;;  %v510_v17 = vrot.slane %v5026_v2, 1  ;;  %v505_v21 = vrot.slane %v5035_v7, 1  ;;  %v507_v22 = vrot.slane %v5038_v8, 1  ;;  %v504_v23 = vrot.slane %v5041_v9, 1 }
  0x12   :  { %10368 = vst [vmem:[#allocation15_spill] sm:$0xff] %v5020_v0  ;;  %v171_v24 = vrot.slane %v33_v12, 7  ;;  %v5061_v26 = vsel %vm149_vm0, 0.0, %v170_v18  ;;  %v5064_v27 = vsel %vm149_vm0, %v168_v60, 0.0  ;;  %v176_v54 = vrot.slane %v36_v37, 7 }
  0x13   :  { %10369 = vst [vmem:[#allocation16_spill] sm:$0xff] %v5023_v1  ;;  %v5058_v25 = vsel %vm478_vm1, %v509_v16, %v510_v17  ;;  %v5067_v30 = vsel %vm478_vm1, %v505_v21, %v507_v22  ;;  %v5070_v32 = vsel %vm478_vm1, %v504_v23, %v505_v21  ;;  %v514_v52 = vrot.slane %v5061_v26, 1 }
  0x14   :  { %10370 = vst [vmem:[#allocation17_spill] sm:$0xff] %v5026_v2  ;;  %v5073_v33 = vsel %vm149_vm0, %v170_v18, %v171_v24  ;;  %v5076_v35 = vsel %vm149_vm0, %v171_v24, 0.0  ;;  %v512_v53 = vrot.slane %v5064_v27, 1  ;;  %v177_v55 = vrot.slane %v37_v40, 7  ;;  %v39_v18 = vld [vmem:[%s9976_s0 + $0x98] sm:$0xff] }
  0x15   :  { %10371 = vst [vmem:[#allocation18_spill] sm:$0xff] %v5029_v5  ;;  %v515_v43 = vrot.slane %v5073_v33, 1  ;;  %v517_v51 = vrot.slane %v5076_v35, 1  ;;  %v173_v56 = vrot.slane %v34_v41, 7  ;;  %v174_v57 = vrot.slane %v35_v42, 7 }
  0x16   :  { %10372 = vst [vmem:[#allocation19_spill] sm:$0xff] %v5035_v7  ;;  %v5104_v59 = vsel %vm478_vm1, %v510_v17, %v512_v53  ;;  %v5110_v61 = vsel %vm149_vm0, %v176_v54, %v177_v55  ;;  %v5113_v62 = vsel %vm149_vm0, 0.0, %v176_v54  ;;  %v38_v17 = vld [vmem:[%s9976_s0 + $0x90] sm:$0xff]  ;;  %v180_v41 = vrot.slane %v39_v18, 7  ;;  %v40_v18 = vld [vmem:[%s9976_s0 + $0xa0] sm:$0xff] }
  0x17   :  { %10373 = vst [vmem:[#allocation20_spill] sm:$0xff] %v5041_v9  ;;  %v5101_v58 = vsel %vm478_vm1, %v515_v43, %v517_v51  ;;  %v5107_v60 = vsel %vm478_vm1, %v514_v52, %v515_v43  ;;  %v5116_v6 = vsel %vm149_vm0, %v173_v56, %v174_v57  ;;  %v5119_v12 = vsel %vm149_vm0, %v174_v57, 0.0  ;;  %v42_v54 = vld [vmem:[%s9976_s0 + $0xb0] sm:$0xff] }
  0x18   :  { %652 = vrot.lane.b32.xlu2 %v5017_v63, %s4843_s9  ;;  %10374 = vst [vmem:[#allocation21_spill] sm:$0xff] %v5058_v25  ;;  %v5122_v16 = vsel %vm149_vm0, 0.0, %v173_v56  ;;  %v524_v21 = vrot.slane %v5113_v62, 1  ;;  %v525_v22 = vrot.slane %v5110_v61, 1  ;;  %v520_v23 = vrot.slane %v5116_v6, 1  ;;  %v43_v56 = vld [vmem:[%s9976_s0 + $0xb8] sm:$0xff] }
  0x19   :  { %650 = vrot.lane.b32.xlu1 %v5020_v0, %s4843_s9  ;;  %648 = vrot.lane.b32.xlu0 %v5023_v1, %s4843_s9  ;;  %10375 = vst [vmem:[#allocation22_spill] sm:$0xff] %v5061_v26  ;;  %v522_v24 = vrot.slane %v5119_v12, 1  ;;  %v519_v37 = vrot.slane %v5122_v16, 1  ;;  %v179_v40 = vrot.slane %v38_v17, 7  ;;  %v5154_v53 = vsel %vm149_vm0, %v180_v41, 0.0 }
  0x1a   :  { %10376 = vst [vmem:[#allocation23_spill] sm:$0xff] %v5067_v30  ;;  %v5142_v42 = vsel %vm478_vm1, %v524_v21, %v525_v22  ;;  %v5166_v17 = vsel %vm149_vm0, %v177_v55, 0.0  ;;  %v41_v21 = vld [vmem:[%s9976_s0 + $0xa8] sm:$0xff]  ;;  %v182_v15 = vrot.slane %v40_v18, 7  ;;  %vm3032_vm3 = vcmask 1043456  }
  0x1b   :  { %10377 = vst [vmem:[#allocation24_spill] sm:$0xff] %v5070_v32  ;;  %v5145_v43 = vsel %vm478_vm1, %v520_v23, %v522_v24  ;;  %v5148_v51 = vsel %vm478_vm1, %v519_v37, %v520_v23  ;;  %v5151_v52 = vsel %vm149_vm0, %v179_v40, %v180_v41  ;;  %v5163_v57 = vsel %vm149_vm0, 0.0, %v179_v40 }
  0x1c   :  { %10378 = vst [vmem:[#allocation25_spill] sm:$0xff] %v5073_v33  ;;  %v530_v55 = vrot.slane %v5151_v52, 1  ;;  %v532_v23 = vrot.slane %v5154_v53, 1  ;;  %v185_v24 = vrot.slane %v42_v54, 7  ;;  %v186_v37 = vrot.slane %v43_v56, 7 }
  0x1d   :  { %10379 = vst [vmem:[#allocation26_spill] sm:$0xff] %v5101_v58  ;;  %v529_v40 = vrot.slane %v5163_v57, 1  ;;  %v527_v41 = vrot.slane %v5166_v17, 1  ;;  %v183_v3 = vrot.slane %v41_v21, 7  ;;  %v44_v21 = vld [vmem:[%s9976_s0 + $0xc0] sm:$0xff]  ;;  %vm2320_vm4 = vcmask 31744  }
  0x1e   :  { %10380 = vst [vmem:[#allocation27_spill] sm:$0xff] %v5104_v59  ;;  %v5185_v29 = vsel %vm478_vm1, %v530_v55, %v532_v23  ;;  %v45_v23 = vld [vmem:[%s9976_s0 + $0xc8] sm:$0xff]  ;;  %vm2446_vm5 = vcmask 97280   ;;  %vm2383_vm6 = vcmask 64512   ;;  %vm2511_vm7 = vcmask 130048  }
  0x1f   :  { %10381 = vst [vmem:[#allocation28_spill] sm:$0xff] %v5107_v60  ;;  %v5197_v54 = vsel %vm478_vm1, %v525_v22, %v527_v41  ;;  %v5200_v56 = vsel %vm149_vm0, %v182_v15, %v183_v3  ;;  %v5203_v18 = vsel %vm149_vm0, %v183_v3, 0.0  ;;  %v188_v41 = vrot.slane %v44_v21, 7 }
  0x20   :  { %658 = vrot.lane.b32.xlu2 %v5058_v25, %s4843_s9  ;;  %10382 = vst [vmem:[#allocation29_spill] sm:$0xff] %v5110_v61  ;;  %v535_v3 = vrot.slane %v5200_v56, 1  ;;  %vm2576_vm8 = vcmask 162816   ;;  %vm2641_vm9 = vcmask 195584   ;;  %vm2706_vm10 = vcmask 228352  }
  0x21   :  { %656 = vrot.lane.b32.xlu1 %v5067_v30, %s4843_s9  ;;  %654 = vrot.lane.b32.xlu0 %v5070_v32, %s4843_s9  ;;  %10383 = vst [vmem:[#allocation30_spill] sm:$0xff] %v5113_v62  ;;  %v5241_v21 = vsel %vm149_vm0, 0.0, %v188_v41  ;;  %vm2839_vm11 = vcmask 293888   ;;  %vm2771_vm12 = vcmask 261120   ;;  %vm3831_vm13 = vcmask 1041408  }
  0x22   :  { %10384 = vst [vmem:[#allocation31_spill] sm:$0xff] %v5116_v6  ;;  %vm3846_vm14 = vcmask 1042432   ;;  %vm3875_vm15 = vcmask 1044480  }
  0x23   :  { %10385 = vst [vmem:[#allocation32_spill] sm:$0xff] %v5122_v16 }
  0x24   :  { %10386 = vst [vmem:[#allocation33_spill] sm:$0xff] %v5142_v42 }
  0x25   :  { %10387 = vst [vmem:[#allocation34_spill] sm:$0xff] %v5145_v43 }
  0x26   :  { %10388 = vst [vmem:[#allocation35_spill] sm:$0xff] %v5148_v51 }
  0x27   :  { %10389 = vst [vmem:[#allocation36_spill] sm:$0xff] %v5151_v52 }
  0x28   :  { %664 = vrot.lane.b32.xlu2 %v5101_v58, %s4843_s9  ;;  %10390 = vst [vmem:[#allocation37_spill] sm:$0xff] %v5163_v57 }
  0x29   :  { %662 = vrot.lane.b32.xlu1 %v5107_v60, %s4843_s9  ;;  %660 = vrot.lane.b32.xlu0 %v5104_v59, %s4843_s9  ;;  %10391 = vst [vmem:[#allocation38_spill] sm:$0xff] %v5185_v29  ;;  %v5194_v60 = vsel %vm478_vm1, %v529_v40, %v530_v55  ;;  %v5212_v55 = vsel %vm149_vm0, 0.0, %v182_v15  ;;  %v537_v40 = vrot.slane %v5203_v18, 1  ;;  %v189_v15 = vrot.slane %v45_v23, 7 }
  0x2a   :  { %10392 = vst [vmem:[#allocation39_spill] sm:$0xff] %v5194_v60  ;;  %v534_v58 = vrot.slane %v5212_v55, 1  ;;  %v5244_v23 = vsel %vm149_vm0, %v186_v37, 0.0 }
  0x2b   :  { %10393 = vst [vmem:[#allocation40_spill] sm:$0xff] %v5197_v54  ;;  %v5232_v30 = vsel %vm149_vm0, %v188_v41, %v189_v15  ;;  %v542_v25 = vrot.slane %v5244_v23, 1 }
  0x2c   :  { %10394 = vst [vmem:[#allocation41_spill] sm:$0xff] %v5212_v55 }
  0x30   :  { %670 = vrot.lane.b32.xlu2 %v5142_v42, %s4843_s9  ;;  %v5191_v42 = vsel %vm149_vm0, 0.0, %v185_v24 }
  0x31   :  { %668 = vrot.lane.b32.xlu1 %v5145_v43, %s4843_s9  ;;  %666 = vrot.lane.b32.xlu0 %v5148_v51, %s4843_s9  ;;  %v5188_v43 = vsel %vm149_vm0, %v185_v24, %v186_v37  ;;  %v539_v22 = vrot.slane %v5191_v42, 1  ;;  %v5229_v51 = vsel %vm478_vm1, %v535_v3, %v537_v40  ;;  %v49_v40 = vld [vmem:[%s9976_s0 + $0xe8] sm:$0xff]  ;;  %v545_v37 = vrot.slane %v5232_v30, 1 }
  0x32   :  { %v540_v24 = vrot.slane %v5188_v43, 1  ;;  %10396 = vst [vmem:[#allocation43_spill] sm:$0xff] %v5229_v51  ;;  %v195_v0 = vrot.slane %v49_v40, 7 }
  0x38   :  { %676 = vrot.lane.b32.xlu2 %v5185_v29, %s4843_s9  ;;  %v5226_v29 = vsel %vm478_vm1, %v539_v22, %v540_v24  ;;  %v48_v22 = vld [vmem:[%s9976_s0 + $0xe0] sm:$0xff] }
  0x39   :  { %674 = vrot.lane.b32.xlu1 %v5194_v60, %s4843_s9  ;;  %672 = vrot.lane.b32.xlu0 %v5197_v54, %s4843_s9  ;;  %10395 = vst [vmem:[#allocation42_spill] sm:$0xff] %v5226_v29  ;;  %v5235_v60 = vsel %vm478_vm1, %v534_v58, %v535_v3  ;;  %v5238_v54 = vsel %vm149_vm0, %v189_v15, 0.0  ;;  %v46_v58 = vld [vmem:[%s9976_s0 + $0xd0] sm:$0xff]  ;;  %v47_v3 = vld [vmem:[%s9976_s0 + $0xd8] sm:$0xff]  ;;  %v544_v15 = vrot.slane %v5241_v21, 1  ;;  %v194_v59 = vrot.slane %v48_v22, 7 }
  0x3a   :  { %10397 = vst [vmem:[#allocation44_spill] sm:$0xff] %v5235_v60  ;;  %v547_v41 = vrot.slane %v5238_v54, 1  ;;  %v191_v63 = vrot.slane %v46_v58, 7  ;;  %v192_v32 = vrot.slane %v47_v3, 7 }
  0x3b   :  { %10398 = vst [vmem:[#allocation45_spill] sm:$0xff] %v5238_v54  ;;  %v5272_v28 = vsel %vm478_vm1, %v544_v15, %v545_v37  ;;  %v5281_v44 = vsel %vm149_vm0, %v194_v59, %v195_v0 }
  0x3c   :  { %10400 = vst [vmem:[#allocation47_spill] sm:$0xff] %v5272_v28  ;;  %v5284_v22 = vsel %vm149_vm0, %v191_v63, %v192_v32  ;;  %v5287_v40 = vsel %vm149_vm0, %v192_v32, 0.0  ;;  %v5290_v58 = vsel %vm149_vm0, 0.0, %v191_v63  ;;  %v555_v63 = vrot.slane %v5281_v44, 1 }
  0x3d   :  { %10403 = vst [vmem:[#allocation50_spill] sm:$0xff] %v5281_v44  ;;  %v550_v32 = vrot.slane %v5284_v22, 1  ;;  %v552_v3 = vrot.slane %v5287_v40, 1 }
  0x3e   :  { %10404 = vst [vmem:[#allocation51_spill] sm:$0xff] %v5284_v22 }
  0x3f   :  { %10405 = vst [vmem:[#allocation52_spill] sm:$0xff] %v5287_v40  ;;  %v5313_v1 = vsel %vm478_vm1, %v550_v32, %v552_v3  ;;  %v55_v3 = vld [vmem:[%s9976_s0 + $0x118] sm:$0xff] }
  0x40   :  { %682 = vrot.lane.b32.xlu2 %v5226_v29, %s4843_s9  ;;  %v5269_v29 = vsel %vm478_vm1, %v545_v37, %v547_v41  ;;  %10406 = vst [vmem:[#allocation53_spill] sm:$0xff] %v5290_v58  ;;  %v549_v37 = vrot.slane %v5290_v58, 1  ;;  %v204_v54 = vrot.slane %v55_v3, 7  ;;  %v59_v3 = vld [vmem:[%s9976_s0 + $0x138] sm:$0xff] }
  0x41   :  { %680 = vrot.lane.b32.xlu1 %v5229_v51, %s4843_s9  ;;  %678 = vrot.lane.b32.xlu0 %v5235_v60, %s4843_s9  ;;  %10399 = vst [vmem:[#allocation46_spill] sm:$0xff] %v5269_v29  ;;  %v5275_v51 = vsel %vm478_vm1, %v540_v24, %v542_v25  ;;  %v5278_v60 = vsel %vm149_vm0, 0.0, %v194_v59  ;;  %v52_v25 = vld [vmem:[%s9976_s0 + $0x100] sm:$0xff]  ;;  %v53_v24 = vld [vmem:[%s9976_s0 + $0x108] sm:$0xff] }
  0x42   :  { %10401 = vst [vmem:[#allocation48_spill] sm:$0xff] %v5275_v51  ;;  %v554_v59 = vrot.slane %v5278_v60, 1  ;;  %v200_v41 = vrot.slane %v52_v25, 7  ;;  %v201_v15 = vrot.slane %v53_v24, 7  ;;  %v5328_v25 = vsel %vm149_vm0, %v195_v0, 0.0  ;;  %v56_v24 = vld [vmem:[%s9976_s0 + $0x120] sm:$0xff] }
  0x43   :  { %10402 = vst [vmem:[#allocation49_spill] sm:$0xff] %v5278_v60  ;;  %v206_v45 = vrot.slane %v56_v24, 7 }
  0x44   :  { %10408 = vst [vmem:[#allocation55_spill] sm:$0xff] %v5313_v1  ;;  %v5322_v46 = vsel %vm149_vm0, %v201_v15, 0.0  ;;  %v5325_v31 = vsel %vm149_vm0, 0.0, %v200_v41 }
  0x45   :  { %10411 = vst [vmem:[#allocation58_spill] sm:$0xff] %v5322_v46 }
  0x46   :  { %10412 = vst [vmem:[#allocation59_spill] sm:$0xff] %v5325_v31 }
  0x47   :  { %10413 = vst [vmem:[#allocation60_spill] sm:$0xff] %v5328_v25 }
  0x48   :  { %688 = vrot.lane.b32.xlu2 %v5269_v29, %s4843_s9  ;;  %v5310_v29 = vsel %vm478_vm1, %v554_v59, %v555_v63  ;;  %v57_v59 = vld [vmem:[%s9976_s0 + $0x128] sm:$0xff] }
  0x49   :  { %686 = vrot.lane.b32.xlu1 %v5272_v28, %s4843_s9  ;;  %684 = vrot.lane.b32.xlu0 %v5275_v51, %s4843_s9  ;;  %10407 = vst [vmem:[#allocation54_spill] sm:$0xff] %v5310_v29  ;;  %v5316_v28 = vsel %vm478_vm1, %v549_v37, %v550_v32  ;;  %v5319_v51 = vsel %vm149_vm0, %v200_v41, %v201_v15  ;;  %v54_v32 = vld [vmem:[%s9976_s0 + $0x110] sm:$0xff]  ;;  %v562_v37 = vrot.slane %v5322_v46, 1  ;;  %v559_v41 = vrot.slane %v5325_v31, 1 }
  0x4a   :  { %10409 = vst [vmem:[#allocation56_spill] sm:$0xff] %v5316_v28  ;;  %v560_v0 = vrot.slane %v5319_v51, 1  ;;  %v557_v15 = vrot.slane %v5328_v25, 1  ;;  %v207_v60 = vrot.slane %v57_v59, 7  ;;  %v203_v44 = vrot.slane %v54_v32, 7 }
  0x4b   :  { %10410 = vst [vmem:[#allocation57_spill] sm:$0xff] %v5319_v51  ;;  %v5365_v46 = vsel %vm149_vm0, 0.0, %v206_v45  ;;  %v5371_v59 = vsel %vm149_vm0, %v204_v54, 0.0 }
  0x4c   :  { %v5362_v51 = vsel %vm149_vm0, %v206_v45, %v207_v60  ;;  %10418 = vst [vmem:[#allocation65_spill] sm:$0xff] %v5365_v46  ;;  %v5368_v24 = vsel %vm149_vm0, %v203_v44, %v204_v54  ;;  %v5374_v32 = vsel %vm149_vm0, 0.0, %v203_v44  ;;  %v569_v44 = vrot.slane %v5365_v46, 1 }
  0x4d   :  { %10417 = vst [vmem:[#allocation64_spill] sm:$0xff] %v5362_v51  ;;  %v570_v45 = vrot.slane %v5362_v51, 1  ;;  %v565_v54 = vrot.slane %v5368_v24, 1 }
  0x4e   :  { %10419 = vst [vmem:[#allocation66_spill] sm:$0xff] %v5368_v24 }
  0x4f   :  { %10420 = vst [vmem:[#allocation67_spill] sm:$0xff] %v5371_v59 }
  0x50   :  { %694 = vrot.lane.b32.xlu2 %v5310_v29, %s4843_s9  ;;  %v5353_v29 = vsel %vm478_vm1, %v560_v0, %v562_v37  ;;  %10421 = vst [vmem:[#allocation68_spill] sm:$0xff] %v5374_v32  ;;  %v564_v37 = vrot.slane %v5374_v32, 1 }
  0x51   :  { %692 = vrot.lane.b32.xlu1 %v5313_v1, %s4843_s9  ;;  %690 = vrot.lane.b32.xlu0 %v5316_v28, %s4843_s9  ;;  %10414 = vst [vmem:[#allocation61_spill] sm:$0xff] %v5353_v29  ;;  %v5356_v1 = vsel %vm478_vm1, %v559_v41, %v560_v0  ;;  %v5359_v28 = vsel %vm478_vm1, %v555_v63, %v557_v15  ;;  %v58_v63 = vld [vmem:[%s9976_s0 + $0x130] sm:$0xff]  ;;  %v567_v0 = vrot.slane %v5371_v59, 1  ;;  %v210_v15 = vrot.slane %v59_v3, 7  ;;  %v63_v3 = vld [vmem:[%s9976_s0 + $0x158] sm:$0xff] }
  0x52   :  { %10415 = vst [vmem:[#allocation62_spill] sm:$0xff] %v5356_v1  ;;  %v209_v41 = vrot.slane %v58_v63, 7  ;;  %v62_v63 = vld [vmem:[%s9976_s0 + $0x150] sm:$0xff]  ;;  %v216_v32 = vrot.slane %v63_v3, 7 }
  0x53   :  { %10416 = vst [vmem:[#allocation63_spill] sm:$0xff] %v5359_v28  ;;  %v5406_v51 = vsel %vm149_vm0, %v210_v15, 0.0 }
  0x54   :  { %v5403_v46 = vsel %vm149_vm0, %v209_v41, %v210_v15  ;;  %10426 = vst [vmem:[#allocation73_spill] sm:$0xff] %v5406_v51  ;;  %v215_v15 = vrot.slane %v62_v63, 7 }
  0x55   :  { %10425 = vst [vmem:[#allocation72_spill] sm:$0xff] %v5403_v46 }
  0x58   :  { %700 = vrot.lane.b32.xlu2 %v5353_v29, %s4843_s9  ;;  %v5394_v29 = vsel %vm478_vm1, %v569_v44, %v570_v45  ;;  %v5415_v44 = vsel %vm149_vm0, 0.0, %v209_v41  ;;  %v577_v41 = vrot.slane %v5406_v51, 1 }
  0x59   :  { %698 = vrot.lane.b32.xlu1 %v5356_v1, %s4843_s9  ;;  %696 = vrot.lane.b32.xlu0 %v5359_v28, %s4843_s9  ;;  %10422 = vst [vmem:[#allocation69_spill] sm:$0xff] %v5394_v29  ;;  %v5397_v1 = vsel %vm478_vm1, %v565_v54, %v567_v0  ;;  %v5400_v28 = vsel %vm478_vm1, %v564_v37, %v565_v54  ;;  %v5418_v54 = vsel %vm149_vm0, %v207_v60, 0.0  ;;  %v60_v0 = vld [vmem:[%s9976_s0 + $0x140] sm:$0xff]  ;;  %v61_v37 = vld [vmem:[%s9976_s0 + $0x148] sm:$0xff]  ;;  %v575_v60 = vrot.slane %v5403_v46, 1 }
  0x5a   :  { %10423 = vst [vmem:[#allocation70_spill] sm:$0xff] %v5397_v1  ;;  %v574_v24 = vrot.slane %v5415_v44, 1  ;;  %v572_v25 = vrot.slane %v5418_v54, 1  ;;  %v212_v31 = vrot.slane %v60_v0, 7 }
  0x5b   :  { %10424 = vst [vmem:[#allocation71_spill] sm:$0xff] %v5400_v28  ;;  %v5439_v58 = vsel %vm478_vm1, %v575_v60, %v577_v41  ;;  %v65_v41 = vld [vmem:[%s9976_s0 + $0x168] sm:$0xff] }
  0x5c   :  { %10427 = vst [vmem:[#allocation74_spill] sm:$0xff] %v5415_v44  ;;  %v5448_v63 = vsel %vm478_vm1, %v574_v24, %v575_v60  ;;  %v5451_v3 = vsel %vm478_vm1, %v570_v45, %v572_v25  ;;  %v5466_v24 = vsel %vm149_vm0, 0.0, %v212_v31  ;;  %v824_v44 = vrot.slane %v4906_v11, 2 }
  0x5d   :  { %10428 = vst [vmem:[#allocation75_spill] sm:$0xff] %v5418_v54 }
  0x5e   :  { %10430 = vst [vmem:[#allocation77_spill] sm:$0xff] %v5439_v58 }
  0x5f   :  { %10433 = vst [vmem:[#allocation80_spill] sm:$0xff] %v5448_v63 }
  0x60   :  { %706 = vrot.lane.b32.xlu2 %v5394_v29, %s4843_s9  ;;  %v213_v29 = vrot.slane %v61_v37, 7  ;;  %10434 = vst [vmem:[#allocation81_spill] sm:$0xff] %v5451_v3  ;;  %v64_v37 = vld [vmem:[%s9976_s0 + $0x160] sm:$0xff] }
  0x61   :  { %704 = vrot.lane.b32.xlu1 %v5397_v1, %s4843_s9  ;;  %702 = vrot.lane.b32.xlu0 %v5400_v28, %s4843_s9  ;;  %v5442_v1 = vsel %vm149_vm0, %v215_v15, %v216_v32  ;;  %v5445_v28 = vsel %vm149_vm0, 0.0, %v215_v15  ;;  %10437 = vst [vmem:[#allocation84_spill] sm:$0xff] %v5466_v24  ;;  %v218_v15 = vrot.slane %v64_v37, 7 }
  0x62   :  { %v5434_v59 = vpop.permute.xlu2 %644  ;;  %10431 = vst [vmem:[#allocation78_spill] sm:$0xff] %v5442_v1  ;;  %v5457_v0 = vsel %vm149_vm0, %v213_v29, 0.0  ;;  %v584_v25 = vrot.slane %v5445_v28, 1  ;;  %v585_v45 = vrot.slane %v5442_v1, 1 }
  0x63   :  { %10429 = vst [vmem:[#allocation76_spill] sm:$0xff] %v5434_v59  ;;  %v5454_v59 = vsel %vm149_vm0, %v212_v31, %v213_v29  ;;  %v582_v60 = vrot.slane %v5457_v0, 1  ;;  %v219_v31 = vrot.slane %v65_v41, 7  ;;  %v5497_v37 = vsel %vm149_vm0, 0.0, %v218_v15 }
  0x64   :  { %10432 = vst [vmem:[#allocation79_spill] sm:$0xff] %v5445_v28  ;;  %v580_v29 = vrot.slane %v5454_v59, 1  ;;  %v5482_v28 = vsel %vm478_vm1, %v584_v25, %v585_v45  ;;  %v5500_v41 = vsel %vm149_vm0, %v216_v32, 0.0  ;;  %v68_v25 = vld [vmem:[%s9976_s0 + $0x180] sm:$0xff] }
  0x65   :  { %10435 = vst [vmem:[#allocation82_spill] sm:$0xff] %v5454_v59 }
  0x66   :  { %10436 = vst [vmem:[#allocation83_spill] sm:$0xff] %v5457_v0  ;;  %v5485_v1 = vsel %vm478_vm1, %v580_v29, %v582_v60  ;;  %v5494_v0 = vsel %vm149_vm0, %v219_v31, 0.0  ;;  %v69_v60 = vld [vmem:[%s9976_s0 + $0x188] sm:$0xff] }
  0x67   :  { %10439 = vst [vmem:[#allocation86_spill] sm:$0xff] %v5482_v28  ;;  %v225_v54 = vrot.slane %v69_v60, 7 }
  0x68   :  { %712 = vrot.lane.b32.xlu2 %v5439_v58, %s4843_s9  ;;  %v579_v58 = vrot.slane %v5466_v24, 1  ;;  %10440 = vst [vmem:[#allocation87_spill] sm:$0xff] %v5485_v1  ;;  %v224_v24 = vrot.slane %v68_v25, 7 }
  0x69   :  { %710 = vrot.lane.b32.xlu1 %v5448_v63, %s4843_s9  ;;  %708 = vrot.lane.b32.xlu0 %v5451_v3, %s4843_s9  ;;  %v5488_v63 = vsel %vm149_vm0, %v218_v15, %v219_v31  ;;  %10443 = vst [vmem:[#allocation90_spill] sm:$0xff] %v5494_v0  ;;  %v592_v15 = vrot.slane %v5494_v0, 1  ;;  %v589_v31 = vrot.slane %v5497_v37, 1 }
  0x6a   :  { %v5478_v51 = vpop.permute.xlu2 %646  ;;  %10441 = vst [vmem:[#allocation88_spill] sm:$0xff] %v5488_v63  ;;  %v5491_v3 = vsel %vm478_vm1, %v579_v58, %v580_v29  ;;  %v66_v58 = vld [vmem:[%s9976_s0 + $0x170] sm:$0xff]  ;;  %v67_v29 = vld [vmem:[%s9976_s0 + $0x178] sm:$0xff]  ;;  %v590_v32 = vrot.slane %v5488_v63, 1  ;;  %v5536_v0 = vsel %vm149_vm0, 0.0, %v224_v24 }
  0x6b   :  { %10438 = vst [vmem:[#allocation85_spill] sm:$0xff] %v5478_v51  ;;  %v587_v51 = vrot.slane %v5500_v41, 1  ;;  %v221_v46 = vrot.slane %v66_v58, 7 }
  0x6c   :  { %10442 = vst [vmem:[#allocation89_spill] sm:$0xff] %v5491_v3  ;;  %v5527_v63 = vsel %vm478_vm1, %v590_v32, %v592_v15 }
  0x6d   :  { %10444 = vst [vmem:[#allocation91_spill] sm:$0xff] %v5497_v37  ;;  %v5548_v58 = vsel %vm149_vm0, 0.0, %v221_v46 }
  0x6e   :  { %10445 = vst [vmem:[#allocation92_spill] sm:$0xff] %v5500_v41  ;;  %v5539_v41 = vsel %vm149_vm0, %v224_v24, %v225_v54  ;;  %v599_v24 = vrot.slane %v5536_v0, 1 }
  0x6f   :  { %10447 = vst [vmem:[#allocation94_spill] sm:$0xff] %v5527_v63 }
  0x70   :  { %718 = vrot.lane.b32.xlu2 %v5482_v28, %s4843_s9  ;;  %v222_v28 = vrot.slane %v67_v29, 7  ;;  %10450 = vst [vmem:[#allocation97_spill] sm:$0xff] %v5536_v0 }
  0x71   :  { %716 = vrot.lane.b32.xlu1 %v5485_v1, %s4843_s9  ;;  %714 = vrot.lane.b32.xlu0 %v5491_v3, %s4843_s9  ;;  %v5530_v1 = vsel %vm478_vm1, %v589_v31, %v590_v32  ;;  %v5533_v3 = vsel %vm478_vm1, %v585_v45, %v587_v51  ;;  %10451 = vst [vmem:[#allocation98_spill] sm:$0xff] %v5539_v41  ;;  %v70_v51 = vld [vmem:[%s9976_s0 + $0x190] sm:$0xff]  ;;  %v71_v45 = vld [vmem:[%s9976_s0 + $0x198] sm:$0xff]  ;;  %v594_v32 = vrot.slane %v5548_v58, 1 }
  0x72   :  { %v5524_v59 = vpop.permute.xlu2 %652  ;;  %10448 = vst [vmem:[#allocation95_spill] sm:$0xff] %v5530_v1  ;;  %v5542_v25 = vsel %vm149_vm0, %v221_v46, %v222_v28  ;;  %v5545_v60 = vsel %vm149_vm0, %v222_v28, 0.0  ;;  %v600_v28 = vrot.slane %v5539_v41, 1  ;;  %v227_v31 = vrot.slane %v70_v51, 7 }
  0x73   :  { %10446 = vst [vmem:[#allocation93_spill] sm:$0xff] %v5524_v59  ;;  %v595_v46 = vrot.slane %v5542_v25, 1  ;;  %v597_v29 = vrot.slane %v5545_v60, 1  ;;  %v228_v59 = vrot.slane %v71_v45, 7  ;;  %v5592_v45 = vsel %vm149_vm0, %v225_v54, 0.0 }
  0x74   :  { %10449 = vst [vmem:[#allocation96_spill] sm:$0xff] %v5533_v3  ;;  %v5589_v51 = vsel %vm149_vm0, 0.0, %v227_v31 }
  0x75   :  { %10452 = vst [vmem:[#allocation99_spill] sm:$0xff] %v5542_v25  ;;  %v5580_v41 = vsel %vm478_vm1, %v594_v32, %v595_v46 }
  0x76   :  { %10453 = vst [vmem:[#allocation100_spill] sm:$0xff] %v5545_v60  ;;  %v5583_v60 = vsel %vm149_vm0, %v227_v31, %v228_v59  ;;  %v604_v31 = vrot.slane %v5589_v51, 1 }
  0x77   :  { %10454 = vst [vmem:[#allocation101_spill] sm:$0xff] %v5548_v58  ;;  %v605_v54 = vrot.slane %v5583_v60, 1 }
  0x78   :  { %724 = vrot.lane.b32.xlu2 %v5527_v63, %s4843_s9  ;;  %10460 = vst [vmem:[#allocation107_spill] sm:$0xff] %v5580_v41 }
  0x79   :  { %722 = vrot.lane.b32.xlu1 %v5530_v1, %s4843_s9  ;;  %720 = vrot.lane.b32.xlu0 %v5533_v3, %s4843_s9  ;;  %v5574_v1 = vsel %vm478_vm1, %v599_v24, %v600_v28  ;;  %v5577_v3 = vsel %vm478_vm1, %v595_v46, %v597_v29  ;;  %10461 = vst [vmem:[#allocation108_spill] sm:$0xff] %v5583_v60  ;;  %v74_v24 = vld [vmem:[%s9976_s0 + $0x1b0] sm:$0xff]  ;;  %v75_v46 = vld [vmem:[%s9976_s0 + $0x1b8] sm:$0xff] }
  0x7a   :  { %v5567_v15 = vpop.permute.xlu2 %658  ;;  %10458 = vst [vmem:[#allocation105_spill] sm:$0xff] %v5574_v1  ;;  %v72_v29 = vld [vmem:[%s9976_s0 + $0x1a0] sm:$0xff]  ;;  %v233_v58 = vrot.slane %v74_v24, 7  ;;  %v234_v25 = vrot.slane %v75_v46, 7  ;;  %v822_v24 = vrot.slane %v4895_v4, 2 }
  0x7b   :  { %10455 = vst [vmem:[#allocation102_spill] sm:$0xff] %v5567_v15  ;;  %v5569_v63 = vpop.permute.xlu1 %640  ;;  %v5571_v0 = vpop.permute.xlu0 %4815  ;;  %v5586_v15 = vsel %vm149_vm0, %v228_v59, 0.0  ;;  %v73_v59 = vld [vmem:[%s9976_s0 + $0x1a8] sm:$0xff]  ;;  %v230_v37 = vrot.slane %v72_v29, 7 }
  0x7c   :  { %10456 = vst [vmem:[#allocation103_spill] sm:$0xff] %v5569_v63  ;;  %v607_v32 = vrot.slane %v5586_v15, 1  ;;  %v602_v63 = vrot.slane %v5592_v45, 1  ;;  %v5635_v11 = vsel %vm149_vm0, %v233_v58, %v234_v25  ;;  %v5638_v29 = vsel %vm149_vm0, 0.0, %v233_v58 }
  0x7d   :  { %10457 = vst [vmem:[#allocation104_spill] sm:$0xff] %v5571_v0 }
  0x7e   :  { %10459 = vst [vmem:[#allocation106_spill] sm:$0xff] %v5577_v3  ;;  %v5632_v46 = vsel %vm478_vm1, %v600_v28, %v602_v63  ;;  %v76_v63 = vld [vmem:[%s9976_s0 + $0x1c0] sm:$0xff]  ;;  %v77_v28 = vld [vmem:[%s9976_s0 + $0x1c8] sm:$0xff] }
  0x7f   :  { %10462 = vst [vmem:[#allocation109_spill] sm:$0xff] %v5586_v15  ;;  %v5627_v15 = vsel %vm478_vm1, %v604_v31, %v605_v54  ;;  %v825_v31 = vsel %vm820_vm2, %v822_v24, %v824_v44 }
  0x80   :  { %10463 = vst [vmem:[#allocation110_spill] sm:$0xff] %v5589_v51  ;;  %730 = vrot.lane.b32.xlu2 %v5574_v1, %s4843_s9  ;;  %v231_v1 = vrot.slane %v73_v59, 7 }
  0x81   :  { %10464 = vst [vmem:[#allocation111_spill] sm:$0xff] %v5592_v45  ;;  %728 = vrot.lane.b32.xlu1 %v5577_v3, %s4843_s9  ;;  %726 = vrot.lane.b32.xlu0 %v5580_v41, %s4843_s9  ;;  %v5624_v41 = vsel %vm478_vm1, %v605_v54, %v607_v32  ;;  %v10132_v45 = vrot.slane %v4902_v10, 2  ;;  %v5647_v54 = vsel %vm149_vm0, 0.0, %v230_v37 }
  0x82   :  { %v5616_v0 = vpop.permute.xlu2 %664  ;;  %10468 = vst [vmem:[#allocation115_spill] sm:$0xff] %v5624_v41  ;;  %v5641_v59 = vsel %vm149_vm0, %v230_v37, %v231_v1  ;;  %v5644_v32 = vsel %vm149_vm0, %v231_v1, 0.0  ;;  %v614_v37 = vrot.slane %v5638_v29, 1 }
  0x83   :  { %10465 = vst [vmem:[#allocation112_spill] sm:$0xff] %v5616_v0  ;;  %v5619_v3 = vpop.permute.xlu1 %642  ;;  %v5621_v40 = vpop.permute.xlu0 %638  ;;  %v823_v58 = vsel %vm820_vm2, %v10132_v45, %v822_v24  ;;  %v615_v0 = vrot.slane %v5635_v11, 1  ;;  %v612_v44 = vrot.slane %v5644_v32, 1  ;;  %v609_v24 = vrot.slane %v5647_v54, 1 }
  0x84   :  { %10466 = vst [vmem:[#allocation113_spill] sm:$0xff] %v5619_v3  ;;  %v5661_v1 = vpack.i.bf16 %v825_v31, %v823_v58  ;;  %v610_v3 = vrot.slane %v5641_v59, 1  ;;  %v236_v58 = vrot.slane %v76_v63, 7  ;;  %v237_v31 = vrot.slane %v77_v28, 7 }
  0x85   :  { %10467 = vst [vmem:[#allocation114_spill] sm:$0xff] %v5621_v40  ;;  %v5679_v10 = vsel %vm478_vm1, %v614_v37, %v615_v0  ;;  %v5697_v28 = vsel %vm149_vm0, %v234_v25, 0.0  ;;  %v80_v37 = vld [vmem:[%s9976_s0 + $0x1e0] sm:$0xff]  ;;  %v79_v25 = vld [vmem:[%s9976_s0 + $0x1d8] sm:$0xff] }
  0x86   :  { %10469 = vst [vmem:[#allocation116_spill] sm:$0xff] %v5627_v15  ;;  %v5694_v63 = vsel %vm149_vm0, 0.0, %v236_v58 }
  0x87   :  { %10470 = vst [vmem:[#allocation117_spill] sm:$0xff] %v5632_v46 }
  0x88   :  { %10471 = vst [vmem:[#allocation118_spill] sm:$0xff] %v5635_v11  ;;  %736 = vrot.lane.b32.xlu2 %v5624_v41, %s4843_s9  ;;  %v5682_v41 = vsel %vm478_vm1, %v610_v3, %v612_v44  ;;  %v78_v44 = vld [vmem:[%s9976_s0 + $0x1d0] sm:$0xff] }
  0x89   :  { %10472 = vst [vmem:[#allocation119_spill] sm:$0xff] %v5638_v29  ;;  %734 = vrot.lane.b32.xlu1 %v5627_v15, %s4843_s9  ;;  %732 = vrot.lane.b32.xlu0 %v5632_v46, %s4843_s9  ;;  %v5685_v46 = vsel %vm478_vm1, %v609_v24, %v610_v3  ;;  %v5691_v15 = vsel %vm149_vm0, %v237_v31, 0.0  ;;  %v81_v3 = vld [vmem:[%s9976_s0 + $0x1e8] sm:$0xff] }
  0x8a   :  { %10473 = vst [vmem:[#allocation120_spill] sm:$0xff] %v5641_v59  ;;  %v5670_v45 = vpop.permute.xlu2 %670  ;;  %v243_v29 = vrot.slane %v81_v3, 7 }
  0x8b   :  { %10474 = vst [vmem:[#allocation121_spill] sm:$0xff] %v5644_v32  ;;  %v5674_v40 = vpop.permute.xlu1 %650  ;;  %v5676_v4 = vpop.permute.xlu0 %648  ;;  %v240_v32 = vrot.slane %v79_v25, 7 }
  0x8c   :  { %10475 = vst [vmem:[#allocation122_spill] sm:$0xff] %v5647_v54 }
  0x8d   :  { %10476 = vst [vmem:[#allocation123_spill] sm:$0xff] %v5661_v1 }
  0x8e   :  { %10477 = vst [vmem:[#allocation124_spill] sm:$0xff] %v5670_v45  ;;  %v5688_v45 = vsel %vm149_vm0, %v236_v58, %v237_v31  ;;  %v622_v58 = vrot.slane %v5691_v15, 1 }
  0x8f   :  { %10478 = vst [vmem:[#allocation125_spill] sm:$0xff] %v5674_v40  ;;  %v620_v24 = vrot.slane %v5688_v45, 1  ;;  %v619_v40 = vrot.slane %v5694_v63, 1 }
  0x90   :  { %10479 = vst [vmem:[#allocation126_spill] sm:$0xff] %v5676_v4  ;;  %742 = vrot.lane.b32.xlu2 %v5679_v10, %s4843_s9  ;;  %v617_v4 = vrot.slane %v5697_v28, 1 }
  0x91   :  { %10480 = vst [vmem:[#allocation127_spill] sm:$0xff] %v5679_v10  ;;  %740 = vrot.lane.b32.xlu1 %v5682_v41, %s4843_s9  ;;  %738 = vrot.lane.b32.xlu0 %v5685_v46, %s4843_s9  ;;  %v242_v10 = vrot.slane %v80_v37, 7 }
  0x92   :  { %10481 = vst [vmem:[#allocation128_spill] sm:$0xff] %v5682_v41  ;;  %v5719_v31 = vpop.permute.xlu2 %676  ;;  %v239_v41 = vrot.slane %v78_v44, 7  ;;  %v5746_v44 = vsel %vm149_vm0, %v240_v32, 0.0 }
  0x93   :  { %10482 = vst [vmem:[#allocation129_spill] sm:$0xff] %v5685_v46  ;;  %v5723_v11 = vpop.permute.xlu1 %656  ;;  %v5725_v54 = vpop.permute.xlu0 %654  ;;  %v5728_v46 = vsel %vm478_vm1, %v620_v24, %v622_v58  ;;  %v5740_v37 = vsel %vm149_vm0, 0.0, %v242_v10 }
  0x94   :  { %10483 = vst [vmem:[#allocation130_spill] sm:$0xff] %v5688_v45  ;;  %v5731_v45 = vsel %vm478_vm1, %v619_v40, %v620_v24  ;;  %v5743_v3 = vsel %vm149_vm0, %v239_v41, %v240_v32  ;;  %v5749_v25 = vsel %vm149_vm0, 0.0, %v239_v41  ;;  %v627_v41 = vrot.slane %v5746_v44, 1 }
  0x95   :  { %10484 = vst [vmem:[#allocation131_spill] sm:$0xff] %v5691_v15  ;;  %v5737_v15 = vsel %vm149_vm0, %v242_v10, %v243_v29  ;;  %v624_v32 = vrot.slane %v5749_v25, 1 }
  0x96   :  { %10485 = vst [vmem:[#allocation132_spill] sm:$0xff] %v5694_v63  ;;  %v630_v10 = vrot.slane %v5737_v15, 1 }
  0x97   :  { %10486 = vst [vmem:[#allocation133_spill] sm:$0xff] %v5719_v31  ;;  %v5734_v31 = vsel %vm478_vm1, %v615_v0, %v617_v4  ;;  %v629_v4 = vrot.slane %v5740_v37, 1  ;;  %v625_v0 = vrot.slane %v5743_v3, 1 }
  0x98   :  { %10487 = vst [vmem:[#allocation134_spill] sm:$0xff] %v5723_v11  ;;  %748 = vrot.lane.b32.xlu2 %v5728_v46, %s4843_s9 }
  0x99   :  { %10488 = vst [vmem:[#allocation135_spill] sm:$0xff] %v5725_v54  ;;  %746 = vrot.lane.b32.xlu1 %v5731_v45, %s4843_s9  ;;  %744 = vrot.lane.b32.xlu0 %v5734_v31, %s4843_s9  ;;  %v5769_v11 = vsel %vm478_vm1, %v629_v4, %v630_v10  ;;  %v5772_v54 = vsel %vm478_vm1, %v625_v0, %v627_v41  ;;  %v826_v4 = vrot.slane %v4962_v36, 2  ;;  %v827_v41 = vrot.slane %v4920_v19, 2 }
  0x9a   :  { %10489 = vst [vmem:[#allocation136_spill] sm:$0xff] %v5728_v46  ;;  %v5759_v40 = vpop.permute.xlu2 %682  ;;  %v5775_v46 = vsel %vm478_vm1, %v624_v32, %v625_v0 }
  0x9b   :  { %10490 = vst [vmem:[#allocation137_spill] sm:$0xff] %v5731_v45  ;;  %v5764_v24 = vpop.permute.xlu1 %662  ;;  %v5766_v58 = vpop.permute.xlu0 %660 }
  0x9c   :  { %10491 = vst [vmem:[#allocation138_spill] sm:$0xff] %v5734_v31  ;;  %v10600_v31 = vld [vmem:[#allocation73_spill] sm:$0xff] }
  0x9d   :  { %10492 = vst [vmem:[#allocation139_spill] sm:$0xff] %v5737_v15 }
  0x9e   :  { %10493 = vst [vmem:[#allocation140_spill] sm:$0xff] %v5740_v37 }
  0x9f   :  { %10494 = vst [vmem:[#allocation141_spill] sm:$0xff] %v5743_v3 }
  0xa0   :  { %10495 = vst [vmem:[#allocation142_spill] sm:$0xff] %v5749_v25  ;;  %754 = vrot.lane.b32.xlu2 %v5769_v11, %s4843_s9 }
  0xa1   :  { %10496 = vst [vmem:[#allocation143_spill] sm:$0xff] %v5759_v40  ;;  %v5778_v40 = vsel %vm149_vm0, %v243_v29, 0.0  ;;  %752 = vrot.lane.b32.xlu1 %v5772_v54, %s4843_s9  ;;  %750 = vrot.lane.b32.xlu0 %v5775_v46, %s4843_s9 }
  0xa2   :  { %10497 = vst [vmem:[#allocation144_spill] sm:$0xff] %v5764_v24  ;;  %v5788_v24 = vpop.permute.xlu2 %688  ;;  %v632_v0 = vrot.slane %v5778_v40, 1 }
  0xa3   :  { %10498 = vst [vmem:[#allocation145_spill] sm:$0xff] %v5766_v58  ;;  %v5791_v32 = vpop.permute.xlu1 %668  ;;  %v5793_v29 = vpop.permute.xlu0 %666  ;;  %v5796_v58 = vsel %vm820_vm2, %v826_v4, %v827_v41  ;;  %v831_v4 = vrot.slane %v4954_v34, 2 }
  0xa4   :  { %10499 = vst [vmem:[#allocation146_spill] sm:$0xff] %v5769_v11  ;;  %v5799_v11 = vsel %vm478_vm1, %v630_v10, %v632_v0  ;;  %v829_v10 = vrot.slane %v4923_v20, 2  ;;  %v842_v20 = vrot.slane %v4983_v47, 2 }
  0xa5   :  { %10500 = vst [vmem:[#allocation147_spill] sm:$0xff] %v5772_v54 }
  0xa6   :  { %10501 = vst [vmem:[#allocation148_spill] sm:$0xff] %v5775_v46 }
  0xa7   :  { %10502 = vst [vmem:[#allocation149_spill] sm:$0xff] %v5788_v24 }
  0xa8   :  { %10503 = vst [vmem:[#allocation150_spill] sm:$0xff] %v5791_v32  ;;  %980 = vrot.lane.b32.xlu2 %v5796_v58, %s4844_s18  ;;  %v832_v32 = vrot.slane %v4910_v13, 2 }
  0xa9   :  { %10504 = vst [vmem:[#allocation151_spill] sm:$0xff] %v5793_v29  ;;  %4820 = vrot.lane.b32.xlu1 %v5661_v1, %s4844_s18  ;;  %756 = vrot.lane.b32.xlu0 %v5799_v11, %s4843_s9  ;;  %v834_v29 = vrot.slane %v4913_v14, 2  ;;  %v841_v14 = vrot.slane %v4989_v49, 2  ;;  %s4845_s9 = smov 12  }
  0xaa   :  { %10505 = vst [vmem:[#allocation152_spill] sm:$0xff] %v5796_v58  ;;  %v5809_v24 = vpop.permute.xlu2 %694  ;;  %v5821_v1 = vsel %vm820_vm2, %v831_v4, %v832_v32  ;;  %v836_v4 = vrot.slane %v4968_v39, 2 }
  0xab   :  { %10506 = vst [vmem:[#allocation153_spill] sm:$0xff] %v5799_v11  ;;  %v5813_v0 = vpop.permute.xlu1 %674  ;;  %v5815_v46 = vpop.permute.xlu0 %672  ;;  %v5818_v58 = vsel %vm820_vm2, %v832_v32, %v834_v29  ;;  %v5824_v11 = vsel %vm820_vm2, %v827_v41, %v829_v10  ;;  %v837_v32 = vrot.slane %v4965_v38, 2  ;;  %v839_v41 = vrot.slane %v4992_v50, 2 }
  0xac   :  { %10507 = vst [vmem:[#allocation154_spill] sm:$0xff] %v5809_v24  ;;  %v847_v50 = vrot.slane %v5035_v7, 2 }
  0xad   :  { %10508 = vst [vmem:[#allocation155_spill] sm:$0xff] %v5813_v0  ;;  %v5844_v0 = vsel %vm820_vm2, %v841_v14, %v842_v20  ;;  %v5847_v24 = vsel %vm820_vm2, %v837_v32, %v839_v41  ;;  %v849_v14 = vrot.slane %v5038_v8, 2  ;;  %v846_v41 = vrot.slane %v5041_v9, 2 }
  0xae   :  { %10509 = vst [vmem:[#allocation156_spill] sm:$0xff] %v5815_v46  ;;  %v857_v8 = vrot.slane %v5073_v33, 2 }
  0xaf   :  { %10510 = vst [vmem:[#allocation157_spill] sm:$0xff] %v5818_v58 }
  0xb0   :  { %10511 = vst [vmem:[#allocation158_spill] sm:$0xff] %v5821_v1  ;;  %986 = vrot.lane.b32.xlu2 %v5818_v58, %s4844_s18 }
  0xb1   :  { %10512 = vst [vmem:[#allocation159_spill] sm:$0xff] %v5824_v11  ;;  %984 = vrot.lane.b32.xlu1 %v5821_v1, %s4844_s18  ;;  %982 = vrot.lane.b32.xlu0 %v5824_v11, %s4844_s18  ;;  %v5850_v1 = vsel %vm820_vm2, %v836_v4, %v837_v32  ;;  %v844_v32 = vrot.slane %v4986_v48, 2  ;;  %v856_v48 = vrot.slane %v5061_v26, 2 }
  0xb2   :  { %v5834_v29 = vpop.permute.xlu2 %700  ;;  %10516 = vst [vmem:[#allocation163_spill] sm:$0xff] %v5844_v0 }
  0xb3   :  { %10513 = vst [vmem:[#allocation160_spill] sm:$0xff] %v5834_v29  ;;  %v5839_v10 = vpop.permute.xlu1 %680  ;;  %v5841_v46 = vpop.permute.xlu0 %678 }
  0xb4   :  { %10514 = vst [vmem:[#allocation161_spill] sm:$0xff] %v5839_v10  ;;  %v5869_v10 = vsel %vm820_vm2, %v847_v50, %v849_v14 }
  0xb5   :  { %10515 = vst [vmem:[#allocation162_spill] sm:$0xff] %v5841_v46 }
  0xb6   :  { %10517 = vst [vmem:[#allocation164_spill] sm:$0xff] %v5847_v24 }
  0xb7   :  { %10518 = vst [vmem:[#allocation165_spill] sm:$0xff] %v5850_v1 }
  0xb8   :  { %992 = vrot.lane.b32.xlu2 %v5844_v0, %s4844_s18  ;;  %10522 = vst [vmem:[#allocation169_spill] sm:$0xff] %v5869_v10  ;;  %v5875_v0 = vsel %vm820_vm2, %v842_v20, %v844_v32  ;;  %v854_v20 = vrot.slane %v5064_v27, 2  ;;  %v862_v27 = vrot.slane %v5116_v6, 2 }
  0xb9   :  { %990 = vrot.lane.b32.xlu1 %v5847_v24, %s4844_s18  ;;  %988 = vrot.lane.b32.xlu0 %v5850_v1, %s4844_s18  ;;  %v5872_v24 = vsel %vm820_vm2, %v846_v41, %v847_v50  ;;  %10524 = vst [vmem:[#allocation171_spill] sm:$0xff] %v5875_v0  ;;  %v852_v50 = vrot.slane %v5026_v2, 2  ;;  %v851_v41 = vrot.slane %v5029_v5, 2 }
  0xba   :  { %v5860_v46 = vpop.permute.xlu2 %706  ;;  %10523 = vst [vmem:[#allocation170_spill] sm:$0xff] %v5872_v24 }
  0xbb   :  { %10519 = vst [vmem:[#allocation166_spill] sm:$0xff] %v5860_v46  ;;  %v5864_v4 = vpop.permute.xlu1 %686  ;;  %v5866_v29 = vpop.permute.xlu0 %684 }
  0xbc   :  { %10520 = vst [vmem:[#allocation167_spill] sm:$0xff] %v5864_v4  ;;  %v5895_v4 = vsel %vm820_vm2, %v856_v48, %v857_v8  ;;  %v864_v48 = vrot.slane %v5119_v12, 2  ;;  %v872_v12 = vrot.slane %v5151_v52, 2 }
  0xbd   :  { %10521 = vst [vmem:[#allocation168_spill] sm:$0xff] %v5866_v29  ;;  %v5898_v29 = vsel %vm820_vm2, %v852_v50, %v854_v20  ;;  %v861_v20 = vrot.slane %v5122_v16, 2 }
  0xbe   :  { %10528 = vst [vmem:[#allocation175_spill] sm:$0xff] %v5895_v4 }
  0xbf   :  { %10529 = vst [vmem:[#allocation176_spill] sm:$0xff] %v5898_v29 }
  0xc0   :  { %998 = vrot.lane.b32.xlu2 %v5869_v10, %s4844_s18 }
  0xc1   :  { %996 = vrot.lane.b32.xlu1 %v5872_v24, %s4844_s18  ;;  %994 = vrot.lane.b32.xlu0 %v5875_v0, %s4844_s18  ;;  %v5901_v24 = vsel %vm820_vm2, %v851_v41, %v852_v50  ;;  %v859_v50 = vrot.slane %v5076_v35, 2  ;;  %v871_v35 = vrot.slane %v5163_v57, 2 }
  0xc2   :  { %v5885_v14 = vpop.permute.xlu2 %712  ;;  %10530 = vst [vmem:[#allocation177_spill] sm:$0xff] %v5901_v24 }
  0xc3   :  { %10525 = vst [vmem:[#allocation172_spill] sm:$0xff] %v5885_v14  ;;  %v5890_v32 = vpop.permute.xlu1 %692  ;;  %v5892_v46 = vpop.permute.xlu0 %690 }
  0xc4   :  { %10526 = vst [vmem:[#allocation173_spill] sm:$0xff] %v5890_v32 }
  0xc5   :  { %10527 = vst [vmem:[#allocation174_spill] sm:$0xff] %v5892_v46  ;;  %v5920_v46 = vsel %vm820_vm2, %v862_v27, %v864_v48 }
  0xc6   :  { %10534 = vst [vmem:[#allocation181_spill] sm:$0xff] %v5920_v46 }
  0xc8   :  { %1004 = vrot.lane.b32.xlu2 %v5895_v4, %s4844_s18  ;;  %v5926_v4 = vsel %vm820_vm2, %v857_v8, %v859_v50  ;;  %v869_v8 = vrot.slane %v5166_v17, 2  ;;  %v877_v17 = vrot.slane %v5200_v56, 2 }
  0xc9   :  { %1002 = vrot.lane.b32.xlu1 %v5898_v29, %s4844_s18  ;;  %1000 = vrot.lane.b32.xlu0 %v5901_v24, %s4844_s18  ;;  %v5923_v29 = vsel %vm820_vm2, %v861_v20, %v862_v27  ;;  %10536 = vst [vmem:[#allocation183_spill] sm:$0xff] %v5926_v4  ;;  %v867_v27 = vrot.slane %v5110_v61, 2  ;;  %v866_v20 = vrot.slane %v5113_v62, 2  ;;  %v10579_v24 = vld [vmem:[#allocation58_spill] sm:$0xff] }
  0xca   :  { %v5911_v14 = vpop.permute.xlu2 %718  ;;  %10535 = vst [vmem:[#allocation182_spill] sm:$0xff] %v5923_v29 }
  0xcb   :  { %10531 = vst [vmem:[#allocation178_spill] sm:$0xff] %v5911_v14  ;;  %v5915_v41 = vpop.permute.xlu1 %698  ;;  %v5917_v32 = vpop.permute.xlu0 %696  ;;  %v5949_v14 = vsel %vm820_vm2, %v867_v27, %v869_v8  ;;  %v876_v8 = vrot.slane %v5212_v55, 2 }
  0xcc   :  { %10532 = vst [vmem:[#allocation179_spill] sm:$0xff] %v5915_v41 }
  0xcd   :  { %10533 = vst [vmem:[#allocation180_spill] sm:$0xff] %v5917_v32  ;;  %v5946_v32 = vsel %vm820_vm2, %v871_v35, %v872_v12  ;;  %v879_v35 = vrot.slane %v5203_v18, 2  ;;  %v887_v18 = vrot.slane %v5232_v30, 2 }
  0xce   :  { %10540 = vst [vmem:[#allocation187_spill] sm:$0xff] %v5946_v32 }
  0xcf   :  { %10541 = vst [vmem:[#allocation188_spill] sm:$0xff] %v5949_v14 }
  0xd0   :  { %1010 = vrot.lane.b32.xlu2 %v5920_v46, %s4844_s18 }
  0xd1   :  { %1008 = vrot.lane.b32.xlu1 %v5923_v29, %s4844_s18  ;;  %1006 = vrot.lane.b32.xlu0 %v5926_v4, %s4844_s18  ;;  %v5952_v29 = vsel %vm820_vm2, %v866_v20, %v867_v27  ;;  %v874_v27 = vrot.slane %v5154_v53, 2  ;;  %v886_v53 = vrot.slane %v5241_v21, 2 }
  0xd2   :  { %v5936_v48 = vpop.permute.xlu2 %724  ;;  %10542 = vst [vmem:[#allocation189_spill] sm:$0xff] %v5952_v29 }
  0xd3   :  { %10537 = vst [vmem:[#allocation184_spill] sm:$0xff] %v5936_v48  ;;  %v5941_v50 = vpop.permute.xlu1 %704  ;;  %v5943_v41 = vpop.permute.xlu0 %702  ;;  %v5971_v48 = vsel %vm820_vm2, %v877_v17, %v879_v35 }
  0xd4   :  { %10538 = vst [vmem:[#allocation185_spill] sm:$0xff] %v5941_v50 }
  0xd5   :  { %10539 = vst [vmem:[#allocation186_spill] sm:$0xff] %v5943_v41 }
  0xd6   :  { %10546 = vst [vmem:[#allocation193_spill] sm:$0xff] %v5971_v48 }
  0xd8   :  { %1016 = vrot.lane.b32.xlu2 %v5946_v32, %s4844_s18  ;;  %v5977_v32 = vsel %vm820_vm2, %v872_v12, %v874_v27  ;;  %v884_v12 = vrot.slane %v5244_v23, 2  ;;  %v892_v23 = vrot.slane %v5284_v22, 2 }
  0xd9   :  { %1014 = vrot.lane.b32.xlu1 %v5949_v14, %s4844_s18  ;;  %1012 = vrot.lane.b32.xlu0 %v5952_v29, %s4844_s18  ;;  %v5974_v14 = vsel %vm820_vm2, %v876_v8, %v877_v17  ;;  %10548 = vst [vmem:[#allocation195_spill] sm:$0xff] %v5977_v32  ;;  %v882_v17 = vrot.slane %v5188_v43, 2  ;;  %v881_v8 = vrot.slane %v5191_v42, 2 }
  0xda   :  { %v5962_v50 = vpop.permute.xlu2 %730  ;;  %10547 = vst [vmem:[#allocation194_spill] sm:$0xff] %v5974_v14 }
  0xdb   :  { %10543 = vst [vmem:[#allocation190_spill] sm:$0xff] %v5962_v50  ;;  %v5966_v20 = vpop.permute.xlu1 %710  ;;  %v5968_v41 = vpop.permute.xlu0 %708  ;;  %v6000_v50 = vsel %vm820_vm2, %v882_v17, %v884_v12  ;;  %v10557_v12 = vld [vmem:[#allocation53_spill] sm:$0xff] }
  0xdc   :  { %10544 = vst [vmem:[#allocation191_spill] sm:$0xff] %v5966_v20  ;;  %v5997_v20 = vsel %vm820_vm2, %v886_v53, %v887_v18 }
  0xdd   :  { %10545 = vst [vmem:[#allocation192_spill] sm:$0xff] %v5968_v41 }
  0xde   :  { %10552 = vst [vmem:[#allocation199_spill] sm:$0xff] %v5997_v20 }
  0xdf   :  { %10553 = vst [vmem:[#allocation200_spill] sm:$0xff] %v6000_v50 }
  0xe0   :  { %1022 = vrot.lane.b32.xlu2 %v5971_v48, %s4844_s18  ;;  %v10558_v48 = vld [vmem:[#allocation45_spill] sm:$0xff] }
  0xe1   :  { %1020 = vrot.lane.b32.xlu1 %v5974_v14, %s4844_s18  ;;  %1018 = vrot.lane.b32.xlu0 %v5977_v32, %s4844_s18  ;;  %v6003_v14 = vsel %vm820_vm2, %v881_v8, %v882_v17  ;;  %v889_v17 = vrot.slane %v10558_v48, 2  ;;  %v10564_v48 = vld [vmem:[#allocation59_spill] sm:$0xff] }
  0xe2   :  { %v5987_v35 = vpop.permute.xlu2 %736  ;;  %10554 = vst [vmem:[#allocation201_spill] sm:$0xff] %v6003_v14 }
  0xe3   :  { %10549 = vst [vmem:[#allocation196_spill] sm:$0xff] %v5987_v35  ;;  %v5992_v27 = vpop.permute.xlu1 %716  ;;  %v5994_v41 = vpop.permute.xlu0 %714  ;;  %v891_v35 = vrot.slane %v10557_v12, 2 }
  0xe4   :  { %10550 = vst [vmem:[#allocation197_spill] sm:$0xff] %v5992_v27  ;;  %v10555_v27 = vld [vmem:[#allocation52_spill] sm:$0xff] }
  0xe5   :  { %10551 = vst [vmem:[#allocation198_spill] sm:$0xff] %v5994_v41  ;;  %v894_v53 = vrot.slane %v10555_v27, 2  ;;  %v901_v27 = vrot.slane %v10564_v48, 2 }
  0xe8   :  { %1028 = vrot.lane.b32.xlu2 %v5997_v20, %s4844_s18  ;;  %v6022_v20 = vsel %vm820_vm2, %v892_v23, %v894_v53 }
  0xe9   :  { %1026 = vrot.lane.b32.xlu1 %v6000_v50, %s4844_s18  ;;  %1024 = vrot.lane.b32.xlu0 %v6003_v14, %s4844_s18  ;;  %10561 = vst [vmem:[#allocation203_spill] sm:$0xff] %v6022_v20  ;;  %v6025_v50 = vsel %vm820_vm2, %v891_v35, %v892_v23  ;;  %v6028_v14 = vsel %vm820_vm2, %v887_v18, %v889_v17  ;;  %v10567_v35 = vld [vmem:[#allocation50_spill] sm:$0xff]  ;;  %v10569_v17 = vld [vmem:[#allocation49_spill] sm:$0xff] }
  0xea   :  { %v6013_v41 = vpop.permute.xlu2 %742  ;;  %10562 = vst [vmem:[#allocation204_spill] sm:$0xff] %v6025_v50  ;;  %v897_v23 = vrot.slane %v10567_v35, 2  ;;  %v896_v46 = vrot.slane %v10569_v17, 2 }
  0xeb   :  { %10556 = vst [vmem:[#allocation52_spill] sm:$0xff] %v6013_v41  ;;  %v6017_v8 = vpop.permute.xlu1 %722  ;;  %v6019_v32 = vpop.permute.xlu0 %720  ;;  %v10565_v41 = vld [vmem:[#allocation57_spill] sm:$0xff] }
  0xec   :  { %10559 = vst [vmem:[#allocation45_spill] sm:$0xff] %v6017_v8  ;;  %v902_v53 = vrot.slane %v10565_v41, 2  ;;  %v6054_v4 = vsel %vm820_vm2, %v896_v46, %v897_v23  ;;  %v904_v46 = vrot.slane %v10579_v24, 2  ;;  %v10585_v24 = vld [vmem:[#allocation74_spill] sm:$0xff] }
  0xed   :  { %10560 = vst [vmem:[#allocation202_spill] sm:$0xff] %v6019_v32  ;;  %v10568_v32 = vld [vmem:[#allocation60_spill] sm:$0xff] }
  0xee   :  { %10563 = vst [vmem:[#allocation205_spill] sm:$0xff] %v6028_v14  ;;  %v899_v18 = vrot.slane %v10568_v32, 2  ;;  %v10575_v32 = vld [vmem:[#allocation66_spill] sm:$0xff] }
  0xef   :  { %10574 = vst [vmem:[#allocation210_spill] sm:$0xff] %v6054_v4 }
  0xf0   :  { %1034 = vrot.lane.b32.xlu2 %v6022_v20, %s4844_s18 }
  0xf1   :  { %1032 = vrot.lane.b32.xlu1 %v6025_v50, %s4844_s18  ;;  %1030 = vrot.lane.b32.xlu0 %v6028_v14, %s4844_s18  ;;  %v6048_v50 = vsel %vm820_vm2, %v901_v27, %v902_v53  ;;  %v6051_v14 = vsel %vm820_vm2, %v897_v23, %v899_v18  ;;  %v10578_v18 = vld [vmem:[#allocation68_spill] sm:$0xff] }
  0xf2   :  { %v6038_v8 = vpop.permute.xlu2 %748  ;;  %10572 = vst [vmem:[#allocation208_spill] sm:$0xff] %v6048_v50  ;;  %v906_v10 = vrot.slane %v10578_v18, 2 }
  0xf3   :  { %10566 = vst [vmem:[#allocation206_spill] sm:$0xff] %v6038_v8  ;;  %v6043_v29 = vpop.permute.xlu1 %728  ;;  %v6045_v20 = vpop.permute.xlu0 %726  ;;  %v907_v8 = vrot.slane %v10575_v32, 2 }
  0xf4   :  { %10570 = vst [vmem:[#allocation60_spill] sm:$0xff] %v6043_v29  ;;  %v10576_v29 = vld [vmem:[#allocation67_spill] sm:$0xff] }
  0xf5   :  { %10571 = vst [vmem:[#allocation207_spill] sm:$0xff] %v6045_v20  ;;  %v909_v27 = vrot.slane %v10576_v29, 2  ;;  %v916_v29 = vrot.slane %v10585_v24, 2 }
  0xf6   :  { %10573 = vst [vmem:[#allocation209_spill] sm:$0xff] %v6051_v14 }
  0xf8   :  { %1040 = vrot.lane.b32.xlu2 %v6048_v50, %s4844_s18  ;;  %v6073_v50 = vsel %vm820_vm2, %v907_v8, %v909_v27 }
  0xf9   :  { %1038 = vrot.lane.b32.xlu1 %v6051_v14, %s4844_s18  ;;  %1036 = vrot.lane.b32.xlu0 %v6054_v4, %s4844_s18  ;;  %10582 = vst [vmem:[#allocation212_spill] sm:$0xff] %v6073_v50  ;;  %v6076_v14 = vsel %vm820_vm2, %v906_v10, %v907_v8  ;;  %v6079_v4 = vsel %vm820_vm2, %v902_v53, %v904_v46  ;;  %v10588_v10 = vld [vmem:[#allocation64_spill] sm:$0xff]  ;;  %v10590_v46 = vld [vmem:[#allocation65_spill] sm:$0xff] }
  0xfa   :  { %v6064_v20 = vpop.permute.xlu2 %754  ;;  %10583 = vst [vmem:[#allocation213_spill] sm:$0xff] %v6076_v14  ;;  %v912_v8 = vrot.slane %v10588_v10, 2  ;;  %v911_v58 = vrot.slane %v10590_v46, 2 }
  0xfb   :  { %10577 = vst [vmem:[#allocation67_spill] sm:$0xff] %v6064_v20  ;;  %v6068_v23 = vpop.permute.xlu1 %734  ;;  %v6070_v0 = vpop.permute.xlu0 %732  ;;  %v10589_v20 = vld [vmem:[#allocation75_spill] sm:$0xff] }
  0xfc   :  { %10580 = vst [vmem:[#allocation58_spill] sm:$0xff] %v6068_v23  ;;  %v10586_v23 = vld [vmem:[#allocation72_spill] sm:$0xff]  ;;  %v914_v53 = vrot.slane %v10589_v20, 2  ;;  %v6105_v11 = vsel %vm820_vm2, %v911_v58, %v912_v8  ;;  %v10596_v20 = vld [vmem:[#allocation82_spill] sm:$0xff]  ;;  %v919_v58 = vrot.slane %v10600_v31, 2 }
  0xfd   :  { %10581 = vst [vmem:[#allocation211_spill] sm:$0xff] %v6070_v0  ;;  %v917_v27 = vrot.slane %v10586_v23, 2 }
  0xfe   :  { %10584 = vst [vmem:[#allocation214_spill] sm:$0xff] %v6079_v4 }
  0xff   :  { %10595 = vst [vmem:[#allocation219_spill] sm:$0xff] %v6105_v11 }
 0x100   :  { %1046 = vrot.lane.b32.xlu2 %v6073_v50, %s4844_s18 }
 0x101   :  { %1044 = vrot.lane.b32.xlu1 %v6076_v14, %s4844_s18  ;;  %1042 = vrot.lane.b32.xlu0 %v6079_v4, %s4844_s18  ;;  %v6099_v14 = vsel %vm820_vm2, %v916_v29, %v917_v27  ;;  %v6102_v4 = vsel %vm820_vm2, %v912_v8, %v914_v53  ;;  %v10599_v53 = vld [vmem:[#allocation84_spill] sm:$0xff] }
 0x102   :  { %v6089_v0 = vpop.permute.xlu2 %980  ;;  %10593 = vst [vmem:[#allocation217_spill] sm:$0xff] %v6099_v14  ;;  %v921_v54 = vrot.slane %v10599_v53, 2 }
 0x103   :  { %10587 = vst [vmem:[#allocation215_spill] sm:$0xff] %v6089_v0  ;;  %v6094_v1 = vpop.permute.xlu1 %740  ;;  %v6096_v50 = vpop.permute.xlu0 %738 }
 0x104   :  { %10591 = vst [vmem:[#allocation75_spill] sm:$0xff] %v6094_v1  ;;  %v10597_v1 = vld [vmem:[#allocation83_spill] sm:$0xff] }
 0x105   :  { %10592 = vst [vmem:[#allocation216_spill] sm:$0xff] %v6096_v50  ;;  %v922_v50 = vrot.slane %v10596_v20, 2  ;;  %v924_v29 = vrot.slane %v10597_v1, 2  ;;  %v10606_v1 = vld [vmem:[#allocation91_spill] sm:$0xff] }
 0x106   :  { %10594 = vst [vmem:[#allocation218_spill] sm:$0xff] %v6102_v4  ;;  %v931_v31 = vrot.slane %v10606_v1, 2 }
 0x108   :  { %1052 = vrot.lane.b32.xlu2 %v6099_v14, %s4844_s18  ;;  %v6124_v14 = vsel %vm820_vm2, %v922_v50, %v924_v29 }
 0x109   :  { %1050 = vrot.lane.b32.xlu1 %v6102_v4, %s4844_s18  ;;  %1048 = vrot.lane.b32.xlu0 %v6105_v11, %s4844_s18  ;;  %10603 = vst [vmem:[#allocation221_spill] sm:$0xff] %v6124_v14  ;;  %v6127_v4 = vsel %vm820_vm2, %v921_v54, %v922_v50  ;;  %v6130_v11 = vsel %vm820_vm2, %v917_v27, %v919_v58  ;;  %v10609_v54 = vld [vmem:[#allocation78_spill] sm:$0xff]  ;;  %v10611_v58 = vld [vmem:[#allocation79_spill] sm:$0xff] }
 0x10a   :  { %v6115_v0 = vpop.permute.xlu2 %986  ;;  %10604 = vst [vmem:[#allocation222_spill] sm:$0xff] %v6127_v4  ;;  %v927_v50 = vrot.slane %v10609_v54, 2  ;;  %v926_v53 = vrot.slane %v10611_v58, 2 }
 0x10b   :  { %10598 = vst [vmem:[#allocation83_spill] sm:$0xff] %v6115_v0  ;;  %v6119_v8 = vpop.permute.xlu1 %746  ;;  %v6121_v45 = vpop.permute.xlu0 %744  ;;  %v10610_v0 = vld [vmem:[#allocation92_spill] sm:$0xff] }
 0x10c   :  { %10601 = vst [vmem:[#allocation73_spill] sm:$0xff] %v6119_v8  ;;  %v10607_v8 = vld [vmem:[#allocation88_spill] sm:$0xff]  ;;  %v929_v27 = vrot.slane %v10610_v0, 2  ;;  %v6156_v1 = vsel %vm820_vm2, %v926_v53, %v927_v50  ;;  %v10617_v0 = vld [vmem:[#allocation99_spill] sm:$0xff] }
 0x10d   :  { %10602 = vst [vmem:[#allocation220_spill] sm:$0xff] %v6121_v45  ;;  %v932_v29 = vrot.slane %v10607_v8, 2  ;;  %v10621_v8 = vld [vmem:[#allocation90_spill] sm:$0xff] }
 0x10e   :  { %10605 = vst [vmem:[#allocation223_spill] sm:$0xff] %v6130_v11  ;;  %v934_v53 = vrot.slane %v10621_v8, 2  ;;  %v947_v8 = vrot.slane %v5583_v60, 2 }
 0x10f   :  { %10616 = vst [vmem:[#allocation228_spill] sm:$0xff] %v6156_v1 }
 0x110   :  { %1058 = vrot.lane.b32.xlu2 %v6124_v14, %s4844_s18 }
 0x111   :  { %1056 = vrot.lane.b32.xlu1 %v6127_v4, %s4844_s18  ;;  %1054 = vrot.lane.b32.xlu0 %v6130_v11, %s4844_s18  ;;  %v6150_v4 = vsel %vm820_vm2, %v931_v31, %v932_v29  ;;  %v6153_v11 = vsel %vm820_vm2, %v927_v50, %v929_v27  ;;  %v10620_v27 = vld [vmem:[#allocation101_spill] sm:$0xff] }
 0x112   :  { %v6140_v45 = vpop.permute.xlu2 %992  ;;  %10614 = vst [vmem:[#allocation226_spill] sm:$0xff] %v6150_v4  ;;  %v936_v54 = vrot.slane %v10620_v27, 2 }
 0x113   :  { %10608 = vst [vmem:[#allocation224_spill] sm:$0xff] %v6140_v45  ;;  %v6145_v20 = vpop.permute.xlu1 %752  ;;  %v6147_v14 = vpop.permute.xlu0 %750 }
 0x114   :  { %10612 = vst [vmem:[#allocation92_spill] sm:$0xff] %v6145_v20  ;;  %v937_v20 = vrot.slane %v10617_v0, 2 }
 0x115   :  { %10613 = vst [vmem:[#allocation225_spill] sm:$0xff] %v6147_v14  ;;  %v10618_v14 = vld [vmem:[#allocation100_spill] sm:$0xff] }
 0x116   :  { %10615 = vst [vmem:[#allocation227_spill] sm:$0xff] %v6153_v11  ;;  %v939_v31 = vrot.slane %v10618_v14, 2  ;;  %v946_v14 = vrot.slane %v5589_v51, 2 }
 0x118   :  { %1064 = vrot.lane.b32.xlu2 %v6150_v4, %s4844_s18  ;;  %v6175_v4 = vsel %vm820_vm2, %v937_v20, %v939_v31 }
 0x119   :  { %1062 = vrot.lane.b32.xlu1 %v6153_v11, %s4844_s18  ;;  %1060 = vrot.lane.b32.xlu0 %v6156_v1, %s4844_s18  ;;  %10624 = vst [vmem:[#allocation230_spill] sm:$0xff] %v6175_v4  ;;  %v6178_v11 = vsel %vm820_vm2, %v936_v54, %v937_v20  ;;  %v6181_v1 = vsel %vm820_vm2, %v932_v29, %v934_v53  ;;  %v10628_v20 = vld [vmem:[#allocation98_spill] sm:$0xff]  ;;  %v10630_v53 = vld [vmem:[#allocation97_spill] sm:$0xff] }
 0x11a   :  { %v6166_v45 = vpop.permute.xlu2 %998  ;;  %10625 = vst [vmem:[#allocation231_spill] sm:$0xff] %v6178_v11  ;;  %v942_v54 = vrot.slane %v10628_v20, 2  ;;  %v10639_v20 = vld [vmem:[#allocation109_spill] sm:$0xff] }
 0x11b   :  { %10619 = vst [vmem:[#allocation100_spill] sm:$0xff] %v6166_v45  ;;  %v6170_v50 = vpop.permute.xlu1 %4820  ;;  %v6172_v58 = vpop.permute.xlu0 %756  ;;  %v10629_v45 = vld [vmem:[#allocation111_spill] sm:$0xff] }
 0x11c   :  { %10622 = vst [vmem:[#allocation90_spill] sm:$0xff] %v6170_v50  ;;  %v944_v29 = vrot.slane %v10629_v45, 2  ;;  %v952_v45 = vrot.slane %v5641_v59, 2 }
 0x11d   :  { %10623 = vst [vmem:[#allocation229_spill] sm:$0xff] %v6172_v58  ;;  %v941_v58 = vrot.slane %v10630_v53, 2 }
 0x11e   :  { %10626 = vst [vmem:[#allocation232_spill] sm:$0xff] %v6181_v1 }
 0x11f   :  { %v6207_v51 = vsel %vm820_vm2, %v941_v58, %v942_v54  ;;  %v949_v58 = vrot.slane %v10639_v20, 2  ;;  %v10645_v20 = vld [vmem:[#allocation130_spill] sm:$0xff] }
 0x120   :  { %1070 = vrot.lane.b32.xlu2 %v6175_v4, %s4844_s18  ;;  %10635 = vst [vmem:[#allocation237_spill] sm:$0xff] %v6207_v51 }
 0x121   :  { %1068 = vrot.lane.b32.xlu1 %v6178_v11, %s4844_s18  ;;  %1066 = vrot.lane.b32.xlu0 %v6181_v1, %s4844_s18  ;;  %v6201_v11 = vsel %vm820_vm2, %v946_v14, %v947_v8  ;;  %v6204_v1 = vsel %vm820_vm2, %v942_v54, %v944_v29  ;;  %v10638_v29 = vld [vmem:[#allocation122_spill] sm:$0xff] }
 0x122   :  { %v6191_v31 = vpop.permute.xlu2 %1004  ;;  %10633 = vst [vmem:[#allocation235_spill] sm:$0xff] %v6201_v11 }
 0x123   :  { %10627 = vst [vmem:[#allocation233_spill] sm:$0xff] %v6191_v31  ;;  %v6196_v50 = vpop.permute.xlu1 %984  ;;  %v6198_v4 = vpop.permute.xlu0 %982  ;;  %v10636_v31 = vld [vmem:[#allocation121_spill] sm:$0xff] }
 0x124   :  { %10631 = vst [vmem:[#allocation111_spill] sm:$0xff] %v6196_v50  ;;  %v954_v14 = vrot.slane %v10636_v31, 2  ;;  %v961_v31 = vrot.slane %v5694_v63, 2 }
 0x125   :  { %10632 = vst [vmem:[#allocation234_spill] sm:$0xff] %v6198_v4  ;;  %v951_v4 = vrot.slane %v10638_v29, 2 }
 0x126   :  { %10634 = vst [vmem:[#allocation236_spill] sm:$0xff] %v6204_v1 }
 0x128   :  { %1076 = vrot.lane.b32.xlu2 %v6201_v11, %s4844_s18  ;;  %v6226_v11 = vsel %vm820_vm2, %v952_v45, %v954_v14  ;;  %v962_v14 = vrot.slane %v10645_v20, 2 }
 0x129   :  { %1074 = vrot.lane.b32.xlu1 %v6204_v1, %s4844_s18  ;;  %1072 = vrot.lane.b32.xlu0 %v6207_v51, %s4844_s18  ;;  %10642 = vst [vmem:[#allocation239_spill] sm:$0xff] %v6226_v11  ;;  %v6229_v1 = vsel %vm820_vm2, %v951_v4, %v952_v45  ;;  %v6232_v51 = vsel %vm820_vm2, %v947_v8, %v949_v58  ;;  %v10647_v4 = vld [vmem:[#allocation118_spill] sm:$0xff]  ;;  %v959_v8 = vrot.slane %v5697_v28, 2  ;;  %v10648_v58 = vld [vmem:[#allocation119_spill] sm:$0xff]  ;;  %v967_v28 = vrot.slane %v5743_v3, 2 }
 0x12a   :  { %v6217_v50 = vpop.permute.xlu2 %1010  ;;  %10643 = vst [vmem:[#allocation240_spill] sm:$0xff] %v6229_v1  ;;  %v957_v45 = vrot.slane %v10647_v4, 2 }
 0x12b   :  { %10637 = vst [vmem:[#allocation121_spill] sm:$0xff] %v6217_v50  ;;  %v6221_v54 = vpop.permute.xlu1 %990  ;;  %v6223_v60 = vpop.permute.xlu0 %988 }
 0x12c   :  { %10640 = vst [vmem:[#allocation109_spill] sm:$0xff] %v6221_v54  ;;  %v956_v54 = vrot.slane %v10648_v58, 2 }
 0x12d   :  { %10641 = vst [vmem:[#allocation238_spill] sm:$0xff] %v6223_v60 }
 0x12e   :  { %10644 = vst [vmem:[#allocation241_spill] sm:$0xff] %v6232_v51  ;;  %v6258_v63 = vsel %vm820_vm2, %v956_v54, %v957_v45 }
 0x12f   :  { %10653 = vst [vmem:[#allocation247_spill] sm:$0xff] %v6258_v63 }
 0x130   :  { %1082 = vrot.lane.b32.xlu2 %v6226_v11, %s4844_s18 }
 0x131   :  { %1080 = vrot.lane.b32.xlu1 %v6229_v1, %s4844_s18  ;;  %1078 = vrot.lane.b32.xlu0 %v6232_v51, %s4844_s18  ;;  %v6252_v1 = vsel %vm820_vm2, %v961_v31, %v962_v14  ;;  %v6255_v51 = vsel %vm820_vm2, %v957_v45, %v959_v8  ;;  %v969_v31 = vrot.slane %v5746_v44, 2  ;;  %v966_v8 = vrot.slane %v5749_v25, 2 }
 0x132   :  { %v6242_v50 = vpop.permute.xlu2 %1016  ;;  %10651 = vst [vmem:[#allocation245_spill] sm:$0xff] %v6252_v1  ;;  %v972_v44 = vrot.slane %v5737_v15, 2 }
 0x133   :  { %10646 = vst [vmem:[#allocation242_spill] sm:$0xff] %v6242_v50  ;;  %v6247_v60 = vpop.permute.xlu1 %996  ;;  %v6249_v11 = vpop.permute.xlu0 %994 }
 0x134   :  { %10649 = vst [vmem:[#allocation243_spill] sm:$0xff] %v6247_v60  ;;  %v10655_v60 = vld [vmem:[#allocation131_spill] sm:$0xff] }
 0x135   :  { %10650 = vst [vmem:[#allocation244_spill] sm:$0xff] %v6249_v11  ;;  %v964_v54 = vrot.slane %v10655_v60, 2 }
 0x136   :  { %10652 = vst [vmem:[#allocation246_spill] sm:$0xff] %v6255_v51 }
 0x138   :  { %1088 = vrot.lane.b32.xlu2 %v6252_v1, %s4844_s18  ;;  %v6277_v1 = vsel %vm820_vm2, %v967_v28, %v969_v31  ;;  %v974_v31 = vrot.slane %v5778_v40, 2 }
 0x139   :  { %1086 = vrot.lane.b32.xlu1 %v6255_v51, %s4844_s18  ;;  %1084 = vrot.lane.b32.xlu0 %v6258_v63, %s4844_s18  ;;  %10658 = vst [vmem:[#allocation250_spill] sm:$0xff] %v6277_v1  ;;  %v6280_v51 = vsel %vm820_vm2, %v966_v8, %v967_v28  ;;  %v6283_v63 = vsel %vm820_vm2, %v962_v14, %v964_v54  ;;  %v971_v28 = vrot.slane %v5740_v37, 2 }
 0x13a   :  { %v6268_v50 = vpop.permute.xlu2 %1022  ;;  %10659 = vst [vmem:[#allocation251_spill] sm:$0xff] %v6280_v51  ;;  %v6301_v54 = vsel %vm820_vm2, %v972_v44, %v974_v31 }
 0x13b   :  { %10654 = vst [vmem:[#allocation248_spill] sm:$0xff] %v6268_v50  ;;  %v6272_v45 = vpop.permute.xlu1 %1002  ;;  %v6274_v11 = vpop.permute.xlu0 %1000 }
 0x13c   :  { %10656 = vst [vmem:[#allocation131_spill] sm:$0xff] %v6272_v45  ;;  %v6304_v45 = vsel %vm820_vm2, %v971_v28, %v972_v44 }
 0x13d   :  { %10657 = vst [vmem:[#allocation249_spill] sm:$0xff] %v6274_v11 }
 0x13e   :  { %10660 = vst [vmem:[#allocation252_spill] sm:$0xff] %v6283_v63 }
 0x13f   :  { %10664 = vst [vmem:[#allocation256_spill] sm:$0xff] %v6301_v54 }
 0x140   :  { %1094 = vrot.lane.b32.xlu2 %v6277_v1, %s4844_s18  ;;  %10665 = vst [vmem:[#allocation257_spill] sm:$0xff] %v6304_v45 }
 0x141   :  { %1092 = vrot.lane.b32.xlu1 %v6280_v51, %s4844_s18  ;;  %1090 = vrot.lane.b32.xlu0 %v6283_v63, %s4844_s18 }
 0x142   :  { %v6291_v60 = vpop.permute.xlu2 %1028 }
 0x143   :  { %10661 = vst [vmem:[#allocation253_spill] sm:$0xff] %v6291_v60  ;;  %v6296_v8 = vpop.permute.xlu1 %1008  ;;  %v6298_v14 = vpop.permute.xlu0 %1006 }
 0x144   :  { %10662 = vst [vmem:[#allocation254_spill] sm:$0xff] %v6296_v8 }
 0x145   :  { %10663 = vst [vmem:[#allocation255_spill] sm:$0xff] %v6298_v14 }
 0x148   :  { %1164 = vrot.lane.b32.xlu2 %v4962_v36, %s4845_s9 }
 0x149   :  { %1098 = vrot.lane.b32.xlu1 %v6301_v54, %s4844_s18  ;;  %1096 = vrot.lane.b32.xlu0 %v6304_v45, %s4844_s18 }
 0x14a   :  { %v6312_v40 = vpop.permute.xlu2 %1034 }
 0x14b   :  { %10666 = vst [vmem:[#allocation258_spill] sm:$0xff] %v6312_v40  ;;  %v6314_v8 = vpop.permute.xlu1 %1014  ;;  %v6316_v14 = vpop.permute.xlu0 %1012 }
 0x14c   :  { %10667 = vst [vmem:[#allocation259_spill] sm:$0xff] %v6314_v8 }
 0x14d   :  { %10668 = vst [vmem:[#allocation260_spill] sm:$0xff] %v6316_v14 }
 0x150   :  { %1170 = vrot.lane.b32.xlu2 %v4910_v13, %s4845_s9 }
 0x151   :  { %1168 = vrot.lane.b32.xlu1 %v4954_v34, %s4845_s9  ;;  %1166 = vrot.lane.b32.xlu0 %v4920_v19, %s4845_s9  ;;  %v6435_v19 = vld [vmem:[%s9976_s0 + $0xf8] sm:$0xff] }
 0x152   :  { %v6324_v44 = vpop.permute.xlu2 %1040 }
 0x153   :  { %10669 = vst [vmem:[#allocation261_spill] sm:$0xff] %v6324_v44  ;;  %v6326_v31 = vpop.permute.xlu1 %1020  ;;  %v6328_v28 = vpop.permute.xlu0 %1018 }
 0x154   :  { %10670 = vst [vmem:[#allocation262_spill] sm:$0xff] %v6326_v31 }
 0x155   :  { %10671 = vst [vmem:[#allocation263_spill] sm:$0xff] %v6328_v28 }
 0x158   :  { %1176 = vrot.lane.b32.xlu2 %v4989_v49, %s4845_s9 }
 0x159   :  { %1174 = vrot.lane.b32.xlu1 %v4965_v38, %s4845_s9  ;;  %1172 = vrot.lane.b32.xlu0 %v4968_v39, %s4845_s9 }
 0x15a   :  { %v6336_v8 = vpop.permute.xlu2 %1046 }
 0x15b   :  { %10672 = vst [vmem:[#allocation264_spill] sm:$0xff] %v6336_v8  ;;  %v6338_v14 = vpop.permute.xlu1 %1026  ;;  %v6340_v11 = vpop.permute.xlu0 %1024 }
 0x15c   :  { %10673 = vst [vmem:[#allocation265_spill] sm:$0xff] %v6338_v14 }
 0x15d   :  { %10674 = vst [vmem:[#allocation266_spill] sm:$0xff] %v6340_v11 }
 0x160   :  { %1182 = vrot.lane.b32.xlu2 %v5035_v7, %s4845_s9 }
 0x161   :  { %1180 = vrot.lane.b32.xlu1 %v5041_v9, %s4845_s9  ;;  %1178 = vrot.lane.b32.xlu0 %v4983_v47, %s4845_s9 }
 0x162   :  { %v6348_v31 = vpop.permute.xlu2 %1052 }
 0x163   :  { %10675 = vst [vmem:[#allocation267_spill] sm:$0xff] %v6348_v31  ;;  %v6350_v28 = vpop.permute.xlu1 %1032  ;;  %v6352_v44 = vpop.permute.xlu0 %1030 }
 0x164   :  { %10676 = vst [vmem:[#allocation268_spill] sm:$0xff] %v6350_v28 }
 0x165   :  { %10677 = vst [vmem:[#allocation269_spill] sm:$0xff] %v6352_v44 }
 0x168   :  { %1188 = vrot.lane.b32.xlu2 %v5061_v26, %s4845_s9 }
 0x169   :  { %1186 = vrot.lane.b32.xlu1 %v5026_v2, %s4845_s9  ;;  %1184 = vrot.lane.b32.xlu0 %v5029_v5, %s4845_s9 }
 0x16a   :  { %v6360_v8 = vpop.permute.xlu2 %1058 }
 0x16b   :  { %10678 = vst [vmem:[#allocation270_spill] sm:$0xff] %v6360_v8  ;;  %v6362_v40 = vpop.permute.xlu1 %1038  ;;  %v6364_v60 = vpop.permute.xlu0 %1036 }
 0x16c   :  { %10679 = vst [vmem:[#allocation271_spill] sm:$0xff] %v6362_v40 }
 0x16d   :  { %10680 = vst [vmem:[#allocation272_spill] sm:$0xff] %v6364_v60 }
 0x170   :  { %1194 = vrot.lane.b32.xlu2 %v5116_v6, %s4845_s9 }
 0x171   :  { %1192 = vrot.lane.b32.xlu1 %v5122_v16, %s4845_s9  ;;  %1190 = vrot.lane.b32.xlu0 %v5073_v33, %s4845_s9 }
 0x172   :  { %v6372_v31 = vpop.permute.xlu2 %1064 }
 0x173   :  { %10681 = vst [vmem:[#allocation273_spill] sm:$0xff] %v6372_v31  ;;  %v6374_v28 = vpop.permute.xlu1 %1044  ;;  %v6376_v44 = vpop.permute.xlu0 %1042 }
 0x174   :  { %10682 = vst [vmem:[#allocation274_spill] sm:$0xff] %v6374_v28 }
 0x175   :  { %10683 = vst [vmem:[#allocation275_spill] sm:$0xff] %v6376_v44 }
 0x178   :  { %1200 = vrot.lane.b32.xlu2 %v5163_v57, %s4845_s9 }
 0x179   :  { %1198 = vrot.lane.b32.xlu1 %v5110_v61, %s4845_s9  ;;  %1196 = vrot.lane.b32.xlu0 %v5113_v62, %s4845_s9 }
 0x17a   :  { %v6384_v8 = vpop.permute.xlu2 %1070 }
 0x17b   :  { %10684 = vst [vmem:[#allocation276_spill] sm:$0xff] %v6384_v8  ;;  %v6386_v40 = vpop.permute.xlu1 %1050  ;;  %v6388_v60 = vpop.permute.xlu0 %1048 }
 0x17c   :  { %10685 = vst [vmem:[#allocation277_spill] sm:$0xff] %v6386_v40 }
 0x17d   :  { %10686 = vst [vmem:[#allocation278_spill] sm:$0xff] %v6388_v60 }
 0x180   :  { %1206 = vrot.lane.b32.xlu2 %v5200_v56, %s4845_s9 }
 0x181   :  { %1204 = vrot.lane.b32.xlu1 %v5212_v55, %s4845_s9  ;;  %1202 = vrot.lane.b32.xlu0 %v5151_v52, %s4845_s9 }
 0x182   :  { %v6396_v28 = vpop.permute.xlu2 %1076 }
 0x183   :  { %10687 = vst [vmem:[#allocation279_spill] sm:$0xff] %v6396_v28  ;;  %v6398_v44 = vpop.permute.xlu1 %1056  ;;  %v6400_v31 = vpop.permute.xlu0 %1054 }
 0x184   :  { %10688 = vst [vmem:[#allocation280_spill] sm:$0xff] %v6398_v44  ;;  %v50_v44 = vld [vmem:[%s9976_s0 + $0xf0] sm:$0xff] }
 0x185   :  { %10689 = vst [vmem:[#allocation281_spill] sm:$0xff] %v6400_v31  ;;  %v197_v31 = vrot.slane %v50_v44, 7 }
 0x188   :  { %1212 = vrot.lane.b32.xlu2 %v5241_v21, %s4845_s9 }
 0x189   :  { %1210 = vrot.lane.b32.xlu1 %v5188_v43, %s4845_s9  ;;  %1208 = vrot.lane.b32.xlu0 %v5191_v42, %s4845_s9 }
 0x18a   :  { %v6408_v40 = vpop.permute.xlu2 %1082 }
 0x18b   :  { %10690 = vst [vmem:[#allocation282_spill] sm:$0xff] %v6408_v40  ;;  %v6410_v60 = vpop.permute.xlu1 %1062  ;;  %v6412_v8 = vpop.permute.xlu0 %1060 }
 0x18c   :  { %10691 = vst [vmem:[#allocation283_spill] sm:$0xff] %v6410_v60 }
 0x18d   :  { %10692 = vst [vmem:[#allocation284_spill] sm:$0xff] %v6412_v8  ;;  %v6430_v8 = vsel %vm149_vm0, 0.0, %v197_v31 }
 0x190   :  { %1218 = vrot.lane.b32.xlu2 %v5284_v22, %s4845_s9 }
 0x191   :  { %1216 = vrot.lane.b32.xlu1 %v10557_v12, %s4845_s9  ;;  %1214 = vrot.lane.b32.xlu0 %v5232_v30, %s4845_s9 }
 0x192   :  { %v6423_v28 = vpop.permute.xlu2 %1088 }
 0x193   :  { %10693 = vst [vmem:[#allocation285_spill] sm:$0xff] %v6423_v28  ;;  %v6425_v40 = vpop.permute.xlu1 %1068  ;;  %v6427_v60 = vpop.permute.xlu0 %1066  ;;  %v10289_v28 = vrot.slane %v6435_v19, 7 }
 0x194   :  { %10694 = vst [vmem:[#allocation286_spill] sm:$0xff] %v6425_v40 }
 0x195   :  { %10695 = vst [vmem:[#allocation287_spill] sm:$0xff] %v6427_v60  ;;  %v6453_v14 = vsel %vm149_vm0, %v197_v31, %v10289_v28 }
 0x198   :  { %1224 = vrot.lane.b32.xlu2 %v6430_v8, %s4845_s9 }
 0x199   :  { %1222 = vrot.lane.b32.xlu1 %v10567_v35, %s4845_s9  ;;  %1220 = vrot.lane.b32.xlu0 %v10569_v17, %s4845_s9 }
 0x19a   :  { %v6443_v44 = vpop.permute.xlu2 %1094 }
 0x19b   :  { %10696 = vst [vmem:[#allocation288_spill] sm:$0xff] %v6443_v44  ;;  %v6446_v40 = vpop.permute.xlu1 %1074  ;;  %v6448_v60 = vpop.permute.xlu0 %1072 }
 0x19c   :  { %10697 = vst [vmem:[#allocation289_spill] sm:$0xff] %v6446_v40 }
 0x19d   :  { %10698 = vst [vmem:[#allocation290_spill] sm:$0xff] %v6448_v60 }
 0x1a0   :  { %1230 = vrot.lane.b32.xlu2 %v10565_v41, %s4845_s9 }
 0x1a1   :  { %1228 = vrot.lane.b32.xlu1 %v10564_v48, %s4845_s9  ;;  %1226 = vrot.lane.b32.xlu0 %v6453_v14, %s4845_s9  ;;  %v10708_v48 = vld [vmem:[#allocation79_spill] sm:$0xff] }
 0x1a2   :  { %v6461_v44 = vpop.permute.xlu2 %1164 }
 0x1a3   :  { %10699 = vst [vmem:[#allocation291_spill] sm:$0xff] %v6461_v44  ;;  %v6463_v36 = vpop.permute.xlu1 %1080  ;;  %v6465_v40 = vpop.permute.xlu0 %1078 }
 0x1a4   :  { %10700 = vst [vmem:[#allocation292_spill] sm:$0xff] %v6463_v36 }
 0x1a5   :  { %10701 = vst [vmem:[#allocation293_spill] sm:$0xff] %v6465_v40 }
 0x1a8   :  { %1236 = vrot.lane.b32.xlu2 %v10590_v46, %s4845_s9 }
 0x1a9   :  { %1234 = vrot.lane.b32.xlu1 %v10575_v32, %s4845_s9  ;;  %1232 = vrot.lane.b32.xlu0 %v10578_v18, %s4845_s9 }
 0x1aa   :  { %v6473_v31 = vpop.permute.xlu2 %1170 }
 0x1ab   :  { %10702 = vst [vmem:[#allocation294_spill] sm:$0xff] %v6473_v31  ;;  %v6475_v28 = vpop.permute.xlu1 %1086  ;;  %v6477_v60 = vpop.permute.xlu0 %1084 }
 0x1ac   :  { %10703 = vst [vmem:[#allocation295_spill] sm:$0xff] %v6475_v28  ;;  %v10709_v28 = vld [vmem:[#allocation82_spill] sm:$0xff] }
 0x1ad   :  { %10704 = vst [vmem:[#allocation296_spill] sm:$0xff] %v6477_v60  ;;  %v10710_v60 = vld [vmem:[#allocation84_spill] sm:$0xff] }
 0x1b0   :  { %1242 = vrot.lane.b32.xlu2 %v10586_v23, %s4845_s9 }
 0x1b1   :  { %1240 = vrot.lane.b32.xlu1 %v10585_v24, %s4845_s9  ;;  %1238 = vrot.lane.b32.xlu0 %v10588_v10, %s4845_s9 }
 0x1b2   :  { %v6485_v36 = vpop.permute.xlu2 %1176 }
 0x1b3   :  { %10705 = vst [vmem:[#allocation297_spill] sm:$0xff] %v6485_v36  ;;  %v6487_v40 = vpop.permute.xlu1 %1092  ;;  %v6489_v41 = vpop.permute.xlu0 %1090  ;;  %v10714_v36 = vld [vmem:[#allocation88_spill] sm:$0xff] }
 0x1b4   :  { %10706 = vst [vmem:[#allocation298_spill] sm:$0xff] %v6487_v40  ;;  %v10715_v40 = vld [vmem:[#allocation91_spill] sm:$0xff] }
 0x1b5   :  { %10707 = vst [vmem:[#allocation299_spill] sm:$0xff] %v6489_v41  ;;  %v10716_v41 = vld [vmem:[#allocation78_spill] sm:$0xff] }
 0x1b8   :  { %1248 = vrot.lane.b32.xlu2 %v10708_v48, %s4845_s9 }
 0x1b9   :  { %1246 = vrot.lane.b32.xlu1 %v10709_v28, %s4845_s9  ;;  %1244 = vrot.lane.b32.xlu0 %v10710_v60, %s4845_s9 }
 0x1ba   :  { %v6497_v31 = vpop.permute.xlu2 %1182 }
 0x1bb   :  { %10711 = vst [vmem:[#allocation300_spill] sm:$0xff] %v6497_v31  ;;  %v6499_v11 = vpop.permute.xlu1 %1098  ;;  %v6501_v44 = vpop.permute.xlu0 %1096 }
 0x1bc   :  { %10712 = vst [vmem:[#allocation301_spill] sm:$0xff] %v6499_v11 }
 0x1bd   :  { %10713 = vst [vmem:[#allocation302_spill] sm:$0xff] %v6501_v44 }
 0x1c0   :  { %1254 = vrot.lane.b32.xlu2 %v10714_v36, %s4845_s9 }
 0x1c1   :  { %1252 = vrot.lane.b32.xlu1 %v10715_v40, %s4845_s9  ;;  %1250 = vrot.lane.b32.xlu0 %v10716_v41, %s4845_s9 }
 0x1c2   :  { %v6509_v50 = vpop.permute.xlu2 %1188 }
 0x1c3   :  { %10717 = vst [vmem:[#allocation303_spill] sm:$0xff] %v6509_v50  ;;  %v6511_v28 = vpop.permute.xlu1 %1168  ;;  %v6513_v60 = vpop.permute.xlu0 %1166  ;;  %v10723_v50 = vld [vmem:[#allocation108_spill] sm:$0xff] }
 0x1c4   :  { %10718 = vst [vmem:[#allocation304_spill] sm:$0xff] %v6511_v28  ;;  %v10724_v28 = vld [vmem:[#allocation110_spill] sm:$0xff] }
 0x1c5   :  { %10719 = vst [vmem:[#allocation305_spill] sm:$0xff] %v6513_v60  ;;  %v10725_v60 = vld [vmem:[#allocation98_spill] sm:$0xff] }
 0x1c8   :  { %1260 = vrot.lane.b32.xlu2 %v10630_v53, %s4845_s9 }
 0x1c9   :  { %1258 = vrot.lane.b32.xlu1 %v10617_v0, %s4845_s9  ;;  %1256 = vrot.lane.b32.xlu0 %v10620_v27, %s4845_s9 }
 0x1ca   :  { %v6521_v31 = vpop.permute.xlu2 %1194 }
 0x1cb   :  { %10720 = vst [vmem:[#allocation306_spill] sm:$0xff] %v6521_v31  ;;  %v6523_v44 = vpop.permute.xlu1 %1174  ;;  %v6525_v11 = vpop.permute.xlu0 %1172 }
 0x1cc   :  { %10721 = vst [vmem:[#allocation307_spill] sm:$0xff] %v6523_v44 }
 0x1cd   :  { %10722 = vst [vmem:[#allocation308_spill] sm:$0xff] %v6525_v11 }
 0x1d0   :  { %1266 = vrot.lane.b32.xlu2 %v10723_v50, %s4845_s9 }
 0x1d1   :  { %1264 = vrot.lane.b32.xlu1 %v10724_v28, %s4845_s9  ;;  %1262 = vrot.lane.b32.xlu0 %v10725_v60, %s4845_s9 }
 0x1d2   :  { %v6533_v53 = vpop.permute.xlu2 %1200 }
 0x1d3   :  { %10726 = vst [vmem:[#allocation309_spill] sm:$0xff] %v6533_v53  ;;  %v6535_v0 = vpop.permute.xlu1 %1180  ;;  %v6537_v27 = vpop.permute.xlu0 %1178  ;;  %v10732_v53 = vld [vmem:[#allocation132_spill] sm:$0xff] }
 0x1d4   :  { %10727 = vst [vmem:[#allocation310_spill] sm:$0xff] %v6535_v0 }
 0x1d5   :  { %10728 = vst [vmem:[#allocation311_spill] sm:$0xff] %v6537_v27 }
 0x1d8   :  { %1272 = vrot.lane.b32.xlu2 %v10648_v58, %s4845_s9 }
 0x1d9   :  { %1270 = vrot.lane.b32.xlu1 %v5641_v59, %s4845_s9  ;;  %1268 = vrot.lane.b32.xlu0 %v10638_v29, %s4845_s9 }
 0x1da   :  { %v6545_v31 = vpop.permute.xlu2 %1206 }
 0x1db   :  { %10729 = vst [vmem:[#allocation312_spill] sm:$0xff] %v6545_v31  ;;  %v6547_v44 = vpop.permute.xlu1 %1186  ;;  %v6549_v11 = vpop.permute.xlu0 %1184  ;;  %v82_v31 = vld [vmem:[%s9976_s0 + $0x1f0] sm:$0xff] }
 0x1dc   :  { %10730 = vst [vmem:[#allocation313_spill] sm:$0xff] %v6547_v44  ;;  %v6569_v44 = vld [vmem:[%s9976_s0 + $0x1f8] sm:$0xff]  ;;  %s4846_s0 = smov 16  }
 0x1dd   :  { %10731 = vst [vmem:[#allocation314_spill] sm:$0xff] %v6549_v11 }
 0x1e0   :  { %1278 = vrot.lane.b32.xlu2 %v10645_v20, %s4845_s9 }
 0x1e1   :  { %1276 = vrot.lane.b32.xlu1 %v10732_v53, %s4845_s9  ;;  %1274 = vrot.lane.b32.xlu0 %v10647_v4, %s4845_s9 }
 0x1e2   :  { %v6557_v0 = vpop.permute.xlu2 %1212 }
 0x1e3   :  { %10733 = vst [vmem:[#allocation315_spill] sm:$0xff] %v6557_v0  ;;  %v6559_v27 = vpop.permute.xlu1 %1192  ;;  %v6561_v29 = vpop.permute.xlu0 %1190 }
 0x1e4   :  { %10734 = vst [vmem:[#allocation316_spill] sm:$0xff] %v6559_v27  ;;  %v245_v27 = vrot.slane %v82_v31, 7 }
 0x1e5   :  { %10735 = vst [vmem:[#allocation317_spill] sm:$0xff] %v6561_v29  ;;  %v10299_v29 = vrot.slane %v6569_v44, 7 }
 0x1e7   :  { %v6587_v53 = vsel %vm149_vm0, %v245_v27, %v10299_v29  ;;  %v10742_v29 = vld [vmem:[#allocation10_spill] sm:$0xff] }
 0x1e8   :  { %1284 = vrot.lane.b32.xlu2 %v5740_v37, %s4845_s9  ;;  %v6590_v37 = vsel %vm149_vm0, 0.0, %v245_v27  ;;  %v10743_v27 = vld [vmem:[#allocation7_spill] sm:$0xff] }
 0x1e9   :  { %1282 = vrot.lane.b32.xlu1 %v5743_v3, %s4845_s9  ;;  %1280 = vrot.lane.b32.xlu0 %v5749_v25, %s4845_s9 }
 0x1ea   :  { %v6578_v11 = vpop.permute.xlu2 %1218 }
 0x1eb   :  { %10736 = vst [vmem:[#allocation318_spill] sm:$0xff] %v6578_v11  ;;  %v6580_v0 = vpop.permute.xlu1 %1198  ;;  %v6582_v4 = vpop.permute.xlu0 %1196  ;;  %v10744_v11 = vld [vmem:[#allocation11_spill] sm:$0xff] }
 0x1ec   :  { %10737 = vst [vmem:[#allocation319_spill] sm:$0xff] %v6580_v0 }
 0x1ed   :  { %10738 = vst [vmem:[#allocation320_spill] sm:$0xff] %v6582_v4 }
 0x1f0   :  { %1290 = vrot.lane.b32.xlu2 %v6587_v53, %s4845_s9 }
 0x1f1   :  { %1288 = vrot.lane.b32.xlu1 %v6590_v37, %s4845_s9  ;;  %1286 = vrot.lane.b32.xlu0 %v5737_v15, %s4845_s9 }
 0x1f2   :  { %v6598_v31 = vpop.permute.xlu2 %1224 }
 0x1f3   :  { %10739 = vst [vmem:[#allocation321_spill] sm:$0xff] %v6598_v31  ;;  %v6600_v0 = vpop.permute.xlu1 %1204  ;;  %v6602_v4 = vpop.permute.xlu0 %1202  ;;  %v10750_v31 = vld [vmem:[#allocation5_spill] sm:$0xff] }
 0x1f4   :  { %10740 = vst [vmem:[#allocation322_spill] sm:$0xff] %v6600_v0  ;;  %v10748_v0 = vld [vmem:[#allocation16_spill] sm:$0xff] }
 0x1f5   :  { %10741 = vst [vmem:[#allocation323_spill] sm:$0xff] %v6602_v4  ;;  %v10749_v4 = vld [vmem:[#allocation9_spill] sm:$0xff] }
 0x1f8   :  { %1372 = vrot.lane.b32.xlu2 %v10742_v29, %s4846_s0 }
 0x1f9   :  { %1370 = vrot.lane.b32.xlu1 %v10743_v27, %s4846_s0  ;;  %1368 = vrot.lane.b32.xlu0 %v10744_v11, %s4846_s0 }
 0x1fa   :  { %v6610_v25 = vpop.permute.xlu2 %1230 }
 0x1fb   :  { %10745 = vst [vmem:[#allocation7_spill] sm:$0xff] %v6610_v25  ;;  %v6612_v3 = vpop.permute.xlu1 %1210  ;;  %v6614_v15 = vpop.permute.xlu0 %1208  ;;  %v10754_v25 = vld [vmem:[#allocation24_spill] sm:$0xff] }
 0x1fc   :  { %10746 = vst [vmem:[#allocation11_spill] sm:$0xff] %v6612_v3  ;;  %v10756_v3 = vld [vmem:[#allocation15_spill] sm:$0xff] }
 0x1fd   :  { %10747 = vst [vmem:[#allocation324_spill] sm:$0xff] %v6614_v15  ;;  %v10755_v15 = vld [vmem:[#allocation14_spill] sm:$0xff] }
 0x200   :  { %1378 = vrot.lane.b32.xlu2 %v10748_v0, %s4846_s0 }
 0x201   :  { %1376 = vrot.lane.b32.xlu1 %v10749_v4, %s4846_s0  ;;  %1374 = vrot.lane.b32.xlu0 %v10750_v31, %s4846_s0 }
 0x202   :  { %v6622_v29 = vpop.permute.xlu2 %1236 }
 0x203   :  { %10751 = vst [vmem:[#allocation325_spill] sm:$0xff] %v6622_v29  ;;  %v6624_v27 = vpop.permute.xlu1 %1216  ;;  %v6626_v11 = vpop.permute.xlu0 %1214  ;;  %v10760_v29 = vld [vmem:[#allocation27_spill] sm:$0xff] }
 0x204   :  { %10752 = vst [vmem:[#allocation326_spill] sm:$0xff] %v6624_v27  ;;  %v10761_v27 = vld [vmem:[#allocation21_spill] sm:$0xff] }
 0x205   :  { %10753 = vst [vmem:[#allocation327_spill] sm:$0xff] %v6626_v11  ;;  %v10762_v11 = vld [vmem:[#allocation23_spill] sm:$0xff] }
 0x208   :  { %1384 = vrot.lane.b32.xlu2 %v10754_v25, %s4846_s0 }
 0x209   :  { %1382 = vrot.lane.b32.xlu1 %v10755_v15, %s4846_s0  ;;  %1380 = vrot.lane.b32.xlu0 %v10756_v3, %s4846_s0 }
 0x20a   :  { %v6634_v0 = vpop.permute.xlu2 %1242 }
 0x20b   :  { %10757 = vst [vmem:[#allocation328_spill] sm:$0xff] %v6634_v0  ;;  %v6636_v4 = vpop.permute.xlu1 %1222  ;;  %v6638_v31 = vpop.permute.xlu0 %1220  ;;  %v10766_v0 = vld [vmem:[#allocation35_spill] sm:$0xff] }
 0x20c   :  { %10758 = vst [vmem:[#allocation329_spill] sm:$0xff] %v6636_v4  ;;  %v10767_v4 = vld [vmem:[#allocation26_spill] sm:$0xff] }
 0x20d   :  { %10759 = vst [vmem:[#allocation330_spill] sm:$0xff] %v6638_v31  ;;  %v10768_v31 = vld [vmem:[#allocation28_spill] sm:$0xff] }
 0x210   :  { %1390 = vrot.lane.b32.xlu2 %v10760_v29, %s4846_s0 }
 0x211   :  { %1388 = vrot.lane.b32.xlu1 %v10761_v27, %s4846_s0  ;;  %1386 = vrot.lane.b32.xlu0 %v10762_v11, %s4846_s0 }
 0x212   :  { %v6646_v25 = vpop.permute.xlu2 %1248 }
 0x213   :  { %10763 = vst [vmem:[#allocation331_spill] sm:$0xff] %v6646_v25  ;;  %v6648_v15 = vpop.permute.xlu1 %1228  ;;  %v6650_v3 = vpop.permute.xlu0 %1226  ;;  %v10772_v25 = vld [vmem:[#allocation40_spill] sm:$0xff] }
 0x214   :  { %10764 = vst [vmem:[#allocation332_spill] sm:$0xff] %v6648_v15  ;;  %v10773_v15 = vld [vmem:[#allocation33_spill] sm:$0xff] }
 0x215   :  { %10765 = vst [vmem:[#allocation333_spill] sm:$0xff] %v6650_v3  ;;  %v10774_v3 = vld [vmem:[#allocation34_spill] sm:$0xff] }
 0x218   :  { %1396 = vrot.lane.b32.xlu2 %v10766_v0, %s4846_s0 }
 0x219   :  { %1394 = vrot.lane.b32.xlu1 %v10767_v4, %s4846_s0  ;;  %1392 = vrot.lane.b32.xlu0 %v10768_v31, %s4846_s0 }
 0x21a   :  { %v6658_v29 = vpop.permute.xlu2 %1254 }
 0x21b   :  { %10769 = vst [vmem:[#allocation334_spill] sm:$0xff] %v6658_v29  ;;  %v6660_v27 = vpop.permute.xlu1 %1234  ;;  %v6662_v11 = vpop.permute.xlu0 %1232  ;;  %v10778_v29 = vld [vmem:[#allocation44_spill] sm:$0xff] }
 0x21c   :  { %10770 = vst [vmem:[#allocation335_spill] sm:$0xff] %v6660_v27  ;;  %v10779_v27 = vld [vmem:[#allocation38_spill] sm:$0xff] }
 0x21d   :  { %10771 = vst [vmem:[#allocation336_spill] sm:$0xff] %v6662_v11  ;;  %v10780_v11 = vld [vmem:[#allocation39_spill] sm:$0xff] }
 0x220   :  { %1402 = vrot.lane.b32.xlu2 %v10772_v25, %s4846_s0 }
 0x221   :  { %1400 = vrot.lane.b32.xlu1 %v10773_v15, %s4846_s0  ;;  %1398 = vrot.lane.b32.xlu0 %v10774_v3, %s4846_s0 }
 0x222   :  { %v6670_v0 = vpop.permute.xlu2 %1260 }
 0x223   :  { %10775 = vst [vmem:[#allocation337_spill] sm:$0xff] %v6670_v0  ;;  %v6672_v4 = vpop.permute.xlu1 %1240  ;;  %v6674_v31 = vpop.permute.xlu0 %1238  ;;  %v10784_v0 = vld [vmem:[#allocation48_spill] sm:$0xff] }
 0x224   :  { %10776 = vst [vmem:[#allocation338_spill] sm:$0xff] %v6672_v4  ;;  %v10785_v4 = vld [vmem:[#allocation42_spill] sm:$0xff] }
 0x225   :  { %10777 = vst [vmem:[#allocation339_spill] sm:$0xff] %v6674_v31  ;;  %v10786_v31 = vld [vmem:[#allocation43_spill] sm:$0xff] }
 0x228   :  { %1408 = vrot.lane.b32.xlu2 %v10778_v29, %s4846_s0 }
 0x229   :  { %1406 = vrot.lane.b32.xlu1 %v10779_v27, %s4846_s0  ;;  %1404 = vrot.lane.b32.xlu0 %v10780_v11, %s4846_s0 }
 0x22a   :  { %v6682_v25 = vpop.permute.xlu2 %1266 }
 0x22b   :  { %10781 = vst [vmem:[#allocation340_spill] sm:$0xff] %v6682_v25  ;;  %v6684_v15 = vpop.permute.xlu1 %1246  ;;  %v6686_v3 = vpop.permute.xlu0 %1244  ;;  %v10790_v25 = vld [vmem:[#allocation56_spill] sm:$0xff] }
 0x22c   :  { %10782 = vst [vmem:[#allocation341_spill] sm:$0xff] %v6684_v15  ;;  %v10791_v15 = vld [vmem:[#allocation46_spill] sm:$0xff] }
 0x22d   :  { %10783 = vst [vmem:[#allocation342_spill] sm:$0xff] %v6686_v3  ;;  %v10792_v3 = vld [vmem:[#allocation47_spill] sm:$0xff] }
 0x230   :  { %1414 = vrot.lane.b32.xlu2 %v10784_v0, %s4846_s0 }
 0x231   :  { %1412 = vrot.lane.b32.xlu1 %v10785_v4, %s4846_s0  ;;  %1410 = vrot.lane.b32.xlu0 %v10786_v31, %s4846_s0 }
 0x232   :  { %v6694_v29 = vpop.permute.xlu2 %1272 }
 0x233   :  { %10787 = vst [vmem:[#allocation343_spill] sm:$0xff] %v6694_v29  ;;  %v6696_v27 = vpop.permute.xlu1 %1252  ;;  %v6698_v11 = vpop.permute.xlu0 %1250  ;;  %v10796_v29 = vrot.slane %v6435_v19, 7 }
 0x234   :  { %10788 = vst [vmem:[#allocation344_spill] sm:$0xff] %v6696_v27 }
 0x235   :  { %10789 = vst [vmem:[#allocation345_spill] sm:$0xff] %v6698_v11  ;;  %v6715_v27 = vsel %vm149_vm0, %v10796_v29, 0.0  ;;  %v10797_v11 = vld [vmem:[#allocation63_spill] sm:$0xff] }
 0x236   :  { %v1361_v19 = vrot.slane %v6715_v27, 1 }
 0x238   :  { %1420 = vrot.lane.b32.xlu2 %v10790_v25, %s4846_s0  ;;  %v10798_v25 = vld [vmem:[#allocation54_spill] sm:$0xff] }
 0x239   :  { %1418 = vrot.lane.b32.xlu1 %v10791_v15, %s4846_s0  ;;  %1416 = vrot.lane.b32.xlu0 %v10792_v3, %s4846_s0  ;;  %v10799_v15 = vld [vmem:[#allocation55_spill] sm:$0xff] }
 0x23a   :  { %v6706_v0 = vpop.permute.xlu2 %1278 }
 0x23b   :  { %10793 = vst [vmem:[#allocation346_spill] sm:$0xff] %v6706_v0  ;;  %v6708_v4 = vpop.permute.xlu1 %1258  ;;  %v6710_v31 = vpop.permute.xlu0 %1256  ;;  %v1358_v0 = vrot.slane %v6430_v8, 1 }
 0x23c   :  { %10794 = vst [vmem:[#allocation347_spill] sm:$0xff] %v6708_v4  ;;  %v1359_v4 = vrot.slane %v6453_v14, 1 }
 0x23d   :  { %10795 = vst [vmem:[#allocation348_spill] sm:$0xff] %v6710_v31 }
 0x240   :  { %1426 = vrot.lane.b32.xlu2 %v10797_v11, %s4846_s0  ;;  %v6733_v11 = vsel %vm478_vm1, %v1359_v4, %v1361_v19  ;;  %v10809_v19 = vld [vmem:[#allocation70_spill] sm:$0xff] }
 0x241   :  { %1424 = vrot.lane.b32.xlu1 %v10798_v25, %s4846_s0  ;;  %1422 = vrot.lane.b32.xlu0 %v10799_v15, %s4846_s0  ;;  %10803 = vst [vmem:[#allocation352_spill] sm:$0xff] %v6733_v11  ;;  %v6736_v25 = vsel %vm478_vm1, %v1358_v0, %v1359_v4  ;;  %v10805_v15 = vld [vmem:[#allocation62_spill] sm:$0xff]  ;;  %v10810_v0 = vld [vmem:[#allocation71_spill] sm:$0xff] }
 0x242   :  { %v6725_v3 = vpop.permute.xlu2 %1284  ;;  %10804 = vst [vmem:[#allocation353_spill] sm:$0xff] %v6736_v25 }
 0x243   :  { %10800 = vst [vmem:[#allocation349_spill] sm:$0xff] %v6725_v3  ;;  %v6728_v31 = vpop.permute.xlu1 %1264  ;;  %v6730_v29 = vpop.permute.xlu0 %1262 }
 0x244   :  { %10801 = vst [vmem:[#allocation350_spill] sm:$0xff] %v6728_v31 }
 0x245   :  { %10802 = vst [vmem:[#allocation351_spill] sm:$0xff] %v6730_v29 }
 0x248   :  { %1432 = vrot.lane.b32.xlu2 %v10805_v15, %s4846_s0  ;;  %v10811_v15 = vld [vmem:[#allocation61_spill] sm:$0xff] }
 0x249   :  { %1430 = vrot.lane.b32.xlu1 %v6733_v11, %s4846_s0  ;;  %1428 = vrot.lane.b32.xlu0 %v6736_v25, %s4846_s0 }
 0x24a   :  { %v6744_v3 = vpop.permute.xlu2 %1290 }
 0x24b   :  { %10806 = vst [vmem:[#allocation62_spill] sm:$0xff] %v6744_v3  ;;  %v6746_v31 = vpop.permute.xlu1 %1270  ;;  %v6748_v29 = vpop.permute.xlu0 %1268  ;;  %v10815_v3 = vld [vmem:[#allocation80_spill] sm:$0xff] }
 0x24c   :  { %10807 = vst [vmem:[#allocation354_spill] sm:$0xff] %v6746_v31  ;;  %v10816_v31 = vld [vmem:[#allocation81_spill] sm:$0xff] }
 0x24d   :  { %10808 = vst [vmem:[#allocation355_spill] sm:$0xff] %v6748_v29  ;;  %v10817_v29 = vld [vmem:[#allocation69_spill] sm:$0xff] }
 0x250   :  { %1438 = vrot.lane.b32.xlu2 %v10809_v19, %s4846_s0 }
 0x251   :  { %1436 = vrot.lane.b32.xlu1 %v10810_v0, %s4846_s0  ;;  %1434 = vrot.lane.b32.xlu0 %v10811_v15, %s4846_s0 }
 0x252   :  { %v6756_v4 = vpop.permute.xlu2 %1372 }
 0x253   :  { %10812 = vst [vmem:[#allocation61_spill] sm:$0xff] %v6756_v4  ;;  %v6758_v11 = vpop.permute.xlu1 %1276  ;;  %v6760_v25 = vpop.permute.xlu0 %1274  ;;  %v10821_v4 = vld [vmem:[#allocation87_spill] sm:$0xff] }
 0x254   :  { %10813 = vst [vmem:[#allocation356_spill] sm:$0xff] %v6758_v11  ;;  %v10822_v11 = vld [vmem:[#allocation89_spill] sm:$0xff] }
 0x255   :  { %10814 = vst [vmem:[#allocation357_spill] sm:$0xff] %v6760_v25  ;;  %v10823_v25 = vld [vmem:[#allocation77_spill] sm:$0xff] }
 0x258   :  { %1444 = vrot.lane.b32.xlu2 %v10815_v3, %s4846_s0 }
 0x259   :  { %1442 = vrot.lane.b32.xlu1 %v10816_v31, %s4846_s0  ;;  %1440 = vrot.lane.b32.xlu0 %v10817_v29, %s4846_s0 }
 0x25a   :  { %v6768_v19 = vpop.permute.xlu2 %1378 }
 0x25b   :  { %10818 = vst [vmem:[#allocation358_spill] sm:$0xff] %v6768_v19  ;;  %v6770_v0 = vpop.permute.xlu1 %1282  ;;  %v6772_v15 = vpop.permute.xlu0 %1280  ;;  %v10827_v19 = vld [vmem:[#allocation95_spill] sm:$0xff] }
 0x25c   :  { %10819 = vst [vmem:[#allocation359_spill] sm:$0xff] %v6770_v0  ;;  %v10828_v0 = vld [vmem:[#allocation96_spill] sm:$0xff] }
 0x25d   :  { %10820 = vst [vmem:[#allocation360_spill] sm:$0xff] %v6772_v15  ;;  %v10829_v15 = vld [vmem:[#allocation86_spill] sm:$0xff] }
 0x260   :  { %1450 = vrot.lane.b32.xlu2 %v10821_v4, %s4846_s0 }
 0x261   :  { %1448 = vrot.lane.b32.xlu1 %v10822_v11, %s4846_s0  ;;  %1446 = vrot.lane.b32.xlu0 %v10823_v25, %s4846_s0 }
 0x262   :  { %v6780_v3 = vpop.permute.xlu2 %1384 }
 0x263   :  { %10824 = vst [vmem:[#allocation361_spill] sm:$0xff] %v6780_v3  ;;  %v6782_v31 = vpop.permute.xlu1 %1288  ;;  %v6784_v29 = vpop.permute.xlu0 %1286  ;;  %v10833_v3 = vld [vmem:[#allocation106_spill] sm:$0xff] }
 0x264   :  { %10825 = vst [vmem:[#allocation362_spill] sm:$0xff] %v6782_v31 }
 0x265   :  { %10826 = vst [vmem:[#allocation363_spill] sm:$0xff] %v6784_v29  ;;  %v10834_v29 = vld [vmem:[#allocation107_spill] sm:$0xff] }
 0x268   :  { %1456 = vrot.lane.b32.xlu2 %v10827_v19, %s4846_s0  ;;  %v10835_v19 = vld [vmem:[#allocation94_spill] sm:$0xff] }
 0x269   :  { %1454 = vrot.lane.b32.xlu1 %v10828_v0, %s4846_s0  ;;  %1452 = vrot.lane.b32.xlu0 %v10829_v15, %s4846_s0 }
 0x26a   :  { %v6792_v4 = vpop.permute.xlu2 %1390 }
 0x26b   :  { %10830 = vst [vmem:[#allocation364_spill] sm:$0xff] %v6792_v4  ;;  %v6794_v11 = vpop.permute.xlu1 %1370  ;;  %v6796_v25 = vpop.permute.xlu0 %1368  ;;  %v10839_v4 = vld [vmem:[#allocation116_spill] sm:$0xff] }
 0x26c   :  { %10831 = vst [vmem:[#allocation365_spill] sm:$0xff] %v6794_v11  ;;  %v10840_v11 = vld [vmem:[#allocation117_spill] sm:$0xff] }
 0x26d   :  { %10832 = vst [vmem:[#allocation366_spill] sm:$0xff] %v6796_v25  ;;  %v10841_v25 = vld [vmem:[#allocation105_spill] sm:$0xff] }
 0x270   :  { %1462 = vrot.lane.b32.xlu2 %v10833_v3, %s4846_s0 }
 0x271   :  { %1460 = vrot.lane.b32.xlu1 %v10834_v29, %s4846_s0  ;;  %1458 = vrot.lane.b32.xlu0 %v10835_v19, %s4846_s0 }
 0x272   :  { %v6804_v31 = vpop.permute.xlu2 %1396 }
 0x273   :  { %10836 = vst [vmem:[#allocation367_spill] sm:$0xff] %v6804_v31  ;;  %v6806_v0 = vpop.permute.xlu1 %1376  ;;  %v6808_v15 = vpop.permute.xlu0 %1374  ;;  %v10845_v31 = vld [vmem:[#allocation128_spill] sm:$0xff] }
 0x274   :  { %10837 = vst [vmem:[#allocation368_spill] sm:$0xff] %v6806_v0  ;;  %v10846_v0 = vld [vmem:[#allocation129_spill] sm:$0xff] }
 0x275   :  { %10838 = vst [vmem:[#allocation369_spill] sm:$0xff] %v6808_v15  ;;  %v10847_v15 = vld [vmem:[#allocation115_spill] sm:$0xff] }
 0x278   :  { %1468 = vrot.lane.b32.xlu2 %v10839_v4, %s4846_s0 }
 0x279   :  { %1466 = vrot.lane.b32.xlu1 %v10840_v11, %s4846_s0  ;;  %1464 = vrot.lane.b32.xlu0 %v10841_v25, %s4846_s0 }
 0x27a   :  { %v6816_v3 = vpop.permute.xlu2 %1402 }
 0x27b   :  { %10842 = vst [vmem:[#allocation370_spill] sm:$0xff] %v6816_v3  ;;  %v6818_v29 = vpop.permute.xlu1 %1382  ;;  %v6820_v19 = vpop.permute.xlu0 %1380  ;;  %v10851_v3 = vld [vmem:[#allocation137_spill] sm:$0xff] }
 0x27c   :  { %10843 = vst [vmem:[#allocation371_spill] sm:$0xff] %v6818_v29  ;;  %v10852_v29 = vld [vmem:[#allocation138_spill] sm:$0xff] }
 0x27d   :  { %10844 = vst [vmem:[#allocation372_spill] sm:$0xff] %v6820_v19  ;;  %v10853_v19 = vld [vmem:[#allocation127_spill] sm:$0xff] }
 0x280   :  { %1474 = vrot.lane.b32.xlu2 %v10845_v31, %s4846_s0 }
 0x281   :  { %1472 = vrot.lane.b32.xlu1 %v10846_v0, %s4846_s0  ;;  %1470 = vrot.lane.b32.xlu0 %v10847_v15, %s4846_s0 }
 0x282   :  { %v6828_v4 = vpop.permute.xlu2 %1408 }
 0x283   :  { %10848 = vst [vmem:[#allocation373_spill] sm:$0xff] %v6828_v4  ;;  %v6830_v11 = vpop.permute.xlu1 %1388  ;;  %v6832_v25 = vpop.permute.xlu0 %1386  ;;  %v10857_v4 = vld [vmem:[#allocation147_spill] sm:$0xff] }
 0x284   :  { %10849 = vst [vmem:[#allocation374_spill] sm:$0xff] %v6830_v11  ;;  %v1364_v11 = vrot.slane %v6587_v53, 1 }
 0x285   :  { %10850 = vst [vmem:[#allocation375_spill] sm:$0xff] %v6832_v25  ;;  %v1363_v25 = vrot.slane %v6590_v37, 1 }
 0x288   :  { %1480 = vrot.lane.b32.xlu2 %v10851_v3, %s4846_s0  ;;  %v10858_v3 = vld [vmem:[#allocation148_spill] sm:$0xff] }
 0x289   :  { %1478 = vrot.lane.b32.xlu1 %v10852_v29, %s4846_s0  ;;  %1476 = vrot.lane.b32.xlu0 %v10853_v19, %s4846_s0  ;;  %v10859_v29 = vld [vmem:[#allocation136_spill] sm:$0xff] }
 0x28a   :  { %v6840_v31 = vpop.permute.xlu2 %1414 }
 0x28b   :  { %10854 = vst [vmem:[#allocation376_spill] sm:$0xff] %v6840_v31  ;;  %v6842_v0 = vpop.permute.xlu1 %1394  ;;  %v6844_v15 = vpop.permute.xlu0 %1392 }
 0x28c   :  { %10855 = vst [vmem:[#allocation377_spill] sm:$0xff] %v6842_v0 }
 0x28d   :  { %10856 = vst [vmem:[#allocation378_spill] sm:$0xff] %v6844_v15  ;;  %v6861_v15 = vsel %vm478_vm1, %v1363_v25, %v1364_v11 }
 0x28e   :  { %10863 = vst [vmem:[#allocation382_spill] sm:$0xff] %v6861_v15 }
 0x290   :  { %1486 = vrot.lane.b32.xlu2 %v10857_v4, %s4846_s0  ;;  %v10864_v4 = vrot.slane %v6569_v44, 7 }
 0x291   :  { %1484 = vrot.lane.b32.xlu1 %v10858_v3, %s4846_s0  ;;  %1482 = vrot.lane.b32.xlu0 %v10859_v29, %s4846_s0  ;;  %v10865_v3 = vld [vmem:[#allocation153_spill] sm:$0xff]  ;;  %v10866_v29 = vld [vmem:[#allocation146_spill] sm:$0xff] }
 0x292   :  { %v6854_v19 = vpop.permute.xlu2 %1420  ;;  %v6866_v20 = vsel %vm149_vm0, %v10864_v4, 0.0  ;;  %v10871_v4 = vld [vmem:[#allocation159_spill] sm:$0xff] }
 0x293   :  { %10860 = vst [vmem:[#allocation379_spill] sm:$0xff] %v6854_v19  ;;  %v6856_v31 = vpop.permute.xlu1 %1400  ;;  %v6858_v0 = vpop.permute.xlu0 %1398 }
 0x294   :  { %10861 = vst [vmem:[#allocation380_spill] sm:$0xff] %v6856_v31 }
 0x295   :  { %10862 = vst [vmem:[#allocation381_spill] sm:$0xff] %v6858_v0  ;;  %v1366_v0 = vrot.slane %v6866_v20, 1 }
 0x297   :  { %v6882_v44 = vsel %vm478_vm1, %v1364_v11, %v1366_v0  ;;  %v10877_v11 = vld [vmem:[#allocation157_spill] sm:$0xff]  ;;  %v10878_v0 = vld [vmem:[#allocation158_spill] sm:$0xff] }
 0x298   :  { %1492 = vrot.lane.b32.xlu2 %v6861_v15, %s4846_s0  ;;  %10870 = vst [vmem:[#allocation386_spill] sm:$0xff] %v6882_v44  ;;  %v10872_v15 = vld [vmem:[#allocation152_spill] sm:$0xff] }
 0x299   :  { %1490 = vrot.lane.b32.xlu1 %v10865_v3, %s4846_s0  ;;  %1488 = vrot.lane.b32.xlu0 %v10866_v29, %s4846_s0 }
 0x29a   :  { %v6874_v31 = vpop.permute.xlu2 %1426 }
 0x29b   :  { %10867 = vst [vmem:[#allocation383_spill] sm:$0xff] %v6874_v31  ;;  %v6877_v25 = vpop.permute.xlu1 %1406  ;;  %v6879_v19 = vpop.permute.xlu0 %1404 }
 0x29c   :  { %10868 = vst [vmem:[#allocation384_spill] sm:$0xff] %v6877_v25 }
 0x29d   :  { %10869 = vst [vmem:[#allocation385_spill] sm:$0xff] %v6879_v19  ;;  %v10876_v19 = vld [vmem:[#allocation165_spill] sm:$0xff] }
 0x2a0   :  { %1572 = vrot.lane.b32.xlu2 %v10871_v4, %s4847_s27 }
 0x2a1   :  { %1570 = vrot.lane.b32.xlu1 %v10872_v15, %s4847_s27  ;;  %1494 = vrot.lane.b32.xlu0 %v6882_v44, %s4846_s0 }
 0x2a2   :  { %v6890_v3 = vpop.permute.xlu2 %1432 }
 0x2a3   :  { %10873 = vst [vmem:[#allocation159_spill] sm:$0xff] %v6890_v3  ;;  %v6892_v29 = vpop.permute.xlu1 %1412  ;;  %v6894_v25 = vpop.permute.xlu0 %1410  ;;  %v10882_v3 = vld [vmem:[#allocation171_spill] sm:$0xff] }
 0x2a4   :  { %10874 = vst [vmem:[#allocation152_spill] sm:$0xff] %v6892_v29  ;;  %v10883_v29 = vld [vmem:[#allocation163_spill] sm:$0xff] }
 0x2a5   :  { %10875 = vst [vmem:[#allocation387_spill] sm:$0xff] %v6894_v25  ;;  %v10884_v25 = vld [vmem:[#allocation164_spill] sm:$0xff] }
 0x2a8   :  { %1578 = vrot.lane.b32.xlu2 %v10876_v19, %s4847_s27 }
 0x2a9   :  { %1576 = vrot.lane.b32.xlu1 %v10877_v11, %s4847_s27  ;;  %1574 = vrot.lane.b32.xlu0 %v10878_v0, %s4847_s27 }
 0x2aa   :  { %v6902_v4 = vpop.permute.xlu2 %1438 }
 0x2ab   :  { %10879 = vst [vmem:[#allocation388_spill] sm:$0xff] %v6902_v4  ;;  %v6904_v15 = vpop.permute.xlu1 %1418  ;;  %v6906_v44 = vpop.permute.xlu0 %1416  ;;  %v10888_v4 = vld [vmem:[#allocation177_spill] sm:$0xff] }
 0x2ac   :  { %10880 = vst [vmem:[#allocation389_spill] sm:$0xff] %v6904_v15  ;;  %v10889_v15 = vld [vmem:[#allocation169_spill] sm:$0xff] }
 0x2ad   :  { %10881 = vst [vmem:[#allocation390_spill] sm:$0xff] %v6906_v44  ;;  %v10890_v44 = vld [vmem:[#allocation170_spill] sm:$0xff] }
 0x2b0   :  { %1584 = vrot.lane.b32.xlu2 %v10882_v3, %s4847_s27 }
 0x2b1   :  { %1582 = vrot.lane.b32.xlu1 %v10883_v29, %s4847_s27  ;;  %1580 = vrot.lane.b32.xlu0 %v10884_v25, %s4847_s27 }
 0x2b2   :  { %v6914_v31 = vpop.permute.xlu2 %1444 }
 0x2b3   :  { %10885 = vst [vmem:[#allocation391_spill] sm:$0xff] %v6914_v31  ;;  %v6916_v19 = vpop.permute.xlu1 %1424  ;;  %v6918_v0 = vpop.permute.xlu0 %1422  ;;  %v10894_v31 = vld [vmem:[#allocation183_spill] sm:$0xff] }
 0x2b4   :  { %10886 = vst [vmem:[#allocation392_spill] sm:$0xff] %v6916_v19  ;;  %v10895_v19 = vld [vmem:[#allocation175_spill] sm:$0xff] }
 0x2b5   :  { %10887 = vst [vmem:[#allocation393_spill] sm:$0xff] %v6918_v0  ;;  %v10896_v0 = vld [vmem:[#allocation176_spill] sm:$0xff] }
 0x2b8   :  { %1590 = vrot.lane.b32.xlu2 %v10888_v4, %s4847_s27 }
 0x2b9   :  { %1588 = vrot.lane.b32.xlu1 %v10889_v15, %s4847_s27  ;;  %1586 = vrot.lane.b32.xlu0 %v10890_v44, %s4847_s27 }
 0x2ba   :  { %v6926_v3 = vpop.permute.xlu2 %1450 }
 0x2bb   :  { %10891 = vst [vmem:[#allocation394_spill] sm:$0xff] %v6926_v3  ;;  %v6928_v29 = vpop.permute.xlu1 %1430  ;;  %v6930_v25 = vpop.permute.xlu0 %1428  ;;  %v10900_v3 = vld [vmem:[#allocation189_spill] sm:$0xff] }
 0x2bc   :  { %10892 = vst [vmem:[#allocation395_spill] sm:$0xff] %v6928_v29  ;;  %v10901_v29 = vld [vmem:[#allocation181_spill] sm:$0xff] }
 0x2bd   :  { %10893 = vst [vmem:[#allocation396_spill] sm:$0xff] %v6930_v25  ;;  %v10902_v25 = vld [vmem:[#allocation182_spill] sm:$0xff] }
 0x2c0   :  { %1596 = vrot.lane.b32.xlu2 %v10894_v31, %s4847_s27 }
 0x2c1   :  { %1594 = vrot.lane.b32.xlu1 %v10895_v19, %s4847_s27  ;;  %1592 = vrot.lane.b32.xlu0 %v10896_v0, %s4847_s27 }
 0x2c2   :  { %v6938_v4 = vpop.permute.xlu2 %1456 }
 0x2c3   :  { %10897 = vst [vmem:[#allocation397_spill] sm:$0xff] %v6938_v4  ;;  %v6940_v15 = vpop.permute.xlu1 %1436  ;;  %v6942_v44 = vpop.permute.xlu0 %1434  ;;  %v10906_v4 = vld [vmem:[#allocation195_spill] sm:$0xff] }
 0x2c4   :  { %10898 = vst [vmem:[#allocation398_spill] sm:$0xff] %v6940_v15  ;;  %v10907_v15 = vld [vmem:[#allocation187_spill] sm:$0xff] }
 0x2c5   :  { %10899 = vst [vmem:[#allocation399_spill] sm:$0xff] %v6942_v44  ;;  %v10908_v44 = vld [vmem:[#allocation188_spill] sm:$0xff] }
 0x2c8   :  { %1602 = vrot.lane.b32.xlu2 %v10900_v3, %s4847_s27 }
 0x2c9   :  { %1600 = vrot.lane.b32.xlu1 %v10901_v29, %s4847_s27  ;;  %1598 = vrot.lane.b32.xlu0 %v10902_v25, %s4847_s27 }
 0x2ca   :  { %v6950_v31 = vpop.permute.xlu2 %1462 }
 0x2cb   :  { %10903 = vst [vmem:[#allocation400_spill] sm:$0xff] %v6950_v31  ;;  %v6952_v19 = vpop.permute.xlu1 %1442  ;;  %v6954_v0 = vpop.permute.xlu0 %1440  ;;  %v10912_v31 = vld [vmem:[#allocation201_spill] sm:$0xff] }
 0x2cc   :  { %10904 = vst [vmem:[#allocation401_spill] sm:$0xff] %v6952_v19  ;;  %v10913_v19 = vld [vmem:[#allocation193_spill] sm:$0xff] }
 0x2cd   :  { %10905 = vst [vmem:[#allocation402_spill] sm:$0xff] %v6954_v0  ;;  %v10914_v0 = vld [vmem:[#allocation194_spill] sm:$0xff] }
 0x2d0   :  { %1608 = vrot.lane.b32.xlu2 %v10906_v4, %s4847_s27 }
 0x2d1   :  { %1606 = vrot.lane.b32.xlu1 %v10907_v15, %s4847_s27  ;;  %1604 = vrot.lane.b32.xlu0 %v10908_v44, %s4847_s27 }
 0x2d2   :  { %v6962_v3 = vpop.permute.xlu2 %1468 }
 0x2d3   :  { %10909 = vst [vmem:[#allocation403_spill] sm:$0xff] %v6962_v3  ;;  %v6964_v29 = vpop.permute.xlu1 %1448  ;;  %v6966_v25 = vpop.permute.xlu0 %1446  ;;  %v10918_v3 = vld [vmem:[#allocation205_spill] sm:$0xff] }
 0x2d4   :  { %10910 = vst [vmem:[#allocation404_spill] sm:$0xff] %v6964_v29  ;;  %v10919_v29 = vld [vmem:[#allocation199_spill] sm:$0xff] }
 0x2d5   :  { %10911 = vst [vmem:[#allocation405_spill] sm:$0xff] %v6966_v25  ;;  %v10920_v25 = vld [vmem:[#allocation200_spill] sm:$0xff] }
 0x2d8   :  { %1614 = vrot.lane.b32.xlu2 %v10912_v31, %s4847_s27 }
 0x2d9   :  { %1612 = vrot.lane.b32.xlu1 %v10913_v19, %s4847_s27  ;;  %1610 = vrot.lane.b32.xlu0 %v10914_v0, %s4847_s27 }
 0x2da   :  { %v6974_v4 = vpop.permute.xlu2 %1474 }
 0x2db   :  { %10915 = vst [vmem:[#allocation406_spill] sm:$0xff] %v6974_v4  ;;  %v6976_v15 = vpop.permute.xlu1 %1454  ;;  %v6978_v44 = vpop.permute.xlu0 %1452  ;;  %v10924_v4 = vld [vmem:[#allocation210_spill] sm:$0xff] }
 0x2dc   :  { %10916 = vst [vmem:[#allocation407_spill] sm:$0xff] %v6976_v15  ;;  %v1561_v15 = vrot.slane %v6453_v14, 2 }
 0x2dd   :  { %10917 = vst [vmem:[#allocation408_spill] sm:$0xff] %v6978_v44  ;;  %v10925_v44 = vld [vmem:[#allocation203_spill] sm:$0xff] }
 0x2e0   :  { %1620 = vrot.lane.b32.xlu2 %v10918_v3, %s4847_s27  ;;  %v10926_v3 = vld [vmem:[#allocation204_spill] sm:$0xff] }
 0x2e1   :  { %1618 = vrot.lane.b32.xlu1 %v10919_v29, %s4847_s27  ;;  %1616 = vrot.lane.b32.xlu0 %v10920_v25, %s4847_s27  ;;  %v1563_v29 = vrot.slane %v6715_v27, 2  ;;  %v1560_v25 = vrot.slane %v6430_v8, 2  ;;  %v10932_v27 = vld [vmem:[#allocation209_spill] sm:$0xff] }
 0x2e2   :  { %v6986_v31 = vpop.permute.xlu2 %1480 }
 0x2e3   :  { %10921 = vst [vmem:[#allocation409_spill] sm:$0xff] %v6986_v31  ;;  %v6988_v19 = vpop.permute.xlu1 %1460  ;;  %v6990_v0 = vpop.permute.xlu0 %1458  ;;  %v7011_v11 = vsel %vm820_vm2, %v1560_v25, %v1561_v15  ;;  %v10937_v25 = vld [vmem:[#allocation214_spill] sm:$0xff] }
 0x2e4   :  { %10922 = vst [vmem:[#allocation410_spill] sm:$0xff] %v6988_v19 }
 0x2e5   :  { %10923 = vst [vmem:[#allocation411_spill] sm:$0xff] %v6990_v0 }
 0x2e6   :  { %10931 = vst [vmem:[#allocation414_spill] sm:$0xff] %v7011_v11 }
 0x2e8   :  { %1626 = vrot.lane.b32.xlu2 %v10924_v4, %s4847_s27  ;;  %v7008_v4 = vsel %vm820_vm2, %v1561_v15, %v1563_v29  ;;  %v10936_v29 = vld [vmem:[#allocation213_spill] sm:$0xff]  ;;  %v10938_v15 = vld [vmem:[#allocation208_spill] sm:$0xff] }
 0x2e9   :  { %1624 = vrot.lane.b32.xlu1 %v10925_v44, %s4847_s27  ;;  %1622 = vrot.lane.b32.xlu0 %v10926_v3, %s4847_s27  ;;  %10930 = vst [vmem:[#allocation413_spill] sm:$0xff] %v7008_v4 }
 0x2ea   :  { %v7001_v31 = vpop.permute.xlu2 %1486 }
 0x2eb   :  { %10927 = vst [vmem:[#allocation203_spill] sm:$0xff] %v7001_v31  ;;  %v7003_v19 = vpop.permute.xlu1 %1466  ;;  %v7005_v0 = vpop.permute.xlu0 %1464 }
 0x2ec   :  { %10928 = vst [vmem:[#allocation204_spill] sm:$0xff] %v7003_v19 }
 0x2ed   :  { %10929 = vst [vmem:[#allocation412_spill] sm:$0xff] %v7005_v0 }
 0x2f0   :  { %1632 = vrot.lane.b32.xlu2 %v7008_v4, %s4847_s27 }
 0x2f1   :  { %1630 = vrot.lane.b32.xlu1 %v7011_v11, %s4847_s27  ;;  %1628 = vrot.lane.b32.xlu0 %v10932_v27, %s4847_s27 }
 0x2f2   :  { %v7019_v31 = vpop.permute.xlu2 %1492 }
 0x2f3   :  { %10933 = vst [vmem:[#allocation415_spill] sm:$0xff] %v7019_v31  ;;  %v7021_v19 = vpop.permute.xlu1 %1472  ;;  %v7023_v0 = vpop.permute.xlu0 %1470  ;;  %v10942_v31 = vld [vmem:[#allocation218_spill] sm:$0xff] }
 0x2f4   :  { %10934 = vst [vmem:[#allocation416_spill] sm:$0xff] %v7021_v19  ;;  %v10943_v19 = vld [vmem:[#allocation219_spill] sm:$0xff] }
 0x2f5   :  { %10935 = vst [vmem:[#allocation417_spill] sm:$0xff] %v7023_v0  ;;  %v10944_v0 = vld [vmem:[#allocation212_spill] sm:$0xff] }
 0x2f8   :  { %1638 = vrot.lane.b32.xlu2 %v10936_v29, %s4847_s27 }
 0x2f9   :  { %1636 = vrot.lane.b32.xlu1 %v10937_v25, %s4847_s27  ;;  %1634 = vrot.lane.b32.xlu0 %v10938_v15, %s4847_s27 }
 0x2fa   :  { %v7031_v4 = vpop.permute.xlu2 %1572 }
 0x2fb   :  { %10939 = vst [vmem:[#allocation214_spill] sm:$0xff] %v7031_v4  ;;  %v7033_v11 = vpop.permute.xlu1 %1478  ;;  %v7035_v27 = vpop.permute.xlu0 %1476  ;;  %v10948_v4 = vld [vmem:[#allocation222_spill] sm:$0xff] }
 0x2fc   :  { %10940 = vst [vmem:[#allocation208_spill] sm:$0xff] %v7033_v11  ;;  %v10949_v11 = vld [vmem:[#allocation223_spill] sm:$0xff] }
 0x2fd   :  { %10941 = vst [vmem:[#allocation418_spill] sm:$0xff] %v7035_v27  ;;  %v10950_v27 = vld [vmem:[#allocation217_spill] sm:$0xff] }
 0x300   :  { %1644 = vrot.lane.b32.xlu2 %v10942_v31, %s4847_s27 }
 0x301   :  { %1642 = vrot.lane.b32.xlu1 %v10943_v19, %s4847_s27  ;;  %1640 = vrot.lane.b32.xlu0 %v10944_v0, %s4847_s27 }
 0x302   :  { %v7043_v29 = vpop.permute.xlu2 %1578 }
 0x303   :  { %10945 = vst [vmem:[#allocation419_spill] sm:$0xff] %v7043_v29  ;;  %v7045_v25 = vpop.permute.xlu1 %1484  ;;  %v7047_v15 = vpop.permute.xlu0 %1482  ;;  %v10954_v29 = vld [vmem:[#allocation227_spill] sm:$0xff] }
 0x304   :  { %10946 = vst [vmem:[#allocation420_spill] sm:$0xff] %v7045_v25  ;;  %v10955_v25 = vld [vmem:[#allocation228_spill] sm:$0xff] }
 0x305   :  { %10947 = vst [vmem:[#allocation421_spill] sm:$0xff] %v7047_v15  ;;  %v10956_v15 = vld [vmem:[#allocation221_spill] sm:$0xff] }
 0x308   :  { %1650 = vrot.lane.b32.xlu2 %v10948_v4, %s4847_s27 }
 0x309   :  { %1648 = vrot.lane.b32.xlu1 %v10949_v11, %s4847_s27  ;;  %1646 = vrot.lane.b32.xlu0 %v10950_v27, %s4847_s27 }
 0x30a   :  { %v7055_v31 = vpop.permute.xlu2 %1584 }
 0x30b   :  { %10951 = vst [vmem:[#allocation422_spill] sm:$0xff] %v7055_v31  ;;  %v7057_v19 = vpop.permute.xlu1 %1490  ;;  %v7059_v0 = vpop.permute.xlu0 %1488  ;;  %v10960_v31 = vld [vmem:[#allocation231_spill] sm:$0xff] }
 0x30c   :  { %10952 = vst [vmem:[#allocation423_spill] sm:$0xff] %v7057_v19  ;;  %v10961_v19 = vld [vmem:[#allocation232_spill] sm:$0xff] }
 0x30d   :  { %10953 = vst [vmem:[#allocation424_spill] sm:$0xff] %v7059_v0  ;;  %v10962_v0 = vld [vmem:[#allocation226_spill] sm:$0xff] }
 0x310   :  { %1656 = vrot.lane.b32.xlu2 %v10954_v29, %s4847_s27 }
 0x311   :  { %1654 = vrot.lane.b32.xlu1 %v10955_v25, %s4847_s27  ;;  %1652 = vrot.lane.b32.xlu0 %v10956_v15, %s4847_s27 }
 0x312   :  { %v7067_v4 = vpop.permute.xlu2 %1590 }
 0x313   :  { %10957 = vst [vmem:[#allocation425_spill] sm:$0xff] %v7067_v4  ;;  %v7069_v11 = vpop.permute.xlu1 %1570  ;;  %v7071_v27 = vpop.permute.xlu0 %1494  ;;  %v10966_v4 = vld [vmem:[#allocation236_spill] sm:$0xff] }
 0x314   :  { %10958 = vst [vmem:[#allocation426_spill] sm:$0xff] %v7069_v11  ;;  %v10968_v11 = vld [vmem:[#allocation230_spill] sm:$0xff] }
 0x315   :  { %10959 = vst [vmem:[#allocation427_spill] sm:$0xff] %v7071_v27  ;;  %v10967_v27 = vld [vmem:[#allocation237_spill] sm:$0xff] }
 0x318   :  { %1662 = vrot.lane.b32.xlu2 %v10960_v31, %s4847_s27 }
 0x319   :  { %1660 = vrot.lane.b32.xlu1 %v10961_v19, %s4847_s27  ;;  %1658 = vrot.lane.b32.xlu0 %v10962_v0, %s4847_s27 }
 0x31a   :  { %v7079_v29 = vpop.permute.xlu2 %1596 }
 0x31b   :  { %10963 = vst [vmem:[#allocation428_spill] sm:$0xff] %v7079_v29  ;;  %v7081_v25 = vpop.permute.xlu1 %1576  ;;  %v7083_v15 = vpop.permute.xlu0 %1574  ;;  %v10972_v29 = vld [vmem:[#allocation240_spill] sm:$0xff] }
 0x31c   :  { %10964 = vst [vmem:[#allocation429_spill] sm:$0xff] %v7081_v25  ;;  %v10973_v25 = vld [vmem:[#allocation241_spill] sm:$0xff] }
 0x31d   :  { %10965 = vst [vmem:[#allocation430_spill] sm:$0xff] %v7083_v15  ;;  %v10974_v15 = vld [vmem:[#allocation235_spill] sm:$0xff] }
 0x320   :  { %1668 = vrot.lane.b32.xlu2 %v10966_v4, %s4847_s27 }
 0x321   :  { %1666 = vrot.lane.b32.xlu1 %v10967_v27, %s4847_s27  ;;  %1664 = vrot.lane.b32.xlu0 %v10968_v11, %s4847_s27 }
 0x322   :  { %v7091_v31 = vpop.permute.xlu2 %1602 }
 0x323   :  { %10969 = vst [vmem:[#allocation431_spill] sm:$0xff] %v7091_v31  ;;  %v7093_v19 = vpop.permute.xlu1 %1582  ;;  %v7095_v0 = vpop.permute.xlu0 %1580  ;;  %v10978_v31 = vld [vmem:[#allocation246_spill] sm:$0xff] }
 0x324   :  { %10970 = vst [vmem:[#allocation432_spill] sm:$0xff] %v7093_v19  ;;  %v10979_v19 = vld [vmem:[#allocation247_spill] sm:$0xff] }
 0x325   :  { %10971 = vst [vmem:[#allocation433_spill] sm:$0xff] %v7095_v0  ;;  %v10980_v0 = vld [vmem:[#allocation239_spill] sm:$0xff] }
 0x328   :  { %1674 = vrot.lane.b32.xlu2 %v10972_v29, %s4847_s27 }
 0x329   :  { %1672 = vrot.lane.b32.xlu1 %v10973_v25, %s4847_s27  ;;  %1670 = vrot.lane.b32.xlu0 %v10974_v15, %s4847_s27 }
 0x32a   :  { %v7103_v4 = vpop.permute.xlu2 %1608 }
 0x32b   :  { %10975 = vst [vmem:[#allocation434_spill] sm:$0xff] %v7103_v4  ;;  %v7105_v27 = vpop.permute.xlu1 %1588  ;;  %v7107_v11 = vpop.permute.xlu0 %1586  ;;  %v10984_v4 = vld [vmem:[#allocation245_spill] sm:$0xff] }
 0x32c   :  { %10976 = vst [vmem:[#allocation435_spill] sm:$0xff] %v7105_v27 }
 0x32d   :  { %10977 = vst [vmem:[#allocation436_spill] sm:$0xff] %v7107_v11 }
 0x330   :  { %1680 = vrot.lane.b32.xlu2 %v10978_v31, %s4847_s27 }
 0x331   :  { %1678 = vrot.lane.b32.xlu1 %v10979_v19, %s4847_s27  ;;  %1676 = vrot.lane.b32.xlu0 %v10980_v0, %s4847_s27 }
 0x332   :  { %v7115_v29 = vpop.permute.xlu2 %1614 }
 0x333   :  { %10981 = vst [vmem:[#allocation247_spill] sm:$0xff] %v7115_v29  ;;  %v7117_v25 = vpop.permute.xlu1 %1594  ;;  %v7119_v15 = vpop.permute.xlu0 %1592  ;;  %v1566_v29 = vrot.slane %v6587_v53, 2 }
 0x334   :  { %10982 = vst [vmem:[#allocation239_spill] sm:$0xff] %v7117_v25  ;;  %v1565_v25 = vrot.slane %v6590_v37, 2 }
 0x335   :  { %10983 = vst [vmem:[#allocation437_spill] sm:$0xff] %v7119_v15 }
 0x338   :  { %1686 = vrot.lane.b32.xlu2 %v6280_v51, %s4847_s27  ;;  %v1568_v51 = vrot.slane %v6866_v20, 2 }
 0x339   :  { %1684 = vrot.lane.b32.xlu1 %v6283_v63, %s4847_s27  ;;  %1682 = vrot.lane.b32.xlu0 %v10984_v4, %s4847_s27 }
 0x33a   :  { %v7127_v27 = vpop.permute.xlu2 %1620 }
 0x33b   :  { %v7129_v31 = vpop.permute.xlu1 %1600  ;;  %v7131_v11 = vpop.permute.xlu0 %1598 }
 0x33c   :  { %10985 = vst [vmem:[#allocation438_spill] sm:$0xff] %v7129_v31 }
 0x33d   :  { %10986 = vst [vmem:[#allocation439_spill] sm:$0xff] %v7131_v11 }
 0x340   :  { %1692 = vrot.lane.b32.xlu2 %v6301_v54, %s4847_s27  ;;  %v7149_v54 = vsel %vm820_vm2, %v1566_v29, %v1568_v51 }
 0x341   :  { %1690 = vrot.lane.b32.xlu1 %v6304_v45, %s4847_s27  ;;  %1688 = vrot.lane.b32.xlu0 %v6277_v1, %s4847_s27  ;;  %10990 = vst [vmem:[#allocation443_spill] sm:$0xff] %v7149_v54  ;;  %v7152_v45 = vsel %vm820_vm2, %v1565_v25, %v1566_v29 }
 0x342   :  { %v7141_v15 = vpop.permute.xlu2 %1626  ;;  %10991 = vst [vmem:[#allocation444_spill] sm:$0xff] %v7152_v45 }
 0x343   :  { %10987 = vst [vmem:[#allocation440_spill] sm:$0xff] %v7141_v15  ;;  %v7144_v31 = vpop.permute.xlu1 %1606  ;;  %v7146_v11 = vpop.permute.xlu0 %1604 }
 0x344   :  { %10988 = vst [vmem:[#allocation441_spill] sm:$0xff] %v7144_v31 }
 0x345   :  { %10989 = vst [vmem:[#allocation442_spill] sm:$0xff] %v7146_v11 }
 0x348   :  { %1762 = vrot.lane.b32.xlu2 %v4954_v34, %s4848_s28 }
 0x349   :  { %1696 = vrot.lane.b32.xlu1 %v7149_v54, %s4847_s27  ;;  %1694 = vrot.lane.b32.xlu0 %v7152_v45, %s4847_s27 }
 0x34a   :  { %v7160_v20 = vpop.permute.xlu2 %1632 }
 0x34b   :  { %10992 = vst [vmem:[#allocation445_spill] sm:$0xff] %v7160_v20  ;;  %v7162_v31 = vpop.permute.xlu1 %1612  ;;  %v7164_v11 = vpop.permute.xlu0 %1610 }
 0x34c   :  { %10993 = vst [vmem:[#allocation446_spill] sm:$0xff] %v7162_v31 }
 0x34d   :  { %10994 = vst [vmem:[#allocation447_spill] sm:$0xff] %v7164_v11 }
 0x350   :  { %1768 = vrot.lane.b32.xlu2 %v4965_v38, %s4848_s28 }
 0x351   :  { %1766 = vrot.lane.b32.xlu1 %v4968_v39, %s4848_s28  ;;  %1764 = vrot.lane.b32.xlu0 %v4910_v13, %s4848_s28 }
 0x352   :  { %v7172_v51 = vpop.permute.xlu2 %1638 }
 0x353   :  { %10995 = vst [vmem:[#allocation448_spill] sm:$0xff] %v7172_v51  ;;  %v7174_v29 = vpop.permute.xlu1 %1618  ;;  %v7176_v25 = vpop.permute.xlu0 %1616 }
 0x358   :  { %1774 = vrot.lane.b32.xlu2 %v5041_v9, %s4848_s28 }
 0x359   :  { %1772 = vrot.lane.b32.xlu1 %v4983_v47, %s4848_s28  ;;  %1770 = vrot.lane.b32.xlu0 %v4989_v49, %s4848_s28 }
 0x35a   :  { %v7184_v31 = vpop.permute.xlu2 %1644 }
 0x35b   :  { %10996 = vst [vmem:[#allocation449_spill] sm:$0xff] %v7184_v31  ;;  %v7186_v11 = vpop.permute.xlu1 %1624  ;;  %v7188_v54 = vpop.permute.xlu0 %1622 }
 0x360   :  { %1780 = vrot.lane.b32.xlu2 %v5026_v2, %s4848_s28 }
 0x361   :  { %1778 = vrot.lane.b32.xlu1 %v5029_v5, %s4848_s28  ;;  %1776 = vrot.lane.b32.xlu0 %v5035_v7, %s4848_s28  ;;  %v11082_v7 = vld [vmem:[#allocation39_spill] sm:$0xff] }
 0x362   :  { %v7196_v51 = vpop.permute.xlu2 %1650 }
 0x363   :  { %10997 = vst [vmem:[#allocation450_spill] sm:$0xff] %v7196_v51  ;;  %v7198_v45 = vpop.permute.xlu1 %1630  ;;  %v7200_v1 = vpop.permute.xlu0 %1628 }
 0x364   :  { %10998 = vst [vmem:[#allocation451_spill] sm:$0xff] %v7198_v45  ;;  %v11127_v45 = vld [vmem:[#allocation205_spill] sm:$0xff] }
 0x365   :  { %10999 = vst [vmem:[#allocation452_spill] sm:$0xff] %v7200_v1 }
 0x368   :  { %1786 = vrot.lane.b32.xlu2 %v5122_v16, %s4848_s28 }
 0x369   :  { %1784 = vrot.lane.b32.xlu1 %v5073_v33, %s4848_s28  ;;  %1782 = vrot.lane.b32.xlu0 %v5061_v26, %s4848_s28  ;;  %v11041_v26 = vld [vmem:[#allocation132_spill] sm:$0xff] }
 0x36a   :  { %v7208_v31 = vpop.permute.xlu2 %1656 }
 0x36b   :  { %11000 = vst [vmem:[#allocation453_spill] sm:$0xff] %v7208_v31  ;;  %v7210_v2 = vpop.permute.xlu1 %1636  ;;  %v7212_v5 = vpop.permute.xlu0 %1634 }
 0x36c   :  { %11001 = vst [vmem:[#allocation454_spill] sm:$0xff] %v7210_v2 }
 0x36d   :  { %11002 = vst [vmem:[#allocation455_spill] sm:$0xff] %v7212_v5  ;;  %v11047_v5 = vld [vmem:[#allocation141_spill] sm:$0xff] }
 0x370   :  { %1792 = vrot.lane.b32.xlu2 %v5110_v61, %s4848_s28 }
 0x371   :  { %1790 = vrot.lane.b32.xlu1 %v5113_v62, %s4848_s28  ;;  %1788 = vrot.lane.b32.xlu0 %v5116_v6, %s4848_s28 }
 0x372   :  { %v7220_v51 = vpop.permute.xlu2 %1662 }
 0x373   :  { %11003 = vst [vmem:[#allocation456_spill] sm:$0xff] %v7220_v51  ;;  %v7222_v16 = vpop.permute.xlu1 %1642  ;;  %v7224_v33 = vpop.permute.xlu0 %1640 }
 0x374   :  { %11004 = vst [vmem:[#allocation457_spill] sm:$0xff] %v7222_v16 }
 0x375   :  { %11005 = vst [vmem:[#allocation458_spill] sm:$0xff] %v7224_v33  ;;  %v11019_v33 = vld [vmem:[#allocation2_spill] sm:$0xff] }
 0x378   :  { %1798 = vrot.lane.b32.xlu2 %v5212_v55, %s4848_s28 }
 0x379   :  { %1796 = vrot.lane.b32.xlu1 %v5151_v52, %s4848_s28  ;;  %1794 = vrot.lane.b32.xlu0 %v5163_v57, %s4848_s28 }
 0x37a   :  { %v7232_v31 = vpop.permute.xlu2 %1668 }
 0x37b   :  { %11006 = vst [vmem:[#allocation459_spill] sm:$0xff] %v7232_v31  ;;  %v7234_v61 = vpop.permute.xlu1 %1648  ;;  %v7236_v62 = vpop.permute.xlu0 %1646 }
 0x37c   :  { %11007 = vst [vmem:[#allocation460_spill] sm:$0xff] %v7234_v61 }
 0x37d   :  { %11008 = vst [vmem:[#allocation461_spill] sm:$0xff] %v7236_v62 }
 0x380   :  { %1804 = vrot.lane.b32.xlu2 %v5188_v43, %s4848_s28 }
 0x381   :  { %1802 = vrot.lane.b32.xlu1 %v5191_v42, %s4848_s28  ;;  %1800 = vrot.lane.b32.xlu0 %v5200_v56, %s4848_s28 }
 0x382   :  { %v7244_v55 = vpop.permute.xlu2 %1674 }
 0x383   :  { %11009 = vst [vmem:[#allocation462_spill] sm:$0xff] %v7244_v55  ;;  %v7246_v52 = vpop.permute.xlu1 %1654  ;;  %v7248_v57 = vpop.permute.xlu0 %1652 }
 0x384   :  { %11010 = vst [vmem:[#allocation463_spill] sm:$0xff] %v7246_v52 }
 0x385   :  { %11011 = vst [vmem:[#allocation464_spill] sm:$0xff] %v7248_v57 }
 0x388   :  { %1810 = vrot.lane.b32.xlu2 %v10557_v12, %s4848_s28  ;;  %v11182_v12 = vld [vmem:[#allocation248_spill] sm:$0xff] }
 0x389   :  { %1808 = vrot.lane.b32.xlu1 %v5232_v30, %s4848_s28  ;;  %1806 = vrot.lane.b32.xlu0 %v5241_v21, %s4848_s28 }
 0x38a   :  { %v7256_v61 = vpop.permute.xlu2 %1680 }
 0x38b   :  { %11012 = vst [vmem:[#allocation465_spill] sm:$0xff] %v7256_v61  ;;  %v7258_v62 = vpop.permute.xlu1 %1660  ;;  %v7260_v16 = vpop.permute.xlu0 %1658  ;;  %v11018_v61 = vld [vmem:[#allocation3_spill] sm:$0xff] }
 0x38c   :  { %11013 = vst [vmem:[#allocation466_spill] sm:$0xff] %v7258_v62  ;;  %v4824_v6 = vpack.i.bf16 %v11019_v33, %v11018_v61  ;;  %v11065_v62 = vld [vmem:[#allocation21_spill] sm:$0xff] }
 0x38d   :  { %11014 = vst [vmem:[#allocation467_spill] sm:$0xff] %v7260_v16 }
 0x390   :  { %1816 = vrot.lane.b32.xlu2 %v10567_v35, %s4848_s28 }
 0x391   :  { %1814 = vrot.lane.b32.xlu1 %v10569_v17, %s4848_s28  ;;  %1812 = vrot.lane.b32.xlu0 %v5284_v22, %s4848_s28  ;;  %v11140_v17 = vld [vmem:[#allocation210_spill] sm:$0xff] }
 0x392   :  { %v7268_v52 = vpop.permute.xlu2 %1686 }
 0x393   :  { %11015 = vst [vmem:[#allocation468_spill] sm:$0xff] %v7268_v52  ;;  %v7270_v57 = vpop.permute.xlu1 %1666  ;;  %v7272_v55 = vpop.permute.xlu0 %1664 }
 0x394   :  { %11016 = vst [vmem:[#allocation469_spill] sm:$0xff] %v7270_v57 }
 0x395   :  { %11017 = vst [vmem:[#allocation470_spill] sm:$0xff] %v7272_v55 }
 0x398   :  { %4825 = vrot.lane.b32.xlu2 %v4824_v6, %s4848_s28 }
 0x399   :  { %1820 = vrot.lane.b32.xlu1 %v6453_v14, %s4848_s28  ;;  %1818 = vrot.lane.b32.xlu0 %v6430_v8, %s4848_s28 }
 0x39a   :  { %v7281_v31 = vpop.permute.xlu2 %1692 }
 0x39b   :  { %11020 = vst [vmem:[#allocation2_spill] sm:$0xff] %v7281_v31  ;;  %v7283_v2 = vpop.permute.xlu1 %1672  ;;  %v7285_v52 = vpop.permute.xlu0 %1670 }
 0x39c   :  { %11021 = vst [vmem:[#allocation471_spill] sm:$0xff] %v7283_v2 }
 0x39d   :  { %11022 = vst [vmem:[#allocation472_spill] sm:$0xff] %v7285_v52 }
 0x3a0   :  { %1830 = vrot.lane.b32.xlu2 %v10590_v46, %s4848_s28 }
 0x3a1   :  { %1828 = vrot.lane.b32.xlu1 %v10575_v32, %s4848_s28  ;;  %1826 = vrot.lane.b32.xlu0 %v10578_v18, %s4848_s28 }
 0x3a2   :  { %v7293_v6 = vpop.permute.xlu2 %1762 }
 0x3a3   :  { %v7295_v14 = vpop.permute.xlu1 %1678  ;;  %v7297_v8 = vpop.permute.xlu0 %1676 }
 0x3a4   :  { %11023 = vst [vmem:[#allocation473_spill] sm:$0xff] %v7295_v14  ;;  %v11027_v14 = vld [vmem:[#allocation82_spill] sm:$0xff] }
 0x3a5   :  { %11024 = vst [vmem:[#allocation474_spill] sm:$0xff] %v7297_v8 }
 0x3a8   :  { %1836 = vrot.lane.b32.xlu2 %v10586_v23, %s4848_s28  ;;  %v11028_v23 = vld [vmem:[#allocation84_spill] sm:$0xff] }
 0x3a9   :  { %1834 = vrot.lane.b32.xlu1 %v10585_v24, %s4848_s28  ;;  %1832 = vrot.lane.b32.xlu0 %v10588_v10, %s4848_s28 }
 0x3aa   :  { %v7305_v31 = vpop.permute.xlu2 %1768 }
 0x3ab   :  { %v7307_v46 = vpop.permute.xlu1 %1684  ;;  %v7309_v32 = vpop.permute.xlu0 %1682 }
 0x3ac   :  { %11025 = vst [vmem:[#allocation475_spill] sm:$0xff] %v7307_v46 }
 0x3ad   :  { %11026 = vst [vmem:[#allocation476_spill] sm:$0xff] %v7309_v32  ;;  %v11032_v32 = vld [vmem:[#allocation97_spill] sm:$0xff] }
 0x3b0   :  { %1842 = vrot.lane.b32.xlu2 %v10708_v48, %s4848_s28 }
 0x3b1   :  { %1840 = vrot.lane.b32.xlu1 %v11027_v14, %s4848_s28  ;;  %1838 = vrot.lane.b32.xlu0 %v11028_v23, %s4848_s28 }
 0x3b2   :  { %v7317_v8 = vpop.permute.xlu2 %1774 }
 0x3b3   :  { %v7319_v24 = vpop.permute.xlu1 %1690  ;;  %v7321_v10 = vpop.permute.xlu0 %1688 }
 0x3b4   :  { %11029 = vst [vmem:[#allocation477_spill] sm:$0xff] %v7319_v24  ;;  %v11033_v24 = vld [vmem:[#allocation99_spill] sm:$0xff] }
 0x3b5   :  { %11030 = vst [vmem:[#allocation478_spill] sm:$0xff] %v7321_v10  ;;  %v11034_v10 = vld [vmem:[#allocation101_spill] sm:$0xff] }
 0x3b8   :  { %1848 = vrot.lane.b32.xlu2 %v10714_v36, %s4848_s28 }
 0x3b9   :  { %1846 = vrot.lane.b32.xlu1 %v10715_v40, %s4848_s28  ;;  %1844 = vrot.lane.b32.xlu0 %v10716_v41, %s4848_s28  ;;  %v11076_v41 = vld [vmem:[#allocation34_spill] sm:$0xff] }
 0x3ba   :  { %v7329_v46 = vpop.permute.xlu2 %1780 }
 0x3bb   :  { %11031 = vst [vmem:[#allocation479_spill] sm:$0xff] %v7329_v46  ;;  %v7331_v14 = vpop.permute.xlu1 %1696  ;;  %v7333_v23 = vpop.permute.xlu0 %1694  ;;  %v11151_v46 = vld [vmem:[#allocation414_spill] sm:$0xff] }
 0x3c0   :  { %1854 = vrot.lane.b32.xlu2 %v11032_v32, %s4848_s28 }
 0x3c1   :  { %1852 = vrot.lane.b32.xlu1 %v11033_v24, %s4848_s28  ;;  %1850 = vrot.lane.b32.xlu0 %v11034_v10, %s4848_s28 }
 0x3c2   :  { %v7341_v2 = vpop.permute.xlu2 %1786 }
 0x3c3   :  { %11035 = vst [vmem:[#allocation480_spill] sm:$0xff] %v7341_v2  ;;  %v7343_v18 = vpop.permute.xlu1 %1766  ;;  %v7345_v52 = vpop.permute.xlu0 %1764 }
 0x3c8   :  { %1860 = vrot.lane.b32.xlu2 %v10723_v50, %s4848_s28  ;;  %v11037_v50 = vld [vmem:[#allocation122_spill] sm:$0xff] }
 0x3c9   :  { %1858 = vrot.lane.b32.xlu1 %v10724_v28, %s4848_s28  ;;  %1856 = vrot.lane.b32.xlu0 %v10725_v60, %s4848_s28 }
 0x3ca   :  { %v7353_v32 = vpop.permute.xlu2 %1792 }
 0x3cb   :  { %11036 = vst [vmem:[#allocation481_spill] sm:$0xff] %v7353_v32  ;;  %v7355_v24 = vpop.permute.xlu1 %1772  ;;  %v7357_v57 = vpop.permute.xlu0 %1770  ;;  %v11040_v32 = vld [vmem:[#allocation130_spill] sm:$0xff] }
 0x3d0   :  { %1866 = vrot.lane.b32.xlu2 %v10648_v58, %s4848_s28  ;;  %v11042_v58 = vld [vmem:[#allocation118_spill] sm:$0xff] }
 0x3d1   :  { %1864 = vrot.lane.b32.xlu1 %v5641_v59, %s4848_s28  ;;  %1862 = vrot.lane.b32.xlu0 %v11037_v50, %s4848_s28 }
 0x3d2   :  { %v7365_v10 = vpop.permute.xlu2 %1798 }
 0x3d3   :  { %11038 = vst [vmem:[#allocation482_spill] sm:$0xff] %v7365_v10  ;;  %v7367_v28 = vpop.permute.xlu1 %1778  ;;  %v7369_v60 = vpop.permute.xlu0 %1776  ;;  %v11046_v10 = vld [vmem:[#allocation140_spill] sm:$0xff] }
 0x3d4   :  { %11039 = vst [vmem:[#allocation483_spill] sm:$0xff] %v7367_v28  ;;  %v11181_v28 = vld [vmem:[#allocation161_spill] sm:$0xff] }
 0x3d8   :  { %1872 = vrot.lane.b32.xlu2 %v11040_v32, %s4848_s28  ;;  %v11048_v32 = vld [vmem:[#allocation142_spill] sm:$0xff] }
 0x3d9   :  { %1870 = vrot.lane.b32.xlu1 %v11041_v26, %s4848_s28  ;;  %1868 = vrot.lane.b32.xlu0 %v11042_v58, %s4848_s28 }
 0x3da   :  { %v7377_v55 = vpop.permute.xlu2 %1804 }
 0x3db   :  { %11043 = vst [vmem:[#allocation484_spill] sm:$0xff] %v7377_v55  ;;  %v7379_v59 = vpop.permute.xlu1 %1784  ;;  %v7381_v50 = vpop.permute.xlu0 %1782  ;;  %v11051_v55 = vld [vmem:[#allocation139_spill] sm:$0xff] }
 0x3dc   :  { %11044 = vst [vmem:[#allocation485_spill] sm:$0xff] %v7379_v59 }
 0x3dd   :  { %11045 = vst [vmem:[#allocation486_spill] sm:$0xff] %v7381_v50 }
 0x3e0   :  { %1878 = vrot.lane.b32.xlu2 %v11046_v10, %s4848_s28 }
 0x3e1   :  { %1876 = vrot.lane.b32.xlu1 %v11047_v5, %s4848_s28  ;;  %1874 = vrot.lane.b32.xlu0 %v11048_v32, %s4848_s28 }
 0x3e2   :  { %v7389_v36 = vpop.permute.xlu2 %1810 }
 0x3e3   :  { %v7391_v26 = vpop.permute.xlu1 %1790  ;;  %v7393_v58 = vpop.permute.xlu0 %1788 }
 0x3e4   :  { %11049 = vst [vmem:[#allocation140_spill] sm:$0xff] %v7391_v26  ;;  %v11055_v26 = vld [vmem:[#allocation9_spill] sm:$0xff] }
 0x3e5   :  { %11050 = vst [vmem:[#allocation487_spill] sm:$0xff] %v7393_v58  ;;  %v11056_v58 = vld [vmem:[#allocation5_spill] sm:$0xff] }
 0x3e8   :  { %1884 = vrot.lane.b32.xlu2 %v6587_v53, %s4848_s28  ;;  %v11057_v53 = vld [vmem:[#allocation10_spill] sm:$0xff] }
 0x3e9   :  { %1882 = vrot.lane.b32.xlu1 %v6590_v37, %s4848_s28  ;;  %1880 = vrot.lane.b32.xlu0 %v11051_v55, %s4848_s28 }
 0x3ea   :  { %v7401_v2 = vpop.permute.xlu2 %1816 }
 0x3eb   :  { %11052 = vst [vmem:[#allocation139_spill] sm:$0xff] %v7401_v2  ;;  %v7403_v5 = vpop.permute.xlu1 %1796  ;;  %v7405_v32 = vpop.permute.xlu0 %1794 }
 0x3ec   :  { %11053 = vst [vmem:[#allocation488_spill] sm:$0xff] %v7403_v5  ;;  %v11060_v5 = vld [vmem:[#allocation14_spill] sm:$0xff] }
 0x3ed   :  { %11054 = vst [vmem:[#allocation489_spill] sm:$0xff] %v7405_v32  ;;  %v11061_v32 = vld [vmem:[#allocation15_spill] sm:$0xff] }
 0x3f0   :  { %1952 = vrot.lane.b32.xlu2 %v11055_v26, %s4849_s29  ;;  %v11062_v26 = vld [vmem:[#allocation16_spill] sm:$0xff] }
 0x3f1   :  { %1950 = vrot.lane.b32.xlu1 %v11056_v58, %s4849_s29  ;;  %1948 = vrot.lane.b32.xlu0 %v11057_v53, %s4849_s29 }
 0x3f2   :  { %v7413_v37 = vpop.permute.xlu2 %4825 }
 0x3f3   :  { %v7415_v51 = vpop.permute.xlu1 %1802  ;;  %v7417_v40 = vpop.permute.xlu0 %1800 }
 0x3f4   :  { %11058 = vst [vmem:[#allocation9_spill] sm:$0xff] %v7415_v51 }
 0x3f5   :  { %11059 = vst [vmem:[#allocation5_spill] sm:$0xff] %v7417_v40  ;;  %v11066_v40 = vld [vmem:[#allocation23_spill] sm:$0xff] }
 0x3f8   :  { %1958 = vrot.lane.b32.xlu2 %v11060_v5, %s4849_s29  ;;  %v11067_v5 = vld [vmem:[#allocation24_spill] sm:$0xff] }
 0x3f9   :  { %1956 = vrot.lane.b32.xlu1 %v11061_v32, %s4849_s29  ;;  %1954 = vrot.lane.b32.xlu0 %v11062_v26, %s4849_s29 }
 0x3fa   :  { %v7425_v59 = vpop.permute.xlu2 %1830 }
 0x3fb   :  { %11063 = vst [vmem:[#allocation10_spill] sm:$0xff] %v7425_v59  ;;  %v7427_v58 = vpop.permute.xlu1 %1808  ;;  %v7429_v53 = vpop.permute.xlu0 %1806  ;;  %v11069_v59 = vld [vmem:[#allocation26_spill] sm:$0xff] }
 0x3fc   :  { %11064 = vst [vmem:[#allocation14_spill] sm:$0xff] %v7429_v53  ;;  %v11070_v53 = vld [vmem:[#allocation28_spill] sm:$0xff] }
 0x400   :  { %1964 = vrot.lane.b32.xlu2 %v11065_v62, %s4849_s29  ;;  %v11071_v62 = vld [vmem:[#allocation27_spill] sm:$0xff] }
 0x401   :  { %1962 = vrot.lane.b32.xlu1 %v11066_v40, %s4849_s29  ;;  %1960 = vrot.lane.b32.xlu0 %v11067_v5, %s4849_s29 }
 0x402   :  { %v7437_v51 = vpop.permute.xlu2 %1836 }
 0x403   :  { %11068 = vst [vmem:[#allocation15_spill] sm:$0xff] %v7437_v51  ;;  %v7439_v32 = vpop.permute.xlu1 %1814  ;;  %v7441_v26 = vpop.permute.xlu0 %1812  ;;  %v11075_v51 = vld [vmem:[#allocation33_spill] sm:$0xff] }
 0x408   :  { %1970 = vrot.lane.b32.xlu2 %v11069_v59, %s4849_s29  ;;  %v11077_v59 = vld [vmem:[#allocation35_spill] sm:$0xff] }
 0x409   :  { %1968 = vrot.lane.b32.xlu1 %v11070_v53, %s4849_s29  ;;  %1966 = vrot.lane.b32.xlu0 %v11071_v62, %s4849_s29 }
 0x40a   :  { %v7449_v20 = vpop.permute.xlu2 %1842 }
 0x40b   :  { %11072 = vst [vmem:[#allocation16_spill] sm:$0xff] %v7449_v20  ;;  %v7451_v40 = vpop.permute.xlu1 %1820  ;;  %v7453_v5 = vpop.permute.xlu0 %1818  ;;  %v11081_v20 = vld [vmem:[#allocation38_spill] sm:$0xff] }
 0x40c   :  { %11073 = vst [vmem:[#allocation21_spill] sm:$0xff] %v7451_v40 }
 0x40d   :  { %11074 = vst [vmem:[#allocation23_spill] sm:$0xff] %v7453_v5 }
 0x410   :  { %1976 = vrot.lane.b32.xlu2 %v11075_v51, %s4849_s29  ;;  %v11083_v51 = vld [vmem:[#allocation40_spill] sm:$0xff] }
 0x411   :  { %1974 = vrot.lane.b32.xlu1 %v11076_v41, %s4849_s29  ;;  %1972 = vrot.lane.b32.xlu0 %v11077_v59, %s4849_s29 }
 0x412   :  { %v7461_v35 = vpop.permute.xlu2 %1848 }
 0x413   :  { %11078 = vst [vmem:[#allocation24_spill] sm:$0xff] %v7461_v35  ;;  %v7463_v53 = vpop.permute.xlu1 %1828  ;;  %v7465_v62 = vpop.permute.xlu0 %1826  ;;  %v11087_v35 = vld [vmem:[#allocation42_spill] sm:$0xff] }
 0x414   :  { %11079 = vst [vmem:[#allocation26_spill] sm:$0xff] %v7463_v53  ;;  %v11088_v53 = vld [vmem:[#allocation43_spill] sm:$0xff] }
 0x415   :  { %11080 = vst [vmem:[#allocation28_spill] sm:$0xff] %v7465_v62 }
 0x418   :  { %1982 = vrot.lane.b32.xlu2 %v11081_v20, %s4849_s29  ;;  %v11089_v20 = vld [vmem:[#allocation44_spill] sm:$0xff] }
 0x419   :  { %1980 = vrot.lane.b32.xlu1 %v11082_v7, %s4849_s29  ;;  %1978 = vrot.lane.b32.xlu0 %v11083_v51, %s4849_s29 }
 0x41a   :  { %v7473_v50 = vpop.permute.xlu2 %1854 }
 0x41b   :  { %11084 = vst [vmem:[#allocation27_spill] sm:$0xff] %v7473_v50  ;;  %v7475_v41 = vpop.permute.xlu1 %1834  ;;  %v7477_v59 = vpop.permute.xlu0 %1832  ;;  %v11093_v50 = vld [vmem:[#allocation46_spill] sm:$0xff] }
 0x41c   :  { %11085 = vst [vmem:[#allocation33_spill] sm:$0xff] %v7475_v41  ;;  %v11094_v41 = vld [vmem:[#allocation47_spill] sm:$0xff] }
 0x41d   :  { %11086 = vst [vmem:[#allocation34_spill] sm:$0xff] %v7477_v59 }
 0x420   :  { %1988 = vrot.lane.b32.xlu2 %v11087_v35, %s4849_s29  ;;  %v11095_v35 = vld [vmem:[#allocation48_spill] sm:$0xff] }
 0x421   :  { %1986 = vrot.lane.b32.xlu1 %v11088_v53, %s4849_s29  ;;  %1984 = vrot.lane.b32.xlu0 %v11089_v20, %s4849_s29 }
 0x422   :  { %v7485_v62 = vpop.permute.xlu2 %1860 }
 0x423   :  { %11090 = vst [vmem:[#allocation35_spill] sm:$0xff] %v7485_v62  ;;  %v7487_v7 = vpop.permute.xlu1 %1840  ;;  %v7489_v51 = vpop.permute.xlu0 %1838  ;;  %v11099_v62 = vld [vmem:[#allocation54_spill] sm:$0xff] }
 0x424   :  { %11091 = vst [vmem:[#allocation38_spill] sm:$0xff] %v7487_v7  ;;  %v11100_v7 = vld [vmem:[#allocation55_spill] sm:$0xff] }
 0x425   :  { %11092 = vst [vmem:[#allocation39_spill] sm:$0xff] %v7489_v51 }
 0x428   :  { %1994 = vrot.lane.b32.xlu2 %v11093_v50, %s4849_s29  ;;  %v11101_v50 = vld [vmem:[#allocation56_spill] sm:$0xff] }
 0x429   :  { %1992 = vrot.lane.b32.xlu1 %v11094_v41, %s4849_s29  ;;  %1990 = vrot.lane.b32.xlu0 %v11095_v35, %s4849_s29 }
 0x42a   :  { %v7497_v59 = vpop.permute.xlu2 %1866 }
 0x42b   :  { %11096 = vst [vmem:[#allocation40_spill] sm:$0xff] %v7497_v59  ;;  %v7499_v53 = vpop.permute.xlu1 %1846  ;;  %v7501_v20 = vpop.permute.xlu0 %1844  ;;  %v11105_v59 = vld [vmem:[#allocation352_spill] sm:$0xff] }
 0x42c   :  { %11097 = vst [vmem:[#allocation42_spill] sm:$0xff] %v7499_v53  ;;  %v11106_v53 = vld [vmem:[#allocation353_spill] sm:$0xff] }
 0x42d   :  { %11098 = vst [vmem:[#allocation43_spill] sm:$0xff] %v7501_v20 }
 0x430   :  { %2000 = vrot.lane.b32.xlu2 %v11099_v62, %s4849_s29  ;;  %v11107_v62 = vld [vmem:[#allocation63_spill] sm:$0xff] }
 0x431   :  { %1998 = vrot.lane.b32.xlu1 %v11100_v7, %s4849_s29  ;;  %1996 = vrot.lane.b32.xlu0 %v11101_v50, %s4849_s29 }
 0x432   :  { %v7509_v51 = vpop.permute.xlu2 %1872 }
 0x433   :  { %11102 = vst [vmem:[#allocation44_spill] sm:$0xff] %v7509_v51  ;;  %v7511_v41 = vpop.permute.xlu1 %1852  ;;  %v7513_v35 = vpop.permute.xlu0 %1850  ;;  %v11111_v51 = vld [vmem:[#allocation157_spill] sm:$0xff] }
 0x434   :  { %11103 = vst [vmem:[#allocation46_spill] sm:$0xff] %v7511_v41  ;;  %v11112_v41 = vld [vmem:[#allocation158_spill] sm:$0xff] }
 0x435   :  { %11104 = vst [vmem:[#allocation47_spill] sm:$0xff] %v7513_v35  ;;  %v11145_v35 = vld [vmem:[#allocation209_spill] sm:$0xff] }
 0x438   :  { %2006 = vrot.lane.b32.xlu2 %v11105_v59, %s4849_s29  ;;  %v11113_v59 = vld [vmem:[#allocation6_spill] sm:$0xff] }
 0x439   :  { %2004 = vrot.lane.b32.xlu1 %v11106_v53, %s4849_s29  ;;  %2002 = vrot.lane.b32.xlu0 %v11107_v62, %s4849_s29 }
 0x43a   :  { %v7521_v20 = vpop.permute.xlu2 %1878 }
 0x43b   :  { %11108 = vst [vmem:[#allocation48_spill] sm:$0xff] %v7521_v20  ;;  %v7523_v7 = vpop.permute.xlu1 %1858  ;;  %v7525_v50 = vpop.permute.xlu0 %1856  ;;  %v11117_v20 = vld [vmem:[#allocation165_spill] sm:$0xff] }
 0x43c   :  { %11109 = vst [vmem:[#allocation54_spill] sm:$0xff] %v7523_v7  ;;  %v11118_v7 = vld [vmem:[#allocation70_spill] sm:$0xff] }
 0x43d   :  { %11110 = vst [vmem:[#allocation55_spill] sm:$0xff] %v7525_v50 }
 0x440   :  { %2136 = vrot.lane.b32.xlu2 %v11111_v51, %s4850_s30  ;;  %v11119_v51 = vld [vmem:[#allocation71_spill] sm:$0xff] }
 0x441   :  { %2134 = vrot.lane.b32.xlu1 %v11112_v41, %s4850_s30  ;;  %4830 = vrot.lane.b32.xlu0 %v11113_v59, %s4849_s29 }
 0x442   :  { %v7533_v53 = vpop.permute.xlu2 %1884 }
 0x443   :  { %11114 = vst [vmem:[#allocation56_spill] sm:$0xff] %v7533_v53  ;;  %v7535_v63 = vpop.permute.xlu1 %1864  ;;  %v7537_v62 = vpop.permute.xlu0 %1862  ;;  %v11122_v53 = vld [vmem:[#allocation164_spill] sm:$0xff] }
 0x444   :  { %11115 = vst [vmem:[#allocation352_spill] sm:$0xff] %v7535_v63  ;;  %v11123_v63 = vld [vmem:[#allocation81_spill] sm:$0xff] }
 0x445   :  { %11116 = vst [vmem:[#allocation353_spill] sm:$0xff] %v7537_v62 }
 0x448   :  { %2138 = vrot.lane.b32.xlu2 %v11117_v20, %s4850_s30  ;;  %v11124_v20 = vld [vmem:[#allocation69_spill] sm:$0xff] }
 0x449   :  { %2014 = vrot.lane.b32.xlu1 %v11118_v7, %s4849_s29  ;;  %2012 = vrot.lane.b32.xlu0 %v11119_v51, %s4849_s29 }
 0x44a   :  { %v7545_v50 = vpop.permute.xlu2 %1952 }
 0x44b   :  { %v7547_v41 = vpop.permute.xlu1 %1870  ;;  %v7549_v59 = vpop.permute.xlu0 %1868 }
 0x44c   :  { %11120 = vst [vmem:[#allocation63_spill] sm:$0xff] %v7547_v41  ;;  %v11128_v41 = vld [vmem:[#allocation163_spill] sm:$0xff] }
 0x44d   :  { %11121 = vst [vmem:[#allocation157_spill] sm:$0xff] %v7549_v59 }
 0x450   :  { %2140 = vrot.lane.b32.xlu2 %v11122_v53, %s4850_s30  ;;  %v11129_v53 = vld [vmem:[#allocation80_spill] sm:$0xff] }
 0x451   :  { %2018 = vrot.lane.b32.xlu1 %v11123_v63, %s4849_s29  ;;  %2016 = vrot.lane.b32.xlu0 %v11124_v20, %s4849_s29 }
 0x452   :  { %v7557_v62 = vpop.permute.xlu2 %1958 }
 0x453   :  { %v7559_v7 = vpop.permute.xlu1 %1876  ;;  %v7561_v51 = vpop.permute.xlu0 %1874 }
 0x454   :  { %11125 = vst [vmem:[#allocation158_spill] sm:$0xff] %v7559_v7  ;;  %v11133_v7 = vld [vmem:[#allocation171_spill] sm:$0xff] }
 0x455   :  { %11126 = vst [vmem:[#allocation6_spill] sm:$0xff] %v7561_v51 }
 0x458   :  { %2180 = vrot.lane.b32.xlu2 %v11127_v45, %s4850_s30  ;;  %v11134_v45 = vld [vmem:[#allocation77_spill] sm:$0xff] }
 0x459   :  { %2142 = vrot.lane.b32.xlu1 %v11128_v41, %s4850_s30  ;;  %2020 = vrot.lane.b32.xlu0 %v11129_v53, %s4849_s29 }
 0x45a   :  { %v7569_v59 = vpop.permute.xlu2 %1964 }
 0x45b   :  { %11130 = vst [vmem:[#allocation165_spill] sm:$0xff] %v7569_v59  ;;  %v7571_v63 = vpop.permute.xlu1 %1882  ;;  %v7573_v20 = vpop.permute.xlu0 %1880 }
 0x45c   :  { %11131 = vst [vmem:[#allocation70_spill] sm:$0xff] %v7571_v63  ;;  %v11136_v63 = vld [vmem:[#allocation170_spill] sm:$0xff] }
 0x45d   :  { %11132 = vst [vmem:[#allocation71_spill] sm:$0xff] %v7573_v20 }
 0x460   :  { %2182 = vrot.lane.b32.xlu2 %v10926_v3, %s4850_s30  ;;  %v11137_v3 = vld [vmem:[#allocation89_spill] sm:$0xff] }
 0x461   :  { %2144 = vrot.lane.b32.xlu1 %v11133_v7, %s4850_s30  ;;  %2022 = vrot.lane.b32.xlu0 %v11134_v45, %s4849_s29 }
 0x462   :  { %v7581_v51 = vpop.permute.xlu2 %1970 }
 0x463   :  { %11135 = vst [vmem:[#allocation164_spill] sm:$0xff] %v7581_v51  ;;  %v7583_v41 = vpop.permute.xlu1 %1950  ;;  %v7585_v53 = vpop.permute.xlu0 %1948  ;;  %v11139_v51 = vld [vmem:[#allocation87_spill] sm:$0xff] }
 0x468   :  { %2184 = vrot.lane.b32.xlu2 %v10925_v44, %s4850_s30  ;;  %v11141_v44 = vld [vmem:[#allocation169_spill] sm:$0xff] }
 0x469   :  { %2146 = vrot.lane.b32.xlu1 %v11136_v63, %s4850_s30  ;;  %2024 = vrot.lane.b32.xlu0 %v11137_v3, %s4849_s29 }
 0x46a   :  { %v7593_v20 = vpop.permute.xlu2 %1976 }
 0x46b   :  { %11138 = vst [vmem:[#allocation81_spill] sm:$0xff] %v7593_v20  ;;  %v7595_v7 = vpop.permute.xlu1 %1956  ;;  %v7597_v45 = vpop.permute.xlu0 %1954  ;;  %v11144_v20 = vld [vmem:[#allocation86_spill] sm:$0xff] }
 0x470   :  { %2026 = vrot.lane.b32.xlu2 %v11139_v51, %s4849_s29  ;;  %v11146_v51 = vld [vmem:[#allocation177_spill] sm:$0xff] }
 0x471   :  { %2186 = vrot.lane.b32.xlu1 %v11140_v17, %s4850_s30  ;;  %2148 = vrot.lane.b32.xlu0 %v11141_v44, %s4850_s30 }
 0x472   :  { %v7605_v9 = vpop.permute.xlu2 %1982 }
 0x473   :  { %11142 = vst [vmem:[#allocation69_spill] sm:$0xff] %v7605_v9  ;;  %v7607_v63 = vpop.permute.xlu1 %1962  ;;  %v7609_v3 = vpop.permute.xlu0 %1960  ;;  %v11150_v9 = vld [vmem:[#allocation175_spill] sm:$0xff] }
 0x474   :  { %11143 = vst [vmem:[#allocation205_spill] sm:$0xff] %v7607_v63  ;;  %v11183_v63 = vld [vmem:[#allocation229_spill] sm:$0xff] }
 0x478   :  { %2028 = vrot.lane.b32.xlu2 %v11144_v20, %s4849_s29  ;;  %v11152_v20 = vld [vmem:[#allocation176_spill] sm:$0xff] }
 0x479   :  { %2188 = vrot.lane.b32.xlu1 %v11145_v35, %s4850_s30  ;;  %2150 = vrot.lane.b32.xlu0 %v11146_v51, %s4850_s30 }
 0x47a   :  { %v7617_v40 = vpop.permute.xlu2 %1988 }
 0x47b   :  { %11147 = vst [vmem:[#allocation163_spill] sm:$0xff] %v7617_v40  ;;  %v7619_v17 = vpop.permute.xlu1 %1968  ;;  %v7621_v44 = vpop.permute.xlu0 %1966  ;;  %v11155_v40 = vld [vmem:[#allocation231_spill] sm:$0xff] }
 0x47c   :  { %11148 = vst [vmem:[#allocation80_spill] sm:$0xff] %v7619_v17  ;;  %v11156_v17 = vld [vmem:[#allocation413_spill] sm:$0xff] }
 0x47d   :  { %11149 = vst [vmem:[#allocation171_spill] sm:$0xff] %v7621_v44 }
 0x480   :  { %2154 = vrot.lane.b32.xlu2 %v11150_v9, %s4850_s30  ;;  %v11157_v9 = vld [vmem:[#allocation107_spill] sm:$0xff] }
 0x481   :  { %2190 = vrot.lane.b32.xlu1 %v11151_v46, %s4850_s30  ;;  %2152 = vrot.lane.b32.xlu0 %v11152_v20, %s4850_s30 }
 0x482   :  { %v7629_v16 = vpop.permute.xlu2 %1994 }
 0x483   :  { %v7631_v35 = vpop.permute.xlu1 %1974  ;;  %v7633_v51 = vpop.permute.xlu0 %1972 }
 0x484   :  { %11153 = vst [vmem:[#allocation77_spill] sm:$0xff] %v7631_v35  ;;  %v414_v35 = vld [vmem:[%s9977_s1 + $0x20] sm:$0xf] }
 0x485   :  { %11154 = vst [vmem:[#allocation170_spill] sm:$0xff] %v7633_v51  ;;  %4705 = vmatpush.msk.msra.mxu0 %vm3032_vm3, %v414_v35  ;;  %4787 = vmatpush.msk.msra.mxu2 %vm3032_vm3, %v414_v35 }
 0x486   :  { %4788 = vmatpush.msk.msra.mxu3 %vm3032_vm3, %v414_v35  ;;  %4786 = vmatpush.msk.msra.mxu1 %vm3032_vm3, %v414_v35  ;;  %v411_v35 = vld [vmem:[%s9977_s1 + $0x8] sm:$0xff] }
 0x488   :  { %2222 = vrot.lane.b32.xlu2 %v11155_v40, %s4850_s30  ;;  %v413_v40 = vld [vmem:[%s9977_s1 + $0x18] sm:$0xff] }
 0x489   :  { %2192 = vrot.lane.b32.xlu1 %v11156_v17, %s4850_s30  ;;  %2036 = vrot.lane.b32.xlu0 %v11157_v9, %s4849_s29  ;;  %v412_v17 = vld [vmem:[%s9977_s1 + $0x10] sm:$0xff]  ;;  %v11160_v9 = vld [vmem:[#allocation123_spill] sm:$0xff] }
 0x48a   :  { %v7641_v44 = vpop.permute.xlu2 %2000  ;;  %3048 = vmatpush.msra.mxu0 %v413_v40  ;;  %4790 = vmatpush.msra.mxu2 %v413_v40 }
 0x48b   :  { %v7643_v46 = vpop.permute.xlu1 %1980  ;;  %v7645_v20 = vpop.permute.xlu0 %1978  ;;  %4791 = vmatpush.msra.mxu3 %v413_v40  ;;  %4789 = vmatpush.msra.mxu1 %v413_v40 }
 0x48c   :  { %11158 = vst [vmem:[#allocation89_spill] sm:$0xff] %v7643_v46  ;;  %v11161_v46 = vld [vmem:[#allocation106_spill] sm:$0xff]  ;;  %3049 = vmatpush.msra.mxu0 %v412_v17  ;;  %4793 = vmatpush.msra.mxu2 %v412_v17 }
 0x48d   :  { %11159 = vst [vmem:[#allocation87_spill] sm:$0xff] %v7645_v20  ;;  %v11162_v20 = vld [vmem:[#allocation183_spill] sm:$0xff]  ;;  %4794 = vmatpush.msra.mxu3 %v412_v17  ;;  %4792 = vmatpush.msra.mxu1 %v412_v17  ;;  %v11171_v17 = vld [vmem:[#allocation117_spill] sm:$0xff] }
 0x48e   :  { %3050 = vmatpush.msra.mxu0 %v411_v35  ;;  %4796 = vmatpush.msra.mxu2 %v411_v35 }
 0x48f   :  { %4797 = vmatpush.msra.mxu3 %v411_v35  ;;  %4795 = vmatpush.msra.mxu1 %v411_v35  ;;  %v11172_v35 = vld [vmem:[#allocation181_spill] sm:$0xff] }
 0x490   :  { %4835 = vrot.lane.b32.xlu2 %v11160_v9, %s4850_s30  ;;  %v410_v9 = vld [vmem:[%s9977_s1] sm:$0xff] }
 0x491   :  { %2038 = vrot.lane.b32.xlu1 %v11161_v46, %s4849_s29  ;;  %2156 = vrot.lane.b32.xlu0 %v11162_v20, %s4850_s30  ;;  %v11166_v46 = vld [vmem:[#allocation105_spill] sm:$0xff]  ;;  %v11167_v20 = vld [vmem:[#allocation182_spill] sm:$0xff] }
 0x492   :  { %v7669_v51 = vpop.permute.xlu2 %2006  ;;  %3051 = vmatpush.msra.mxu0 %v410_v9  ;;  %4799 = vmatpush.msra.mxu2 %v410_v9 }
 0x493   :  { %11163 = vst [vmem:[#allocation210_spill] sm:$0xff] %v7669_v51  ;;  %v7671_v4 = vpop.permute.xlu1 %1986  ;;  %v7673_v1 = vpop.permute.xlu0 %1984  ;;  %4800 = vmatpush.msra.mxu3 %v410_v9  ;;  %4798 = vmatpush.msra.mxu1 %v410_v9  ;;  %v11174_v9 = vld [vmem:[#allocation104_spill] sm:$0xff] }
 0x494   :  { %11164 = vst [vmem:[#allocation169_spill] sm:$0xff] %v7671_v4  ;;  %v11168_v4 = vld [vmem:[#allocation230_spill] sm:$0xff]  ;;  %v4817_v22 = vunpack.i.l.bf16 %v11174_v9 }
 0x495   :  { %11165 = vst [vmem:[#allocation86_spill] sm:$0xff] %v7673_v1 }
 0x496   :  { %v2321_v15 = vsel %vm2320_vm4, %v11018_v61, %v4817_v22  ;;  %v11186_v22 = vld [vmem:[#allocation366_spill] sm:$0xff]  ;;  %v11187_v61 = vld [vmem:[#allocation376_spill] sm:$0xff] }
 0x498   :  { %2040 = vrot.lane.b32.xlu2 %v11166_v46, %s4849_s29  ;;  %v11173_v46 = vld [vmem:[#allocation237_spill] sm:$0xff] }
 0x499   :  { %2158 = vrot.lane.b32.xlu1 %v11167_v20, %s4850_s30  ;;  %2224 = vrot.lane.b32.xlu0 %v11168_v4, %s4850_s30 }
 0x49a   :  { %v7684_v1 = vpop.permute.xlu2 %2136 }
 0x49b   :  { %v7686_v40 = vpop.permute.xlu1 %1992  ;;  %v7688_v51 = vpop.permute.xlu0 %1990 }
 0x49c   :  { %11169 = vst [vmem:[#allocation209_spill] sm:$0xff] %v7686_v40  ;;  %v11175_v40 = vld [vmem:[#allocation189_spill] sm:$0xff] }
 0x49d   :  { %11170 = vst [vmem:[#allocation177_spill] sm:$0xff] %v7688_v51  ;;  %v11176_v51 = vld [vmem:[#allocation90_spill] sm:$0xff] }
 0x49e   :  { %v4822_v47 = vunpack.i.l.bf16 %v11176_v51 }
 0x4a0   :  { %2042 = vrot.lane.b32.xlu2 %v11171_v17, %s4849_s29  ;;  %v11177_v17 = vld [vmem:[#allocation236_spill] sm:$0xff]  ;;  %v7725_v49 = vsel %vm2383_vm6, %v2321_v15, %v4822_v47  ;;  %v4823_v47 = vunpack.i.h.bf16 %v11176_v51  ;;  %v11188_v15 = vld [vmem:[#allocation301_spill] sm:$0xff]  ;;  %v11193_v51 = vld [vmem:[#allocation62_spill] sm:$0xff] }
 0x4a1   :  { %2160 = vrot.lane.b32.xlu1 %v11172_v35, %s4850_s30  ;;  %2226 = vrot.lane.b32.xlu0 %v11173_v46, %s4850_s30  ;;  %v11178_v35 = vld [vmem:[#allocation213_spill] sm:$0xff] }
 0x4a2   :  { %v7696_v20 = vpop.permute.xlu2 %2138 }
 0x4a3   :  { %v7698_v48 = vpop.permute.xlu1 %1998  ;;  %v7700_v4 = vpop.permute.xlu0 %1996 }
 0x4a8   :  { %2162 = vrot.lane.b32.xlu2 %v11175_v40, %s4850_s30  ;;  %v2344_v40 = vsel %vm2320_vm4, %v5200_v56, %v11181_v28  ;;  %v11185_v28 = vld [vmem:[#allocation11_spill] sm:$0xff] }
 0x4a9   :  { %2228 = vrot.lane.b32.xlu1 %v11177_v17, %s4850_s30  ;;  %2198 = vrot.lane.b32.xlu0 %v11178_v35, %s4850_s30  ;;  %v4818_v17 = vunpack.i.h.bf16 %v11174_v9  ;;  %v2407_v35 = vsel %vm2383_vm6, %v2344_v40, %v11182_v12 }
 0x4aa   :  { %v7710_v46 = vpop.permute.xlu2 %2140  ;;  %v2470_v2 = vsel %vm2446_vm5, %v2407_v35, %v11185_v28  ;;  %v11190_v35 = vld [vmem:[#allocation235_spill] sm:$0xff] }
 0x4ab   :  { %v7712_v59 = vpop.permute.xlu1 %2004  ;;  %v7714_v5 = vpop.permute.xlu0 %2002  ;;  %v2535_v12 = vsel %vm2511_vm7, %v2470_v2, %v11187_v61  ;;  %v11191_v61 = vld [vmem:[#allocation212_spill] sm:$0xff] }
 0x4ac   :  { %11179 = vst [vmem:[#allocation175_spill] sm:$0xff] %v7712_v59  ;;  %v2382_v59 = vsel %vm2320_vm4, %v11051_v55, %v11183_v63  ;;  %v11189_v63 = vld [vmem:[#allocation426_spill] sm:$0xff]  ;;  %v2600_v40 = vsel %vm2576_vm8, %v2535_v12, %v7176_v25 }
 0x4ad   :  { %11180 = vst [vmem:[#allocation414_spill] sm:$0xff] %v7714_v5  ;;  %v11184_v5 = vld [vmem:[#allocation291_spill] sm:$0xff]  ;;  %v2445_v55 = vsel %vm2383_vm6, %v2382_v59, %v11188_v15  ;;  %v2665_v2 = vsel %vm2641_vm9, %v2600_v40, %v7427_v58  ;;  %v11192_v59 = vld [vmem:[#allocation116_spill] sm:$0xff] }
 0x4ae   :  { %v2447_v56 = vsel %vm2446_vm5, %v7725_v49, %v11184_v5  ;;  %v2510_v28 = vsel %vm2446_vm5, %v2445_v55, %v11193_v51  ;;  %v11194_v58 = vld [vmem:[#allocation427_spill] sm:$0xff] }
 0x4af   :  { %v2512_v9 = vsel %vm2511_vm7, %v2447_v56, %v11186_v22  ;;  %v4828_v56 = vunpack.i.h.bf16 %v7413_v37  ;;  %v2730_v22 = vsel %vm2706_vm10, %v2665_v2, %v7629_v16  ;;  %v2575_v12 = vsel %vm2511_vm7, %v2510_v28, %v11194_v58  ;;  %v11195_v55 = vld [vmem:[#allocation143_spill] sm:$0xff]  ;;  %v11200_v58 = vld [vmem:[#allocation365_spill] sm:$0xff] }
 0x4b0   :  { %v2577_v5 = vsel %vm2576_vm8, %v2512_v9, %v11189_v63  ;;  %2230 = vrot.lane.b32.xlu2 %v11190_v35, %s4850_s30  ;;  %v2640_v16 = vsel %vm2576_vm8, %v2575_v12, %v7331_v14  ;;  %v11197_v51 = vld [vmem:[#allocation315_spill] sm:$0xff] }
 0x4b1   :  { %2200 = vrot.lane.b32.xlu1 %v11191_v61, %s4850_s30  ;;  %2044 = vrot.lane.b32.xlu0 %v11192_v59, %s4849_s29  ;;  %v2642_v25 = vsel %vm2641_vm9, %v2577_v5, %v7293_v6  ;;  %v2345_v6 = vsel %vm2320_vm4, %v5191_v42, %v11195_v55  ;;  %v11196_v61 = vld [vmem:[#allocation266_spill] sm:$0xff]  ;;  %v2322_v59 = vsel %vm2320_vm4, %v11019_v33, %v4818_v17 }
 0x4b2   :  { %v2181_v9 = vpop.permute.xlu2 %2180  ;;  %v2707_v15 = vsel %vm2706_vm10, %v2642_v25, %v7585_v53  ;;  %v2408_v53 = vsel %vm2383_vm6, %v2345_v6, %v11196_v61  ;;  %v2705_v42 = vsel %vm2641_vm9, %v2640_v16, %v4828_v56  ;;  %v7785_v14 = vsel %vm2383_vm6, %v2322_v59, %v4823_v47  ;;  %v11199_v17 = vld [vmem:[#allocation390_spill] sm:$0xff]  ;;  %v11203_v6 = vld [vmem:[#allocation115_spill] sm:$0xff]  ;;  %v11204_v16 = vld [vmem:[#allocation188_spill] sm:$0xff] }
 0x4b3   :  { %v2135_v63 = vpop.permute.xlu1 %2134  ;;  %v7765_v40 = vpop.permute.xlu0 %4830  ;;  %v2795_v35 = vsel %vm2771_vm12, %v2730_v22, %v2181_v9  ;;  %v2471_v28 = vsel %vm2446_vm5, %v2408_v53, %v11197_v51  ;;  %v11198_v22 = vld [vmem:[#allocation305_spill] sm:$0xff]  ;;  %v11205_v51 = vld [vmem:[#allocation168_spill] sm:$0xff] }
 0x4b4   :  { %v4833_v5 = vunpack.i.h.bf16 %v7765_v40  ;;  %v2772_v2 = vsel %vm2771_vm12, %v2707_v15, %v2135_v63  ;;  %4729 = vmatmul.msk.f32.vlgmr.msra.gmra.mxu2 %vm2839_vm11, %v2795_v35  ;;  %v2448_v33 = vsel %vm2446_vm5, %v7785_v14, %v11198_v22  ;;  %v2536_v9 = vsel %vm2511_vm7, %v2471_v28, %v11199_v17  ;;  %v11201_v15 = vld [vmem:[#allocation219_spill] sm:$0xff]  ;;  %v11202_v63 = vld [vmem:[#allocation214_spill] sm:$0xff]  ;;  %v11207_v22 = vld [vmem:[#allocation8_spill] sm:$0xff] }
 0x4b5   :  { %4706 = vmatmul.msk.f32.vlgmr.msra.gmra.mxu0 %vm2839_vm11, %v2772_v2  ;;  %v2513_v12 = vsel %vm2511_vm7, %v2448_v33, %v11200_v58  ;;  %v2601_v47 = vsel %vm2576_vm8, %v2536_v9, %v7174_v29  ;;  %v2346_v28 = vsel %vm2320_vm4, %v5188_v43, %v11205_v51  ;;  %v11209_v9 = vld [vmem:[#allocation215_spill] sm:$0xff] }
 0x4b6   :  { %v7792_v25 = vsel %vm2706_vm10, %v2705_v42, %v4833_v5  ;;  %v2578_v35 = vsel %vm2576_vm8, %v2513_v12, %v11202_v63  ;;  %v2666_v55 = vsel %vm2641_vm9, %v2601_v47, %v7389_v36  ;;  %v11210_v12 = vld [vmem:[#allocation327_spill] sm:$0xff]  ;;  %v11211_v47 = vld [vmem:[#allocation304_spill] sm:$0xff] }
 0x4b7   :  { %v2643_v2 = vsel %vm2641_vm9, %v2578_v35, %v7345_v52  ;;  %v2731_v29 = vsel %vm2706_vm10, %v2666_v55, %v7700_v4  ;;  %v11206_v4 = vld [vmem:[#allocation114_spill] sm:$0xff]  ;;  %v11213_v35 = vld [vmem:[#allocation61_spill] sm:$0xff] }
 0x4b8   :  { %2202 = vrot.lane.b32.xlu2 %v11201_v15, %s4850_s30  ;;  %v2708_v53 = vsel %vm2706_vm10, %v2643_v2, %v7583_v41  ;;  %v2323_v33 = vsel %vm2320_vm4, %v11207_v22, %v11206_v4  ;;  %v11208_v41 = vld [vmem:[#allocation265_spill] sm:$0xff]  ;;  %v11215_v2 = vld [vmem:[#allocation430_spill] sm:$0xff] }
 0x4b9   :  { %2046 = vrot.lane.b32.xlu1 %v11203_v6, %s4849_s29  ;;  %2164 = vrot.lane.b32.xlu0 %v11204_v16, %s4850_s30  ;;  %v2773_v52 = vsel %vm2771_vm12, %v2708_v53, %v7684_v1  ;;  %v2409_v17 = vsel %vm2383_vm6, %v2346_v28, %v11208_v41  ;;  %v2386_v58 = vsel %vm2383_vm6, %v2323_v33, %v11209_v9  ;;  %v11212_v15 = vld [vmem:[#allocation389_spill] sm:$0xff]  ;;  %v11216_v53 = vld [vmem:[#allocation187_spill] sm:$0xff]  ;;  %v11221_v9 = vld [vmem:[#allocation294_spill] sm:$0xff] }
 0x4ba   :  { %v2183_v61 = vpop.permute.xlu2 %2182  ;;  %v2472_v43 = vsel %vm2446_vm5, %v2409_v17, %v11210_v12  ;;  %v2449_v1 = vsel %vm2446_vm5, %v2386_v58, %v11211_v47  ;;  %v11214_v16 = vld [vmem:[#allocation129_spill] sm:$0xff]  ;;  %v11218_v41 = vld [vmem:[#allocation103_spill] sm:$0xff] }
 0x4bb   :  { %v7819_v59 = vpop.permute.xlu1 %2014  ;;  %v7821_v42 = vpop.permute.xlu0 %2012  ;;  %v2796_v36 = vsel %vm2771_vm12, %v2731_v29, %v2183_v61  ;;  %v2537_v63 = vsel %vm2511_vm7, %v2472_v43, %v11212_v15  ;;  %v2514_v55 = vsel %vm2511_vm7, %v2449_v1, %v11213_v35  ;;  %v11222_v12 = vld [vmem:[#allocation369_spill] sm:$0xff]  ;;  %v11223_v47 = vld [vmem:[#allocation195_spill] sm:$0xff]  ;;  %v11225_v15 = vld [vmem:[#allocation240_spill] sm:$0xff] }
 0x4bc   :  { %4730 = vmatmul.msk.f32.gmra.mxu2 %vm2839_vm11, %v2796_v36  ;;  %v2602_v6 = vsel %vm2576_vm8, %v2537_v63, %v7127_v27  ;;  %v2579_v29 = vsel %vm2576_vm8, %v2514_v55, %v11215_v2  ;;  %v11217_v36 = vld [vmem:[#allocation241_spill] sm:$0xff]  ;;  %v11226_v63 = vld [vmem:[#allocation218_spill] sm:$0xff] }
 0x4bd   :  { %4707 = vmatmul.msk.f32.gmra.mxu0 %vm2839_vm11, %v2773_v52  ;;  %v2667_v61 = vsel %vm2641_vm9, %v2602_v6, %v7441_v26  ;;  %v2644_v51 = vsel %vm2641_vm9, %v2579_v29, %v7343_v18  ;;  %v11219_v18 = vld [vmem:[#allocation4_spill] sm:$0xff] }
 0x4be   :  { %v2732_v27 = vsel %vm2706_vm10, %v2667_v61, %v7698_v48  ;;  %v2709_v52 = vsel %vm2706_vm10, %v2644_v51, %v7545_v50  ;;  %v2324_v17 = vsel %vm2320_vm4, %v11219_v18, %v11218_v41  ;;  %v11220_v48 = vld [vmem:[#allocation234_spill] sm:$0xff]  ;;  %v11227_v61 = vld [vmem:[#allocation113_spill] sm:$0xff]  ;;  %v11229_v51 = vld [vmem:[#allocation308_spill] sm:$0xff] }
 0x4bf   :  { %v2774_v33 = vsel %vm2771_vm12, %v2709_v52, %v7696_v20  ;;  %v2387_v50 = vsel %vm2383_vm6, %v2324_v17, %v11220_v48  ;;  %v11224_v20 = vld [vmem:[#allocation429_spill] sm:$0xff]  ;;  %v11231_v52 = vld [vmem:[#allocation419_spill] sm:$0xff] }
 0x4c0   :  { %2048 = vrot.lane.b32.xlu2 %v11214_v16, %s4849_s29  ;;  %v2450_v58 = vsel %vm2446_vm5, %v2387_v50, %v11221_v9  ;;  %v11234_v50 = vld [vmem:[#allocation76_spill] sm:$0xff] }
 0x4c1   :  { %2166 = vrot.lane.b32.xlu1 %v11216_v53, %s4850_s30  ;;  %2232 = vrot.lane.b32.xlu0 %v11217_v36, %s4850_s30  ;;  %v2515_v43 = vsel %vm2511_vm7, %v2450_v58, %v11222_v12  ;;  %v2325_v53 = vsel %vm2320_vm4, %v4954_v34, %v11227_v61  ;;  %v11228_v36 = vld [vmem:[#allocation111_spill] sm:$0xff]  ;;  %v11233_v34 = vld [vmem:[#allocation128_spill] sm:$0xff]  ;;  %v2326_v9 = vsel %vm2320_vm4, %v4910_v13, %v11234_v50  ;;  %v11241_v13 = vld [vmem:[#allocation201_spill] sm:$0xff] }
 0x4c2   :  { %v2185_v28 = vpop.permute.xlu2 %2184  ;;  %v2580_v1 = vsel %vm2576_vm8, %v2515_v43, %v11224_v20  ;;  %v11235_v58 = vld [vmem:[#allocation83_spill] sm:$0xff] }
 0x4c3   :  { %v7864_v4 = vpop.permute.xlu1 %2018  ;;  %v7866_v22 = vpop.permute.xlu0 %2016  ;;  %v2797_v26 = vsel %vm2771_vm12, %v2732_v27, %v2185_v28  ;;  %v2645_v35 = vsel %vm2641_vm9, %v2580_v1, %v7305_v31  ;;  %v2388_v31 = vsel %vm2383_vm6, %v2325_v53, %v11228_v36  ;;  %v11230_v28 = vld [vmem:[#allocation368_spill] sm:$0xff]  ;;  %v2389_v12 = vsel %vm2383_vm6, %v2326_v9, %v11235_v58  ;;  %v11238_v20 = vld [vmem:[#allocation127_spill] sm:$0xff]  ;;  %v11239_v1 = vld [vmem:[#allocation433_spill] sm:$0xff] }
 0x4c4   :  { %4731 = vmatmul.msk.f32.gmra.mxu2 %vm2839_vm11, %v2797_v26  ;;  %v2710_v6 = vsel %vm2706_vm10, %v2645_v35, %v7597_v45  ;;  %v2451_v27 = vsel %vm2446_vm5, %v2388_v31, %v11229_v51  ;;  %v11232_v26 = vld [vmem:[#allocation217_spill] sm:$0xff]  ;;  %v11243_v51 = vld [vmem:[#allocation167_spill] sm:$0xff] }
 0x4c5   :  { %4708 = vmatmul.msk.f32.gmra.mxu0 %vm2839_vm11, %v2774_v33  ;;  %v2775_v29 = vsel %vm2771_vm12, %v2710_v6, %v7710_v46  ;;  %v2516_v45 = vsel %vm2511_vm7, %v2451_v27, %v11230_v28  ;;  %v11242_v36 = vld [vmem:[#allocation85_spill] sm:$0xff]  ;;  %v2347_v27 = vsel %vm2320_vm4, %v5241_v21, %v11243_v51  ;;  %v11252_v58 = vld [vmem:[#allocation223_spill] sm:$0xff] }
 0x4c6   :  { %v2581_v46 = vsel %vm2576_vm8, %v2516_v45, %v11231_v52  ;;  %v2327_v31 = vsel %vm2320_vm4, %v4968_v39, %v11242_v36  ;;  %v11245_v45 = vld [vmem:[#allocation253_spill] sm:$0xff]  ;;  %v8013_v36 = vunpack.i.l.bf16 %v7413_v37 }
 0x4c7   :  { %v2646_v33 = vsel %vm2641_vm9, %v2581_v46, %v7357_v57  ;;  %v11236_v57 = vld [vmem:[#allocation307_spill] sm:$0xff]  ;;  %v11246_v52 = vld [vmem:[#allocation297_spill] sm:$0xff] }
 0x4c8   :  { %2168 = vrot.lane.b32.xlu2 %v11223_v47, %s4850_s30  ;;  %v2711_v18 = vsel %vm2706_vm10, %v2646_v33, %v7595_v7  ;;  %v2452_v43 = vsel %vm2446_vm5, %v2389_v12, %v11236_v57  ;;  %v11237_v47 = vld [vmem:[#allocation358_spill] sm:$0xff]  ;;  %v11248_v33 = vld [vmem:[#allocation372_spill] sm:$0xff] }
 0x4c9   :  { %2234 = vrot.lane.b32.xlu1 %v11225_v15, %s4850_s30  ;;  %2204 = vrot.lane.b32.xlu0 %v11226_v63, %s4850_s30  ;;  %v2517_v7 = vsel %vm2511_vm7, %v2452_v43, %v11237_v47  ;;  %v11240_v63 = vld [vmem:[#allocation194_spill] sm:$0xff] }
 0x4ca   :  { %v7892_v55 = vpop.permute.xlu2 %2026  ;;  %v2582_v15 = vsel %vm2576_vm8, %v2517_v7, %v11239_v1 }
 0x4cb   :  { %v2143_v16 = vpop.permute.xlu1 %2142  ;;  %v7896_v2 = vpop.permute.xlu0 %2020  ;;  %v2647_v35 = vsel %vm2641_vm9, %v2582_v15, %v7355_v24  ;;  %v11244_v24 = vld [vmem:[#allocation238_spill] sm:$0xff] }
 0x4cc   :  { %v2390_v28 = vsel %vm2383_vm6, %v2327_v31, %v11244_v24  ;;  %v11253_v15 = vld [vmem:[#allocation126_spill] sm:$0xff] }
 0x4cd   :  { %4709 = vmatmul.msk.f32.gmra.mxu0 %vm2839_vm11, %v2775_v29  ;;  %v2453_v46 = vsel %vm2446_vm5, %v2390_v28, %v11246_v52  ;;  %v11262_v28 = vld [vmem:[#allocation371_spill] sm:$0xff] }
 0x4ce   :  { %v2518_v39 = vsel %vm2511_vm7, %v2453_v46, %v11248_v33  ;;  %v11264_v46 = vld [vmem:[#allocation415_spill] sm:$0xff]  ;;  %v11265_v33 = vld [vmem:[#allocation222_spill] sm:$0xff] }
 0x4d0   :  { %2236 = vrot.lane.b32.xlu2 %v10980_v0, %s4850_s30  ;;  %v2776_v0 = vsel %vm2771_vm12, %v2711_v18, %v2143_v16  ;;  %v2712_v16 = vsel %vm2706_vm10, %v2647_v35, %v7557_v62  ;;  %v2410_v62 = vsel %vm2383_vm6, %v2347_v27, %v11245_v45  ;;  %v11249_v18 = vld [vmem:[#allocation379_spill] sm:$0xff]  ;;  %v11261_v27 = vld [vmem:[#allocation362_spill] sm:$0xff] }
 0x4d1   :  { %2206 = vrot.lane.b32.xlu1 %v11232_v26, %s4850_s30  ;;  %2050 = vrot.lane.b32.xlu0 %v11233_v34, %s4849_s29  ;;  %v11247_v26 = vld [vmem:[#allocation326_spill] sm:$0xff] }
 0x4d2   :  { %v7920_v41 = vpop.permute.xlu2 %2028  ;;  %v2473_v34 = vsel %vm2446_vm5, %v2410_v62, %v11247_v26  ;;  %v11263_v62 = vld [vmem:[#allocation393_spill] sm:$0xff] }
 0x4d3   :  { %v2145_v17 = vpop.permute.xlu1 %2144  ;;  %v7924_v48 = vpop.permute.xlu0 %2022  ;;  %v2538_v21 = vsel %vm2511_vm7, %v2473_v34, %v11249_v18  ;;  %v4832_v34 = vunpack.i.l.bf16 %v7765_v40 }
 0x4d4   :  { %v2777_v53 = vsel %vm2771_vm12, %v2712_v16, %v2145_v17  ;;  %v11250_v17 = vld [vmem:[#allocation200_spill] sm:$0xff]  ;;  %v2603_v9 = vsel %vm2576_vm8, %v2538_v21, %v7188_v54  ;;  %v11257_v16 = vld [vmem:[#allocation269_spill] sm:$0xff] }
 0x4d5   :  { %4710 = vmatmul.msk.f32.gmra.mxu0 %vm2839_vm11, %v2776_v0  ;;  %v11251_v0 = vld [vmem:[#allocation432_spill] sm:$0xff]  ;;  %v2668_v57 = vsel %vm2641_vm9, %v2603_v9, %v7439_v32 }
 0x4d6   :  { %v2583_v50 = vsel %vm2576_vm8, %v2518_v39, %v11251_v0  ;;  %v2733_v54 = vsel %vm2706_vm10, %v2668_v57, %v7641_v44  ;;  %v11256_v44 = vld [vmem:[#allocation109_spill] sm:$0xff]  ;;  %v11266_v39 = vld [vmem:[#allocation422_spill] sm:$0xff] }
 0x4d7   :  { %v2648_v12 = vsel %vm2641_vm9, %v2583_v50, %v7317_v8  ;;  %v2328_v8 = vsel %vm2320_vm4, %v4965_v38, %v11253_v15  ;;  %v11267_v0 = vld [vmem:[#allocation138_spill] sm:$0xff]  ;;  %v11268_v50 = vld [vmem:[#allocation193_spill] sm:$0xff] }
 0x4d8   :  { %2052 = vrot.lane.b32.xlu2 %v11238_v20, %s4849_s29  ;;  %v2713_v47 = vsel %vm2706_vm10, %v2648_v12, %v7609_v3  ;;  %v2391_v35 = vsel %vm2383_vm6, %v2328_v8, %v11256_v44 }
 0x4d9   :  { %2170 = vrot.lane.b32.xlu1 %v11240_v63, %s4850_s30  ;;  %2174 = vrot.lane.b32.xlu0 %v11241_v13, %s4850_s30  ;;  %v11254_v63 = vld [vmem:[#allocation149_spill] sm:$0xff]  ;;  %v11255_v13 = vld [vmem:[#allocation67_spill] sm:$0xff] }
 0x4da   :  { %v7947_v6 = vpop.permute.xlu2 %2154  ;;  %v2348_v32 = vsel %vm2320_vm4, %v5232_v30, %v11254_v63  ;;  %v2381_v3 = vsel %vm2320_vm4, %v11046_v10, %v11255_v13  ;;  %v11259_v30 = vld [vmem:[#allocation311_spill] sm:$0xff]  ;;  %v11260_v10 = vld [vmem:[#allocation318_spill] sm:$0xff]  ;;  %v11272_v13 = vld [vmem:[#allocation125_spill] sm:$0xff] }
 0x4db   :  { %v2147_v29 = vpop.permute.xlu1 %2146  ;;  %v7951_v61 = vpop.permute.xlu0 %2024  ;;  %v2454_v31 = vsel %vm2446_vm5, %v2391_v35, %v11259_v30  ;;  %v11274_v35 = vld [vmem:[#allocation174_spill] sm:$0xff]  ;;  %v11277_v30 = vld [vmem:[#allocation268_spill] sm:$0xff] }
 0x4dc   :  { %v2519_v45 = vsel %vm2511_vm7, %v2454_v31, %v11262_v28 }
 0x4dd   :  { %4711 = vmatmul.msk.f32.gmra.mxu0 %vm2839_vm11, %v2777_v53  ;;  %v11258_v53 = vld [vmem:[#allocation302_spill] sm:$0xff]  ;;  %v2584_v18 = vsel %vm2576_vm8, %v2519_v45, %v11266_v39  ;;  %v11280_v45 = vld [vmem:[#allocation361_spill] sm:$0xff] }
 0x4de   :  { %v2444_v38 = vsel %vm2383_vm6, %v2381_v3, %v11258_v53  ;;  %v2649_v9 = vsel %vm2641_vm9, %v2584_v18, %v7369_v60  ;;  %v11273_v3 = vld [vmem:[#allocation13_spill] sm:$0xff]  ;;  %v11276_v53 = vld [vmem:[#allocation224_spill] sm:$0xff] }
 0x4df   :  { %v2509_v24 = vsel %vm2446_vm5, %v2444_v38, %v11261_v27  ;;  %v2329_v44 = vsel %vm2320_vm4, %v11273_v3, %v11272_v13  ;;  %v11292_v13 = vld [vmem:[#allocation12_spill] sm:$0xff] }
 0x4e0   :  { %2176 = vrot.lane.b32.xlu2 %v11250_v17, %s4850_s30  ;;  %v2574_v26 = vsel %vm2511_vm7, %v2509_v24, %v11264_v46  ;;  %v2392_v38 = vsel %vm2383_vm6, %v2329_v44, %v11276_v53  ;;  %v11279_v24 = vld [vmem:[#allocation330_spill] sm:$0xff]  ;;  %v11293_v44 = vld [vmem:[#allocation173_spill] sm:$0xff]  ;;  %v11296_v53 = vld [vmem:[#allocation79_spill] sm:$0xff] }
 0x4e1   :  { %2238 = vrot.lane.b32.xlu1 %v10979_v19, %s4850_s30  ;;  %2208 = vrot.lane.b32.xlu0 %v11252_v58, %s4850_s30  ;;  %v2778_v19 = vsel %vm2771_vm12, %v2713_v47, %v2147_v29  ;;  %v2411_v29 = vsel %vm2383_vm6, %v2348_v32, %v11257_v16  ;;  %v2639_v17 = vsel %vm2576_vm8, %v2574_v26, %v7333_v23  ;;  %v11269_v58 = vld [vmem:[#allocation139_spill] sm:$0xff]  ;;  %v11270_v47 = vld [vmem:[#allocation205_spill] sm:$0xff] }
 0x4e2   :  { %v7987_v43 = vpop.permute.xlu2 %2222  ;;  %v2474_v51 = vsel %vm2446_vm5, %v2411_v29, %v11260_v10  ;;  %v2714_v23 = vsel %vm2706_vm10, %v2649_v9, %v11270_v47  ;;  %v11275_v16 = vld [vmem:[#allocation53_spill] sm:$0xff]  ;;  %v11288_v9 = vld [vmem:[#allocation23_spill] sm:$0xff] }
 0x4e3   :  { %v2187_v7 = vpop.permute.xlu1 %2186  ;;  %v2149_v20 = vpop.permute.xlu0 %2148  ;;  %v2539_v52 = vsel %vm2511_vm7, %v2474_v51, %v11263_v62  ;;  %v2349_v29 = vsel %vm2320_vm4, %v11275_v16, %v11274_v35  ;;  %v11278_v51 = vld [vmem:[#allocation310_spill] sm:$0xff]  ;;  %v11282_v26 = vld [vmem:[#allocation137_spill] sm:$0xff]  ;;  %v11294_v35 = vld [vmem:[#allocation51_spill] sm:$0xff] }
 0x4e4   :  { %v2798_v1 = vsel %vm2771_vm12, %v2733_v54, %v2187_v7  ;;  %v2604_v21 = vsel %vm2576_vm8, %v2539_v52, %v7186_v11  ;;  %v2704_v11 = vsel %vm2641_vm9, %v2639_v17, %v8013_v36  ;;  %v11271_v54 = vld [vmem:[#allocation414_spill] sm:$0xff]  ;;  %v2779_v8 = vsel %vm2771_vm12, %v2714_v23, %v2149_v20  ;;  %v11281_v52 = vld [vmem:[#allocation392_spill] sm:$0xff]  ;;  %v11290_v23 = vld [vmem:[#allocation175_spill] sm:$0xff] }
 0x4e5   :  { %4712 = vmatmul.msk.f32.gmra.mxu0 %vm2839_vm11, %v2778_v19  ;;  %4732 = vmatmul.msk.f32.gmra.mxu2 %vm2839_vm11, %v2798_v1  ;;  %v2669_v12 = vsel %vm2641_vm9, %v2604_v21, %v11269_v58  ;;  %v2769_v32 = vsel %vm2706_vm10, %v2704_v11, %v4832_v34  ;;  %v2412_v31 = vsel %vm2383_vm6, %v2349_v29, %v11277_v30  ;;  %v11285_v21 = vld [vmem:[#allocation199_spill] sm:$0xff]  ;;  %v11286_v17 = vld [vmem:[#allocation246_spill] sm:$0xff]  ;;  %v11289_v11 = vld [vmem:[#allocation165_spill] sm:$0xff] }
 0x4e6   :  { %v2734_v7 = vsel %vm2706_vm10, %v2669_v12, %v11271_v54  ;;  %v2455_v27 = vsel %vm2446_vm5, %v2392_v38, %v11278_v51  ;;  %v2475_v28 = vsel %vm2446_vm5, %v2412_v31, %v11279_v24  ;;  %v2350_v16 = vsel %vm2320_vm4, %v11294_v35, %v11293_v44  ;;  %v11295_v29 = vld [vmem:[#allocation178_spill] sm:$0xff]  ;;  %v11297_v30 = vld [vmem:[#allocation244_spill] sm:$0xff]  ;;  %v11314_v44 = vld [vmem:[#allocation47_spill] sm:$0xff] }
 0x4e7   :  { %v2520_v62 = vsel %vm2511_vm7, %v2455_v27, %v11280_v45  ;;  %v2540_v46 = vsel %vm2511_vm7, %v2475_v28, %v11281_v52  ;;  %v2363_v38 = vsel %vm2320_vm4, %v11296_v53, %v11295_v29  ;;  %v11298_v31 = vld [vmem:[#allocation258_spill] sm:$0xff]  ;;  %v11299_v27 = vld [vmem:[#allocation284_spill] sm:$0xff] }
 0x4e8   :  { %2210 = vrot.lane.b32.xlu2 %v11265_v33, %s4850_s30  ;;  %v11283_v33 = vld [vmem:[#allocation436_spill] sm:$0xff]  ;;  %v2413_v51 = vsel %vm2383_vm6, %v2350_v16, %v11298_v31  ;;  %v2426_v24 = vsel %vm2383_vm6, %v2363_v38, %v11299_v27  ;;  %v11315_v16 = vld [vmem:[#allocation171_spill] sm:$0xff]  ;;  %v11316_v53 = vld [vmem:[#allocation210_spill] sm:$0xff] }
 0x4e9   :  { %2054 = vrot.lane.b32.xlu1 %v11267_v0, %s4849_s29  ;;  %2172 = vrot.lane.b32.xlu0 %v11268_v50, %s4850_s30  ;;  %v2585_v39 = vsel %vm2576_vm8, %v2520_v62, %v11283_v33  ;;  %v11287_v0 = vld [vmem:[#allocation483_spill] sm:$0xff]  ;;  %v11300_v28 = vld [vmem:[#allocation300_spill] sm:$0xff]  ;;  %v11301_v62 = vld [vmem:[#allocation329_spill] sm:$0xff] }
 0x4ea   :  { %v8044_v57 = vpop.permute.xlu2 %4835  ;;  %v2650_v50 = vsel %vm2641_vm9, %v2585_v39, %v11287_v0  ;;  %v2476_v52 = vsel %vm2446_vm5, %v2413_v51, %v11301_v62  ;;  %v11303_v33 = vld [vmem:[#allocation375_spill] sm:$0xff]  ;;  %v11319_v62 = vld [vmem:[#allocation154_spill] sm:$0xff] }
 0x4eb   :  { %v4838_v19 = vunpack.i.h.bf16 %v8044_v57  ;;  %v4837_v1 = vunpack.i.l.bf16 %v8044_v57  ;;  %v2189_v15 = vpop.permute.xlu1 %2188  ;;  %v2151_v60 = vpop.permute.xlu0 %2150  ;;  %v2715_v47 = vsel %vm2706_vm10, %v2650_v50, %v11289_v11  ;;  %v11307_v50 = vld [vmem:[#allocation435_spill] sm:$0xff]  ;;  %v11363_v57 = vld [vmem:[#allocation273_spill] sm:$0xff] }
 0x4ec   :  { %v2799_v63 = vsel %vm2771_vm12, %v2734_v7, %v2189_v15 }
 0x4ed   :  { %4713 = vmatmul.msk.f32.gmra.mxu0 %vm2839_vm11, %v2779_v8  ;;  %4733 = vmatmul.msk.f32.gmra.mxu2 %vm2839_vm11, %v2799_v63  ;;  %v8070_v20 = vsel %vm2771_vm12, %v2769_v32, %v4837_v1  ;;  %v8080_v10 = vsel %vm2771_vm12, %v7792_v25, %v4838_v19  ;;  %v11284_v25 = vld [vmem:[#allocation440_spill] sm:$0xff]  ;;  %v2780_v8 = vsel %vm2771_vm12, %v2715_v47, %v2151_v60  ;;  %v11291_v32 = vld [vmem:[#allocation93_spill] sm:$0xff] }
 0x4ee   :  { %v2605_v18 = vsel %vm2576_vm8, %v2540_v46, %v11284_v25  ;;  %v2330_v3 = vsel %vm2320_vm4, %v11292_v13, %v11291_v32  ;;  %v11302_v46 = vld [vmem:[#allocation344_spill] sm:$0xff]  ;;  %v11304_v25 = vld [vmem:[#allocation383_spill] sm:$0xff]  ;;  %v11309_v47 = vld [vmem:[#allocation245_spill] sm:$0xff] }
 0x4ef   :  { %v2670_v58 = vsel %vm2641_vm9, %v2605_v18, %v11288_v9  ;;  %v2393_v60 = vsel %vm2383_vm6, %v2330_v3, %v11297_v30  ;;  %v2541_v18 = vsel %vm2511_vm7, %v2476_v52, %v11304_v25  ;;  %v11313_v32 = vld [vmem:[#allocation21_spill] sm:$0xff] }
 0x4f0   :  { %2056 = vrot.lane.b32.xlu2 %v11282_v26, %s4849_s29  ;;  %v2735_v54 = vsel %vm2706_vm10, %v2670_v58, %v11290_v23  ;;  %v2456_v45 = vsel %vm2446_vm5, %v2393_v60, %v11300_v28  ;;  %v2491_v26 = vsel %vm2446_vm5, %v2426_v24, %v11302_v46  ;;  %v11308_v58 = vld [vmem:[#allocation452_spill] sm:$0xff]  ;;  %v11310_v23 = vld [vmem:[#allocation221_spill] sm:$0xff]  ;;  %v11317_v24 = vld [vmem:[#allocation135_spill] sm:$0xff] }
 0x4f1   :  { %2178 = vrot.lane.b32.xlu1 %v11285_v21, %s4850_s30  ;;  %2240 = vrot.lane.b32.xlu0 %v11286_v17, %s4850_s30  ;;  %v2521_v39 = vsel %vm2511_vm7, %v2456_v45, %v11303_v33  ;;  %v11305_v21 = vld [vmem:[#allocation136_spill] sm:$0xff]  ;;  %v11306_v17 = vld [vmem:[#allocation397_spill] sm:$0xff]  ;;  %v2606_v11 = vsel %vm2576_vm8, %v2541_v18, %v11308_v58  ;;  %v11321_v33 = vld [vmem:[#allocation243_spill] sm:$0xff] }
 0x4f2   :  { %v8104_v12 = vpop.permute.xlu2 %2040  ;;  %v2556_v0 = vsel %vm2511_vm7, %v2491_v26, %v11306_v17  ;;  %v2586_v9 = vsel %vm2576_vm8, %v2521_v39, %v11307_v50  ;;  %v2671_v13 = vsel %vm2641_vm9, %v2606_v11, %v11313_v32  ;;  %v11318_v28 = vld [vmem:[#allocation20_spill] sm:$0xff]  ;;  %v11320_v52 = vld [vmem:[#allocation49_spill] sm:$0xff]  ;;  %v11323_v18 = vld [vmem:[#allocation314_spill] sm:$0xff] }
 0x4f3   :  { %v2191_v7 = vpop.permute.xlu1 %2190  ;;  %v2153_v15 = vpop.permute.xlu0 %2152  ;;  %v2736_v38 = vsel %vm2706_vm10, %v2671_v13, %v11316_v53  ;;  %v2331_v45 = vsel %vm2320_vm4, %v11318_v28, %v11317_v24  ;;  %v2351_v46 = vsel %vm2320_vm4, %v11320_v52, %v11319_v62  ;;  %v11322_v39 = vld [vmem:[#allocation272_spill] sm:$0xff]  ;;  %v11324_v17 = vld [vmem:[#allocation321_spill] sm:$0xff]  ;;  %v11325_v50 = vld [vmem:[#allocation374_spill] sm:$0xff] }
 0x4f4   :  { %v2800_v63 = vsel %vm2771_vm12, %v2735_v54, %v2191_v7  ;;  %v11311_v54 = vld [vmem:[#allocation467_spill] sm:$0xff]  ;;  %v2414_v25 = vsel %vm2383_vm6, %v2351_v46, %v11322_v39  ;;  %v11326_v58 = vld [vmem:[#allocation396_spill] sm:$0xff]  ;;  %v11332_v32 = vld [vmem:[#allocation486_spill] sm:$0xff] }
 0x4f5   :  { %4714 = vmatmul.msk.f32.gmra.mxu0 %vm2839_vm11, %v2780_v8  ;;  %4734 = vmatmul.msk.f32.gmra.mxu2 %vm2839_vm11, %v2800_v63  ;;  %v2621_v7 = vsel %vm2576_vm8, %v2556_v0, %v11311_v54  ;;  %v11312_v8 = vld [vmem:[#allocation479_spill] sm:$0xff]  ;;  %v2477_v0 = vsel %vm2446_vm5, %v2414_v25, %v11324_v17  ;;  %v11327_v11 = vld [vmem:[#allocation96_spill] sm:$0xff]  ;;  %v11338_v52 = vld [vmem:[#allocation202_spill] sm:$0xff] }
 0x4f6   :  { %v2651_v63 = vsel %vm2641_vm9, %v2586_v9, %v11312_v8  ;;  %v2686_v35 = vsel %vm2641_vm9, %v2621_v7, %v11314_v44  ;;  %v11329_v54 = vld [vmem:[#allocation451_spill] sm:$0xff]  ;;  %v11330_v8 = vld [vmem:[#allocation252_spill] sm:$0xff]  ;;  %v11339_v46 = vld [vmem:[#allocation78_spill] sm:$0xff] }
 0x4f7   :  { %v2716_v29 = vsel %vm2706_vm10, %v2651_v63, %v11315_v16  ;;  %v11331_v63 = vld [vmem:[#allocation228_spill] sm:$0xff]  ;;  %v11343_v25 = vld [vmem:[#allocation313_spill] sm:$0xff] }
 0x4f8   :  { %2058 = vrot.lane.b32.xlu2 %v11305_v21, %s4849_s29  ;;  %v2781_v51 = vsel %vm2771_vm12, %v2716_v29, %v2153_v15  ;;  %v2394_v15 = vsel %vm2383_vm6, %v2331_v45, %v11321_v33  ;;  %v11333_v16 = vld [vmem:[#allocation80_spill] sm:$0xff]  ;;  %v11337_v45 = vld [vmem:[#allocation50_spill] sm:$0xff] }
 0x4f9   :  { %2242 = vrot.lane.b32.xlu1 %v11309_v47, %s4850_s30  ;;  %2212 = vrot.lane.b32.xlu0 %v11310_v23, %s4850_s30  ;;  %v2457_v21 = vsel %vm2446_vm5, %v2394_v15, %v11323_v18  ;;  %v11328_v47 = vld [vmem:[#allocation425_spill] sm:$0xff]  ;;  %v11336_v28 = vld [vmem:[#allocation180_spill] sm:$0xff]  ;;  %v11342_v15 = vld [vmem:[#allocation283_spill] sm:$0xff] }
 0x4fa   :  { %v8157_v3 = vpop.permute.xlu2 %2042  ;;  %v2522_v9 = vsel %vm2511_vm7, %v2457_v21, %v11325_v50  ;;  %v2352_v62 = vsel %vm2320_vm4, %v11337_v45, %v11336_v28  ;;  %v11344_v21 = vld [vmem:[#allocation333_spill] sm:$0xff] }
 0x4fb   :  { %v2193_v30 = vpop.permute.xlu1 %2192  ;;  %v2037_v60 = vpop.permute.xlu0 %2036  ;;  %v2587_v23 = vsel %vm2576_vm8, %v2522_v9, %v11328_v47  ;;  %v11346_v9 = vld [vmem:[#allocation364_spill] sm:$0xff]  ;;  %v11348_v47 = vld [vmem:[#allocation411_spill] sm:$0xff] }
 0x4fc   :  { %v2751_v31 = vsel %vm2706_vm10, %v2686_v35, %v2037_v60  ;;  %v2801_v27 = vsel %vm2771_vm12, %v2736_v38, %v2193_v30  ;;  %v2652_v13 = vsel %vm2641_vm9, %v2587_v23, %v11332_v32 }
 0x4fd   :  { %4715 = vmatmul.msk.f32.gmra.mxu0 %vm2839_vm11, %v2781_v51  ;;  %4735 = vmatmul.msk.f32.gmra.mxu2 %vm2839_vm11, %v2801_v27  ;;  %v2816_v26 = vsel %vm2771_vm12, %v2751_v31, %v7987_v43  ;;  %v2542_v43 = vsel %vm2511_vm7, %v2477_v0, %v11326_v58  ;;  %v2717_v29 = vsel %vm2706_vm10, %v2652_v13, %v11333_v16  ;;  %v11334_v51 = vld [vmem:[#allocation134_spill] sm:$0xff]  ;;  %v11335_v27 = vld [vmem:[#allocation19_spill] sm:$0xff] }
 0x4fe   :  { %4750 = vmatmul.msk.f32.vlgmr.msra.gmra.mxu3 %vm2839_vm11, %v2816_v26  ;;  %v2607_v7 = vsel %vm2576_vm8, %v2542_v43, %v11329_v54  ;;  %v2782_v60 = vsel %vm2771_vm12, %v2717_v29, %v7947_v6  ;;  %v2332_v24 = vsel %vm2320_vm4, %v11335_v27, %v11334_v51  ;;  %v2364_v26 = vsel %vm2320_vm4, %v11339_v46, %v11338_v52  ;;  %v11340_v6 = vld [vmem:[#allocation100_spill] sm:$0xff]  ;;  %v11345_v0 = vld [vmem:[#allocation334_spill] sm:$0xff]  ;;  %v11347_v43 = vld [vmem:[#allocation395_spill] sm:$0xff] }
 0x4ff   :  { %v2672_v35 = vsel %vm2641_vm9, %v2607_v7, %v8013_v36  ;;  %v2427_v39 = vsel %vm2383_vm6, %v2364_v26, %v11342_v15  ;;  %v11349_v54 = vld [vmem:[#allocation251_spill] sm:$0xff]  ;;  %v11350_v7 = vld [vmem:[#allocation437_spill] sm:$0xff]  ;;  %v11352_v13 = vld [vmem:[#allocation466_spill] sm:$0xff] }
 0x500   :  { %2030 = vrot.lane.b32.xlu2 %v11327_v11, %s4849_s29  ;;  %v2737_v30 = vsel %vm2706_vm10, %v2672_v35, %v4832_v34  ;;  %v2395_v34 = vsel %vm2383_vm6, %v2332_v24, %v11340_v6  ;;  %v2492_v50 = vsel %vm2446_vm5, %v2427_v39, %v11345_v0  ;;  %v11353_v16 = vld [vmem:[#allocation227_spill] sm:$0xff]  ;;  %v11354_v29 = vld [vmem:[#allocation148_spill] sm:$0xff] }
 0x501   :  { %2244 = vrot.lane.b32.xlu1 %v11330_v8, %s4850_s30  ;;  %2214 = vrot.lane.b32.xlu0 %v11331_v63, %s4850_s30  ;;  %v2802_v31 = vsel %vm2771_vm12, %v2737_v30, %v4837_v1  ;;  %v11341_v1 = vld [vmem:[#allocation271_spill] sm:$0xff]  ;;  %v2458_v18 = vsel %vm2446_vm5, %v2395_v34, %v11343_v25  ;;  %v2557_v23 = vsel %vm2511_vm7, %v2492_v50, %v11348_v47  ;;  %v11351_v63 = vld [vmem:[#allocation445_spill] sm:$0xff]  ;;  %v11357_v24 = vld [vmem:[#allocation164_spill] sm:$0xff] }
 0x502   :  { %v8203_v44 = vpop.permute.xlu2 %2162  ;;  %v2415_v33 = vsel %vm2383_vm6, %v2352_v62, %v11341_v1  ;;  %v2523_v58 = vsel %vm2511_vm7, %v2458_v18, %v11346_v9  ;;  %v2622_v35 = vsel %vm2576_vm8, %v2557_v23, %v11352_v13  ;;  %v11355_v30 = vld [vmem:[#allocation485_spill] sm:$0xff]  ;;  %v11358_v34 = vld [vmem:[#allocation102_spill] sm:$0xff]  ;;  %v11361_v15 = vld [vmem:[#allocation91_spill] sm:$0xff] }
 0x503   :  { %v2039_v53 = vpop.permute.xlu1 %2038  ;;  %v2157_v38 = vpop.permute.xlu0 %2156  ;;  %v2478_v17 = vsel %vm2446_vm5, %v2415_v33, %v11344_v21  ;;  %v2588_v8 = vsel %vm2576_vm8, %v2523_v58, %v11350_v7  ;;  %v11359_v1 = vld [vmem:[#allocation18_spill] sm:$0xff]  ;;  %v11360_v33 = vld [vmem:[#allocation45_spill] sm:$0xff]  ;;  %v11364_v39 = vld [vmem:[#allocation303_spill] sm:$0xff] }
 0x504   :  { %v2543_v11 = vsel %vm2511_vm7, %v2478_v17, %v11347_v43  ;;  %v2365_v40 = vsel %vm2320_vm4, %v11361_v15, %v11360_v33  ;;  %v11365_v18 = vld [vmem:[#allocation348_spill] sm:$0xff]  ;;  %v11366_v17 = vld [vmem:[#allocation378_spill] sm:$0xff]  ;;  %v11369_v43 = vld [vmem:[#allocation239_spill] sm:$0xff] }
 0x505   :  { %4716 = vmatmul.msk.f32.gmra.mxu0 %vm2839_vm11, %v2782_v60  ;;  %4736 = vmatmul.msk.f32.gmra.mxu2 %vm2839_vm11, %v2802_v31  ;;  %v2608_v32 = vsel %vm2576_vm8, %v2543_v11, %v11351_v63  ;;  %v2653_v60 = vsel %vm2641_vm9, %v2588_v8, %v11355_v30  ;;  %v11356_v31 = vld [vmem:[#allocation46_spill] sm:$0xff]  ;;  %v11370_v47 = vld [vmem:[#allocation456_spill] sm:$0xff]  ;;  %v11372_v7 = vld [vmem:[#allocation95_spill] sm:$0xff] }
 0x506   :  { %v2687_v51 = vsel %vm2641_vm9, %v2622_v35, %v11356_v31  ;;  %v2673_v27 = vsel %vm2641_vm9, %v2608_v32, %v4828_v56  ;;  %v2718_v28 = vsel %vm2706_vm10, %v2653_v60, %v11357_v24  ;;  %v11367_v50 = vld [vmem:[#allocation410_spill] sm:$0xff]  ;;  %v11373_v8 = vld [vmem:[#allocation480_spill] sm:$0xff]  ;;  %v11374_v32 = vld [vmem:[#allocation27_spill] sm:$0xff] }
 0x507   :  { %v2752_v45 = vsel %vm2706_vm10, %v2687_v51, %v2039_v53  ;;  %v2738_v46 = vsel %vm2706_vm10, %v2673_v27, %v4833_v5  ;;  %v2783_v6 = vsel %vm2771_vm12, %v2718_v28, %v2157_v38  ;;  %v2333_v53 = vsel %vm2320_vm4, %v11359_v1, %v11358_v34  ;;  %v11362_v5 = vld [vmem:[#allocation249_spill] sm:$0xff]  ;;  %v11368_v58 = vld [vmem:[#allocation226_spill] sm:$0xff]  ;;  %v11384_v15 = vld [vmem:[#allocation347_spill] sm:$0xff] }
 0x508   :  { %2246 = vrot.lane.b32.xlu2 %v11349_v54, %s4850_s30  ;;  %v2803_v37 = vsel %vm2771_vm12, %v2738_v46, %v4838_v19  ;;  %v2396_v38 = vsel %vm2383_vm6, %v2333_v53, %v11362_v5  ;;  %v2428_v19 = vsel %vm2383_vm6, %v2365_v40, %v11363_v57  ;;  %v11371_v54 = vld [vmem:[#allocation147_spill] sm:$0xff]  ;;  %v11375_v35 = vld [vmem:[#allocation170_spill] sm:$0xff]  ;;  %v11376_v27 = vld [vmem:[#allocation145_spill] sm:$0xff] }
 0x509   :  { %2216 = vrot.lane.b32.xlu1 %v11353_v16, %s4850_s30  ;;  %2060 = vrot.lane.b32.xlu0 %v11354_v29, %s4849_s29  ;;  %v2459_v25 = vsel %vm2446_vm5, %v2396_v38, %v11364_v39  ;;  %v2493_v21 = vsel %vm2446_vm5, %v2428_v19, %v11365_v18  ;;  %v11377_v24 = vld [vmem:[#allocation17_spill] sm:$0xff]  ;;  %v11383_v53 = vld [vmem:[#allocation332_spill] sm:$0xff]  ;;  %v11386_v57 = vld [vmem:[#allocation159_spill] sm:$0xff] }
 0x50a   :  { %v8271_v26 = vpop.permute.xlu2 %2230  ;;  %v2524_v0 = vsel %vm2511_vm7, %v2459_v25, %v11366_v17  ;;  %v2558_v9 = vsel %vm2511_vm7, %v2493_v21, %v11367_v50  ;;  %v2334_v28 = vsel %vm2320_vm4, %v11377_v24, %v11376_v27  ;;  %v2479_v33 = vsel %vm2446_vm5, %v7725_v49, %v11383_v53  ;;  %v11385_v5 = vld [vmem:[#allocation377_spill] sm:$0xff]  ;;  %v11387_v39 = vld [vmem:[#allocation400_spill] sm:$0xff]  ;;  %v11388_v18 = vld [vmem:[#allocation146_spill] sm:$0xff] }
 0x50b   :  { %v2159_v62 = vpop.permute.xlu1 %2158  ;;  %v2225_v52 = vpop.permute.xlu0 %2224  ;;  %v2589_v11 = vsel %vm2576_vm8, %v2524_v0, %v11369_v43  ;;  %v2623_v23 = vsel %vm2576_vm8, %v2558_v9, %v11370_v47  ;;  %v2544_v19 = vsel %vm2511_vm7, %v2479_v33, %v11386_v57  ;;  %v11389_v21 = vld [vmem:[#allocation428_spill] sm:$0xff]  ;;  %v11390_v0 = vld [vmem:[#allocation455_spill] sm:$0xff]  ;;  %v11391_v50 = vld [vmem:[#allocation470_spill] sm:$0xff] }
 0x50c   :  { %v2817_v56 = vsel %vm2771_vm12, %v2752_v45, %v2225_v52  ;;  %v2654_v63 = vsel %vm2641_vm9, %v2589_v11, %v11373_v8  ;;  %v2688_v13 = vsel %vm2641_vm9, %v2623_v23, %v11374_v32  ;;  %v11378_v45 = vld [vmem:[#allocation184_spill] sm:$0xff]  ;;  %v2609_v49 = vsel %vm2576_vm8, %v2544_v19, %v11390_v0  ;;  %v11393_v43 = vld [vmem:[#allocation250_spill] sm:$0xff]  ;;  %v11394_v11 = vld [vmem:[#allocation487_spill] sm:$0xff] }
 0x50d   :  { %4717 = vmatmul.msk.f32.gmra.mxu0 %vm2839_vm11, %v2783_v6  ;;  %4737 = vmatmul.msk.f32.gmra.mxu2 %vm2839_vm11, %v2803_v37  ;;  %v2719_v16 = vsel %vm2706_vm10, %v2654_v63, %v11375_v35  ;;  %v2753_v29 = vsel %vm2706_vm10, %v2688_v13, %v8104_v12  ;;  %v11379_v52 = vld [vmem:[#allocation88_spill] sm:$0xff]  ;;  %v11380_v6 = vld [vmem:[#allocation131_spill] sm:$0xff]  ;;  %v11397_v63 = vld [vmem:[#allocation77_spill] sm:$0xff] }
 0x50e   :  { %4751 = vmatmul.msk.f32.gmra.mxu3 %vm2839_vm11, %v2817_v56  ;;  %v2784_v31 = vsel %vm2771_vm12, %v2719_v16, %v2159_v62  ;;  %v2366_v46 = vsel %vm2320_vm4, %v11379_v52, %v11378_v45  ;;  %v2397_v37 = vsel %vm2383_vm6, %v2334_v28, %v11380_v6  ;;  %v11381_v12 = vld [vmem:[#allocation287_spill] sm:$0xff]  ;;  %v11382_v62 = vld [vmem:[#allocation317_spill] sm:$0xff]  ;;  %v11395_v23 = vld [vmem:[#allocation28_spill] sm:$0xff] }
 0x50f   :  { %v2429_v56 = vsel %vm2383_vm6, %v2366_v46, %v11381_v12  ;;  %v2460_v1 = vsel %vm2446_vm5, %v2397_v37, %v11382_v62  ;;  %v11398_v27 = vld [vmem:[#allocation144_spill] sm:$0xff]  ;;  %v11399_v24 = vld [vmem:[#allocation22_spill] sm:$0xff]  ;;  %v11401_v45 = vld [vmem:[#allocation101_spill] sm:$0xff] }
 0x510   :  { %2218 = vrot.lane.b32.xlu2 %v11368_v58, %s4850_s30  ;;  %v2494_v40 = vsel %vm2446_vm5, %v2429_v56, %v11384_v15  ;;  %v2525_v38 = vsel %vm2511_vm7, %v2460_v1, %v11385_v5  ;;  %v11392_v58 = vld [vmem:[#allocation94_spill] sm:$0xff]  ;;  %v2335_v28 = vsel %vm2320_vm4, %v11399_v24, %v11398_v27  ;;  %v11402_v52 = vld [vmem:[#allocation233_spill] sm:$0xff]  ;;  %v11404_v37 = vld [vmem:[#allocation316_spill] sm:$0xff] }
 0x511   :  { %2062 = vrot.lane.b32.xlu1 %v11371_v54, %s4849_s29  ;;  %2032 = vrot.lane.b32.xlu0 %v11372_v7, %s4849_s29  ;;  %v2559_v25 = vsel %vm2511_vm7, %v2494_v40, %v11387_v39  ;;  %v2590_v17 = vsel %vm2576_vm8, %v2525_v38, %v11389_v21  ;;  %v2674_v54 = vsel %vm2641_vm9, %v2609_v49, %v11395_v23  ;;  %v11396_v7 = vld [vmem:[#allocation55_spill] sm:$0xff]  ;;  %v11406_v1 = vld [vmem:[#allocation337_spill] sm:$0xff]  ;;  %v11410_v19 = vld [vmem:[#allocation412_spill] sm:$0xff] }
 0x512   :  { %v8330_v34 = vpop.permute.xlu2 %2202  ;;  %v2624_v9 = vsel %vm2576_vm8, %v2559_v25, %v11391_v50  ;;  %v2655_v47 = vsel %vm2641_vm9, %v2590_v17, %v11394_v11  ;;  %v2739_v13 = vsel %vm2706_vm10, %v2674_v54, %v7821_v42  ;;  %v11400_v42 = vld [vmem:[#allocation207_spill] sm:$0xff]  ;;  %v2398_v46 = vsel %vm2383_vm6, %v2335_v28, %v11402_v52  ;;  %v11409_v57 = vld [vmem:[#allocation153_spill] sm:$0xff]  ;;  %v11414_v0 = vld [vmem:[#allocation232_spill] sm:$0xff] }
 0x513   :  { %v2161_v30 = vpop.permute.xlu1 %2160  ;;  %v2227_v60 = vpop.permute.xlu0 %2226  ;;  %v2689_v8 = vsel %vm2641_vm9, %v2624_v9, %v11396_v7  ;;  %v2720_v32 = vsel %vm2706_vm10, %v2655_v47, %v11397_v63  ;;  %v2461_v12 = vsel %vm2446_vm5, %v2398_v46, %v11404_v37  ;;  %v11405_v56 = vld [vmem:[#allocation7_spill] sm:$0xff]  ;;  %v11413_v17 = vld [vmem:[#allocation257_spill] sm:$0xff]  ;;  %v11416_v9 = vld [vmem:[#allocation140_spill] sm:$0xff] }
 0x514   :  { %v2818_v51 = vsel %vm2771_vm12, %v2753_v29, %v2227_v60  ;;  %v2754_v35 = vsel %vm2706_vm10, %v2689_v8, %v8157_v3  ;;  %v2785_v60 = vsel %vm2771_vm12, %v2720_v32, %v2161_v30  ;;  %v2367_v3 = vsel %vm2320_vm4, %v11401_v45, %v11400_v42  ;;  %v11403_v30 = vld [vmem:[#allocation286_spill] sm:$0xff]  ;;  %v11407_v33 = vld [vmem:[#allocation367_spill] sm:$0xff]  ;;  %v11415_v49 = vld [vmem:[#allocation469_spill] sm:$0xff] }
 0x515   :  { %4718 = vmatmul.msk.f32.gmra.mxu0 %vm2839_vm11, %v2784_v31  ;;  %v2430_v6 = vsel %vm2383_vm6, %v2367_v3, %v11403_v30  ;;  %v2480_v62 = vsel %vm2446_vm5, %v7785_v14, %v11405_v56  ;;  %v2526_v15 = vsel %vm2511_vm7, %v2461_v12, %v11407_v33  ;;  %v11408_v40 = vld [vmem:[#allocation399_spill] sm:$0xff]  ;;  %v11418_v47 = vld [vmem:[#allocation54_spill] sm:$0xff]  ;;  %v11419_v54 = vld [vmem:[#allocation81_spill] sm:$0xff] }
 0x516   :  { %4752 = vmatmul.msk.f32.gmra.mxu3 %vm2839_vm11, %v2818_v51  ;;  %v2495_v53 = vsel %vm2446_vm5, %v2430_v6, %v11406_v1  ;;  %v2545_v5 = vsel %vm2511_vm7, %v2480_v62, %v11408_v40  ;;  %v11411_v25 = vld [vmem:[#allocation439_spill] sm:$0xff]  ;;  %v11425_v42 = vld [vmem:[#allocation261_spill] sm:$0xff]  ;;  %v11426_v3 = vld [vmem:[#allocation306_spill] sm:$0xff] }
 0x517   :  { %v2560_v39 = vsel %vm2511_vm7, %v2495_v53, %v11410_v19  ;;  %v2591_v14 = vsel %vm2576_vm8, %v2526_v15, %v11411_v25  ;;  %v11423_v27 = vld [vmem:[#allocation59_spill] sm:$0xff]  ;;  %v11427_v46 = vld [vmem:[#allocation336_spill] sm:$0xff]  ;;  %v11428_v6 = vld [vmem:[#allocation381_spill] sm:$0xff] }
 0x518   :  { %2064 = vrot.lane.b32.xlu2 %v11388_v18, %s4849_s29  ;;  %v11412_v18 = vld [vmem:[#allocation454_spill] sm:$0xff]  ;;  %v2625_v50 = vsel %vm2576_vm8, %v2560_v39, %v11415_v49  ;;  %v11424_v28 = vld [vmem:[#allocation255_spill] sm:$0xff]  ;;  %v11430_v56 = vld [vmem:[#allocation444_spill] sm:$0xff] }
 0x519   :  { %2034 = vrot.lane.b32.xlu1 %v11392_v58, %s4849_s29  ;;  %2248 = vrot.lane.b32.xlu0 %v11393_v43, %s4850_s30  ;;  %v2610_v21 = vsel %vm2576_vm8, %v2545_v5, %v11412_v18  ;;  %v2656_v58 = vsel %vm2641_vm9, %v2591_v14, %v11416_v9  ;;  %v11417_v43 = vld [vmem:[#allocation26_spill] sm:$0xff]  ;;  %v2690_v23 = vsel %vm2641_vm9, %v2625_v50, %v11418_v47  ;;  %v11432_v53 = vld [vmem:[#allocation448_spill] sm:$0xff]  ;;  %v11435_v5 = vld [vmem:[#allocation481_spill] sm:$0xff] }
 0x51a   :  { %v8397_v38 = vpop.permute.xlu2 %2048  ;;  %v2675_v11 = vsel %vm2641_vm9, %v2610_v21, %v11417_v43  ;;  %v2721_v7 = vsel %vm2706_vm10, %v2656_v58, %v11419_v54  ;;  %v11429_v12 = vld [vmem:[#allocation398_spill] sm:$0xff]  ;;  %v11434_v40 = vld [vmem:[#allocation256_spill] sm:$0xff]  ;;  %v11437_v14 = vld [vmem:[#allocation87_spill] sm:$0xff] }
 0x51b   :  { %v2229_v16 = vpop.permute.xlu1 %2228  ;;  %v2199_v29 = vpop.permute.xlu0 %2198  ;;  %v2740_v8 = vsel %vm2706_vm10, %v2675_v11, %v7819_v59  ;;  %v11431_v62 = vld [vmem:[#allocation438_spill] sm:$0xff]  ;;  %v11438_v9 = vld [vmem:[#allocation151_spill] sm:$0xff]  ;;  %v11439_v58 = vld [vmem:[#allocation32_spill] sm:$0xff] }
 0x51c   :  { %v2804_v31 = vsel %vm2771_vm12, %v2739_v13, %v2199_v29  ;;  %v2819_v51 = vsel %vm2771_vm12, %v2754_v35, %v2229_v16  ;;  %v2786_v35 = vsel %vm2771_vm12, %v2721_v7, %v8203_v44  ;;  %v11420_v29 = vld [vmem:[#allocation112_spill] sm:$0xff]  ;;  %v11433_v15 = vld [vmem:[#allocation382_spill] sm:$0xff]  ;;  %v2337_v43 = vsel %vm2320_vm4, %v11439_v58, %v11438_v9  ;;  %v11441_v47 = vld [vmem:[#allocation99_spill] sm:$0xff] }
 0x51d   :  { %4719 = vmatmul.msk.f32.gmra.mxu0 %vm2839_vm11, %v2785_v60  ;;  %4738 = vmatmul.msk.f32.gmra.mxu2 %vm2839_vm11, %v2804_v31  ;;  %v11421_v60 = vld [vmem:[#allocation25_spill] sm:$0xff]  ;;  %v11436_v19 = vld [vmem:[#allocation10_spill] sm:$0xff]  ;;  %v11440_v11 = vld [vmem:[#allocation60_spill] sm:$0xff] }
 0x51e   :  { %4753 = vmatmul.msk.f32.gmra.mxu3 %vm2839_vm11, %v2819_v51  ;;  %v2336_v31 = vsel %vm2320_vm4, %v11421_v60, %v11420_v29  ;;  %v11422_v51 = vld [vmem:[#allocation179_spill] sm:$0xff]  ;;  %v11443_v7 = vld [vmem:[#allocation276_spill] sm:$0xff] }
 0x51f   :  { %v2353_v24 = vsel %vm2320_vm4, %v11423_v27, %v11422_v51  ;;  %v2399_v44 = vsel %vm2383_vm6, %v2336_v31, %v11424_v28  ;;  %v11447_v29 = vld [vmem:[#allocation204_spill] sm:$0xff]  ;;  %v11448_v31 = vld [vmem:[#allocation431_spill] sm:$0xff] }
 0x520   :  { %2066 = vrot.lane.b32.xlu2 %v11409_v57, %s4849_s29  ;;  %v2416_v45 = vsel %vm2383_vm6, %v2353_v24, %v11425_v42  ;;  %v2462_v52 = vsel %vm2446_vm5, %v2399_v44, %v11426_v3  ;;  %v11449_v27 = vld [vmem:[#allocation459_spill] sm:$0xff]  ;;  %v11452_v44 = vld [vmem:[#allocation489_spill] sm:$0xff] }
 0x521   :  { %2250 = vrot.lane.b32.xlu1 %v11413_v17, %s4850_s30  ;;  %2220 = vrot.lane.b32.xlu0 %v11414_v0, %s4850_s30  ;;  %v2481_v30 = vsel %vm2446_vm5, %v2416_v45, %v11427_v46  ;;  %v2527_v37 = vsel %vm2511_vm7, %v2462_v52, %v11428_v6  ;;  %v11451_v28 = vld [vmem:[#allocation443_spill] sm:$0xff]  ;;  %v11454_v46 = vld [vmem:[#allocation89_spill] sm:$0xff] }
 0x522   :  { %v2592_v1 = vsel %vm2576_vm8, %v2527_v37, %v11431_v62  ;;  %v2169_v25 = vpop.permute.xlu2 %2168  ;;  %v11453_v45 = vld [vmem:[#allocation35_spill] sm:$0xff] }
 0x523   :  { %v2201_v63 = vpop.permute.xlu1 %2200  ;;  %v2045_v32 = vpop.permute.xlu0 %2044  ;;  %v2657_v57 = vsel %vm2641_vm9, %v2592_v1, %v11435_v5  ;;  %v11455_v1 = vld [vmem:[#allocation150_spill] sm:$0xff]  ;;  %v11465_v58 = vld [vmem:[#allocation335_spill] sm:$0xff] }
 0x524   :  { %v2755_v13 = vsel %vm2706_vm10, %v2690_v23, %v2045_v32  ;;  %v2805_v16 = vsel %vm2771_vm12, %v2740_v8, %v2201_v63  ;;  %v2722_v18 = vsel %vm2706_vm10, %v2657_v57, %v11437_v14  ;;  %v2368_v23 = vsel %vm2320_vm4, %v11441_v47, %v11440_v11  ;;  %v11444_v63 = vld [vmem:[#allocation320_spill] sm:$0xff]  ;;  %v11445_v32 = vld [vmem:[#allocation351_spill] sm:$0xff]  ;;  %v11459_v57 = vld [vmem:[#allocation190_spill] sm:$0xff] }
 0x525   :  { %4720 = vmatmul.msk.f32.gmra.mxu0 %vm2839_vm11, %v2786_v35  ;;  %4739 = vmatmul.msk.f32.gmra.mxu2 %vm2839_vm11, %v2805_v16  ;;  %v2820_v59 = vsel %vm2771_vm12, %v2755_v13, %v8271_v26  ;;  %v2546_v26 = vsel %vm2511_vm7, %v2481_v30, %v11429_v12  ;;  %v2431_v8 = vsel %vm2383_vm6, %v2368_v23, %v11443_v7  ;;  %v11446_v35 = vld [vmem:[#allocation380_spill] sm:$0xff]  ;;  %v11461_v14 = vld [vmem:[#allocation121_spill] sm:$0xff]  ;;  %v11466_v11 = vld [vmem:[#allocation350_spill] sm:$0xff] }
 0x526   :  { %4754 = vmatmul.msk.f32.gmra.mxu3 %vm2839_vm11, %v2820_v59  ;;  %v2611_v33 = vsel %vm2576_vm8, %v2546_v26, %v11432_v53  ;;  %v2496_v13 = vsel %vm2446_vm5, %v2431_v8, %v11445_v32  ;;  %v11450_v59 = vld [vmem:[#allocation386_spill] sm:$0xff]  ;;  %v11456_v53 = vld [vmem:[#allocation31_spill] sm:$0xff] }
 0x527   :  { %v2676_v39 = vsel %vm2641_vm9, %v2611_v33, %v11436_v19  ;;  %v2561_v60 = vsel %vm2511_vm7, %v2496_v13, %v11447_v29  ;;  %v2338_v33 = vsel %vm2320_vm4, %v11456_v53, %v11455_v1  ;;  %v11460_v19 = vld [vmem:[#allocation97_spill] sm:$0xff]  ;;  %v11467_v23 = vld [vmem:[#allocation370_spill] sm:$0xff]  ;;  %v11469_v8 = vld [vmem:[#allocation403_spill] sm:$0xff] }
 0x528   :  { %2254 = vrot.lane.b32.xlu2 %v11430_v56, %s4850_s30  ;;  %v2741_v21 = vsel %vm2706_vm10, %v2676_v39, %v7866_v22  ;;  %v11442_v22 = vld [vmem:[#allocation254_spill] sm:$0xff]  ;;  %v2626_v24 = vsel %vm2576_vm8, %v2561_v60, %v11449_v27  ;;  %v2369_v39 = vsel %vm2320_vm4, %v11460_v19, %v11459_v57  ;;  %v11473_v60 = vld [vmem:[#allocation488_spill] sm:$0xff]  ;;  %v11483_v57 = vld [vmem:[#allocation325_spill] sm:$0xff] }
 0x529   :  { %2068 = vrot.lane.b32.xlu1 %v11433_v15, %s4849_s29  ;;  %2252 = vrot.lane.b32.xlu0 %v11434_v40, %s4850_s30  ;;  %v2806_v50 = vsel %vm2771_vm12, %v2741_v21, %v8330_v34  ;;  %v2400_v54 = vsel %vm2383_vm6, %v2337_v43, %v11442_v22  ;;  %v2691_v3 = vsel %vm2641_vm9, %v2626_v24, %v11453_v45  ;;  %v11457_v15 = vld [vmem:[#allocation160_spill] sm:$0xff]  ;;  %v11458_v40 = vld [vmem:[#allocation57_spill] sm:$0xff]  ;;  %v11462_v21 = vld [vmem:[#allocation275_spill] sm:$0xff] }
 0x52a   :  { %v2463_v34 = vsel %vm2446_vm5, %v2400_v54, %v11444_v63  ;;  %v2237_v26 = vpop.permute.xlu2 %2236  ;;  %v2354_v5 = vsel %vm2320_vm4, %v11458_v40, %v11457_v15  ;;  %v11468_v54 = vld [vmem:[#allocation388_spill] sm:$0xff]  ;;  %v11471_v13 = vld [vmem:[#allocation458_spill] sm:$0xff]  ;;  %v11475_v24 = vld [vmem:[#allocation353_spill] sm:$0xff] }
 0x52b   :  { %v2047_v17 = vpop.permute.xlu1 %2046  ;;  %v2165_v0 = vpop.permute.xlu0 %2164  ;;  %v2528_v16 = vsel %vm2511_vm7, %v2463_v34, %v11446_v35  ;;  %v11470_v34 = vld [vmem:[#allocation442_spill] sm:$0xff]  ;;  %v11482_v40 = vld [vmem:[#allocation289_spill] sm:$0xff] }
 0x52c   :  { %v2787_v49 = vsel %vm2771_vm12, %v2722_v18, %v2165_v0  ;;  %v2593_v51 = vsel %vm2576_vm8, %v2528_v16, %v11448_v31  ;;  %v2756_v6 = vsel %vm2706_vm10, %v2691_v3, %v2047_v17  ;;  %v2401_v18 = vsel %vm2383_vm6, %v2338_v33, %v11461_v14  ;;  %v11463_v0 = vld [vmem:[#allocation290_spill] sm:$0xff]  ;;  %v11472_v16 = vld [vmem:[#allocation472_spill] sm:$0xff] }
 0x52d   :  { %4721 = vmatmul.msk.f32.gmra.mxu0 %vm2839_vm11, %v2787_v49  ;;  %4740 = vmatmul.msk.f32.gmra.mxu2 %vm2839_vm11, %v2806_v50  ;;  %v2658_v42 = vsel %vm2641_vm9, %v2593_v51, %v11452_v44  ;;  %v2417_v17 = vsel %vm2383_vm6, %v2354_v5, %v11462_v21  ;;  %v2432_v49 = vsel %vm2383_vm6, %v2369_v39, %v11463_v0  ;;  %v11464_v50 = vld [vmem:[#allocation319_spill] sm:$0xff]  ;;  %v11474_v51 = vld [vmem:[#allocation34_spill] sm:$0xff]  ;;  %v11476_v44 = vld [vmem:[#allocation69_spill] sm:$0xff] }
 0x52e   :  { %v2723_v30 = vsel %vm2706_vm10, %v2658_v42, %v11454_v46  ;;  %v2464_v9 = vsel %vm2446_vm5, %v2401_v18, %v11464_v50  ;;  %v2482_v43 = vsel %vm2446_vm5, %v2417_v17, %v11465_v58  ;;  %v2497_v47 = vsel %vm2446_vm5, %v2432_v49, %v11466_v11  ;;  %v11480_v53 = vld [vmem:[#allocation98_spill] sm:$0xff]  ;;  %v11484_v39 = vld [vmem:[#allocation340_spill] sm:$0xff]  ;;  %v11486_v17 = vld [vmem:[#allocation417_spill] sm:$0xff] }
 0x52f   :  { %v2529_v22 = vsel %vm2511_vm7, %v2464_v9, %v11467_v23  ;;  %v2547_v7 = vsel %vm2511_vm7, %v2482_v43, %v11468_v54  ;;  %v2562_v63 = vsel %vm2511_vm7, %v2497_v47, %v11469_v8  ;;  %v11481_v33 = vld [vmem:[#allocation274_spill] sm:$0xff]  ;;  %v11487_v49 = vld [vmem:[#allocation457_spill] sm:$0xff]  ;;  %v11488_v9 = vld [vmem:[#allocation471_spill] sm:$0xff] }
 0x530   :  { %v2594_v32 = vsel %vm2576_vm8, %v2529_v22, %v11470_v34  ;;  %v2612_v35 = vsel %vm2576_vm8, %v2547_v7, %v11471_v13  ;;  %v2627_v29 = vsel %vm2576_vm8, %v2562_v63, %v11472_v16  ;;  %v11485_v18 = vld [vmem:[#allocation402_spill] sm:$0xff]  ;;  %v11489_v43 = vld [vmem:[#allocation33_spill] sm:$0xff]  ;;  %v11490_v23 = vld [vmem:[#allocation352_spill] sm:$0xff] }
 0x531   :  { %2070 = vrot.lane.b32.xlu0 %v11450_v59, %s4849_s29  ;;  %2256 = vrot.lane.b32.xlu1 %v11451_v28, %s4850_s30  ;;  %v2659_v31 = vsel %vm2641_vm9, %v2594_v32, %v11473_v60  ;;  %v2677_v27 = vsel %vm2641_vm9, %v2612_v35, %v11474_v51  ;;  %v2692_v59 = vsel %vm2641_vm9, %v2627_v29, %v11475_v24  ;;  %v11491_v32 = vld [vmem:[#allocation124_spill] sm:$0xff]  ;;  %v11492_v13 = vld [vmem:[#allocation30_spill] sm:$0xff]  ;;  %v11493_v16 = vld [vmem:[#allocation155_spill] sm:$0xff] }
 0x532   :  { %v8503_v52 = vpop.f32.mrf.mxu0  ;;  %v2724_v42 = vsel %vm2706_vm10, %v2659_v31, %v11476_v44  ;;  %v2742_v45 = vsel %vm2706_vm10, %v2677_v27, %v7864_v4  ;;  %v2757_v3 = vsel %vm2706_vm10, %v2692_v59, %v8397_v38  ;;  %v11479_v4 = vld [vmem:[#allocation211_spill] sm:$0xff]  ;;  %v2339_v35 = vsel %vm2320_vm4, %v11492_v13, %v11491_v32  ;;  %v11494_v29 = vld [vmem:[#allocation37_spill] sm:$0xff]  ;;  %v11495_v51 = vld [vmem:[#allocation242_spill] sm:$0xff] }
 0x533   :  { %v2167_v37 = vpop.permute.xlu1 %2166  ;;  %v2233_v12 = vpop.permute.xlu0 %2232  ;;  %v2370_v38 = vsel %vm2320_vm4, %v11480_v53, %v11479_v4  ;;  %v2341_v60 = vsel %vm2320_vm4, %v11494_v29, %v11493_v16  ;;  %v11496_v27 = vld [vmem:[#allocation260_spill] sm:$0xff]  ;;  %v11497_v59 = vld [vmem:[#allocation309_spill] sm:$0xff]  ;;  %v11518_v29 = vld [vmem:[#allocation355_spill] sm:$0xff] }
 0x534   :  { %v2788_v56 = vsel %vm2771_vm12, %v2723_v30, %v2167_v37  ;;  %v2821_v62 = vsel %vm2771_vm12, %v2756_v6, %v2233_v12  ;;  %v2789_v6 = vsel %vm2771_vm12, %v2724_v42, %v2169_v25  ;;  %v8572_v25 = vpop.permute.xlu2 %2052  ;;  %v2433_v5 = vsel %vm2383_vm6, %v2370_v38, %v11482_v40  ;;  %v11498_v42 = vld [vmem:[#allocation322_spill] sm:$0xff]  ;;  %v11504_v53 = vld [vmem:[#allocation9_spill] sm:$0xff]  ;;  %v11516_v32 = vld [vmem:[#allocation312_spill] sm:$0xff] }
 0x535   :  { %4722 = vmatmul.msk.f32.gmra.mxu0 %vm2839_vm11, %v2788_v56  ;;  %4755 = vmatmul.msk.f32.gmra.mxu3 %vm2839_vm11, %v2821_v62  ;;  %v11477_v56 = vld [vmem:[#allocation186_spill] sm:$0xff]  ;;  %v11478_v62 = vld [vmem:[#allocation68_spill] sm:$0xff]  ;;  %v2498_v14 = vsel %vm2446_vm5, %v2433_v5, %v11484_v39  ;;  %v2402_v24 = vsel %vm2383_vm6, %v2339_v35, %v11496_v27  ;;  %v11517_v35 = vld [vmem:[#allocation339_spill] sm:$0xff] }
 0x536   :  { %v2355_v1 = vsel %vm2320_vm4, %v11478_v62, %v11477_v56  ;;  %v2563_v0 = vsel %vm2511_vm7, %v2498_v14, %v11486_v17  ;;  %v2465_v44 = vsel %vm2446_vm5, %v2402_v24, %v11497_v59  ;;  %v11502_v56 = vld [vmem:[#allocation447_spill] sm:$0xff]  ;;  %v11506_v5 = vld [vmem:[#allocation86_spill] sm:$0xff]  ;;  %v11507_v17 = vld [vmem:[#allocation133_spill] sm:$0xff] }
 0x537   :  { %v2418_v15 = vsel %vm2383_vm6, %v2355_v1, %v11481_v33  ;;  %v2628_v58 = vsel %vm2576_vm8, %v2563_v0, %v11488_v9  ;;  %v11503_v1 = vld [vmem:[#allocation482_spill] sm:$0xff]  ;;  %v8634_v14 = vpop.f32.mrf.mxu2  ;;  %v11508_v0 = vld [vmem:[#allocation36_spill] sm:$0xff] }
 0x538   :  { %v2483_v19 = vsel %vm2446_vm5, %v2418_v15, %v11483_v57  ;;  %v2693_v22 = vsel %vm2641_vm9, %v2628_v58, %v11490_v23  ;;  %v11505_v15 = vld [vmem:[#allocation163_spill] sm:$0xff]  ;;  %v11510_v9 = vld [vmem:[#allocation66_spill] sm:$0xff]  ;;  %v11521_v24 = vld [vmem:[#allocation416_spill] sm:$0xff] }
 0x539   :  { %v2548_v21 = vsel %vm2511_vm7, %v2483_v19, %v11485_v18 }
 0x53a   :  { %v8551_v28 = vpop.f32.mrf.mxu0  ;;  %v2613_v50 = vsel %vm2576_vm8, %v2548_v21, %v11487_v49  ;;  %v2342_v49 = vsel %vm2320_vm4, %v11508_v0, %v11507_v17  ;;  %v11529_v17 = vld [vmem:[#allocation156_spill] sm:$0xff]  ;;  %v11530_v0 = vld [vmem:[#allocation29_spill] sm:$0xff] }
 0x53b   :  { %v2235_v46 = vpop.permute.xlu1 %2234  ;;  %v2205_v30 = vpop.permute.xlu0 %2204  ;;  %v2678_v11 = vsel %vm2641_vm9, %v2613_v50, %v11489_v43  ;;  %v11509_v50 = vld [vmem:[#allocation185_spill] sm:$0xff]  ;;  %v11511_v43 = vld [vmem:[#allocation58_spill] sm:$0xff] }
 0x53c   :  { %v2807_v37 = vsel %vm2771_vm12, %v2742_v45, %v2205_v30  ;;  %v2822_v12 = vsel %vm2771_vm12, %v2757_v3, %v2235_v46  ;;  %v2743_v54 = vsel %vm2706_vm10, %v2678_v11, %v7896_v2  ;;  %v2404_v2 = vsel %vm2383_vm6, %v2341_v60, %v11495_v51  ;;  %v11499_v3 = vld [vmem:[#allocation373_spill] sm:$0xff]  ;;  %v11512_v11 = vld [vmem:[#allocation110_spill] sm:$0xff] }
 0x53d   :  { %4723 = vmatmul.msk.f32.gmra.mxu0 %vm2839_vm11, %v2789_v6  ;;  %4741 = vmatmul.msk.f32.gmra.mxu2 %vm2839_vm11, %v2807_v37  ;;  %v2467_v45 = vsel %vm2446_vm5, %v2404_v2, %v11498_v42  ;;  %v11500_v30 = vld [vmem:[#allocation385_spill] sm:$0xff]  ;;  %v2177_v6 = vpop.permute.xlu2 %2176  ;;  %v2356_v58 = vsel %vm2320_vm4, %v11510_v9, %v11509_v50  ;;  %v2371_v23 = vsel %vm2320_vm4, %v11512_v11, %v11511_v43  ;;  %v11533_v9 = vld [vmem:[#allocation259_spill] sm:$0xff] }
 0x53e   :  { %4756 = vmatmul.msk.f32.gmra.mxu3 %vm2839_vm11, %v2822_v12  ;;  %v2532_v46 = vsel %vm2511_vm7, %v2467_v45, %v11499_v3  ;;  %v11501_v37 = vld [vmem:[#allocation441_spill] sm:$0xff] }
 0x53f   :  { %v2597_v62 = vsel %vm2576_vm8, %v2532_v46, %v11502_v56  ;;  %v11520_v2 = vld [vmem:[#allocation401_spill] sm:$0xff]  ;;  %v11524_v46 = vld [vmem:[#allocation462_spill] sm:$0xff]  ;;  %v8698_v43 = vpop.f32.mrf.mxu2 }
 0x540   :  { %v2662_v38 = vsel %vm2641_vm9, %v2597_v62, %v11504_v53  ;;  %v11523_v45 = vld [vmem:[#allocation449_spill] sm:$0xff]  ;;  %v11527_v62 = vld [vmem:[#allocation40_spill] sm:$0xff] }
 0x541   :  { %v2727_v40 = vsel %vm2706_vm10, %v2662_v38, %v11505_v15  ;;  %v11528_v38 = vld [vmem:[#allocation177_spill] sm:$0xff] }
 0x542   :  { %v8591_v47 = vpop.f32.mrf.mxu0  ;;  %v11532_v50 = vld [vmem:[#allocation65_spill] sm:$0xff] }
 0x543   :  { %v2207_v7 = vpop.permute.xlu1 %2206  ;;  %v2051_v8 = vpop.permute.xlu0 %2050 }
 0x544   :  { %v2758_v63 = vsel %vm2706_vm10, %v2693_v22, %v2051_v8  ;;  %v2808_v34 = vsel %vm2771_vm12, %v2743_v54, %v2207_v7  ;;  %v11513_v22 = vld [vmem:[#allocation263_spill] sm:$0xff]  ;;  %v11514_v7 = vld [vmem:[#allocation264_spill] sm:$0xff] }
 0x545   :  { %4742 = vmatmul.msk.f32.gmra.mxu2 %vm2839_vm11, %v2808_v34  ;;  %v2823_v31 = vsel %vm2771_vm12, %v2758_v63, %v2237_v26  ;;  %v2530_v26 = vsel %vm2511_vm7, %v2465_v44, %v11500_v30  ;;  %v2405_v54 = vsel %vm2383_vm6, %v2342_v49, %v11513_v22  ;;  %v2419_v8 = vsel %vm2383_vm6, %v2356_v58, %v11514_v7  ;;  %v11515_v63 = vld [vmem:[#allocation279_spill] sm:$0xff]  ;;  %v11522_v44 = vld [vmem:[#allocation446_spill] sm:$0xff] }
 0x546   :  { %4757 = vmatmul.msk.f32.gmra.mxu3 %vm2839_vm11, %v2823_v31  ;;  %v2595_v12 = vsel %vm2576_vm8, %v2530_v26, %v11501_v37  ;;  %v2434_v34 = vsel %vm2383_vm6, %v2371_v23, %v11515_v63  ;;  %v2468_v13 = vsel %vm2446_vm5, %v2405_v54, %v11516_v32  ;;  %v2484_v16 = vsel %vm2446_vm5, %v2419_v8, %v11517_v35  ;;  %v11519_v31 = vld [vmem:[#allocation387_spill] sm:$0xff]  ;;  %v11525_v26 = vld [vmem:[#allocation484_spill] sm:$0xff]  ;;  %v11536_v54 = vld [vmem:[#allocation338_spill] sm:$0xff] }
 0x547   :  { %v2660_v4 = vsel %vm2641_vm9, %v2595_v12, %v11503_v1  ;;  %v2499_v60 = vsel %vm2446_vm5, %v2434_v34, %v11518_v29  ;;  %v2533_v51 = vsel %vm2511_vm7, %v2468_v13, %v11519_v31  ;;  %v2549_v27 = vsel %vm2511_vm7, %v2484_v16, %v11520_v2  ;;  %v11526_v12 = vld [vmem:[#allocation15_spill] sm:$0xff]  ;;  %v11537_v8 = vld [vmem:[#allocation384_spill] sm:$0xff]  ;;  %v11539_v13 = vld [vmem:[#allocation434_spill] sm:$0xff] }
 0x548   :  { %v2725_v57 = vsel %vm2706_vm10, %v2660_v4, %v11506_v5  ;;  %v2564_v59 = vsel %vm2511_vm7, %v2499_v60, %v11521_v24  ;;  %v2598_v42 = vsel %vm2576_vm8, %v2533_v51, %v11522_v44  ;;  %v2614_v3 = vsel %vm2576_vm8, %v2549_v27, %v11523_v45  ;;  %v2211_v4 = vpop.permute.xlu2 %2210  ;;  %v11535_v23 = vld [vmem:[#allocation323_spill] sm:$0xff]  ;;  %v11540_v16 = vld [vmem:[#allocation461_spill] sm:$0xff] }
 0x549   :  { %v2629_v30 = vsel %vm2576_vm8, %v2564_v59, %v11524_v46  ;;  %v2663_v37 = vsel %vm2641_vm9, %v2598_v42, %v11525_v26  ;;  %v2679_v56 = vsel %vm2641_vm9, %v2614_v3, %v11526_v12  ;;  %v2340_v49 = vsel %vm2320_vm4, %v11530_v0, %v11529_v17  ;;  %v11538_v34 = vld [vmem:[#allocation391_spill] sm:$0xff]  ;;  %v11541_v60 = vld [vmem:[#allocation5_spill] sm:$0xff]  ;;  %v11546_v12 = vld [vmem:[#allocation196_spill] sm:$0xff] }
 0x54a   :  { %v8628_v33 = vpop.f32.mrf.mxu0  ;;  %v2694_v1 = vsel %vm2641_vm9, %v2629_v30, %v11527_v62  ;;  %v2728_v15 = vsel %vm2706_vm10, %v2663_v37, %v11528_v38  ;;  %v2403_v58 = vsel %vm2383_vm6, %v2340_v49, %v11533_v9  ;;  %v11542_v2 = vld [vmem:[#allocation39_spill] sm:$0xff]  ;;  %v11543_v24 = vld [vmem:[#allocation169_spill] sm:$0xff]  ;;  %v11544_v30 = vld [vmem:[#allocation162_spill] sm:$0xff] }
 0x54b   :  { %v2171_v19 = vpop.permute.xlu1 %2170  ;;  %v2175_v39 = vpop.permute.xlu0 %2174  ;;  %v2759_v5 = vsel %vm2706_vm10, %v2694_v1, %v8572_v25  ;;  %v2466_v22 = vsel %vm2446_vm5, %v2403_v58, %v11535_v23  ;;  %v11545_v26 = vld [vmem:[#allocation41_spill] sm:$0xff]  ;;  %v8737_v1 = vld [vmem:[%s9978_s2] ss:$0 sm:$0xff]  ;;  %v11554_v49 = vld [vmem:[#allocation192_spill] sm:$0xff] }
 0x54c   :  { %v2790_v18 = vsel %vm2771_vm12, %v2725_v57, %v2171_v19  ;;  %v2792_v21 = vsel %vm2771_vm12, %v2727_v40, %v2175_v39  ;;  %v2744_v40 = vsel %vm2706_vm10, %v2679_v56, %v7924_v48  ;;  %v11531_v48 = vld [vmem:[#allocation166_spill] sm:$0xff]  ;;  %v2531_v63 = vsel %vm2511_vm7, %v2466_v22, %v11537_v8  ;;  %v11547_v56 = vld [vmem:[#allocation108_spill] sm:$0xff] }
 0x54d   :  { %4724 = vmatmul.msk.f32.gmra.mxu0 %vm2839_vm11, %v2790_v18  ;;  %4726 = vmatmul.msk.f32.vlgmr.msra.gmra.mxu1 %vm2839_vm11, %v2792_v21  ;;  %v2793_v18 = vsel %vm2771_vm12, %v2728_v15, %v2177_v6  ;;  %v2357_v25 = vsel %vm2320_vm4, %v11532_v50, %v11531_v48  ;;  %v11534_v6 = vld [vmem:[#allocation278_spill] sm:$0xff]  ;;  %v2596_v35 = vsel %vm2576_vm8, %v2531_v63, %v11539_v13  ;;  %v11555_v48 = vld [vmem:[#allocation64_spill] sm:$0xff] }
 0x54e   :  { %v2420_v11 = vsel %vm2383_vm6, %v2357_v25, %v11534_v6  ;;  %v2661_v31 = vsel %vm2641_vm9, %v2596_v35, %v11541_v60  ;;  %v2343_v37 = vsel %vm2320_vm4, %v11545_v26, %v11544_v30  ;;  %v2372_v62 = vsel %vm2320_vm4, %v11547_v56, %v11546_v12  ;;  %v11548_v38 = vld [vmem:[#allocation262_spill] sm:$0xff]  ;;  %v11556_v25 = vld [vmem:[#allocation75_spill] sm:$0xff]  ;;  %v11557_v9 = vld [vmem:[#allocation120_spill] sm:$0xff] }
 0x54f   :  { %v2485_v7 = vsel %vm2446_vm5, %v2420_v11, %v11536_v54  ;;  %v2726_v59 = vsel %vm2706_vm10, %v2661_v31, %v11543_v24  ;;  %v2406_v15 = vsel %vm2383_vm6, %v2343_v37, %v11548_v38  ;;  %v11553_v17 = vld [vmem:[#allocation354_spill] sm:$0xff]  ;;  %v2358_v50 = vsel %vm2320_vm4, %v11555_v48, %v11554_v49  ;;  %v11558_v6 = vld [vmem:[#allocation152_spill] sm:$0xff]  ;;  %v8765_v54 = vpop.f32.mrf.mxu2 }
 0x550   :  { %v2550_v32 = vsel %vm2511_vm7, %v2485_v7, %v11538_v34  ;;  %v8725_v3 = vpop.permute.xlu2 %2056  ;;  %v2374_v58 = vsel %vm2320_vm4, %v11557_v9, %v11556_v25  ;;  %v11559_v23 = vld [vmem:[#allocation406_spill] sm:$0xff]  ;;  %v11560_v7 = vld [vmem:[#allocation247_spill] sm:$0xff]  ;;  %v3054_v34 = vadd.f32 %v8737_v1, %v8503_v52  ;;  %v11562_v13 = vld [vmem:[#allocation216_spill] sm:$0xff]  ;;  %v3126_v49 = vadd.f32 %v8737_v1, %v8698_v43 }
 0x551   :  { %v2615_v29 = vsel %vm2576_vm8, %v2550_v32, %v11540_v16  ;;  %v11563_v35 = vld [vmem:[#allocation122_spill] sm:$0xff]  ;;  %v11568_v37 = vld [vmem:[#allocation292_spill] sm:$0xff]  ;;  %v3057_v43 = vadd.f32 %v8737_v1, %v8551_v28 }
 0x552   :  { %v3065_v53 = vpop.f32.mrf.mxu0  ;;  %v2680_v27 = vsel %vm2641_vm9, %v2615_v29, %v11542_v2  ;;  %v2373_v16 = vsel %vm2320_vm4, %v11563_v35, %v11562_v13  ;;  %v11564_v29 = vld [vmem:[#allocation277_spill] sm:$0xff]  ;;  %v11565_v31 = vld [vmem:[#allocation14_spill] sm:$0xff]  ;;  %v11569_v56 = vld [vmem:[#allocation328_spill] sm:$0xff] }
 0x553   :  { %v2239_v57 = vpop.permute.xlu1 %2238  ;;  %v2209_v19 = vpop.permute.xlu0 %2208  ;;  %v2745_v45 = vsel %vm2706_vm10, %v2680_v27, %v7951_v61  ;;  %v3066_v32 = vadd.f32 %v8737_v1, %v3065_v53  ;;  %v2421_v60 = vsel %vm2383_vm6, %v2358_v50, %v11564_v29  ;;  %v11566_v27 = vld [vmem:[#allocation157_spill] sm:$0xff]  ;;  %v2436_v12 = vsel %vm2383_vm6, %v2373_v16, %v11568_v37  ;;  %v11574_v50 = vld [vmem:[#allocation460_spill] sm:$0xff]  ;;  %v11579_v35 = vld [vmem:[#allocation342_spill] sm:$0xff] }
 0x554   :  { %v2824_v39 = vsel %vm2771_vm12, %v2759_v5, %v2239_v57  ;;  %v2809_v21 = vsel %vm2771_vm12, %v2744_v40, %v2209_v19  ;;  %v2810_v61 = vsel %vm2771_vm12, %v2745_v45, %v2211_v4  ;;  %v11549_v40 = vld [vmem:[#allocation293_spill] sm:$0xff]  ;;  %v11550_v57 = vld [vmem:[#allocation191_spill] sm:$0xff]  ;;  %v11551_v19 = vld [vmem:[#allocation74_spill] sm:$0xff]  ;;  %v3060_v4 = vadd.f32 %v8737_v1, %v8591_v47 }
 0x555   :  { %4758 = vmatmul.msk.f32.gmra.mxu3 %vm2839_vm11, %v2824_v39  ;;  %4727 = vmatmul.msk.f32.gmra.mxu1 %vm2839_vm11, %v2793_v18  ;;  %v2435_v5 = vsel %vm2383_vm6, %v2372_v62, %v11549_v40  ;;  %v2359_v39 = vsel %vm2320_vm4, %v11551_v19, %v11550_v57  ;;  %v11552_v18 = vld [vmem:[#allocation324_spill] sm:$0xff]  ;;  %v11561_v47 = vld [vmem:[#allocation474_spill] sm:$0xff]  ;;  %v2486_v62 = vsel %vm2446_vm5, %v2421_v60, %v11569_v56  ;;  %v3249_v57 = vmax.f32 %v3066_v32, 0.0  ;;  %v11571_v19 = vld [vmem:[#allocation267_spill] sm:$0xff] }
 0x556   :  { %4743 = vmatmul.msk.f32.gmra.mxu2 %vm2839_vm11, %v2809_v21  ;;  %v2469_v21 = vsel %vm2446_vm5, %v2406_v15, %v11552_v18  ;;  %v2500_v0 = vsel %vm2446_vm5, %v2435_v5, %v11553_v17  ;;  %v3247_v52 = vmax.f32 %v3060_v4, 0.0  ;;  %v11570_v15 = vld [vmem:[#allocation343_spill] sm:$0xff]  ;;  %v3245_v5 = vmax.f32 %v3054_v34, 0.0 }
 0x557   :  { %v2534_v11 = vsel %vm2511_vm7, %v2469_v21, %v11558_v6  ;;  %v2565_v22 = vsel %vm2511_vm7, %v2500_v0, %v11559_v23  ;;  %v2501_v40 = vsel %vm2446_vm5, %v2436_v12, %v11570_v15  ;;  %v2422_v18 = vsel %vm2383_vm6, %v2359_v39, %v11571_v19  ;;  %v11572_v21 = vld [vmem:[#allocation405_spill] sm:$0xff]  ;;  %v11573_v0 = vld [vmem:[#allocation418_spill] sm:$0xff]  ;;  %v11578_v34 = vld [vmem:[#allocation63_spill] sm:$0xff] }
 0x558   :  { %v2599_v8 = vsel %vm2576_vm8, %v2534_v11, %v11560_v7  ;;  %v2630_v63 = vsel %vm2576_vm8, %v2565_v22, %v11561_v47  ;;  %v2551_v17 = vsel %vm2511_vm7, %v2486_v62, %v11572_v21  ;;  %v2566_v4 = vsel %vm2511_vm7, %v2501_v40, %v11573_v0  ;;  %v2059_v48 = vpop.permute.xlu2 %2058  ;;  %v11575_v39 = vld [vmem:[#allocation282_spill] sm:$0xff]  ;;  %v11576_v22 = vld [vmem:[#allocation473_spill] sm:$0xff]  ;;  %v11581_v12 = vld [vmem:[#allocation404_spill] sm:$0xff] }
 0x559   :  { %v2664_v2 = vsel %vm2641_vm9, %v2599_v8, %v11565_v31  ;;  %v2695_v24 = vsel %vm2641_vm9, %v2630_v63, %v11566_v27  ;;  %v2616_v25 = vsel %vm2576_vm8, %v2551_v17, %v11574_v50  ;;  %v3309_v9 = vmax.f32 %v3245_v5, %v3247_v52  ;;  %v11577_v8 = vld [vmem:[#allocation38_spill] sm:$0xff]  ;;  %v11582_v62 = vld [vmem:[#allocation208_spill] sm:$0xff]  ;;  %v11584_v19 = vld [vmem:[#allocation465_spill] sm:$0xff] }
 0x55a   :  { %v8717_v51 = vpop.f32.mrf.mxu0  ;;  %v3063_v6 = vadd.f32 %v8737_v1, %v8628_v33  ;;  %v2437_v23 = vsel %vm2383_vm6, %v2374_v58, %v11575_v39  ;;  %v2631_v7 = vsel %vm2576_vm8, %v2566_v4, %v11576_v22  ;;  %v2681_v47 = vsel %vm2641_vm9, %v2616_v25, %v11577_v8  ;;  %v11585_v0 = vld [vmem:[#allocation16_spill] sm:$0xff] }
 0x55b   :  { %v2055_v44 = vpop.permute.xlu1 %2054  ;;  %v2173_v42 = vpop.permute.xlu0 %2172  ;;  %v2696_v32 = vsel %vm2641_vm9, %v2631_v7, %v11578_v34  ;;  %v3069_v33 = vadd.f32 %v8737_v1, %v8717_v51  ;;  %v2487_v16 = vsel %vm2446_vm5, %v2422_v18, %v11579_v35  ;;  %v2746_v29 = vsel %vm2706_vm10, %v2681_v47, %v7892_v55  ;;  %v11586_v25 = vld [vmem:[#allocation44_spill] sm:$0xff]  ;;  %v11590_v35 = vld [vmem:[#allocation119_spill] sm:$0xff] }
 0x55c   :  { %v2791_v46 = vsel %vm2771_vm12, %v2726_v59, %v2173_v42  ;;  %v11567_v42 = vld [vmem:[#allocation209_spill] sm:$0xff]  ;;  %v2760_v53 = vsel %vm2706_vm10, %v2695_v24, %v2055_v44  ;;  %v3269_v60 = vmax.f32 %v3126_v49, 0.0  ;;  %v2761_v28 = vsel %vm2706_vm10, %v2696_v32, %v8725_v3  ;;  %v11588_v34 = vld [vmem:[#allocation72_spill] sm:$0xff] }
 0x55d   :  { %4725 = vmatmul.msk.f32.gmra.mxu0 %vm2839_vm11, %v2791_v46  ;;  %v2729_v45 = vsel %vm2706_vm10, %v2664_v2, %v11567_v42  ;;  %v3248_v2 = vmax.f32 %v3063_v6, 0.0  ;;  %v2552_v56 = vsel %vm2511_vm7, %v2487_v16, %v11581_v12 }
 0x55e   :  { %4744 = vmatmul.msk.f32.gmra.mxu2 %vm2839_vm11, %v2810_v61 }
 0x560   :  { %v2031_v21 = vpop.permute.xlu2 %2030 }
 0x562   :  { %v3071_v59 = vpop.f32.mrf.mxu0 }
 0x563   :  { %v3072_v46 = vadd.f32 %v8737_v1, %v3071_v59  ;;  %v2179_v30 = vpop.permute.xlu1 %2178  ;;  %v2241_v26 = vpop.permute.xlu0 %2240 }
 0x564   :  { %v2794_v61 = vsel %vm2771_vm12, %v2729_v45, %v2179_v30  ;;  %v2825_v38 = vsel %vm2771_vm12, %v2760_v53, %v2241_v26  ;;  %v11580_v45 = vld [vmem:[#allocation357_spill] sm:$0xff]  ;;  %v3246_v53 = vmax.f32 %v3057_v43, 0.0  ;;  %v3250_v30 = vmax.f32 %v3069_v33, 0.0 }
 0x565   :  { %v3251_v44 = vmax.f32 %v3072_v46, 0.0  ;;  %4728 = vmatmul.msk.f32.gmra.mxu1 %vm2839_vm11, %v2794_v61  ;;  %4759 = vmatmul.msk.f32.gmra.mxu3 %vm2839_vm11, %v2825_v38  ;;  %v2502_v52 = vsel %vm2446_vm5, %v2437_v23, %v11580_v45  ;;  %v3129_v38 = vadd.f32 %v8737_v1, %v8765_v54  ;;  %v11595_v45 = vld [vmem:[#allocation394_spill] sm:$0xff] }
 0x566   :  { %v2567_v61 = vsel %vm2511_vm7, %v2502_v52, %v11582_v62  ;;  %v3310_v15 = vmax.f32 %v3246_v53, %v3248_v2  ;;  %v11596_v53 = vld [vmem:[#allocation409_spill] sm:$0xff]  ;;  %v11597_v62 = vld [vmem:[#allocation464_spill] sm:$0xff] }
 0x567   :  { %v8809_v11 = vmax.f32 %v3249_v57, %v3251_v44  ;;  %v11583_v57 = vld [vmem:[#allocation450_spill] sm:$0xff]  ;;  %v2632_v18 = vsel %vm2576_vm8, %v2567_v61, %v11584_v19  ;;  %v3270_v23 = vmax.f32 %v3129_v38, 0.0  ;;  %v11598_v38 = vld [vmem:[#allocation476_spill] sm:$0xff] }
 0x568   :  { %v3131_v63 = vpop.f32.mrf.mxu2  ;;  %v2617_v44 = vsel %vm2576_vm8, %v2552_v56, %v11583_v57 }
 0x569   :  { %v3317_v13 = vmax.f32 %v3309_v9, %v8809_v11  ;;  %v3132_v58 = vadd.f32 %v8737_v1, %v3131_v63  ;;  %v2682_v4 = vsel %vm2641_vm9, %v2617_v44, %v11585_v0  ;;  %v2697_v9 = vsel %vm2641_vm9, %v2632_v18, %v11586_v25  ;;  %v11587_v63 = vld [vmem:[#allocation172_spill] sm:$0xff]  ;;  %v11599_v44 = vld [vmem:[#allocation43_spill] sm:$0xff]  ;;  %v11600_v18 = vld [vmem:[#allocation6_spill] sm:$0xff] }
 0x56a   :  { %v3074_v31 = vpop.f32.mrf.mxu0  ;;  %v2747_v6 = vsel %vm2706_vm10, %v2682_v4, %v7920_v41  ;;  %v2762_v22 = vsel %vm2706_vm10, %v2697_v9, %v2059_v48  ;;  %v2360_v32 = vsel %vm2320_vm4, %v11588_v34, %v11587_v63  ;;  %v11591_v48 = vld [vmem:[#allocation281_spill] sm:$0xff] }
 0x56b   :  { %v3383_v27 = vrot.slane %v3317_v13, 1  ;;  %v3271_v24 = vmax.f32 %v3132_v58, 0.0  ;;  %v3075_v51 = vadd.f32 %v8737_v1, %v3074_v31  ;;  %v2243_v59 = vpop.permute.xlu1 %2242  ;;  %v2213_v42 = vpop.permute.xlu0 %2212  ;;  %v11589_v58 = vld [vmem:[#allocation52_spill] sm:$0xff] }
 0x56c   :  { %v2811_v46 = vsel %vm2771_vm12, %v2746_v29, %v2213_v42  ;;  %v2826_v55 = vsel %vm2771_vm12, %v2761_v28, %v2243_v59  ;;  %v2375_v41 = vsel %vm2320_vm4, %v11590_v35, %v11589_v58  ;;  %v2423_v28 = vsel %vm2383_vm6, %v2360_v32, %v11591_v48  ;;  %v11592_v31 = vld [vmem:[#allocation296_spill] sm:$0xff] }
 0x56d   :  { %v3411_v26 = vmax.f32 %v3317_v13, %v3383_v27  ;;  %v8836_v37 = vmax.f32 %v3269_v60, %v3271_v24  ;;  %v3252_v3 = vmax.f32 %v3075_v51, 0.0  ;;  %4745 = vmatmul.msk.f32.gmra.mxu2 %vm2839_vm11, %v2811_v46  ;;  %4760 = vmatmul.msk.f32.gmra.mxu3 %vm2839_vm11, %v2826_v55  ;;  %v2438_v2 = vsel %vm2383_vm6, %v2375_v41, %v11592_v31  ;;  %v11593_v27 = vld [vmem:[#allocation341_spill] sm:$0xff]  ;;  %v11594_v51 = vld [vmem:[#allocation356_spill] sm:$0xff] }
 0x56e   :  { %v2488_v24 = vsel %vm2446_vm5, %v2423_v28, %v11593_v27  ;;  %v2503_v59 = vsel %vm2446_vm5, %v2438_v2, %v11594_v51  ;;  %v11605_v41 = vld [vmem:[#allocation408_spill] sm:$0xff]  ;;  %v11606_v28 = vmov 0.0   ;;  %v11607_v2 = vld [vmem:[#allocation463_spill] sm:$0xff]  ;;  %v11608_v51 = vld [vmem:[#allocation42_spill] sm:$0xff] }
 0x56f   :  { %v3439_v40 = vrot.slane %v3411_v26, 2  ;;  %v8846_v5 = vmax.f32 %v3250_v30, %v3252_v3  ;;  %v2553_v52 = vsel %vm2511_vm7, %v2488_v24, %v11595_v45  ;;  %v2568_v46 = vsel %vm2511_vm7, %v2503_v59, %v11596_v53 }
 0x570   :  { %v3134_v17 = vpop.f32.mrf.mxu2  ;;  %v2618_v61 = vsel %vm2576_vm8, %v2553_v52, %v11597_v62  ;;  %v8918_v31 = vrot.slane %v11606_v28, 1 }
 0x571   :  { %v3467_v49 = vmax.f32 %v3411_v26, %v3439_v40  ;;  %v3318_v50 = vmax.f32 %v3310_v15, %v8846_v5  ;;  %v3135_v54 = vadd.f32 %v8737_v1, %v3134_v17  ;;  %v2633_v15 = vsel %vm2576_vm8, %v2568_v46, %v11598_v38  ;;  %v2247_v40 = vpop.permute.xlu2 %2246 }
 0x572   :  { %v3077_v39 = vpop.f32.mrf.mxu0  ;;  %v2683_v19 = vsel %vm2641_vm9, %v2618_v61, %v11599_v44  ;;  %v2698_v17 = vsel %vm2641_vm9, %v2633_v15, %v11600_v18  ;;  %v11611_v15 = vld [vmem:[#allocation295_spill] sm:$0xff]  ;;  %v11612_v18 = vld [vmem:[#allocation346_spill] sm:$0xff] }
 0x573   :  { %v3495_v7 = vrot.slane %v3318_v50, 1  ;;  %v3272_v8 = vmax.f32 %v3135_v54, 0.0  ;;  %v2245_v47 = vpop.permute.xlu1 %2244  ;;  %v2215_v43 = vpop.permute.xlu0 %2214  ;;  %v3621_v16 = vrot.slane %v3467_v49, 1  ;;  %v3649_v55 = vrot.slane %v3467_v49, 2 }
 0x574   :  { %v2812_v33 = vsel %vm2771_vm12, %v2747_v6, %v2215_v43  ;;  %v2827_v13 = vsel %vm2771_vm12, %v2762_v22, %v2245_v47 }
 0x575   :  { %v3523_v29 = vmax.f32 %v3318_v50, %v3495_v7  ;;  %v8869_v60 = vmax.f32 %v3270_v23, %v3272_v8  ;;  %4746 = vmatmul.msk.f32.gmra.mxu2 %vm2839_vm11, %v2812_v33  ;;  %4761 = vmatmul.msk.f32.gmra.mxu3 %vm2839_vm11, %v2827_v13  ;;  %v3817_v3 = vsel %vm149_vm0, %v3467_v49, %v3621_v16  ;;  %v11601_v7 = vld [vmem:[#allocation198_spill] sm:$0xff]  ;;  %v11602_v8 = vld [vmem:[#allocation84_spill] sm:$0xff]  ;;  %v11604_v33 = vld [vmem:[#allocation331_spill] sm:$0xff] }
 0x576   :  { %v2748_v50 = vsel %vm2706_vm10, %v2683_v19, %v2031_v21  ;;  %v3832_v54 = vsel %vm3831_vm13, %v3817_v3, %v3649_v55  ;;  %v2361_v47 = vsel %vm2320_vm4, %v11602_v8, %v11601_v7  ;;  %v11603_v21 = vld [vmem:[#allocation280_spill] sm:$0xff]  ;;  %v11617_v7 = vld [vmem:[#allocation73_spill] sm:$0xff] }
 0x577   :  { %v3551_v42 = vrot.slane %v3523_v29, 2  ;;  %v2424_v34 = vsel %vm2383_vm6, %v2361_v47, %v11603_v21  ;;  %v11609_v3 = vld [vmem:[#allocation220_spill] sm:$0xff] }
 0x578   :  { %v3137_v30 = vpop.f32.mrf.mxu2  ;;  %v2489_v13 = vsel %vm2446_vm5, %v2424_v34, %v11604_v33  ;;  %v11618_v8 = vld [vmem:[#allocation132_spill] sm:$0xff] }
 0x579   :  { %v3579_v12 = vmax.f32 %v3411_v26, %v3551_v42  ;;  %v3593_v56 = vmax.f32 %v3523_v29, %v3551_v42  ;;  %v2554_v16 = vsel %vm2511_vm7, %v2489_v13, %v11605_v41  ;;  %v3078_v29 = vadd.f32 %v8737_v1, %v3077_v39  ;;  %v2219_v46 = vpop.permute.xlu2 %2218 }
 0x57a   :  { %v3080_v57 = vpop.f32.mrf.mxu0  ;;  %v2619_v27 = vsel %vm2576_vm8, %v2554_v16, %v11607_v2  ;;  %v3138_v44 = vadd.f32 %v8737_v1, %v3137_v30  ;;  %v2377_v47 = vsel %vm2320_vm4, %v11618_v8, %v11617_v7  ;;  %v11620_v16 = vld [vmem:[#allocation270_spill] sm:$0xff] }
 0x57b   :  { %v3691_v0 = vrot.slane %v3579_v12, 3  ;;  %v3733_v4 = vrot.slane %v3593_v56, 4  ;;  %v2217_v26 = vpop.permute.xlu1 %2216  ;;  %v2061_v49 = vpop.permute.xlu0 %2060  ;;  %v3761_v9 = vrot.slane %v3593_v56, 5  ;;  %v3789_v43 = vrot.slane %v3593_v56, 6  ;;  %v11610_v12 = vld [vmem:[#allocation118_spill] sm:$0xff] }
 0x57c   :  { %v2763_v25 = vsel %vm2706_vm10, %v2698_v17, %v2061_v49  ;;  %v2813_v23 = vsel %vm2771_vm12, %v2748_v50, %v2217_v26  ;;  %v2684_v59 = vsel %vm2641_vm9, %v2619_v27, %v11608_v51  ;;  %v2376_v56 = vsel %vm2320_vm4, %v11610_v12, %v11609_v3  ;;  %v11614_v50 = vld [vmem:[#allocation475_spill] sm:$0xff] }
 0x57d   :  { %v3847_v6 = vsel %vm3846_vm14, %v3832_v54, %v3691_v0  ;;  %v2828_v22 = vsel %vm2771_vm12, %v2763_v25, %v2247_v40  ;;  %4747 = vmatmul.msk.f32.gmra.mxu2 %vm2839_vm11, %v2813_v23  ;;  %v3253_v62 = vmax.f32 %v3078_v29, 0.0  ;;  %v2439_v40 = vsel %vm2383_vm6, %v2376_v56, %v11611_v15  ;;  %v11616_v23 = vld [vmem:[#allocation82_spill] sm:$0xff] }
 0x57e   :  { %v3861_v63 = vsel %vm3032_vm3, %v3847_v6, %v3733_v4  ;;  %4762 = vmatmul.msk.f32.gmra.mxu3 %vm2839_vm11, %v2828_v22  ;;  %v2504_v17 = vsel %vm2446_vm5, %v2439_v40, %v11612_v18  ;;  %v11613_v4 = vld [vmem:[#allocation421_spill] sm:$0xff]  ;;  %v3081_v54 = vadd.f32 %v8737_v1, %v3080_v57  ;;  %v3273_v21 = vmax.f32 %v3138_v44, 0.0 }
 0x57f   :  { %v3876_v32 = vsel %vm3875_vm15, %v3861_v63, %v3761_v9  ;;  %v2569_v26 = vsel %vm2511_vm7, %v2504_v17, %v11613_v4  ;;  %v11615_v6 = vld [vmem:[#allocation197_spill] sm:$0xff] }
 0x580   :  { %v8911_v58 = vpop.f32.mrf.mxu2  ;;  %v3890_v35 = vsel %vm820_vm2, %v3876_v32, %v3789_v43  ;;  %v2634_v30 = vsel %vm2576_vm8, %v2569_v26, %v11614_v50  ;;  %v2362_v22 = vsel %vm2320_vm4, %v11616_v23, %v11615_v6  ;;  %v11619_v43 = vld [vmem:[#allocation158_spill] sm:$0xff]  ;;  %v11626_v40 = vld [vmem:[#allocation453_spill] sm:$0xff] }
 0x581   :  { %v3918_v48 = vrot.slane %v3890_v35, 7  ;;  %v2699_v63 = vsel %vm2641_vm9, %v2634_v30, %v11619_v43  ;;  %v8964_v34 = vpop.f32.mrf.mxu3  ;;  %v2425_v29 = vsel %vm2383_vm6, %v2362_v22, %v11620_v16  ;;  %v2065_v12 = vpop.permute.xlu2 %2064  ;;  %v3141_v18 = vadd.f32 %v8737_v1, %v8911_v58  ;;  %v11627_v30 = vld [vmem:[#allocation468_spill] sm:$0xff]  ;;  %v11630_v16 = vld [vmem:[#allocation206_spill] sm:$0xff] }
 0x582   :  { %v3083_v24 = vpop.f32.mrf.mxu0  ;;  %v11629_v22 = vld [vmem:[#allocation48_spill] sm:$0xff] }
 0x583   :  { %v3084_v42 = vadd.f32 %v8737_v1, %v3083_v24  ;;  %v2063_v45 = vpop.permute.xlu1 %2062  ;;  %v2033_v52 = vpop.permute.xlu0 %2032  ;;  %v8926_v53 = vsel %vm149_vm0, 0.0, %v3918_v48  ;;  %v11621_v48 = vld [vmem:[#allocation285_spill] sm:$0xff]  ;;  %v3254_v24 = vmax.f32 %v3081_v54, 0.0 }
 0x584   :  { %v2749_v39 = vsel %vm2706_vm10, %v2684_v59, %v2033_v52  ;;  %v3986_v55 = vrot.slane %v8926_v53, 1  ;;  %v2440_v2 = vsel %vm2383_vm6, %v2377_v47, %v11621_v48 }
 0x585   :  { %v3255_v61 = vmax.f32 %v3084_v42, 0.0  ;;  %v2814_v38 = vsel %vm2771_vm12, %v2749_v39, %v2219_v46  ;;  %v11623_v46 = vld [vmem:[#allocation360_spill] sm:$0xff] }
 0x586   :  { %v8939_v19 = vsel %vm478_vm1, %v3986_v55, %v8918_v31  ;;  %4748 = vmatmul.msk.f32.gmra.mxu2 %vm2839_vm11, %v2814_v38  ;;  %v2505_v39 = vsel %vm2446_vm5, %v2440_v2, %v11623_v46  ;;  %v11624_v55 = vld [vmem:[#allocation407_spill] sm:$0xff]  ;;  %v11625_v38 = vld [vmem:[#allocation420_spill] sm:$0xff]  ;;  %v11632_v2 = vld [vmem:[#allocation225_spill] sm:$0xff] }
 0x587   :  { %v8944_v0 = vmax.f32 %v3253_v62, %v3255_v61  ;;  %4016 = vrot.lane.b32.xlu0 %v8939_v19, %s4844_s18  ;;  %v2570_v15 = vsel %vm2511_vm7, %v2505_v39, %v11625_v38 }
 0x588   :  { %v3143_v49 = vpop.f32.mrf.mxu2  ;;  %v2635_v54 = vsel %vm2576_vm8, %v2570_v15, %v11627_v30  ;;  %v11639_v30 = vld [vmem:[#allocation349_spill] sm:$0xff] }
 0x589   :  { %v3325_v25 = vmax.f32 %v8809_v11, %v8944_v0  ;;  %v3144_v9 = vadd.f32 %v8737_v1, %v3143_v49  ;;  %v2764_v11 = vsel %vm2706_vm10, %v2699_v63, %v2063_v45  ;;  %v11622_v45 = vld [vmem:[#allocation345_spill] sm:$0xff]  ;;  %v2700_v58 = vsel %vm2641_vm9, %v2635_v54, %v11629_v22 }
 0x58a   :  { %v3086_v57 = vpop.f32.mrf.mxu0  ;;  %v2490_v52 = vsel %vm2446_vm5, %v2425_v29, %v11622_v45  ;;  %v2765_v63 = vsel %vm2706_vm10, %v2700_v58, %v2065_v12  ;;  %v11631_v29 = vld [vmem:[#allocation130_spill] sm:$0xff]  ;;  %v11636_v12 = vld [vmem:[#allocation203_spill] sm:$0xff] }
 0x58b   :  { %v3384_v32 = vrot.slane %v3325_v25, 1  ;;  %v3275_v33 = vmax.f32 %v3144_v9, 0.0  ;;  %v3087_v13 = vadd.f32 %v8737_v1, %v3086_v57  ;;  %v2035_v35 = vpop.permute.xlu1 %2034  ;;  %v2249_v41 = vpop.permute.xlu0 %2248  ;;  %v2555_v3 = vsel %vm2511_vm7, %v2490_v52, %v11624_v55  ;;  %v11635_v52 = vld [vmem:[#allocation359_spill] sm:$0xff] }
 0x58c   :  { %v2829_v27 = vsel %vm2771_vm12, %v2764_v11, %v2249_v41  ;;  %v2620_v44 = vsel %vm2576_vm8, %v2555_v3, %v11626_v40  ;;  %v2378_v48 = vsel %vm2320_vm4, %v11631_v29, %v11630_v16 }
 0x58d   :  { %v3412_v51 = vmax.f32 %v3325_v25, %v3384_v32  ;;  %v3361_v59 = vmax.f32 %v3273_v21, %v3275_v33  ;;  %v3256_v42 = vmax.f32 %v3087_v13, 0.0  ;;  %4763 = vmatmul.msk.f32.gmra.mxu3 %vm2839_vm11, %v2829_v27  ;;  %v11628_v25 = vld [vmem:[#allocation24_spill] sm:$0xff]  ;;  %v3274_v21 = vmax.f32 %v3141_v18, 0.0  ;;  %v11633_v27 = vld [vmem:[#allocation142_spill] sm:$0xff] }
 0x58e   :  { %v2685_v9 = vsel %vm2641_vm9, %v2620_v44, %v11628_v25  ;;  %v11637_v44 = vld [vmem:[#allocation298_spill] sm:$0xff]  ;;  %v11640_v25 = vld [vmem:[#allocation71_spill] sm:$0xff] }
 0x58f   :  { %v3440_v56 = vrot.slane %v3412_v51, 2  ;;  %v3365_v62 = vmax.f32 %v8836_v37, %v3361_v59  ;;  %v8981_v61 = vmax.f32 %v3254_v24, %v3256_v42  ;;  %v2750_v47 = vsel %vm2706_vm10, %v2685_v9, %v2035_v35  ;;  %v11634_v59 = vld [vmem:[#allocation299_spill] sm:$0xff] }
 0x590   :  { %v3146_v17 = vpop.f32.mrf.mxu2  ;;  %v2379_v24 = vsel %vm2320_vm4, %v11633_v27, %v11632_v2  ;;  %v2441_v42 = vsel %vm2383_vm6, %v2378_v48, %v11634_v59 }
 0x591   :  { %v3468_v4 = vmax.f32 %v3412_v51, %v3440_v56  ;;  %v3389_v26 = vrot.slane %v3365_v62, 1  ;;  %v3326_v49 = vmax.f32 %v8846_v5, %v8981_v61  ;;  %v3147_v50 = vadd.f32 %v8737_v1, %v3146_v17  ;;  %v8996_v6 = vpop.f32.mrf.mxu3  ;;  %v11638_v17 = vld [vmem:[#allocation478_spill] sm:$0xff] }
 0x592   :  { %v3089_v23 = vpop.f32.mrf.mxu0  ;;  %v2506_v46 = vsel %vm2446_vm5, %v2441_v42, %v11635_v52  ;;  %v2442_v18 = vsel %vm2383_vm6, %v2379_v24, %v11637_v44  ;;  %v11643_v24 = vld [vmem:[#allocation3_spill] sm:$0xff] }
 0x593   :  { %v3417_v7 = vmax.f32 %v3365_v62, %v3389_v26  ;;  %v3496_v8 = vrot.slane %v3326_v49, 1  ;;  %v2251_v43 = vpop.permute.xlu1 %2250  ;;  %v2221_v5 = vpop.permute.xlu0 %2220  ;;  %v3276_v57 = vmax.f32 %v3147_v50, 0.0  ;;  %v3622_v11 = vrot.slane %v3468_v4, 1 }
 0x594   :  { %v2815_v32 = vsel %vm2771_vm12, %v2750_v47, %v2221_v5  ;;  %v2830_v41 = vsel %vm2771_vm12, %v2765_v63, %v2251_v43  ;;  %v3650_v39 = vrot.slane %v3468_v4, 2  ;;  %v2571_v56 = vsel %vm2511_vm7, %v2506_v46, %v11636_v12  ;;  %v2067_v62 = vpop.permute.xlu2 %2066  ;;  %v11641_v63 = vld [vmem:[#allocation424_spill] sm:$0xff] }
 0x595   :  { %v3445_v33 = vrot.slane %v3417_v7, 2  ;;  %v3524_v13 = vmax.f32 %v3326_v49, %v3496_v8  ;;  %4749 = vmatmul.msk.f32.gmra.mxu2 %vm2839_vm11, %v2815_v32  ;;  %v3362_v35 = vmax.f32 %v3274_v21, %v3276_v57  ;;  %4764 = vmatmul.msk.f32.gmra.mxu3 %vm2839_vm11, %v2830_v41  ;;  %v3818_v38 = vsel %vm149_vm0, %v3468_v4, %v3622_v11 }
 0x596   :  { %v2636_v26 = vsel %vm2576_vm8, %v2571_v56, %v11638_v17  ;;  %v2507_v54 = vsel %vm2446_vm5, %v2442_v18, %v11639_v30  ;;  %v3833_v47 = vsel %vm3831_vm13, %v3818_v38, %v3650_v39  ;;  %v3090_v2 = vadd.f32 %v8737_v1, %v3089_v23  ;;  %v11646_v56 = vld [vmem:[#allocation92_spill] sm:$0xff] }
 0x597   :  { %v3552_v45 = vrot.slane %v3524_v13, 2  ;;  %v3473_v55 = vmax.f32 %v3417_v7, %v3445_v33  ;;  %v3366_v3 = vmax.f32 %v8869_v60, %v3362_v35  ;;  %v2701_v9 = vsel %vm2641_vm9, %v2636_v26, %v11640_v25  ;;  %v11642_v33 = vld [vmem:[#allocation477_spill] sm:$0xff]  ;;  %v11648_v18 = vld [vmem:[#allocation288_spill] sm:$0xff] }
 0x598   :  { %v2572_v21 = vsel %vm2511_vm7, %v2507_v54, %v11641_v63  ;;  %v11644_v59 = vrot.slane %v11643_v24, 1 }
 0x599   :  { %v3580_v15 = vmax.f32 %v3412_v51, %v3552_v45  ;;  %v3594_v40 = vmax.f32 %v3524_v13, %v3552_v45  ;;  %v3501_v49 = vrot.slane %v3366_v3, 1  ;;  %v2766_v51 = vsel %vm2706_vm10, %v2701_v9, %v2067_v62  ;;  %v9032_v5 = vpop.f32.mrf.mxu3  ;;  %v11647_v62 = vld [vmem:[#allocation141_spill] sm:$0xff] }
 0x59a   :  { %v9024_v50 = vpop.f32.mrf.mxu0  ;;  %v3627_v8 = vrot.slane %v3473_v55, 1  ;;  %v2637_v13 = vsel %vm2576_vm8, %v2572_v21, %v11642_v33  ;;  %v3655_v48 = vrot.slane %v3473_v55, 2  ;;  %v9048_v42 = vsel %vm478_vm1, %v11644_v59, %v8918_v31 }
 0x59b   :  { %v3692_v22 = vrot.slane %v3580_v15, 3  ;;  %v3734_v58 = vrot.slane %v3594_v40, 4  ;;  %v2253_v4 = vpop.permute.xlu0 %2252  ;;  %v3529_v43 = vmax.f32 %v3366_v3, %v3501_v49  ;;  %v3762_v57 = vrot.slane %v3594_v40, 5  ;;  %v2069_v27 = vpop.permute.xlu1 %2068  ;;  %4014 = vrot.lane.b32.xlu2 %v9048_v42, %s4844_s18  ;;  %v11645_v3 = vld [vmem:[#allocation70_spill] sm:$0xff] }
 0x59c   :  { %v2831_v11 = vsel %vm2771_vm12, %v2766_v51, %v2253_v4  ;;  %v3790_v41 = vrot.slane %v3594_v40, 6  ;;  %v3823_v45 = vsel %vm149_vm0, %v3473_v55, %v3627_v8  ;;  %v2702_v12 = vsel %vm2641_vm9, %v2637_v13, %v11645_v3  ;;  %v2255_v55 = vpop.permute.xlu2 %2254 }
 0x59d   :  { %v3848_v32 = vsel %vm3846_vm14, %v3833_v47, %v3692_v22  ;;  %v3557_v29 = vrot.slane %v3529_v43, 2  ;;  %4765 = vmatmul.msk.f32.gmra.mxu3 %vm2839_vm11, %v2831_v11  ;;  %v2380_v38 = vsel %vm2320_vm4, %v11647_v62, %v11646_v56  ;;  %v2767_v44 = vsel %vm2706_vm10, %v2702_v12, %v2069_v27  ;;  %v11649_v47 = vld [vmem:[#allocation363_spill] sm:$0xff] }
 0x59e   :  { %v3862_v16 = vsel %vm3032_vm3, %v3848_v32, %v3734_v58  ;;  %v2443_v17 = vsel %vm2383_vm6, %v2380_v38, %v11648_v18  ;;  %v3838_v26 = vsel %vm3831_vm13, %v3823_v45, %v3655_v48  ;;  %v3257_v9 = vmax.f32 %v3090_v2, 0.0  ;;  %v11650_v32 = vld [vmem:[#allocation423_spill] sm:$0xff]  ;;  %v11652_v48 = vld [vmem:[#allocation56_spill] sm:$0xff] }
 0x59f   :  { %v3877_v35 = vsel %vm3875_vm15, %v3862_v16, %v3762_v57  ;;  %v3585_v52 = vmax.f32 %v3417_v7, %v3557_v29  ;;  %v3599_v46 = vmax.f32 %v3529_v43, %v3557_v29  ;;  %v2832_v8 = vsel %vm2771_vm12, %v2767_v44, %v2255_v55  ;;  %v11651_v16 = vld [vmem:[#allocation2_spill] sm:$0xff] }
 0x5a0   :  { %v3891_v39 = vsel %vm820_vm2, %v3877_v35, %v3790_v41  ;;  %v2508_v43 = vsel %vm2446_vm5, %v2443_v17, %v11649_v47  ;;  %v3093_v2 = vadd.f32 %v8737_v1, %v9024_v50  ;;  %v3192_v47 = vadd.f32 %v8737_v1, %v9032_v5 }
 0x5a1   :  { %v3919_v23 = vrot.slane %v3891_v39, 7  ;;  %v3697_v15 = vrot.slane %v3585_v52, 3  ;;  %v3739_v40 = vrot.slane %v3599_v46, 4  ;;  %v3767_v54 = vrot.slane %v3599_v46, 5  ;;  %v9074_v21 = vpop.f32.mrf.mxu3 }
 0x5a2   :  { %v3095_v7 = vpop.f32.mrf.mxu0  ;;  %v3795_v58 = vrot.slane %v3599_v46, 6  ;;  %v2573_v11 = vsel %vm2511_vm7, %v2508_v43, %v11650_v32  ;;  %v9099_v46 = vpop.f32.mrf.mxu2  ;;  %v3258_v12 = vmax.f32 %v3093_v2, 0.0  ;;  %v3291_v5 = vmax.f32 %v3192_v47, 0.0 }
 0x5a3   :  { %v3096_v49 = vadd.f32 %v8737_v1, %v3095_v7  ;;  %v9065_v30 = vsel %vm149_vm0, 0.0, %v3919_v23  ;;  %v3853_v25 = vsel %vm3846_vm14, %v3838_v26, %v3697_v15  ;;  %v2071_v13 = vpop.permute.xlu0 %2070  ;;  %v2638_v29 = vsel %vm2576_vm8, %v2573_v11, %v11651_v16  ;;  %v2257_v45 = vpop.permute.xlu1 %2256 }
 0x5a4   :  { %v3988_v22 = vrot.slane %v9065_v30, 1  ;;  %v3867_v4 = vsel %vm3032_vm3, %v3853_v25, %v3739_v40  ;;  %v2703_v35 = vsel %vm2641_vm9, %v2638_v29, %v11652_v48  ;;  %v3186_v11 = vadd.f32 %v8737_v1, %v8964_v34 }
 0x5a5   :  { %v3259_v51 = vmax.f32 %v3096_v49, 0.0  ;;  %v3882_v63 = vsel %vm3875_vm15, %v3867_v4, %v3767_v54  ;;  %4766 = vmatmul.msk.f32.gmra.mxu3 %vm2839_vm11, %v2832_v8  ;;  %v2768_v59 = vsel %vm2706_vm10, %v2703_v35, %v2071_v13  ;;  %v3195_v34 = vadd.f32 %v8737_v1, %v9074_v21 }
 0x5a6   :  { %v9079_v57 = vsel %vm478_vm1, %v3988_v22, %v8918_v31  ;;  %v9088_v41 = vsel %vm820_vm2, %v3882_v63, %v3795_v58  ;;  %v2833_v62 = vsel %vm2771_vm12, %v2768_v59, %v2257_v45  ;;  %v3123_v47 = vadd.f32 %v8737_v1, %v8634_v14 }
 0x5a7   :  { %v9083_v33 = vmax.f32 %v3257_v9, %v3259_v51  ;;  %4018 = vrot.lane.b32.xlu1 %v9079_v57, %s4844_s18  ;;  %vm4479_vm4 = vcmask 457728   ;;  %vm4496_vm5 = vcmask 523264   ;;  %vm4516_vm8 = vcmask 588800  }
 0x5a9   :  { %v3333_v27 = vmax.f32 %v8944_v0, %v9083_v33  ;;  %v3197_v0 = vpop.f32.mrf.mxu3 }
 0x5aa   :  { %v3098_v52 = vpop.f32.mrf.mxu0  ;;  %v9108_v7 = vpop.f32.mrf.mxu2  ;;  %v3198_v13 = vadd.f32 %v8737_v1, %v3197_v0 }
 0x5ab   :  { %v3385_v39 = vrot.slane %v3333_v27, 1  ;;  %v3099_v3 = vadd.f32 %v8737_v1, %v3098_v52 }
 0x5ac   :  { %v3293_v59 = vmax.f32 %v3198_v13, 0.0 }
 0x5ad   :  { %v3413_v23 = vmax.f32 %v3333_v27, %v3385_v39  ;;  %v3260_v56 = vmax.f32 %v3099_v3, 0.0  ;;  %4767 = vmatmul.msk.f32.gmra.mxu3 %vm2839_vm11, %v2833_v62 }
 0x5af   :  { %v3441_v50 = vrot.slane %v3413_v23, 2  ;;  %v9104_v38 = vmax.f32 %v3258_v12, %v3260_v56  ;;  %v3189_v56 = vadd.f32 %v8737_v1, %v8996_v6 }
 0x5b1   :  { %v3469_v15 = vmax.f32 %v3413_v23, %v3441_v50  ;;  %v3334_v40 = vmax.f32 %v8981_v61, %v9104_v38 }
 0x5b2   :  { %v3101_v49 = vpop.f32.mrf.mxu0  ;;  %v9121_v32 = vpop.f32.mrf.mxu2 }
 0x5b3   :  { %v3497_v44 = vrot.slane %v3334_v40, 1  ;;  %v3623_v55 = vrot.slane %v3469_v15, 1  ;;  %v3651_v26 = vrot.slane %v3469_v15, 2  ;;  %v3102_v21 = vadd.f32 %v8737_v1, %v3101_v49 }
 0x5b5   :  { %v3525_v18 = vmax.f32 %v3334_v40, %v3497_v44  ;;  %4768 = vmatmul.msk.f32.gmra.mxu3 %vm2839_vm11, %v8070_v20  ;;  %v3819_v25 = vsel %vm149_vm0, %v3469_v15, %v3623_v55  ;;  %v3292_v15 = vmax.f32 %v3195_v34, 0.0 }
 0x5b6   :  { %v3834_v61 = vsel %vm3831_vm13, %v3819_v25, %v3651_v26  ;;  %v3290_v26 = vmax.f32 %v3189_v56, 0.0 }
 0x5b7   :  { %v3553_v17 = vrot.slane %v3525_v18, 2 }
 0x5b8   :  { %v3200_v54 = vpop.f32.mrf.mxu3 }
 0x5b9   :  { %v3581_v9 = vmax.f32 %v3413_v23, %v3553_v17  ;;  %v3595_v22 = vmax.f32 %v3525_v18, %v3553_v17  ;;  %v3201_v62 = vadd.f32 %v8737_v1, %v3200_v54 }
 0x5ba   :  { %v3104_v35 = vpop.f32.mrf.mxu0 }
 0x5bb   :  { %v3693_v58 = vrot.slane %v3581_v9, 3  ;;  %v3735_v4 = vrot.slane %v3595_v22, 4  ;;  %v3763_v51 = vrot.slane %v3595_v22, 5  ;;  %v3791_v43 = vrot.slane %v3595_v22, 6 }
 0x5bc   :  { %v3294_v25 = vmax.f32 %v3201_v62, 0.0  ;;  %v3261_v22 = vmax.f32 %v3102_v21, 0.0 }
 0x5bd   :  { %v3849_v8 = vsel %vm3846_vm14, %v3834_v61, %v3693_v58  ;;  %4769 = vmatmul.msk.f32.gmra.mxu3 %vm2839_vm11, %v8080_v10  ;;  %v3289_v10 = vmax.f32 %v3186_v11, 0.0  ;;  %v9154_v58 = vmax.f32 %v3290_v26, %v3292_v15  ;;  %v3156_v26 = vadd.f32 %v8737_v1, %v9121_v32 }
 0x5be   :  { %v3863_v20 = vsel %vm3032_vm3, %v3849_v8, %v3735_v4 }
 0x5bf   :  { %v3878_v63 = vsel %vm3875_vm15, %v3863_v20, %v3763_v51  ;;  %v9132_v39 = vmax.f32 %v3289_v10, %v3291_v5  ;;  %v3279_v32 = vmax.f32 %v3156_v26, 0.0 }
 0x5c0   :  { %v3892_v16 = vsel %vm820_vm2, %v3878_v63, %v3791_v43  ;;  %v9142_v23 = vpop.f32.mrf.mxu2 }
 0x5c1   :  { %v3203_v29 = vpop.f32.mrf.mxu3  ;;  %v3920_v48 = vrot.slane %v3892_v16, 7 }
 0x5c2   :  { %v3204_v2 = vadd.f32 %v8737_v1, %v3203_v29 }
 0x5c3   :  { %v9129_v27 = vsel %vm149_vm0, 0.0, %v3920_v48  ;;  %v3268_v48 = vmax.f32 %v3123_v47, 0.0 }
 0x5c4   :  { %v3295_v45 = vmax.f32 %v3204_v2, 0.0  ;;  %v3990_v52 = vrot.slane %v9129_v27, 1 }
 0x5c6   :  { %v9136_v3 = vmax.f32 %v3293_v59, %v3295_v45  ;;  %v9140_v12 = vsel %vm478_vm1, %v3990_v52, %v8918_v31 }
 0x5c7   :  { %4020 = vrot.lane.b32.xlu2 %v9140_v12, %s4844_s18 }
 0x5c8   :  { %v3343_v50 = vmax.f32 %v9132_v39, %v9136_v3  ;;  %v3161_v43 = vpop.f32.mrf.mxu2 }
 0x5c9   :  { %v3206_v0 = vpop.f32.mrf.mxu3 }
 0x5ca   :  { %v3393_v40 = vrot.slane %v3343_v50, 1  ;;  %v3107_v44 = vpop.f32.mrf.mxu0  ;;  %v3207_v55 = vadd.f32 %v8737_v1, %v3206_v0  ;;  %v3113_v18 = vpop.f32.mrf.mxu1 }
 0x5cb   :  { %v3108_v17 = vadd.f32 %v8737_v1, %v3107_v44 }
 0x5cc   :  { %v3421_v9 = vmax.f32 %v3343_v50, %v3393_v40  ;;  %v3296_v6 = vmax.f32 %v3207_v55, 0.0 }
 0x5cd   :  { %v3263_v54 = vmax.f32 %v3108_v17, 0.0 }
 0x5ce   :  { %v3449_v4 = vrot.slane %v3421_v9, 2  ;;  %v9156_v61 = vmax.f32 %v3294_v25, %v3296_v6 }
 0x5cf   :  { %v9158_v49 = vmax.f32 %v3261_v22, %v3263_v54 }
 0x5d0   :  { %v3477_v51 = vmax.f32 %v3421_v9, %v3449_v4  ;;  %v3344_v8 = vmax.f32 %v9154_v58, %v9156_v61  ;;  %v3150_v4 = vadd.f32 %v8737_v1, %v9099_v46 }
 0x5d1   :  { %v3341_v20 = vmax.f32 %v9083_v33, %v9158_v49  ;;  %v3105_v33 = vadd.f32 %v8737_v1, %v3104_v35 }
 0x5d2   :  { %v3505_v63 = vrot.slane %v3344_v8, 1  ;;  %v3116_v11 = vpop.f32.mrf.mxu1  ;;  %v3631_v16 = vrot.slane %v3477_v51, 1  ;;  %v3659_v59 = vrot.slane %v3477_v51, 2  ;;  %v3277_v46 = vmax.f32 %v3150_v4, 0.0 }
 0x5d3   :  { %v3117_v13 = vadd.f32 %v8737_v1, %v3116_v11  ;;  %v3386_v2 = vrot.slane %v3341_v20, 1 }
 0x5d4   :  { %v3533_v29 = vmax.f32 %v3344_v8, %v3505_v63  ;;  %v3827_v52 = vsel %vm149_vm0, %v3477_v51, %v3631_v16  ;;  %v3162_v51 = vadd.f32 %v8737_v1, %v3161_v43 }
 0x5d5   :  { %v3266_v5 = vmax.f32 %v3117_v13, 0.0  ;;  %v3414_v50 = vmax.f32 %v3341_v20, %v3386_v2  ;;  %v3842_v40 = vsel %vm3831_vm13, %v3827_v52, %v3659_v59  ;;  %v3114_v20 = vadd.f32 %v8737_v1, %v3113_v18 }
 0x5d6   :  { %v3561_v10 = vrot.slane %v3533_v29, 2 }
 0x5d7   :  { %v3346_v45 = vmax.f32 %v3266_v5, %v3268_v48  ;;  %v3442_v6 = vrot.slane %v3414_v50, 2  ;;  %v3265_v52 = vmax.f32 %v3114_v20, 0.0 }
 0x5d8   :  { %v3589_v34 = vmax.f32 %v3421_v9, %v3561_v10  ;;  %v3603_v14 = vmax.f32 %v3533_v29, %v3561_v10  ;;  %v3262_v9 = vmax.f32 %v3105_v33, 0.0  ;;  %v9185_v8 = vpop.f32.mrf.mxu3  ;;  %v3281_v10 = vmax.f32 %v3162_v51, 0.0 }
 0x5d9   :  { %v3358_v56 = vmax.f32 %v3346_v45, %v8869_v60  ;;  %v9169_v62 = vpop.f32.mrf.mxu2  ;;  %v3470_v11 = vmax.f32 %v3414_v50, %v3442_v6  ;;  %v3311_v33 = vmax.f32 %v3277_v46, %v3279_v32  ;;  %v3924_v32 = vrot.slane %v9088_v41, 7 }
 0x5da   :  { %v3701_v21 = vrot.slane %v3589_v34, 3  ;;  %v3743_v0 = vrot.slane %v3603_v14, 4  ;;  %v3110_v15 = vpop.f32.mrf.mxu0  ;;  %v3771_v44 = vrot.slane %v3603_v14, 5  ;;  %v3799_v25 = vrot.slane %v3603_v14, 6 }
 0x5db   :  { %v3111_v17 = vadd.f32 %v8737_v1, %v3110_v15  ;;  %v3500_v5 = vrot.slane %v3358_v56, 1  ;;  %v3624_v18 = vrot.slane %v3470_v11, 1  ;;  %v3153_v15 = vadd.f32 %v8737_v1, %v9108_v7 }
 0x5dc   :  { %v3857_v55 = vsel %vm3846_vm14, %v3842_v40, %v3701_v21  ;;  %v3159_v40 = vadd.f32 %v8737_v1, %v9142_v23  ;;  %v3652_v26 = vrot.slane %v3470_v11, 2 }
 0x5dd   :  { %v3871_v60 = vsel %vm3032_vm3, %v3857_v55, %v3743_v0  ;;  %v3264_v22 = vmax.f32 %v3111_v17, 0.0  ;;  %v3278_v20 = vmax.f32 %v3153_v15, 0.0 }
 0x5de   :  { %v3886_v35 = vsel %vm3875_vm15, %v3871_v60, %v3771_v44 }
 0x5df   :  { %v9180_v54 = vsel %vm820_vm2, %v3886_v35, %v3799_v25  ;;  %v3338_v47 = vmax.f32 %v3262_v9, %v3264_v22 }
 0x5e1   :  { %v3167_v63 = vpop.f32.mrf.mxu2  ;;  %v3342_v13 = vmax.f32 %v9104_v38, %v3338_v47  ;;  %v3350_v16 = vmax.f32 %v3338_v47, %v3346_v45  ;;  %v3528_v38 = vmax.f32 %v3358_v56, %v3500_v5  ;;  %v3820_v56 = vsel %vm149_vm0, %v3470_v11, %v3624_v18 }
 0x5e2   :  { %v3168_v29 = vadd.f32 %v8737_v1, %v3167_v63  ;;  %v3119_v48 = vpop.f32.mrf.mxu1  ;;  %v3280_v63 = vmax.f32 %v3159_v40, 0.0 }
 0x5e3   :  { %v3120_v2 = vadd.f32 %v8737_v1, %v3119_v48  ;;  %v3498_v43 = vrot.slane %v3342_v13, 1  ;;  %v3499_v34 = vrot.slane %v3350_v16, 1  ;;  %v3556_v22 = vrot.slane %v3528_v38, 2 }
 0x5e4   :  { %v3283_v59 = vmax.f32 %v3168_v29, 0.0  ;;  %v3165_v48 = vadd.f32 %v8737_v1, %v9169_v62 }
 0x5e5   :  { %v3267_v14 = vmax.f32 %v3120_v2, 0.0  ;;  %v3526_v21 = vmax.f32 %v3342_v13, %v3498_v43  ;;  %v3527_v25 = vmax.f32 %v3350_v16, %v3499_v34  ;;  %v3835_v16 = vsel %vm3831_vm13, %v3820_v56, %v3652_v26 }
 0x5e6   :  { %v9191_v0 = vmax.f32 %v3281_v10, %v3283_v59 }
 0x5e7   :  { %v3345_v45 = vmax.f32 %v3265_v52, %v3267_v14  ;;  %v3554_v44 = vrot.slane %v3526_v21, 2  ;;  %v3555_v13 = vrot.slane %v3527_v25, 2  ;;  %v3312_v14 = vmax.f32 %v3278_v20, %v3280_v63 }
 0x5e8   :  { %v3319_v55 = vmax.f32 %v3311_v33, %v9191_v0  ;;  %v9198_v17 = vpop.f32.mrf.mxu3 }
 0x5e9   :  { %v3349_v60 = vmax.f32 %v9158_v49, %v3345_v45  ;;  %v3357_v9 = vmax.f32 %v3345_v45, %v8836_v37  ;;  %v3582_v6 = vmax.f32 %v3414_v50, %v3554_v44  ;;  %v3596_v35 = vmax.f32 %v3526_v21, %v3554_v44 }
 0x5ea   :  { %v3390_v7 = vrot.slane %v3319_v55, 1  ;;  %v3598_v50 = vmax.f32 %v3528_v38, %v3556_v22  ;;  %v3597_v33 = vmax.f32 %v3527_v25, %v3555_v13  ;;  %v3282_v44 = vmax.f32 %v3165_v48, 0.0 }
 0x5eb   :  { %v3387_v4 = vrot.slane %v3349_v60, 1  ;;  %v3388_v51 = vrot.slane %v3357_v9, 1  ;;  %v3694_v23 = vrot.slane %v3582_v6, 3  ;;  %v3736_v47 = vrot.slane %v3596_v35, 4 }
 0x5ec   :  { %v3764_v49 = vrot.slane %v3596_v35, 5  ;;  %v9209_v2 = vmax.f32 %v3319_v55, %v3390_v7  ;;  %v3792_v46 = vrot.slane %v3596_v35, 6  ;;  %v3738_v40 = vrot.slane %v3598_v50, 4 }
 0x5ed   :  { %v3850_v37 = vsel %vm3846_vm14, %v3835_v16, %v3694_v23  ;;  %v3415_v29 = vmax.f32 %v3349_v60, %v3387_v4  ;;  %v3416_v11 = vmax.f32 %v3357_v9, %v3388_v51  ;;  %v3766_v35 = vrot.slane %v3598_v50, 5 }
 0x5ee   :  { %v3864_v5 = vsel %vm3032_vm3, %v3850_v37, %v3736_v47  ;;  %v3446_v55 = vrot.slane %v9209_v2, 2  ;;  %v3737_v7 = vrot.slane %v3597_v33, 4  ;;  %v9228_v37 = vld [vmem:[%s9978_s2] ss:$0 sm:$0xff]  ;;  %s4851_s2 = smov 40  }
 0x5ef   :  { %v3879_v10 = vsel %vm3875_vm15, %v3864_v5, %v3764_v49  ;;  %v3443_v43 = vrot.slane %v3415_v29, 2  ;;  %v3444_v59 = vrot.slane %v3416_v11, 2  ;;  %v3584_v18 = vmax.f32 %v3416_v11, %v3556_v22 }
 0x5f0   :  { %v3170_v52 = vpop.f32.mrf.mxu2  ;;  %v3215_v34 = vpop.f32.mrf.mxu3  ;;  %v3583_v15 = vmax.f32 %v3415_v29, %v3555_v13  ;;  %v3893_v62 = vsel %vm820_vm2, %v3879_v10, %v3792_v46  ;;  %v3474_v47 = vmax.f32 %v9209_v2, %v3446_v55  ;;  %v3765_v5 = vrot.slane %v3597_v33, 5 }
 0x5f1   :  { %v3171_v21 = vadd.f32 %v8737_v1, %v3170_v52  ;;  %v3471_v38 = vmax.f32 %v3415_v29, %v3443_v43  ;;  %v3472_v45 = vmax.f32 %v3416_v11, %v3444_v59  ;;  %v3921_v22 = vrot.slane %v3893_v62, 7 }
 0x5f2   :  { %v3695_v1 = vrot.slane %v3583_v15, 3  ;;  %v3696_v4 = vrot.slane %v3584_v18, 3  ;;  %v3216_v29 = vadd.f32 %v9228_v37, %v3215_v34  ;;  %v3794_v59 = vrot.slane %v3598_v50, 6 }
 0x5f3   :  { %v3284_v26 = vmax.f32 %v3171_v21, 0.0  ;;  %v3625_v60 = vrot.slane %v3471_v38, 1  ;;  %v3626_v9 = vrot.slane %v3472_v45, 1  ;;  %v3653_v56 = vrot.slane %v3471_v38, 2 }
 0x5f4   :  { %v3654_v6 = vrot.slane %v3472_v45, 2  ;;  %v9232_v11 = vsel %vm149_vm0, 0.0, %v3921_v22  ;;  %v3210_v52 = vadd.f32 %v9228_v37, %v9185_v8  ;;  %v3299_v62 = vmax.f32 %v3216_v29, 0.0 }
 0x5f5   :  { %v9215_v25 = vmax.f32 %v3282_v44, %v3284_v26  ;;  %v3821_v51 = vsel %vm149_vm0, %v3471_v38, %v3625_v60  ;;  %v3822_v23 = vsel %vm149_vm0, %v3472_v45, %v3626_v9  ;;  %v3992_v18 = vrot.slane %v9232_v11, 1 }
 0x5f6   :  { %v3836_v20 = vsel %vm3831_vm13, %v3821_v51, %v3653_v56  ;;  %v3837_v63 = vsel %vm3831_vm13, %v3822_v23, %v3654_v6  ;;  %v3628_v38 = vrot.slane %v3474_v47, 1  ;;  %v9248_v50 = vsel %vm149_vm0, 0.0, %v3924_v32 }
 0x5f7   :  { %v3320_v13 = vmax.f32 %v3312_v14, %v9215_v25  ;;  %v3851_v16 = vsel %vm3846_vm14, %v3836_v20, %v3695_v1  ;;  %v3852_v49 = vsel %vm3846_vm14, %v3837_v63, %v3696_v4  ;;  %v3793_v14 = vrot.slane %v3597_v33, 6 }
 0x5f8   :  { %v3173_v48 = vpop.f32.mrf.mxu2  ;;  %v3865_v46 = vsel %vm3032_vm3, %v3851_v16, %v3737_v7  ;;  %v3866_v10 = vsel %vm3032_vm3, %v3852_v49, %v3738_v40  ;;  %v3218_v21 = vpop.f32.mrf.mxu3  ;;  %v9243_v44 = vsel %vm478_vm1, %v3992_v18, %v8918_v31  ;;  %v3297_v60 = vmax.f32 %v3210_v52, 0.0 }
 0x5f9   :  { %v3502_v43 = vrot.slane %v3320_v13, 1  ;;  %v3881_v45 = vsel %vm3875_vm15, %v3866_v10, %v3766_v35  ;;  %v3880_v15 = vsel %vm3875_vm15, %v3865_v46, %v3765_v5  ;;  %4022 = vrot.lane.b32.xlu0 %v9243_v44, %s4844_s18  ;;  %v3219_v40 = vadd.f32 %v9228_v37, %v3218_v21 }
 0x5fa   :  { %v3895_v8 = vsel %vm820_vm2, %v3881_v45, %v3794_v59  ;;  %v3894_v26 = vsel %vm820_vm2, %v3880_v15, %v3793_v14  ;;  %v3656_v9 = vrot.slane %v3474_v47, 2  ;;  %v3213_v56 = vadd.f32 %v9228_v37, %v9198_v17 }
 0x5fb   :  { %v3530_v34 = vmax.f32 %v3320_v13, %v3502_v43  ;;  %v3923_v55 = vrot.slane %v3895_v8, 7  ;;  %v3922_v41 = vrot.slane %v3894_v26, 7  ;;  %v3824_v32 = vsel %vm149_vm0, %v3474_v47, %v3628_v38 }
 0x5fc   :  { %v3998_v22 = vrot.slane %v9248_v50, 1  ;;  %v9267_v20 = vmax.f32 %v3297_v60, %v3299_v62  ;;  %v3300_v17 = vmax.f32 %v3219_v40, 0.0  ;;  %v3839_v47 = vsel %vm3831_vm13, %v3824_v32, %v3656_v9 }
 0x5fd   :  { %v3558_v33 = vrot.slane %v3530_v34, 2  ;;  %v9260_v7 = vsel %vm149_vm0, 0.0, %v3923_v55  ;;  %v9265_v4 = vsel %vm149_vm0, 0.0, %v3922_v41  ;;  %v3298_v16 = vmax.f32 %v3213_v56, 0.0 }
 0x5fe   :  { %v3996_v1 = vrot.slane %v9260_v7, 1  ;;  %v3994_v13 = vrot.slane %v9265_v4, 1  ;;  %v9281_v10 = vsel %vm478_vm1, %v3998_v22, %v8918_v31  ;;  %v3351_v43 = vmax.f32 %v9136_v3, %v9267_v20 }
 0x5ff   :  { %v3586_v6 = vmax.f32 %v9209_v2, %v3558_v33  ;;  %v3600_v35 = vmax.f32 %v3530_v34, %v3558_v33  ;;  %v9285_v59 = vmax.f32 %v3298_v16, %v3300_v17  ;;  %v3174_v38 = vadd.f32 %v9228_v37, %v3173_v48 }
 0x600   :  { %v3176_v63 = vpop.f32.mrf.mxu2  ;;  %v9272_v2 = vsel %vm478_vm1, %v3996_v1, %v8918_v31  ;;  %v9291_v52 = vsel %vm478_vm1, %v3994_v13, %v8918_v31  ;;  %v3928_v34 = vrot.slane %v9180_v54, 7  ;;  %v3394_v45 = vrot.slane %v3351_v43, 1 }
 0x601   :  { %v3698_v51 = vrot.slane %v3586_v6, 3  ;;  %v3740_v23 = vrot.slane %v3600_v35, 4  ;;  %v3768_v49 = vrot.slane %v3600_v35, 5  ;;  %4026 = vrot.lane.b32.xlu2 %v9272_v2, %s4844_s18  ;;  %v3796_v5 = vrot.slane %v3600_v35, 6  ;;  %4028 = vrot.lane.b32.xlu0 %v9281_v10, %s4844_s18  ;;  %v3221_v3 = vpop.f32.mrf.mxu3 }
 0x602   :  { %4024 = vrot.lane.b32.xlu1 %v9291_v52, %s4844_s18  ;;  %v3352_v15 = vmax.f32 %v9156_v61, %v9285_v59  ;;  %v3285_v55 = vmax.f32 %v3174_v38, 0.0  ;;  %v9307_v26 = vsel %vm149_vm0, 0.0, %v3928_v34  ;;  %v3422_v48 = vmax.f32 %v3351_v43, %v3394_v45 }
 0x603   :  { %v3854_v29 = vsel %vm3846_vm14, %v3839_v47, %v3698_v51  ;;  %v4006_v41 = vrot.slane %v9307_v26, 1 }
 0x604   :  { %v3868_v46 = vsel %vm3032_vm3, %v3854_v29, %v3740_v23  ;;  %v3506_v60 = vrot.slane %v3352_v15, 1  ;;  %v3450_v32 = vrot.slane %v3422_v48, 2  ;;  %v3222_v29 = vadd.f32 %v9228_v37, %v3221_v3 }
 0x605   :  { %v3883_v14 = vsel %vm3875_vm15, %v3868_v46, %v3768_v49  ;;  %v9320_v47 = vsel %vm478_vm1, %v4006_v41, %v8918_v31  ;;  %v3177_v49 = vadd.f32 %v9228_v37, %v3176_v63 }
 0x606   :  { %v3897_v18 = vsel %vm820_vm2, %v3883_v14, %v3796_v5  ;;  %v3534_v6 = vmax.f32 %v3352_v15, %v3506_v60  ;;  %v3478_v23 = vmax.f32 %v3422_v48, %v3450_v32  ;;  %v3301_v45 = vmax.f32 %v3222_v29, 0.0 }
 0x607   :  { %v3925_v21 = vrot.slane %v3897_v18, 7  ;;  %v3286_v34 = vmax.f32 %v3177_v49, 0.0 }
 0x608   :  { %v3562_v17 = vrot.slane %v3534_v6, 2  ;;  %v3632_v5 = vrot.slane %v3478_v23, 1  ;;  %v3660_v18 = vrot.slane %v3478_v23, 2 }
 0x609   :  { %v3179_v62 = vpop.f32.mrf.mxu2  ;;  %v9302_v8 = vsel %vm149_vm0, 0.0, %v3925_v21 }
 0x60a   :  { %v3180_v33 = vadd.f32 %v9228_v37, %v3179_v62  ;;  %v4000_v40 = vrot.slane %v9302_v8, 1  ;;  %v9329_v63 = vmax.f32 %v3534_v6, %v3562_v17 }
 0x60c   :  { %v3287_v9 = vmax.f32 %v3180_v33, 0.0  ;;  %v9311_v54 = vsel %vm478_vm1, %v4000_v40, %v8918_v31  ;;  %v3828_v33 = vsel %vm149_vm0, %v3478_v23, %v3632_v5  ;;  %v3744_v6 = vrot.slane %v9329_v63, 4 }
 0x60d   :  { %4030 = vrot.lane.b32.xlu1 %v9311_v54, %s4844_s18 }
 0x60e   :  { %v3323_v61 = vmax.f32 %v3285_v55, %v3287_v9 }
 0x610   :  { %v3224_v56 = vpop.f32.mrf.mxu3  ;;  %v3327_v35 = vmax.f32 %v9191_v0, %v3323_v61  ;;  %v3335_v22 = vmax.f32 %v3323_v61, %v9132_v39  ;;  %v3590_v39 = vmax.f32 %v3422_v48, %v3562_v17  ;;  %v3843_v61 = vsel %vm3831_vm13, %v3828_v33, %v3660_v18 }
 0x611   :  { %v3225_v9 = vadd.f32 %v9228_v37, %v3224_v56 }
 0x612   :  { %v3391_v1 = vrot.slane %v3327_v35, 1  ;;  %v3392_v51 = vrot.slane %v3335_v22, 1  ;;  %v3702_v3 = vrot.slane %v3590_v39, 3 }
 0x614   :  { %v3419_v13 = vmax.f32 %v3327_v35, %v3391_v1  ;;  %v3420_v16 = vmax.f32 %v3335_v22, %v3392_v51  ;;  %v3858_v22 = vsel %vm3846_vm14, %v3843_v61, %v3702_v3 }
 0x615   :  { %4036 = vrot.lane.b32.xlu1 %v9320_v47, %s4844_s18 }
 0x616   :  { %v3447_v21 = vrot.slane %v3419_v13, 2  ;;  %v3448_v38 = vrot.slane %v3420_v16, 2 }
 0x618   :  { %v3182_v0 = vpop.f32.mrf.mxu2  ;;  %v3227_v43 = vpop.f32.mrf.mxu3  ;;  %v3475_v48 = vmax.f32 %v3419_v13, %v3447_v21  ;;  %v3476_v60 = vmax.f32 %v3420_v16, %v3448_v38 }
 0x619   :  { %v3183_v46 = vadd.f32 %v9228_v37, %v3182_v0  ;;  %v3228_v14 = vadd.f32 %v9228_v37, %v3227_v43  ;;  %v3302_v0 = vmax.f32 %v3225_v9, 0.0 }
 0x61a   :  { %v3629_v56 = vrot.slane %v3475_v48, 1  ;;  %v3630_v29 = vrot.slane %v3476_v60, 1  ;;  %v3657_v21 = vrot.slane %v3475_v48, 2  ;;  %v3658_v38 = vrot.slane %v3476_v60, 2 }
 0x61b   :  { %v3288_v15 = vmax.f32 %v3183_v46, 0.0  ;;  %v3303_v62 = vmax.f32 %v3228_v14, 0.0  ;;  %v3872_v46 = vsel %vm3032_vm3, %v3858_v22, %v3744_v6 }
 0x61d   :  { %v3324_v40 = vmax.f32 %v3286_v34, %v3288_v15  ;;  %v9331_v55 = vmax.f32 %v3301_v45, %v3303_v62  ;;  %v3825_v34 = vsel %vm149_vm0, %v3475_v48, %v3629_v56  ;;  %v3826_v45 = vsel %vm149_vm0, %v3476_v60, %v3630_v29 }
 0x61f   :  { %v3328_v41 = vmax.f32 %v9215_v25, %v3324_v40  ;;  %v3336_v32 = vmax.f32 %v3324_v40, %v9154_v58  ;;  %v3359_v35 = vmax.f32 %v9267_v20, %v9331_v55  ;;  %v3772_v40 = vrot.slane %v9329_v63, 5 }
 0x620   :  { %v3230_v1 = vpop.f32.mrf.mxu3 }
 0x621   :  { %v3503_v51 = vrot.slane %v3328_v41, 1  ;;  %v3504_v23 = vrot.slane %v3336_v32, 1  ;;  %v3395_v17 = vrot.slane %v3359_v35, 1  ;;  %v3231_v49 = vadd.f32 %v9228_v37, %v3230_v1 }
 0x622   :  { %v3800_v1 = vrot.slane %v9329_v63, 6  ;;  %v3887_v48 = vsel %vm3875_vm15, %v3872_v46, %v3772_v40 }
 0x623   :  { %v3531_v5 = vmax.f32 %v3328_v41, %v3503_v51  ;;  %v3532_v25 = vmax.f32 %v3336_v32, %v3504_v23  ;;  %v3423_v39 = vmax.f32 %v3359_v35, %v3395_v17  ;;  %v3304_v58 = vmax.f32 %v3231_v49, 0.0 }
 0x625   :  { %v3559_v20 = vrot.slane %v3531_v5, 2  ;;  %v3560_v43 = vrot.slane %v3532_v25, 2  ;;  %v3451_v14 = vrot.slane %v3423_v39, 2  ;;  %v9343_v18 = vmax.f32 %v3302_v0, %v3304_v58 }
 0x627   :  { %v3587_v15 = vmax.f32 %v3419_v13, %v3559_v20  ;;  %v3588_v62 = vmax.f32 %v3420_v16, %v3560_v43  ;;  %v3601_v33 = vmax.f32 %v3531_v5, %v3559_v20  ;;  %v3602_v3 = vmax.f32 %v3532_v25, %v3560_v43 }
 0x628   :  { %v3479_v9 = vmax.f32 %v3423_v39, %v3451_v14  ;;  %v3360_v61 = vmax.f32 %v9285_v59, %v9343_v18  ;;  %v3233_v41 = vpop.f32.mrf.mxu3  ;;  %v3840_v13 = vsel %vm3831_vm13, %v3825_v34, %v3657_v21  ;;  %v3841_v16 = vsel %vm3831_vm13, %v3826_v45, %v3658_v38 }
 0x629   :  { %v3699_v32 = vrot.slane %v3587_v15, 3  ;;  %v3700_v35 = vrot.slane %v3588_v62, 3  ;;  %v3741_v6 = vrot.slane %v3601_v33, 4  ;;  %v3742_v22 = vrot.slane %v3602_v3, 4 }
 0x62a   :  { %v3769_v60 = vrot.slane %v3601_v33, 5  ;;  %v3770_v51 = vrot.slane %v3602_v3, 5  ;;  %v3797_v59 = vrot.slane %v3601_v33, 6  ;;  %v3507_v29 = vrot.slane %v3360_v61, 1 }
 0x62b   :  { %v3855_v23 = vsel %vm3846_vm14, %v3840_v13, %v3699_v32  ;;  %v3856_v17 = vsel %vm3846_vm14, %v3841_v16, %v3700_v35  ;;  %v3798_v0 = vrot.slane %v3602_v3, 6  ;;  %v3633_v25 = vrot.slane %v3479_v9, 1 }
 0x62c   :  { %v3869_v49 = vsel %vm3032_vm3, %v3855_v23, %v3741_v6  ;;  %v3870_v56 = vsel %vm3032_vm3, %v3856_v17, %v3742_v22  ;;  %v3535_v58 = vmax.f32 %v3360_v61, %v3507_v29  ;;  %v3901_v20 = vsel %vm820_vm2, %v3887_v48, %v3800_v1 }
 0x62d   :  { %v3884_v63 = vsel %vm3875_vm15, %v3869_v49, %v3769_v60  ;;  %v3885_v5 = vsel %vm3875_vm15, %v3870_v56, %v3770_v51  ;;  %v3661_v45 = vrot.slane %v3479_v9, 2  ;;  %v3829_v15 = vsel %vm149_vm0, %v3479_v9, %v3633_v25 }
 0x62e   :  { %v3898_v46 = vsel %vm820_vm2, %v3884_v63, %v3797_v59  ;;  %v3899_v14 = vsel %vm820_vm2, %v3885_v5, %v3798_v0  ;;  %v3563_v21 = vrot.slane %v3535_v58, 2  ;;  %v3929_v33 = vrot.slane %v3901_v20, 7 }
 0x62f   :  { %v3926_v43 = vrot.slane %v3898_v46, 7  ;;  %v3927_v34 = vrot.slane %v3899_v14, 7  ;;  %v3844_v1 = vsel %vm3831_vm13, %v3829_v15, %v3661_v45  ;;  %v3234_v23 = vadd.f32 %v9228_v37, %v3233_v41 }
 0x630   :  { %v3236_v38 = vpop.f32.mrf.mxu3  ;;  %v3591_v3 = vmax.f32 %v3423_v39, %v3563_v21  ;;  %v3605_v40 = vmax.f32 %v3535_v58, %v3563_v21  ;;  %v9387_v16 = vsel %vm149_vm0, 0.0, %v3929_v33 }
 0x631   :  { %v9365_v62 = vsel %vm149_vm0, 0.0, %v3926_v43  ;;  %v9369_v32 = vsel %vm149_vm0, 0.0, %v3927_v34  ;;  %v4008_v56 = vrot.slane %v9387_v16, 1  ;;  %v3305_v63 = vmax.f32 %v3234_v23, 0.0 }
 0x632   :  { %v4002_v61 = vrot.slane %v9365_v62, 1  ;;  %v4004_v35 = vrot.slane %v9369_v32, 1  ;;  %v3703_v6 = vrot.slane %v3591_v3, 3  ;;  %v3745_v22 = vrot.slane %v3605_v40, 4 }
 0x633   :  { %v3773_v39 = vrot.slane %v3605_v40, 5  ;;  %v3801_v60 = vrot.slane %v3605_v40, 6  ;;  %v9400_v46 = vsel %vm478_vm1, %v4008_v56, %v8918_v31  ;;  %v3237_v20 = vadd.f32 %v9228_v37, %v3236_v38 }
 0x634   :  { %v9375_v9 = vsel %vm478_vm1, %v4002_v61, %v8918_v31  ;;  %v9379_v48 = vsel %vm478_vm1, %v4004_v35, %v8918_v31  ;;  %v3859_v13 = vsel %vm3846_vm14, %v3844_v1, %v3703_v6  ;;  %v9414_v34 = vrot.slane %v11606_v28, 2 }
 0x635   :  { %4032 = vrot.lane.b32.xlu2 %v9375_v9, %s4844_s18  ;;  %4034 = vrot.lane.b32.xlu0 %v9379_v48, %s4844_s18  ;;  %v3873_v51 = vsel %vm3032_vm3, %v3859_v13, %v3745_v22  ;;  %v3306_v33 = vmax.f32 %v3237_v20, 0.0  ;;  %v4061_v22 = vrot.slane %v8926_v53, 2  ;;  %v4063_v56 = vrot.slane %v9065_v30, 2 }
 0x636   :  { %v3888_v17 = vsel %vm3875_vm15, %v3873_v51, %v3773_v39 }
 0x637   :  { %v3902_v29 = vsel %vm820_vm2, %v3888_v17, %v3801_v60  ;;  %v4062_v60 = vsel %vm820_vm2, %v4061_v22, %v9414_v34  ;;  %v4064_v20 = vsel %vm820_vm2, %v4063_v56, %v9414_v34 }
 0x638   :  { %v3239_v59 = vpop.f32.mrf.mxu3  ;;  %v3930_v0 = vrot.slane %v3902_v29, 7 }
 0x639   :  { %v3240_v49 = vadd.f32 %v9228_v37, %v3239_v59 }
 0x63a   :  { %v9396_v25 = vsel %vm149_vm0, 0.0, %v3930_v0 }
 0x63b   :  { %v3307_v5 = vmax.f32 %v3240_v49, 0.0  ;;  %v4010_v41 = vrot.slane %v9396_v25, 1 }
 0x63d   :  { %v3363_v58 = vmax.f32 %v3305_v63, %v3307_v5  ;;  %4038 = vrot.lane.b32.xlu2 %v9400_v46, %s4844_s18  ;;  %v9409_v14 = vsel %vm478_vm1, %v4010_v41, %v8918_v31 }
 0x63e   :  { %4040 = vrot.lane.b32.xlu0 %v9409_v14, %s4844_s18 }
 0x63f   :  { %v3367_v43 = vmax.f32 %v9331_v55, %v3363_v58  ;;  %v11653_v55 = vrot.slane %v11643_v24, 2 }
 0x640   :  { %v3242_v21 = vpop.f32.mrf.mxu3 }
 0x641   :  { %v3396_v45 = vrot.slane %v3367_v43, 1  ;;  %v3243_v15 = vadd.f32 %v9228_v37, %v3242_v21  ;;  %v9421_v38 = vsel %vm820_vm2, %v11653_v55, %v9414_v34 }
 0x643   :  { %v3424_v3 = vmax.f32 %v3367_v43, %v3396_v45  ;;  %v3308_v40 = vmax.f32 %v3243_v15, 0.0 }
 0x645   :  { %v3452_v61 = vrot.slane %v3424_v3, 2  ;;  %v3364_v35 = vmax.f32 %v3306_v33, %v3308_v40  ;;  %4089 = vrot.lane.b32.xlu2 %v9421_v38, %s4846_s0 }
 0x646   :  { %4134 = vrot.lane.b32.xlu0 %v8926_v53, %s4848_s28 }
 0x647   :  { %v3480_v6 = vmax.f32 %v3424_v3, %v3452_v61  ;;  %v3368_v28 = vmax.f32 %v9343_v18, %v3364_v35  ;;  %v4069_v61 = vrot.slane %v9265_v4, 2 }
 0x649   :  { %v3508_v37 = vrot.slane %v3368_v28, 1  ;;  %v3634_v1 = vrot.slane %v3480_v6, 1  ;;  %v3662_v51 = vrot.slane %v3480_v6, 2  ;;  %v4070_v35 = vsel %vm820_vm2, %v4069_v61, %v9414_v34 }
 0x64b   :  { %v3536_v39 = vmax.f32 %v3368_v28, %v3508_v37  ;;  %v3830_v23 = vsel %vm149_vm0, %v3480_v6, %v3634_v1  ;;  %v9500_v6 = vpop.permute.xlu0 %4016  ;;  %v4071_v1 = vrot.slane %v9260_v7, 2 }
 0x64c   :  { %v3845_v29 = vsel %vm3831_vm13, %v3830_v23, %v3662_v51  ;;  %v9536_v23 = vpop.permute.xlu1 %4018 }
 0x64d   :  { %v3564_v13 = vrot.slane %v3536_v39, 2  ;;  %4221 = vrot.lane.b32.xlu2 %v4062_v60, %s4851_s2 }
 0x64e   :  { %4266 = vrot.lane.b32.xlu0 %v9065_v30, %s4852_s20 }
 0x64f   :  { %v3592_v17 = vmax.f32 %v3424_v3, %v3564_v13  ;;  %v3606_v18 = vmax.f32 %v3536_v39, %v3564_v13  ;;  %v4065_v3 = vrot.slane %v9129_v27, 2  ;;  %v4072_v39 = vsel %vm820_vm2, %v4071_v1, %v9414_v34 }
 0x651   :  { %v3704_v59 = vrot.slane %v3592_v17, 3  ;;  %v3746_v49 = vrot.slane %v3606_v18, 4  ;;  %v3774_v0 = vrot.slane %v3606_v18, 5  ;;  %v3802_v5 = vrot.slane %v3606_v18, 6  ;;  %v3967_v18 = vld [vmem:[%s9979_s3 + $0x38] sm:$0xff] }
 0x653   :  { %v3860_v63 = vsel %vm3846_vm14, %v3845_v29, %v3704_v59  ;;  %v3966_v59 = vld [vmem:[%s9979_s3 + $0x30] sm:$0xff]  ;;  %v3965_v29 = vld [vmem:[%s9979_s3 + $0x28] sm:$0xff] }
 0x654   :  { %v3874_v58 = vsel %vm3032_vm3, %v3860_v63, %v3746_v49  ;;  %vm4462_vm3 = vcmask 392192  }
 0x655   :  { %v3889_v41 = vsel %vm3875_vm15, %v3874_v58, %v3774_v0  ;;  %4344 = vrot.lane.b32.xlu2 %v4064_v20, %s4853_s21  ;;  %v4073_v0 = vrot.slane %v9248_v50, 2  ;;  %v3963_v58 = vld [vmem:[%s9979_s3 + $0x18] sm:$0xff] }
 0x656   :  { %v3903_v43 = vsel %vm820_vm2, %v3889_v41, %v3802_v5  ;;  %4091 = vrot.lane.b32.xlu0 %v4062_v60, %s4846_s0  ;;  %v3964_v5 = vld [vmem:[%s9979_s3 + $0x20] sm:$0xff]  ;;  %v3962_v41 = vld [vmem:[%s9979_s3 + $0x10] sm:$0xff] }
 0x657   :  { %v3931_v21 = vrot.slane %v3903_v43, 7  ;;  %v4074_v43 = vsel %vm820_vm2, %v4073_v0, %v9414_v34 }
 0x659   :  { %v9446_v45 = vsel %vm149_vm0, 0.0, %v3931_v21 }
 0x65a   :  { %v4012_v15 = vrot.slane %v9446_v45, 1 }
 0x65c   :  { %v9451_v33 = vsel %vm478_vm1, %v4012_v15, %v8918_v31  ;;  %v4066_v31 = vsel %vm820_vm2, %v4065_v3, %v9414_v34  ;;  %v3961_v15 = vld [vmem:[%s9979_s3 + $0x8] sm:$0xff]  ;;  %vm4445_vm1 = vcmask 326656  }
 0x65d   :  { %4042 = vrot.lane.b32.xlu1 %v9451_v33, %s4844_s18  ;;  %4178 = vrot.lane.b32.xlu2 %v9079_v57, %s4850_s30 }
 0x65e   :  { %4223 = vrot.lane.b32.xlu0 %v4064_v20, %s4851_s2 }
 0x665   :  { %4176 = vrot.lane.b32.xlu1 %v8939_v19, %s4850_s30  ;;  %4307 = vrot.lane.b32.xlu2 %v9140_v12, %s4854_s22  ;;  %v9474_v19 = vpop.permute.xlu2 %4014 }
 0x666   :  { %4346 = vrot.lane.b32.xlu0 %v4066_v31, %s4853_s21 }
 0x66b   :  { %v9507_v37 = vpop.permute.xlu0 %4022 }
 0x66d   :  { %4305 = vrot.lane.b32.xlu1 %v9079_v57, %s4854_s22  ;;  %4138 = vrot.lane.b32.xlu2 %v9129_v27, %s4848_s28  ;;  %v9483_v57 = vpop.permute.xlu2 %4020 }
 0x66e   :  { %4180 = vrot.lane.b32.xlu0 %v9140_v12, %s4850_s30  ;;  %v4067_v12 = vrot.slane %v9232_v11, 2 }
 0x670   :  { %v4068_v40 = vsel %vm820_vm2, %v4067_v12, %v9414_v34 }
 0x673   :  { %v9521_v13 = vpop.permute.xlu0 %4028 }
 0x674   :  { %v9557_v49 = vpop.permute.xlu1 %4024 }
 0x675   :  { %4136 = vrot.lane.b32.xlu1 %v9065_v30, %s4848_s28  ;;  %4270 = vrot.lane.b32.xlu2 %v9232_v11, %s4852_s20  ;;  %v9492_v55 = vpop.permute.xlu2 %4026 }
 0x676   :  { %4309 = vrot.lane.b32.xlu0 %v9243_v44, %s4854_s22 }
 0x67d   :  { %4268 = vrot.lane.b32.xlu1 %v9129_v27, %s4852_s20  ;;  %4095 = vrot.lane.b32.xlu2 %v4066_v31, %s4846_s0 }
 0x67e   :  { %4140 = vrot.lane.b32.xlu0 %v9232_v11, %s4848_s28 }
 0x685   :  { %4093 = vrot.lane.b32.xlu1 %v4064_v20, %s4846_s0  ;;  %4227 = vrot.lane.b32.xlu2 %v4068_v40, %s4851_s2  ;;  %v9579_v20 = vpop.permute.xlu1 %4030 }
 0x686   :  { %4272 = vrot.lane.b32.xlu0 %v9265_v4, %s4852_s20 }
 0x68d   :  { %4225 = vrot.lane.b32.xlu1 %v4066_v31, %s4851_s2  ;;  %4350 = vrot.lane.b32.xlu2 %v4070_v35, %s4853_s21  ;;  %v3960_v31 = vld [vmem:[%s9979_s3] sm:$0xff]  ;;  %v9598_v12 = vpop.permute.xlu1 %4036 }
 0x68e   :  { %4097 = vrot.lane.b32.xlu0 %v4068_v40, %s4846_s0 }
 0x68f   :  { %v9504_v28 = vpop.permute.xlu2 %4032 }
 0x695   :  { %4348 = vrot.lane.b32.xlu1 %v4068_v40, %s4853_s21  ;;  %4184 = vrot.lane.b32.xlu2 %v9291_v52, %s4850_s30 }
 0x696   :  { %4229 = vrot.lane.b32.xlu0 %v4070_v35, %s4851_s2 }
 0x697   :  { %v9512_v22 = vpop.permute.xlu2 %4038 }
 0x69d   :  { %4182 = vrot.lane.b32.xlu1 %v9243_v44, %s4850_s30  ;;  %4313 = vrot.lane.b32.xlu2 %v9272_v2, %s4854_s22 }
 0x69e   :  { %4352 = vrot.lane.b32.xlu0 %v4072_v39, %s4853_s21 }
 0x69f   :  { %v9524_v60 = vpop.permute.xlu2 %4089 }
 0x6a5   :  { %4311 = vrot.lane.b32.xlu1 %v9291_v52, %s4854_s22  ;;  %4144 = vrot.lane.b32.xlu2 %v9260_v7, %s4848_s28 }
 0x6a6   :  { %4186 = vrot.lane.b32.xlu0 %v9272_v2, %s4850_s30  ;;  %v3968_v2 = vld [vmem:[%s9979_s3 + $0x40] sm:$0xff] }
 0x6a7   :  { %v9532_v44 = vpop.permute.xlu2 %4221  ;;  %v9534_v51 = vpop.permute.xlu0 %4034  ;;  %4572 = vmatpush.msrb.mxu1 %v3968_v2 }
 0x6a9   :  { %4573 = vmatpush.msrb.mxu1 %v3967_v18  ;;  %v4383_v18 = vsel %vm2383_vm6, %v11643_v24, %v9474_v19 }
 0x6ab   :  { %4574 = vmatpush.msrb.mxu1 %v3966_v59 }
 0x6ad   :  { %4142 = vrot.lane.b32.xlu1 %v9265_v4, %s4848_s28  ;;  %4276 = vrot.lane.b32.xlu2 %v9248_v50, %s4852_s20 }
 0x6ae   :  { %4315 = vrot.lane.b32.xlu0 %v9281_v10, %s4854_s22  ;;  %4575 = vmatpush.msrb.mxu1 %v3965_v29 }
 0x6af   :  { %v9544_v52 = vpop.permute.xlu2 %4344 }
 0x6b0   :  { %v9546_v17 = vpop.permute.xlu0 %4040  ;;  %4576 = vmatpush.msrb.mxu1 %v3964_v5 }
 0x6b2   :  { %4577 = vmatpush.msrb.mxu1 %v3963_v58 }
 0x6b4   :  { %4578 = vmatpush.msrb.mxu1 %v3962_v41 }
 0x6b5   :  { %4274 = vrot.lane.b32.xlu1 %v9260_v7, %s4852_s20  ;;  %4101 = vrot.lane.b32.xlu2 %v4072_v39, %s4846_s0 }
 0x6b6   :  { %4146 = vrot.lane.b32.xlu0 %v9248_v50, %s4848_s28  ;;  %4579 = vmatpush.msrb.mxu1 %v3961_v15 }
 0x6b7   :  { %v9564_v56 = vpop.permute.xlu2 %4178 }
 0x6b8   :  { %v4135_v63 = vpop.permute.xlu0 %4134  ;;  %4580 = vmatpush.msrb.mxu1 %v3960_v31 }
 0x6bd   :  { %4099 = vrot.lane.b32.xlu1 %v4070_v35, %s4846_s0  ;;  %4233 = vrot.lane.b32.xlu2 %v4074_v43, %s4851_s2 }
 0x6be   :  { %4278 = vrot.lane.b32.xlu0 %v11643_v24, %s4852_s20 }
 0x6bf   :  { %v9587_v21 = vpop.permute.xlu2 %4307 }
 0x6c0   :  { %v4267_v3 = vpop.permute.xlu0 %4266 }
 0x6c5   :  { %4231 = vrot.lane.b32.xlu1 %v4072_v39, %s4851_s2  ;;  %4356 = vrot.lane.b32.xlu2 %v9421_v38, %s4853_s21  ;;  %v4075_v39 = vrot.slane %v9302_v8, 2 }
 0x6c6   :  { %4103 = vrot.lane.b32.xlu0 %v4074_v43, %s4846_s0 }
 0x6c7   :  { %v9601_v40 = vpop.permute.xlu2 %4138  ;;  %v4076_v59 = vsel %vm820_vm2, %v4075_v39, %v9414_v34 }
 0x6c8   :  { %v4092_v61 = vpop.permute.xlu0 %4091 }
 0x6cd   :  { %4354 = vrot.lane.b32.xlu1 %v4074_v43, %s4853_s21  ;;  %4235 = vrot.lane.b32.xlu2 %v9421_v38, %s4851_s2  ;;  %v9623_v38 = vsel %vm2511_vm7, %v4383_v18, %v9524_v60 }
 0x6ce   :  { %4148 = vrot.lane.b32.xlu0 %v9302_v8, %s4848_s28  ;;  %v4413_v0 = vsel %vm2641_vm9, %v9623_v38, %v4135_v63 }
 0x6cf   :  { %v9606_v35 = vpop.permute.xlu1 %4042  ;;  %v9610_v1 = vpop.permute.xlu2 %4270 }
 0x6d0   :  { %v4224_v2 = vpop.permute.xlu0 %4223 }
 0x6d5   :  { %4188 = vrot.lane.b32.xlu1 %v9281_v10, %s4850_s30  ;;  %4237 = vrot.lane.b32.xlu2 %v4076_v59, %s4851_s2  ;;  %v4077_v10 = vrot.slane %v9365_v62, 2 }
 0x6d6   :  { %4280 = vrot.lane.b32.xlu0 %v9365_v62, %s4852_s20 }
 0x6d7   :  { %v4177_v29 = vpop.permute.xlu1 %4176  ;;  %v9629_v24 = vpop.permute.xlu2 %4095  ;;  %v9637_v60 = vsel %vm820_vm2, %v4077_v10, %v9414_v34 }
 0x6d8   :  { %v4429_v19 = vsel %vm2771_vm12, %v4413_v0, %v4177_v29  ;;  %v4347_v5 = vpop.permute.xlu0 %4346 }
 0x6d9   :  { %v4446_v58 = vsel %vm4445_vm1, %v4429_v19, %v9532_v44 }
 0x6da   :  { %v4463_v41 = vsel %vm4462_vm3, %v4446_v58, %v4267_v3  ;;  %v4384_v3 = vsel %vm2383_vm6, %v8926_v53, %v9500_v6 }
 0x6db   :  { %v4399_v18 = vsel %vm2511_vm7, %v4384_v3, %v4092_v61 }
 0x6dd   :  { %4317 = vrot.lane.b32.xlu1 %v9048_v42, %s4854_s22  ;;  %4358 = vrot.lane.b32.xlu2 %v9637_v60, %s4853_s21 }
 0x6de   :  { %4105 = vrot.lane.b32.xlu0 %v4076_v59, %s4846_s0 }
 0x6df   :  { %v4306_v63 = vpop.permute.xlu1 %4305  ;;  %v9645_v44 = vpop.permute.xlu2 %4227 }
 0x6e0   :  { %v4480_v43 = vsel %vm4479_vm4, %v4463_v41, %v4306_v63  ;;  %v4181_v31 = vpop.permute.xlu0 %4180 }
 0x6e1   :  { %v4497_v15 = vsel %vm4496_vm5, %v4480_v43, %v9544_v52 }
 0x6e2   :  { %4770 = vmatmul.msk.f32.vlgmr.msrb.gmra.mxu1 %vm4516_vm8, %v4497_v15 }
 0x6e5   :  { %4190 = vrot.lane.b32.xlu1 %v9048_v42, %s4850_s30  ;;  %4194 = vrot.lane.b32.xlu2 %v9375_v9, %s4850_s30  ;;  %v4079_v42 = vrot.slane %v9369_v32, 2 }
 0x6e6   :  { %4239 = vrot.lane.b32.xlu0 %v9637_v60, %s4851_s2 }
 0x6e7   :  { %v4137_v39 = vpop.permute.xlu1 %4136  ;;  %v9662_v59 = vpop.permute.xlu2 %4350  ;;  %v4080_v53 = vsel %vm820_vm2, %v4079_v42, %v9414_v34 }
 0x6e8   :  { %v4414_v52 = vsel %vm2641_vm9, %v4399_v18, %v4137_v39  ;;  %v4310_v29 = vpop.permute.xlu0 %4309  ;;  %v4081_v18 = vrot.slane %v9307_v26, 2 }
 0x6e9   :  { %v4430_v0 = vsel %vm2771_vm12, %v4414_v52, %v9564_v56 }
 0x6ea   :  { %v4447_v61 = vsel %vm4445_vm1, %v4430_v0, %v4224_v2 }
 0x6ed   :  { %4192 = vrot.lane.b32.xlu1 %v9311_v54, %s4850_s30  ;;  %4321 = vrot.lane.b32.xlu2 %v9379_v48, %s4854_s22 }
 0x6ee   :  { %4360 = vrot.lane.b32.xlu0 %v4080_v53, %s4853_s21 }
 0x6ef   :  { %v4269_v6 = vpop.permute.xlu1 %4268  ;;  %v4185_v54 = vpop.permute.xlu2 %4184 }
 0x6f0   :  { %v4464_v19 = vsel %vm4462_vm3, %v4447_v61, %v4269_v6  ;;  %v4141_v56 = vpop.permute.xlu0 %4140 }
 0x6f1   :  { %v4481_v10 = vsel %vm4479_vm4, %v4464_v19, %v9587_v21  ;;  %v4385_v21 = vsel %vm2383_vm6, %v9065_v30, %v9536_v23  ;;  %v4083_v19 = vrot.slane %v9387_v16, 2 }
 0x6f2   :  { %v4498_v58 = vsel %vm4496_vm5, %v4481_v10, %v4347_v5 }
 0x6f3   :  { %4771 = vmatmul.msk.f32.gmra.mxu1 %vm4516_vm8, %v4498_v58 }
 0x6f5   :  { %4319 = vrot.lane.b32.xlu1 %v9375_v9, %s4854_s22  ;;  %4152 = vrot.lane.b32.xlu2 %v9369_v32, %s4848_s28 }
 0x6f6   :  { %4196 = vrot.lane.b32.xlu0 %v9379_v48, %s4850_s30 }
 0x6f7   :  { %v4094_v2 = vpop.permute.xlu1 %4093  ;;  %v4314_v9 = vpop.permute.xlu2 %4313 }
 0x6f8   :  { %v4400_v63 = vsel %vm2511_vm7, %v4385_v21, %v4094_v2  ;;  %v4273_v5 = vpop.permute.xlu0 %4272 }
 0x6f9   :  { %v4415_v41 = vsel %vm2641_vm9, %v4400_v63, %v9601_v40 }
 0x6fa   :  { %v4431_v48 = vsel %vm2771_vm12, %v4415_v41, %v4181_v31 }
 0x6fd   :  { %4150 = vrot.lane.b32.xlu1 %v9365_v62, %s4848_s28  ;;  %4284 = vrot.lane.b32.xlu2 %v9307_v26, %s4852_s20 }
 0x6fe   :  { %4323 = vrot.lane.b32.xlu0 %v9320_v47, %s4854_s22 }
 0x6ff   :  { %v4226_v43 = vpop.permute.xlu1 %4225  ;;  %v4145_v39 = vpop.permute.xlu2 %4144 }
 0x700   :  { %v4448_v30 = vsel %vm4445_vm1, %v4431_v48, %v4226_v43  ;;  %v4098_v23 = vpop.permute.xlu0 %4097  ;;  %v4085_v43 = vrot.slane %v9396_v25, 2 }
 0x701   :  { %v4465_v15 = vsel %vm4462_vm3, %v4448_v30, %v9610_v1  ;;  %v4082_v1 = vsel %vm820_vm2, %v4081_v18, %v9414_v34 }
 0x702   :  { %v4482_v3 = vsel %vm4479_vm4, %v4465_v15, %v4310_v29  ;;  %v4386_v29 = vsel %vm2383_vm6, %v9129_v27, %v9483_v57  ;;  %v9730_v57 = vsel %vm820_vm2, %v4083_v19, %v9414_v34 }
 0x703   :  { %v4401_v42 = vsel %vm2511_vm7, %v4386_v29, %v9629_v24 }
 0x704   :  { %v4416_v6 = vsel %vm2641_vm9, %v4401_v42, %v4141_v56 }
 0x705   :  { %4282 = vrot.lane.b32.xlu1 %v9369_v32, %s4852_s20  ;;  %4109 = vrot.lane.b32.xlu2 %v4080_v53, %s4846_s0 }
 0x706   :  { %4154 = vrot.lane.b32.xlu0 %v9307_v26, %s4848_s28 }
 0x707   :  { %v4349_v40 = vpop.permute.xlu1 %4348 }
 0x708   :  { %v4499_v31 = vsel %vm4496_vm5, %v4482_v3, %v4349_v40  ;;  %v4230_v52 = vpop.permute.xlu0 %4229 }
 0x709   :  { %4772 = vmatmul.msk.f32.gmra.mxu1 %vm4516_vm8, %v4499_v31 }
 0x70d   :  { %4107 = vrot.lane.b32.xlu1 %v9637_v60, %s4846_s0  ;;  %4243 = vrot.lane.b32.xlu2 %v4082_v1, %s4851_s2  ;;  %v4277_v60 = vpop.permute.xlu2 %4276 }
 0x70e   :  { %4286 = vrot.lane.b32.xlu0 %v9387_v16, %s4852_s20 }
 0x70f   :  { %v4183_v0 = vpop.permute.xlu1 %4182 }
 0x710   :  { %v4432_v61 = vsel %vm2771_vm12, %v4416_v6, %v4183_v0  ;;  %v4353_v10 = vpop.permute.xlu0 %4352 }
 0x711   :  { %v4449_v27 = vsel %vm4445_vm1, %v4432_v61, %v9645_v44  ;;  %v4087_v61 = vrot.slane %v9446_v45, 2 }
 0x712   :  { %v4466_v56 = vsel %vm4462_vm3, %v4449_v27, %v4273_v5  ;;  %v4389_v27 = vsel %vm2383_vm6, %v9260_v7, %v9492_v55 }
 0x715   :  { %4241 = vrot.lane.b32.xlu1 %v4080_v53, %s4851_s2  ;;  %4364 = vrot.lane.b32.xlu2 %v9730_v57, %s4853_s21  ;;  %v4102_v21 = vpop.permute.xlu2 %4101  ;;  %v4387_v53 = vsel %vm2383_vm6, %v9232_v11, %v9507_v37  ;;  %v4086_v11 = vsel %vm820_vm2, %v4085_v43, %v9414_v34 }
 0x716   :  { %4111 = vrot.lane.b32.xlu0 %v4082_v1, %s4846_s0  ;;  %v4402_v5 = vsel %vm2511_vm7, %v4387_v53, %v4098_v23 }
 0x717   :  { %v4312_v24 = vpop.permute.xlu1 %4311 }
 0x718   :  { %v4483_v58 = vsel %vm4479_vm4, %v4466_v56, %v4312_v24  ;;  %v4187_v44 = vpop.permute.xlu0 %4186  ;;  %v4404_v24 = vsel %vm2511_vm7, %v4389_v27, %v4102_v21 }
 0x719   :  { %v4500_v2 = vsel %vm4496_vm5, %v4483_v58, %v9662_v59 }
 0x71a   :  { %4773 = vmatmul.msk.f32.gmra.mxu1 %vm4516_vm8, %v4500_v2 }
 0x71d   :  { %4362 = vrot.lane.b32.xlu1 %v4082_v1, %s4853_s21  ;;  %4200 = vrot.lane.b32.xlu2 %v9400_v46, %s4850_s30  ;;  %v4234_v30 = vpop.permute.xlu2 %4233 }
 0x71e   :  { %4245 = vrot.lane.b32.xlu0 %v9730_v57, %s4851_s2 }
 0x71f   :  { %v4143_v63 = vpop.permute.xlu1 %4142 }
 0x720   :  { %v4417_v59 = vsel %vm2641_vm9, %v4402_v5, %v4143_v63  ;;  %v4316_v41 = vpop.permute.xlu0 %4315  ;;  %v4390_v5 = vsel %vm2383_vm6, %v9248_v50, %v9521_v13 }
 0x721   :  { %v4433_v48 = vsel %vm2771_vm12, %v4417_v59, %v4185_v54 }
 0x722   :  { %v4450_v23 = vsel %vm4445_vm1, %v4433_v48, %v4230_v52 }
 0x725   :  { %4198 = vrot.lane.b32.xlu1 %v9320_v47, %s4850_s30  ;;  %4327 = vrot.lane.b32.xlu2 %v9409_v14, %s4854_s22  ;;  %v9769_v31 = vpop.permute.xlu2 %4356 }
 0x726   :  { %4366 = vrot.lane.b32.xlu0 %v4086_v11, %s4853_s21 }
 0x727   :  { %v4275_v37 = vpop.permute.xlu1 %4274 }
 0x728   :  { %v4467_v15 = vsel %vm4462_vm3, %v4450_v23, %v4275_v37  ;;  %v4147_v54 = vpop.permute.xlu0 %4146 }
 0x729   :  { %v4484_v40 = vsel %vm4479_vm4, %v4467_v15, %v4314_v9  ;;  %v4388_v9 = vsel %vm2383_vm6, %v9265_v4, %v9557_v49  ;;  %v4419_v58 = vsel %vm2641_vm9, %v4404_v24, %v4147_v54 }
 0x72a   :  { %v4501_v3 = vsel %vm4496_vm5, %v4484_v40, %v4353_v10 }
 0x72b   :  { %4774 = vmatmul.msk.f32.gmra.mxu1 %vm4516_vm8, %v4501_v3 }
 0x72d   :  { %4325 = vrot.lane.b32.xlu1 %v9400_v46, %s4854_s22  ;;  %4158 = vrot.lane.b32.xlu2 %v9396_v25, %s4848_s28  ;;  %v9788_v49 = vpop.permute.xlu2 %4235 }
 0x72e   :  { %4202 = vrot.lane.b32.xlu0 %v9409_v14, %s4850_s30 }
 0x72f   :  { %v4100_v47 = vpop.permute.xlu1 %4099 }
 0x730   :  { %v4403_v18 = vsel %vm2511_vm7, %v4388_v9, %v4100_v47  ;;  %v9777_v52 = vpop.permute.xlu0 %4278 }
 0x731   :  { %v4418_v1 = vsel %vm2641_vm9, %v4403_v18, %v4145_v39 }
 0x732   :  { %v4434_v14 = vsel %vm2771_vm12, %v4418_v1, %v4187_v44 }
 0x735   :  { %4156 = vrot.lane.b32.xlu1 %v9387_v16, %s4848_s28  ;;  %4290 = vrot.lane.b32.xlu2 %v9446_v45, %s4852_s20  ;;  %v4238_v10 = vpop.permute.xlu2 %4237 }
 0x736   :  { %4329 = vrot.lane.b32.xlu0 %v9451_v33, %s4854_s22 }
 0x737   :  { %v4232_v46 = vpop.permute.xlu1 %4231 }
 0x738   :  { %v4451_v4 = vsel %vm4445_vm1, %v4434_v14, %v4232_v46  ;;  %v4104_v29 = vpop.permute.xlu0 %4103 }
 0x739   :  { %v4468_v42 = vsel %vm4462_vm3, %v4451_v4, %v4277_v60  ;;  %v4088_v60 = vsel %vm820_vm2, %v4087_v61, %v9414_v34  ;;  %v4405_v59 = vsel %vm2511_vm7, %v4390_v5, %v4104_v29  ;;  %vm4696_vm2 = vcmask 58368  }
 0x73a   :  { %v4485_v0 = vsel %vm4479_vm4, %v4468_v42, %v4316_v41  ;;  %v4420_v43 = vsel %vm2641_vm9, %v4405_v59, %v8013_v36 }
 0x73d   :  { %4288 = vrot.lane.b32.xlu1 %v9396_v25, %s4852_s20  ;;  %4115 = vrot.lane.b32.xlu2 %v4086_v11, %s4846_s0 }
 0x73e   :  { %4160 = vrot.lane.b32.xlu0 %v9446_v45, %s4848_s28 }
 0x73f   :  { %v4355_v39 = vpop.permute.xlu1 %4354 }
 0x740   :  { %v4502_v6 = vsel %vm4496_vm5, %v4485_v0, %v4355_v39  ;;  %v4149_v19 = vpop.permute.xlu0 %4148 }
 0x741   :  { %4775 = vmatmul.msk.f32.gmra.mxu1 %vm4516_vm8, %v4502_v6  ;;  %v4421_v40 = vsel %vm2641_vm9, %v9623_v38, %v4149_v19  ;;  %v4391_v38 = vsel %vm2383_vm6, %v9302_v8, %v9579_v20 }
 0x745   :  { %4113 = vrot.lane.b32.xlu1 %v9730_v57, %s4846_s0  ;;  %4249 = vrot.lane.b32.xlu2 %v4088_v60, %s4851_s2  ;;  %v4359_v57 = vpop.permute.xlu2 %4358 }
 0x746   :  { %4117 = vrot.lane.b32.xlu0 %v4088_v60, %s4846_s0 }
 0x747   :  { %v4189_v56 = vpop.permute.xlu1 %4188 }
 0x748   :  { %v4435_v2 = vsel %vm2771_vm12, %v4419_v58, %v4189_v56  ;;  %v4281_v44 = vpop.permute.xlu0 %4280 }
 0x749   :  { %v4452_v34 = vsel %vm4445_vm1, %v4435_v2, %v4234_v30  ;;  %v4392_v2 = vsel %vm2383_vm6, %v9365_v62, %v9504_v28  ;;  %v9878_v28 = vld [vmem:[%s9980_s4] ss:$0 sm:$0xff] }
 0x74a   :  { %v4469_v7 = vsel %vm4462_vm3, %v4452_v34, %v9777_v52 }
 0x74d   :  { %4247 = vrot.lane.b32.xlu1 %v4086_v11, %s4851_s2  ;;  %v4195_v48 = vpop.permute.xlu2 %4194 }
 0x74f   :  { %v9814_v53 = vpop.permute.xlu1 %4317 }
 0x750   :  { %v4486_v55 = vsel %vm4479_vm4, %v4469_v7, %v9814_v53  ;;  %v4106_v63 = vpop.permute.xlu0 %4105 }
 0x751   :  { %v4503_v21 = vsel %vm4496_vm5, %v4486_v55, %v9769_v31  ;;  %v4406_v42 = vsel %vm2511_vm7, %v4391_v38, %v4106_v63 }
 0x752   :  { %4776 = vmatmul.msk.f32.gmra.mxu1 %vm4516_vm8, %v4503_v21 }
 0x755   :  { %4368 = vrot.lane.b32.xlu1 %v4088_v60, %s4853_s21  ;;  %v4322_v3 = vpop.permute.xlu2 %4321 }
 0x757   :  { %v9828_v41 = vpop.permute.xlu1 %4190 }
 0x758   :  { %v4436_v30 = vsel %vm2771_vm12, %v4420_v43, %v9828_v41  ;;  %v4240_v37 = vpop.permute.xlu0 %4239 }
 0x759   :  { %v4453_v11 = vsel %vm4445_vm1, %v4436_v30, %v9788_v49 }
 0x75a   :  { %v4470_v50 = vsel %vm4462_vm3, %v4453_v11, %v9777_v52 }
 0x75b   :  { %v4487_v13 = vsel %vm4479_vm4, %v4470_v50, %v9814_v53 }
 0x75c   :  { %v4504_v23 = vsel %vm4496_vm5, %v4487_v13, %v9769_v31 }
 0x75d   :  { %4204 = vrot.lane.b32.xlu1 %v9451_v33, %s4850_s30  ;;  %4777 = vmatmul.msk.f32.gmra.mxu1 %vm4516_vm8, %v4504_v23  ;;  %v4153_v4 = vpop.permute.xlu2 %4152  ;;  %v4393_v23 = vsel %vm2383_vm6, %v9369_v32, %v9534_v51 }
 0x75f   :  { %v4193_v15 = vpop.permute.xlu1 %4192  ;;  %v4582_v8 = vpop.f32.mrf.mxu1 }
 0x760   :  { %v4437_v54 = vsel %vm2771_vm12, %v4421_v40, %v4193_v15  ;;  %v4361_v47 = vpop.permute.xlu0 %4360  ;;  %v4583_v15 = vadd.f32 %v9878_v28, %v4582_v8 }
 0x761   :  { %v4454_v9 = vsel %vm4445_vm1, %v4437_v54, %v4238_v10 }
 0x762   :  { %v4471_v1 = vsel %vm4462_vm3, %v4454_v9, %v4281_v44 }
 0x765   :  { %v4285_v61 = vpop.permute.xlu2 %4284 }
 0x767   :  { %v4320_v18 = vpop.permute.xlu1 %4319 }
 0x768   :  { %v4488_v46 = vsel %vm4479_vm4, %v4471_v1, %v4320_v18  ;;  %v4197_v33 = vpop.permute.xlu0 %4196 }
 0x769   :  { %v4505_v14 = vsel %vm4496_vm5, %v4488_v46, %v4359_v57 }
 0x76a   :  { %4778 = vmatmul.msk.f32.gmra.mxu1 %vm4516_vm8, %v4505_v14  ;;  %v4626_v14 = vmax.f32 %v4583_v15, 0.0 }
 0x76d   :  { %v4110_v58 = vpop.permute.xlu2 %4109 }
 0x76e   :  { %v4408_v54 = vsel %vm2511_vm7, %v4393_v23, %v4110_v58 }
 0x76f   :  { %v4151_v29 = vpop.permute.xlu1 %4150 }
 0x770   :  { %v4422_v39 = vsel %vm2641_vm9, %v4406_v42, %v4151_v29  ;;  %v4324_v0 = vpop.permute.xlu0 %4323  ;;  %v4585_v7 = vpop.f32.mrf.mxu1 }
 0x771   :  { %v4438_v6 = vsel %vm2771_vm12, %v4422_v39, %v4195_v48  ;;  %v4586_v50 = vadd.f32 %v9878_v28, %v4585_v7 }
 0x772   :  { %v4455_v10 = vsel %vm4445_vm1, %v4438_v6, %v4240_v37 }
 0x773   :  { %v4627_v9 = vmax.f32 %v4586_v50, 0.0 }
 0x775   :  { %v4244_v5 = vpop.permute.xlu2 %4243  ;;  %v4638_v38 = vmax.f32 %v4626_v14, %v4627_v9 }
 0x777   :  { %v4283_v19 = vpop.permute.xlu1 %4282 }
 0x778   :  { %v4472_v60 = vsel %vm4462_vm3, %v4455_v10, %v4283_v19  ;;  %v4155_v24 = vpop.permute.xlu0 %4154 }
 0x779   :  { %v4489_v27 = vsel %vm4479_vm4, %v4472_v60, %v4322_v3  ;;  %v4424_v18 = vsel %vm2641_vm9, %v4408_v54, %v4155_v24 }
 0x77a   :  { %v4506_v56 = vsel %vm4496_vm5, %v4489_v27, %v4361_v47 }
 0x77b   :  { %4779 = vmatmul.msk.f32.gmra.mxu1 %vm4516_vm8, %v4506_v56  ;;  %v4394_v56 = vsel %vm2383_vm6, %v9307_v26, %v9598_v12 }
 0x77d   :  { %v4365_v37 = vpop.permute.xlu2 %4364 }
 0x77f   :  { %v4108_v20 = vpop.permute.xlu1 %4107 }
 0x780   :  { %v4407_v44 = vsel %vm2511_vm7, %v4392_v2, %v4108_v20  ;;  %v4287_v34 = vpop.permute.xlu0 %4286 }
 0x781   :  { %v4423_v57 = vsel %vm2641_vm9, %v4407_v44, %v4153_v4 }
 0x782   :  { %v4439_v21 = vsel %vm2771_vm12, %v4423_v57, %v4197_v33 }
 0x785   :  { %v4201_v29 = vpop.permute.xlu2 %4200 }
 0x786   :  { %v4588_v48 = vpop.f32.mrf.mxu1 }
 0x787   :  { %v4242_v55 = vpop.permute.xlu1 %4241  ;;  %v4589_v40 = vadd.f32 %v9878_v28, %v4588_v48 }
 0x788   :  { %v4456_v63 = vsel %vm4445_vm1, %v4439_v21, %v4242_v55  ;;  %v4112_v59 = vpop.permute.xlu0 %4111 }
 0x789   :  { %v4473_v43 = vsel %vm4462_vm3, %v4456_v63, %v4285_v61  ;;  %v4628_v33 = vmax.f32 %v4589_v40, 0.0  ;;  %v4409_v58 = vsel %vm2511_vm7, %v4394_v56, %v4112_v59 }
 0x78a   :  { %v4490_v11 = vsel %vm4479_vm4, %v4473_v43, %v4324_v0 }
 0x78d   :  { %v4328_v20 = vpop.permute.xlu2 %4327 }
 0x78f   :  { %v4363_v30 = vpop.permute.xlu1 %4362 }
 0x790   :  { %v4507_v62 = vsel %vm4496_vm5, %v4490_v11, %v4363_v30  ;;  %v4246_v13 = vpop.permute.xlu0 %4245  ;;  %v4395_v30 = vsel %vm2383_vm6, %v9387_v16, %v9512_v22 }
 0x791   :  { %4780 = vmatmul.msk.f32.gmra.mxu1 %vm4516_vm8, %v4507_v62 }
 0x795   :  { %v4159_v63 = vpop.permute.xlu2 %4158 }
 0x797   :  { %v4199_v3 = vpop.permute.xlu1 %4198  ;;  %v4591_v47 = vpop.f32.mrf.mxu1 }
 0x798   :  { %v4592_v1 = vadd.f32 %v9878_v28, %v4591_v47  ;;  %v4440_v46 = vsel %vm2771_vm12, %v4424_v18, %v4199_v3  ;;  %v4367_v39 = vpop.permute.xlu0 %4366 }
 0x799   :  { %v4457_v32 = vsel %vm4445_vm1, %v4440_v46, %v4244_v5 }
 0x79a   :  { %v4629_v4 = vmax.f32 %v4592_v1, 0.0  ;;  %v4474_v6 = vsel %vm4462_vm3, %v4457_v32, %v4287_v34  ;;  %v4397_v32 = vsel %vm2383_vm6, %v9446_v45, %v9606_v35 }
 0x79c   :  { %v4640_v51 = vmax.f32 %v4628_v33, %v4629_v4 }
 0x79d   :  { %v4291_v62 = vpop.permute.xlu2 %4290 }
 0x79e   :  { %v4642_v42 = vmax.f32 %v4638_v38, %v4640_v51 }
 0x79f   :  { %v4326_v0 = vpop.permute.xlu1 %4325 }
 0x7a0   :  { %v4652_v61 = vrot.slane %v4642_v42, 1  ;;  %v4491_v19 = vsel %vm4479_vm4, %v4474_v6, %v4326_v0  ;;  %v4203_v44 = vpop.permute.xlu0 %4202 }
 0x7a1   :  { %v4508_v10 = vsel %vm4496_vm5, %v4491_v19, %v4365_v37 }
 0x7a2   :  { %v4660_v60 = vmax.f32 %v4642_v42, %v4652_v61  ;;  %4781 = vmatmul.msk.f32.gmra.mxu1 %vm4516_vm8, %v4508_v10 }
 0x7a4   :  { %v4668_v27 = vrot.slane %v4660_v60, 2 }
 0x7a5   :  { %v4116_v1 = vpop.permute.xlu2 %4115 }
 0x7a6   :  { %v4676_v24 = vmax.f32 %v4660_v60, %v4668_v27 }
 0x7a7   :  { %v4157_v8 = vpop.permute.xlu1 %4156 }
 0x7a8   :  { %v4684_v2 = vrot.slane %v4676_v24, 1  ;;  %v4425_v34 = vsel %vm2641_vm9, %v4409_v58, %v4157_v8  ;;  %v4330_v59 = vpop.permute.xlu0 %4329  ;;  %v4594_v43 = vpop.f32.mrf.mxu1 }
 0x7a9   :  { %v4441_v7 = vsel %vm2771_vm12, %v4425_v34, %v4201_v29  ;;  %v4595_v37 = vadd.f32 %v9878_v28, %v4594_v43 }
 0x7aa   :  { %v4692_v57 = vsel %vm149_vm0, %v4676_v24, %v4684_v2  ;;  %v4458_v26 = vsel %vm4445_vm1, %v4441_v7, %v4246_v13 }
 0x7ab   :  { %4697 = vst.msk [vmem:[%s9981_s5] sm:$0x3] %vm4696_vm2, %v4692_v57  ;;  %v4630_v3 = vmax.f32 %v4595_v37, 0.0 }
 0x7ad   :  { %v4250_v60 = vpop.permute.xlu2 %4249 }
 0x7af   :  { %v4289_v55 = vpop.permute.xlu1 %4288 }
 0x7b0   :  { %v4475_v12 = vsel %vm4462_vm3, %v4458_v26, %v4289_v55  ;;  %v4161_v50 = vpop.permute.xlu0 %4160 }
 0x7b1   :  { %v4492_v21 = vsel %vm4479_vm4, %v4475_v12, %v4328_v20 }
 0x7b2   :  { %v4509_v5 = vsel %vm4496_vm5, %v4492_v21, %v4367_v39 }
 0x7b3   :  { %4782 = vmatmul.msk.f32.gmra.mxu1 %vm4516_vm8, %v4509_v5 }
 0x7b7   :  { %v4114_v48 = vpop.permute.xlu1 %4113 }
 0x7b8   :  { %v4410_v11 = vsel %vm2511_vm7, %v4395_v30, %v4114_v48  ;;  %v4118_v46 = vpop.permute.xlu0 %4117 }
 0x7b9   :  { %v4426_v13 = vsel %vm2641_vm9, %v4410_v11, %v4159_v63  ;;  %v4412_v42 = vsel %vm2511_vm7, %v4397_v32, %v4118_v46 }
 0x7ba   :  { %v4442_v54 = vsel %vm2771_vm12, %v4426_v13, %v4203_v44  ;;  %v4428_v0 = vsel %vm2641_vm9, %v4412_v42, %v8013_v36 }
 0x7bb   :  { %v4444_v27 = vsel %vm2771_vm12, %v4428_v0, %v9828_v41 }
 0x7bc   :  { %v4461_v41 = vsel %vm4445_vm1, %v4444_v27, %v9788_v49 }
 0x7bd   :  { %v4478_v20 = vsel %vm4462_vm3, %v4461_v41, %v9777_v52 }
 0x7be   :  { %v4597_v23 = vpop.f32.mrf.mxu1  ;;  %v4495_v58 = vsel %vm4479_vm4, %v4478_v20, %v9814_v53 }
 0x7bf   :  { %v4598_v15 = vadd.f32 %v9878_v28, %v4597_v23  ;;  %v4248_v40 = vpop.permute.xlu1 %4247  ;;  %v4512_v44 = vsel %vm4496_vm5, %v4495_v58, %v9769_v31 }
 0x7c0   :  { %v4459_v9 = vsel %vm4445_vm1, %v4442_v54, %v4248_v40 }
 0x7c1   :  { %v4631_v47 = vmax.f32 %v4598_v15, 0.0  ;;  %v4476_v16 = vsel %vm4462_vm3, %v4459_v9, %v4291_v62 }
 0x7c2   :  { %v4493_v4 = vsel %vm4479_vm4, %v4476_v16, %v4330_v59 }
 0x7c3   :  { %v4644_v18 = vmax.f32 %v4630_v3, %v4631_v47 }
 0x7c5   :  { %v4646_v22 = vmax.f32 %v4640_v51, %v4644_v18  ;;  %v4396_v51 = vsel %vm2383_vm6, %v9396_v25, %v9546_v17 }
 0x7c6   :  { %v4411_v61 = vsel %vm2511_vm7, %v4396_v51, %v4116_v1 }
 0x7c7   :  { %v4653_v14 = vrot.slane %v4646_v22, 1  ;;  %v4369_v33 = vpop.permute.xlu1 %4368  ;;  %v4427_v19 = vsel %vm2641_vm9, %v4411_v61, %v4161_v50 }
 0x7c8   :  { %v4510_v38 = vsel %vm4496_vm5, %v4493_v4, %v4369_v33 }
 0x7c9   :  { %v4661_v29 = vmax.f32 %v4646_v22, %v4653_v14  ;;  %4783 = vmatmul.msk.f32.gmra.mxu1 %vm4516_vm8, %v4510_v38 }
 0x7cb   :  { %v4669_v39 = vrot.slane %v4661_v29, 2 }
 0x7cd   :  { %v4677_v6 = vmax.f32 %v4661_v29, %v4669_v39 }
 0x7cf   :  { %v4685_v10 = vrot.slane %v4677_v6, 1  ;;  %v4205_v45 = vpop.permute.xlu1 %4204  ;;  %v4600_v35 = vpop.f32.mrf.mxu1 }
 0x7d0   :  { %v4443_v24 = vsel %vm2771_vm12, %v4427_v19, %v4205_v45 }
 0x7d1   :  { %v4693_v56 = vsel %vm149_vm0, %v4677_v6, %v4685_v10  ;;  %v4460_v25 = vsel %vm4445_vm1, %v4443_v24, %v4250_v60 }
 0x7d2   :  { %4698 = vst.msk [vmem:[%s9981_s5 + $0x2] sm:$0x3] %vm4696_vm2, %v4693_v56  ;;  %v4477_v36 = vsel %vm4462_vm3, %v4460_v25, %v9777_v52 }
 0x7d3   :  { %v4494_v17 = vsel %vm4479_vm4, %v4477_v36, %v9814_v53 }
 0x7d4   :  { %v4511_v8 = vsel %vm4496_vm5, %v4494_v17, %v9769_v31 }
 0x7d5   :  { %4784 = vmatmul.msk.f32.gmra.mxu1 %vm4516_vm8, %v4511_v8 }
 0x7da   :  { %v4602_v2 = vpop.f32.mrf.mxu1 }
 0x7dd   :  { %4785 = vmatmul.msk.f32.gmra.mxu1 %vm4516_vm8, %v4512_v44 }
 0x7e7   :  { %v4604_v34 = vpop.f32.mrf.mxu1 }
 0x7e8   :  { %v4605_v55 = vadd.f32 %v9878_v28, %v4604_v34 }
 0x7ea   :  { %v4632_v53 = vmax.f32 %v4605_v55, 0.0 }
 0x7f8   :  { %v4607_v57 = vpop.f32.mrf.mxu1 }
 0x7f9   :  { %v4608_v7 = vadd.f32 %v9878_v28, %v4607_v57 }
 0x7fb   :  { %v4633_v52 = vmax.f32 %v4608_v7, 0.0 }
 0x7fd   :  { %v4639_v59 = vmax.f32 %v4632_v53, %v4633_v52 }
 0x80e   :  { %v4610_v49 = vpop.f32.mrf.mxu1 }
 0x80f   :  { %v4611_v26 = vadd.f32 %v9878_v28, %v4610_v49 }
 0x811   :  { %v4634_v63 = vmax.f32 %v4611_v26, 0.0 }
 0x81f   :  { %v4613_v12 = vpop.f32.mrf.mxu1 }
 0x820   :  { %v4614_v21 = vadd.f32 %v9878_v28, %v4613_v12 }
 0x822   :  { %v4635_v5 = vmax.f32 %v4614_v21, 0.0 }
 0x824   :  { %v4641_v31 = vmax.f32 %v4634_v63, %v4635_v5 }
 0x826   :  { %v4643_v43 = vmax.f32 %v4639_v59, %v4641_v31 }
 0x828   :  { %v4654_v48 = vrot.slane %v4643_v43, 1 }
 0x82a   :  { %v4662_v30 = vmax.f32 %v4643_v43, %v4654_v48 }
 0x82c   :  { %v4670_v11 = vrot.slane %v4662_v30, 2 }
 0x82e   :  { %v4678_v62 = vmax.f32 %v4662_v30, %v4670_v11 }
 0x830   :  { %v4686_v37 = vrot.slane %v4678_v62, 1  ;;  %v4616_v13 = vpop.f32.mrf.mxu1 }
 0x831   :  { %v4617_v23 = vadd.f32 %v9878_v28, %v4616_v13 }
 0x832   :  { %v4694_v50 = vsel %vm149_vm0, %v4678_v62, %v4686_v37 }
 0x833   :  { %4699 = vst.msk [vmem:[%s9981_s5 + $0x4] sm:$0x3] %vm4696_vm2, %v4694_v50  ;;  %v4636_v54 = vmax.f32 %v4617_v23, 0.0 }
 0x846   :  { %v4619_v15 = vpop.f32.mrf.mxu1 }
 0x847   :  { %v4620_v40 = vadd.f32 %v9878_v28, %v4619_v15 }
 0x849   :  { %v4637_v3 = vmax.f32 %v4620_v40, 0.0 }
 0x84b   :  { %v4645_v47 = vmax.f32 %v4636_v54, %v4637_v3 }
 0x84d   :  { %v4647_v9 = vmax.f32 %v4641_v31, %v4645_v47 }
 0x84f   :  { %v4655_v18 = vrot.slane %v4647_v9, 1 }
 0x851   :  { %v4663_v16 = vmax.f32 %v4647_v9, %v4655_v18 }
 0x852   :  { %v4622_v22 = vpop.f32.mrf.mxu1 }
 0x853   :  { %v4671_v1 = vrot.slane %v4663_v16, 2 }
 0x855   :  { %v4679_v46 = vmax.f32 %v4663_v16, %v4671_v1 }
 0x857   :  { %v4687_v14 = vrot.slane %v4679_v46, 1 }
 0x859   :  { %v4695_v33 = vsel %vm149_vm0, %v4679_v46, %v4687_v14 }
 0x85a   :  { %4700 = vst.msk [vmem:[%s9981_s5 + $0x6] sm:$0x3] %vm4696_vm2, %v4695_v33  ;;  %v4624_v4 = vpop.f32.mrf.mxu1 }

</bundles_post_ra>
